<compile_context>
chip_gen: v5e
topology: v5e:2x2
jax: 0.10.0
libtpu: 0.0.40
codegen_flags: <defaults>
</compile_context>

<pallas_src>
import jax
import jax.numpy as jnp
from jax import lax
from jax.experimental import pallas as pl
from jax.experimental.pallas import tpu as pltpu


def _leaky(v):
    # mul + max (2 VALU ops/elem) instead of cmp + mul + select.
    return jnp.maximum(v, 0.2 * v)


def _denoise_kernel(im1_ref, w1_ref, b1_ref, w2_ref, b2_ref, w3t_ref, b3_ref,
                    o_ref, hpad_ref):
    # im1_ref : (nb*H*W, 9*Cin)     bf16  im2col of the input (built in wrapper)
    # w1_ref  : (9*Cin, Ch)         bf16
    # w2_ref  : (9*Ch, Ch)          bf16
    # w3t_ref : (Cout, Ch)          f32   transposed 1x1 weights
    # b*_ref  : f32 biases (2-D)
    # o_ref   : (nb, Cout, H*W)     f32   lane-dense, NCHW-ordered output block
    # hpad_ref: (nb, H+2, W+2, Ch)  bf16  padded hidden activations (scratch)
    nb, Hp, Wp, Ch = hpad_ref.shape
    H, W = Hp - 2, Wp - 2
    HW = H * W

    # ---- layer 1: single bf16 MXU matmul (K = 9*Cin), f32 accumulation ----
    h1 = jnp.dot(im1_ref[...], w1_ref[...],
                 preferred_element_type=jnp.float32) + b1_ref[...]
    h1 = _leaky(h1)                                          # (nb*HW, Ch) f32

    # ---- bf16 padded hidden buffer: zero the 1-pixel halo strips only,
    #      then store the interior (single f32->bf16 cast of h1) ----
    hpad_ref[:, 0:1, :, :] = jnp.zeros((nb, 1, Wp, Ch), jnp.bfloat16)
    hpad_ref[:, H + 1:H + 2, :, :] = jnp.zeros((nb, 1, Wp, Ch), jnp.bfloat16)
    hpad_ref[:, 1:H + 1, 0:1, :] = jnp.zeros((nb, H, 1, Ch), jnp.bfloat16)
    hpad_ref[:, 1:H + 1, W + 1:W + 2, :] = jnp.zeros((nb, H, 1, Ch), jnp.bfloat16)
    hpad_ref[:, 1:H + 1, 1:W + 1, :] = (
        h1.astype(jnp.bfloat16).reshape(nb, H, W, Ch))

    # ---- layer 2: 9-tap im2col assembled in registers (no VMEM im2 scratch),
    #      one bf16 matmul (K = 9*Ch), f32 accumulation ----
    taps = [hpad_ref[:, dy:dy + H, dx:dx + W, :].reshape(nb * HW, Ch)
            for dy in range(3) for dx in range(3)]           # tap order (dy, dx)
    lhs2 = jnp.concatenate(taps, axis=-1)                    # (nb*HW, 9*Ch) bf16
    h2 = jnp.dot(lhs2, w2_ref[...],
                 preferred_element_type=jnp.float32) + b2_ref[...]
    h2 = _leaky(h2)                                          # (nb*HW, Ch) f32

    # ---- layer 3 (1x1 conv), f32, computed transposed per batch ----
    # dot_general contracts h2's channel dim directly (no materialized h2.T);
    # the (Cout, HW) store is lane-dense (HW multiple of 128) and already NCHW.
    for b in range(nb):                                      # nb is a small static int
        h2b = h2[b * HW:(b + 1) * HW, :]                     # (HW, Ch)
        out_b = lax.dot_general(
            w3t_ref[...], h2b,
            dimension_numbers=(((1,), (1,)), ((), ())),
            preferred_element_type=jnp.float32)              # (Cout, HW)
        o_ref[b, :, :] = out_b + b3_ref[...]


def _tensorcores_per_chip():
    """2 on v7x (split batch across cores), otherwise 1 (flatten batch into M)."""
    try:
        kind = jax.devices()[0].device_kind.lower()
    except Exception:
        return 1
    return 2 if "v7" in kind else 1


def denoising_network_forward(x_nchw, params):
    """x_nchw: (N, Cin, H, W) float32.  Returns (N, Cin, H, W) float32."""
    w1, b1, w2, b2, w3, b3 = params
    N, Cin, H, W = x_nchw.shape
    Ch = w1.shape[-1]
    Cout = w3.shape[-1]
    HW = H * W

    # Per-generation batch handling: grid=(1,) with M = N*HW on single-TC
    # chips (v5e/v6e); grid=(N/nb,) per-batch on v7x so both cores are busy.
    n_tc = _tensorcores_per_chip()
    grid_n = n_tc if (n_tc > 1 and N % n_tc == 0) else 1
    nb = N // grid_n

    # ---- XLA-side preprocessing: NHWC, zero pad, layer-1 im2col, 2-D weights ----
    x_nhwc = jnp.transpose(x_nchw, (0, 2, 3, 1)).astype(jnp.float32)
    xp = jnp.pad(x_nhwc, ((0, 0), (1, 1), (1, 1), (0, 0)))
    patches = [xp[:, dy:dy + H, dx:dx + W, :]
               for dy in range(3) for dx in range(3)]        # tap order (dy, dx)
    im1 = jnp.concatenate(patches, axis=-1).reshape(N * HW, 9 * Cin)

    im1_bf16 = im1.astype(jnp.bfloat16)
    w1r = w1.reshape(9 * Cin, Ch).astype(jnp.bfloat16)       # matches tap order
    w2r = w2.reshape(9 * Ch, Ch).astype(jnp.bfloat16)
    w3t = jnp.transpose(w3).astype(jnp.float32)              # (Cout, Ch)

    out3d = pl.pallas_call(
        _denoise_kernel,
        out_shape=jax.ShapeDtypeStruct((N, Cout, HW), jnp.float32),
        grid_spec=pltpu.PrefetchScalarGridSpec(
            num_scalar_prefetch=0,
            grid=(grid_n,),
            in_specs=[
                pl.BlockSpec((nb * HW, 9 * Cin), lambda g: (g, 0)),  # im2col1
                pl.BlockSpec((9 * Cin, Ch), lambda g: (0, 0)),       # w1 (resident)
                pl.BlockSpec((1, Ch), lambda g: (0, 0)),             # b1
                pl.BlockSpec((9 * Ch, Ch), lambda g: (0, 0)),        # w2 (resident)
                pl.BlockSpec((1, Ch), lambda g: (0, 0)),             # b2
                pl.BlockSpec((Cout, Ch), lambda g: (0, 0)),          # w3^T
                pl.BlockSpec((Cout, 1), lambda g: (0, 0)),           # b3
            ],
            out_specs=pl.BlockSpec((nb, Cout, HW), lambda g: (g, 0, 0)),
            scratch_shapes=[
                pltpu.VMEM((nb, H + 2, W + 2, Ch), jnp.bfloat16),    # padded hidden
            ],
        ),
        compiler_params=pltpu.CompilerParams(
            dimension_semantics=("parallel",)),               # megacore on v7x
    )(im1_bf16, w1r, b1.reshape(1, Ch), w2r, b2.reshape(1, Ch),
      w3t, b3.reshape(Cout, 1))

    # Output is already channel-major per batch; just split HW back into (H, W).
    return out3d.reshape(N, Cout, H, W)


def reference_forward(x_nchw, params):
    """Pure-JAX reference (true f32 PyTorch forward semantics)."""
    w1, b1, w2, b2, w3, b3 = params
    dn = ('NHWC', 'HWIO', 'NHWC')
    hp = lax.Precision.HIGHEST
    x = jnp.transpose(x_nchw, (0, 2, 3, 1)).astype(jnp.float32)
    h = lax.conv_general_dilated(x, w1, (1, 1), 'SAME',
                                 dimension_numbers=dn, precision=hp) + b1
    h = jnp.where(h >= 0, h, 0.2 * h)
    h = lax.conv_general_dilated(h, w2, (1, 1), 'SAME',
                                 dimension_numbers=dn, precision=hp) + b2
    h = jnp.where(h >= 0, h, 0.2 * h)
    w3_4d = w3.reshape(1, 1, w3.shape[0], w3.shape[1])
    out = lax.conv_general_dilated(h, w3_4d, (1, 1), 'SAME',
                                   dimension_numbers=dn, precision=hp) + b3
    return jnp.transpose(out, (0, 3, 1, 2))


def quantized_reference(x_nchw, params):
    """Pure-JAX reference that mirrors the kernel's quantization exactly:
    bf16 3x3-conv operands, bf16 hidden-activation buffer, f32 accumulation,
    f32 1x1 layer."""
    w1, b1, w2, b2, w3, b3 = params
    N, Cin, H, W = x_nchw.shape
    Ch = w1.shape[-1]
    HW = H * W
    hp = lax.Precision.HIGHEST

    x = jnp.transpose(x_nchw, (0, 2, 3, 1)).astype(jnp.float32)
    xp = jnp.pad(x, ((0, 0), (1, 1), (1, 1), (0, 0)))
    p1 = jnp.concatenate([xp[:, dy:dy + H, dx:dx + W, :]
                          for dy in range(3) for dx in range(3)], axis=-1)
    h1 = jnp.dot(p1.reshape(N * HW, 9 * Cin).astype(jnp.bfloat16),
                 w1.reshape(9 * Cin, Ch).astype(jnp.bfloat16),
                 preferred_element_type=jnp.float32) + b1
    h1 = jnp.maximum(h1, 0.2 * h1)

    h1b = h1.astype(jnp.bfloat16).reshape(N, H, W, Ch)       # bf16 hidden buffer
    h1p = jnp.pad(h1b, ((0, 0), (1, 1), (1, 1), (0, 0)))
    p2 = jnp.concatenate([h1p[:, dy:dy + H, dx:dx + W, :]
                          for dy in range(3) for dx in range(3)], axis=-1)
    h2 = jnp.dot(p2.reshape(N * HW, 9 * Ch),
                 w2.reshape(9 * Ch, Ch).astype(jnp.bfloat16),
                 preferred_element_type=jnp.float32) + b2
    h2 = jnp.maximum(h2, 0.2 * h2)

    out = jnp.dot(h2, w3.astype(jnp.float32),
                  preferred_element_type=jnp.float32, precision=hp) + b3
    return jnp.transpose(out.reshape(N, H, W, -1), (0, 3, 1, 2))


def init_params(key, in_channels, hidden_channels, input_channel_multiplier=1):
    """Deterministic synthetic parameters (HWIO conv weights)."""
    cin = in_channels * input_channel_multiplier
    k1, k2, k3 = jax.random.split(key, 3)
    scale1 = 1.0 / jnp.sqrt(3.0 * 3.0 * cin)
    scale2 = 1.0 / jnp.sqrt(3.0 * 3.0 * hidden_channels)
    scale3 = 1.0 / jnp.sqrt(1.0 * hidden_channels)
    w1 = scale1 * jax.random.normal(k1, (3, 3, cin, hidden_channels), jnp.float32)
    b1 = jnp.linspace(-0.1, 0.1, hidden_channels).astype(jnp.float32)
    w2 = scale2 * jax.random.normal(k2, (3, 3, hidden_channels, hidden_channels), jnp.float32)
    b2 = jnp.linspace(0.1, -0.1, hidden_channels).astype(jnp.float32)
    w3 = scale3 * jax.random.normal(k3, (hidden_channels, in_channels), jnp.float32)
    b3 = jnp.linspace(-0.05, 0.05, in_channels).astype(jnp.float32)
    return (w1, b1, w2, b2, w3, b3)


if __name__ == "__main__":
    # Small shapes consistent with the module: batch=2, in_channels=4,
    # spatial=16x16, hidden_channels=32.
    N, Cin, H, W = 2, 4, 16, 16
    Ch = 32

    key = jax.random.PRNGKey(0)
    kx, kp = jax.random.split(key)
    x = jax.random.normal(kx, (N, Cin, H, W), jnp.float32)
    params = init_params(kp, in_channels=Cin, hidden_channels=Ch)

    out = jax.jit(denoising_network_forward)(x, params)
    out = jax.block_until_ready(out)
    assert out.shape == (N, Cin, H, W), out.shape

    # Tight check: reference applies the SAME bf16 quantization as the kernel
    # (bf16 3x3 operands + bf16 hidden buffer, f32 accumulation), so the only
    # remaining differences are accumulation-order / matmul-pass rounding.
    ref_q = quantized_reference(x, params)
    err_q = float(jnp.max(jnp.abs(out - ref_q)))
    assert err_q < 1e-2, err_q

    # Loose sanity check against the true f32 module semantics (bf16 conv
    # operand quantization is the only intended source of drift).
    ref = reference_forward(x, params)
    err = float(jnp.max(jnp.abs(out - ref)))
    assert err < 2e-1, err

    print("KERNEL_OK")
</pallas_src>

<mosaic_0001>
module attributes {stable_mosaic.version = 11 : i64} {
  func.func @_denoise_kernel(%arg0: i32, %arg1: memref<512x36xbf16, #tpu.memory_space<vmem>>, %arg2: memref<36x32xbf16, #tpu.memory_space<vmem>>, %arg3: memref<1x32xf32, #tpu.memory_space<vmem>>, %arg4: memref<288x32xbf16, #tpu.memory_space<vmem>>, %arg5: memref<1x32xf32, #tpu.memory_space<vmem>>, %arg6: memref<4x32xf32, #tpu.memory_space<vmem>>, %arg7: memref<4x1xf32, #tpu.memory_space<vmem>>, %arg8: memref<2x4x256xf32, #tpu.memory_space<vmem>>, %arg9: memref<2x18x18x32xbf16, #tpu.memory_space<vmem>>) attributes {dimension_semantics = [#tpu.dimension_semantics<parallel>], iteration_bounds = array<i64: 1>, scalar_prefetch = 0 : i64, scratch_operands = 1 : i64, tpu.core_type = #tpu.core_type<tc>, window_params = [{transform_indices = @transform_0, window_bounds = array<i64: 512, 36>}, {pipeline_mode = #tpu.pipeline_mode<synchronous>, transform_indices = @transform_1, window_bounds = array<i64: 36, 32>}, {pipeline_mode = #tpu.pipeline_mode<synchronous>, transform_indices = @transform_2, window_bounds = array<i64: 1, 32>}, {pipeline_mode = #tpu.pipeline_mode<synchronous>, transform_indices = @transform_3, window_bounds = array<i64: 288, 32>}, {pipeline_mode = #tpu.pipeline_mode<synchronous>, transform_indices = @transform_4, window_bounds = array<i64: 1, 32>}, {pipeline_mode = #tpu.pipeline_mode<synchronous>, transform_indices = @transform_5, window_bounds = array<i64: 4, 32>}, {pipeline_mode = #tpu.pipeline_mode<synchronous>, transform_indices = @transform_6, window_bounds = array<i64: 4, 1>}, {transform_indices = @transform_7, window_bounds = array<i64: 2, 4, 256>}]} {
    %c0 = arith.constant 0 : index
    %c0_0 = arith.constant 0 : index
    %0 = vector.load %arg1[%c0, %c0_0] : memref<512x36xbf16, #tpu.memory_space<vmem>>, vector<512x36xbf16>
    %c0_1 = arith.constant 0 : index
    %c0_2 = arith.constant 0 : index
    %1 = vector.load %arg2[%c0_1, %c0_2] : memref<36x32xbf16, #tpu.memory_space<vmem>>, vector<36x32xbf16>
    %cst = arith.constant dense<0.000000e+00> : vector<512x32xf32>
    %2 = tpu.matmul %0, %1, %cst {dimension_numbers = #tpu.dot_dimension_numbers<[1], [0], [0], [1], [0, 0, 1, 1], [], []>} : vector<512x36xbf16>, vector<36x32xbf16>, vector<512x32xf32> -> vector<512x32xf32>
    %c0_3 = arith.constant 0 : index
    %c0_4 = arith.constant 0 : index
    %3 = vector.load %arg3[%c0_3, %c0_4] : memref<1x32xf32, #tpu.memory_space<vmem>>, vector<1x32xf32>
    %4 = vector.broadcast %3 : vector<1x32xf32> to vector<512x32xf32>
    %5 = arith.addf %2, %4 : vector<512x32xf32>
    %cst_5 = arith.constant 2.000000e-01 : f32
    %6 = vector.broadcast %cst_5 : f32 to vector<512x32xf32>
    %7 = arith.mulf %6, %5 : vector<512x32xf32>
    %8 = arith.maximumf %5, %7 : vector<512x32xf32>
    %cst_6 = arith.constant 0.000000e+00 : bf16
    %9 = vector.broadcast %cst_6 : bf16 to vector<2x1x18x32xbf16>
    %c0_7 = arith.constant 0 : index
    %c0_8 = arith.constant 0 : index
    %c0_9 = arith.constant 0 : index
    %c0_10 = arith.constant 0 : index
    %10 = vector.load %arg9[%c0_7, %c0_8, %c0_9, %c0_10] : memref<2x18x18x32xbf16, #tpu.memory_space<vmem>>, vector<2x1x18x32xbf16>
    tpu.vector_store %arg9[%c0_7, %c0_8, %c0_9, %c0_10], %9 {strides = array<i32>} : memref<2x18x18x32xbf16, #tpu.memory_space<vmem>>, vector<2x1x18x32xbf16>,
    %cst_11 = arith.constant 0.000000e+00 : bf16
    %11 = vector.broadcast %cst_11 : bf16 to vector<2x1x18x32xbf16>
    %c0_12 = arith.constant 0 : index
    %c17 = arith.constant 17 : index
    %c0_13 = arith.constant 0 : index
    %c0_14 = arith.constant 0 : index
    %12 = vector.load %arg9[%c0_12, %c17, %c0_13, %c0_14] : memref<2x18x18x32xbf16, #tpu.memory_space<vmem>>, vector<2x1x18x32xbf16>
    tpu.vector_store %arg9[%c0_12, %c17, %c0_13, %c0_14], %11 {strides = array<i32>} : memref<2x18x18x32xbf16, #tpu.memory_space<vmem>>, vector<2x1x18x32xbf16>,
    %cst_15 = arith.constant 0.000000e+00 : bf16
    %13 = vector.broadcast %cst_15 : bf16 to vector<2x16x1x32xbf16>
    %c0_16 = arith.constant 0 : index
    %c1 = arith.constant 1 : index
    %c0_17 = arith.constant 0 : index
    %c0_18 = arith.constant 0 : index
    %14 = vector.load %arg9[%c0_16, %c1, %c0_17, %c0_18] : memref<2x18x18x32xbf16, #tpu.memory_space<vmem>>, vector<2x16x1x32xbf16>
    tpu.vector_store %arg9[%c0_16, %c1, %c0_17, %c0_18], %13 {strides = array<i32>} : memref<2x18x18x32xbf16, #tpu.memory_space<vmem>>, vector<2x16x1x32xbf16>,
    %cst_19 = arith.constant 0.000000e+00 : bf16
    %15 = vector.broadcast %cst_19 : bf16 to vector<2x16x1x32xbf16>
    %c0_20 = arith.constant 0 : index
    %c1_21 = arith.constant 1 : index
    %c17_22 = arith.constant 17 : index
    %c0_23 = arith.constant 0 : index
    %16 = vector.load %arg9[%c0_20, %c1_21, %c17_22, %c0_23] : memref<2x18x18x32xbf16, #tpu.memory_space<vmem>>, vector<2x16x1x32xbf16>
    tpu.vector_store %arg9[%c0_20, %c1_21, %c17_22, %c0_23], %15 {strides = array<i32>} : memref<2x18x18x32xbf16, #tpu.memory_space<vmem>>, vector<2x16x1x32xbf16>,
    %17 = arith.truncf %8 : vector<512x32xf32> to vector<512x32xbf16>
    %18 = vector.shape_cast %17 : vector<512x32xbf16> to vector<2x16x16x32xbf16>
    %c0_24 = arith.constant 0 : index
    %c1_25 = arith.constant 1 : index
    %c1_26 = arith.constant 1 : index
    %c0_27 = arith.constant 0 : index
    %19 = vector.load %arg9[%c0_24, %c1_25, %c1_26, %c0_27] : memref<2x18x18x32xbf16, #tpu.memory_space<vmem>>, vector<2x16x16x32xbf16>
    tpu.vector_store %arg9[%c0_24, %c1_25, %c1_26, %c0_27], %18 {strides = array<i32>} : memref<2x18x18x32xbf16, #tpu.memory_space<vmem>>, vector<2x16x16x32xbf16>,
    %c0_28 = arith.constant 0 : index
    %c0_29 = arith.constant 0 : index
    %c0_30 = arith.constant 0 : index
    %c0_31 = arith.constant 0 : index
    %20 = vector.load %arg9[%c0_28, %c0_29, %c0_30, %c0_31] : memref<2x18x18x32xbf16, #tpu.memory_space<vmem>>, vector<2x16x16x32xbf16>
    %21 = vector.shape_cast %20 : vector<2x16x16x32xbf16> to vector<512x32xbf16>
    %c0_32 = arith.constant 0 : index
    %c0_33 = arith.constant 0 : index
    %c1_34 = arith.constant 1 : index
    %c0_35 = arith.constant 0 : index
    %22 = vector.load %arg9[%c0_32, %c0_33, %c1_34, %c0_35] : memref<2x18x18x32xbf16, #tpu.memory_space<vmem>>, vector<2x16x16x32xbf16>
    %23 = vector.shape_cast %22 : vector<2x16x16x32xbf16> to vector<512x32xbf16>
    %c0_36 = arith.constant 0 : index
    %c0_37 = arith.constant 0 : index
    %c2 = arith.constant 2 : index
    %c0_38 = arith.constant 0 : index
    %24 = vector.load %arg9[%c0_36, %c0_37, %c2, %c0_38] : memref<2x18x18x32xbf16, #tpu.memory_space<vmem>>, vector<2x16x16x32xbf16>
    %25 = vector.shape_cast %24 : vector<2x16x16x32xbf16> to vector<512x32xbf16>
    %c0_39 = arith.constant 0 : index
    %c1_40 = arith.constant 1 : index
    %c0_41 = arith.constant 0 : index
    %c0_42 = arith.constant 0 : index
    %26 = vector.load %arg9[%c0_39, %c1_40, %c0_41, %c0_42] : memref<2x18x18x32xbf16, #tpu.memory_space<vmem>>, vector<2x16x16x32xbf16>
    %27 = vector.shape_cast %26 : vector<2x16x16x32xbf16> to vector<512x32xbf16>
    %c0_43 = arith.constant 0 : index
    %c1_44 = arith.constant 1 : index
    %c1_45 = arith.constant 1 : index
    %c0_46 = arith.constant 0 : index
    %28 = vector.load %arg9[%c0_43, %c1_44, %c1_45, %c0_46] : memref<2x18x18x32xbf16, #tpu.memory_space<vmem>>, vector<2x16x16x32xbf16>
    %29 = vector.shape_cast %28 : vector<2x16x16x32xbf16> to vector<512x32xbf16>
    %c0_47 = arith.constant 0 : index
    %c1_48 = arith.constant 1 : index
    %c2_49 = arith.constant 2 : index
    %c0_50 = arith.constant 0 : index
    %30 = vector.load %arg9[%c0_47, %c1_48, %c2_49, %c0_50] : memref<2x18x18x32xbf16, #tpu.memory_space<vmem>>, vector<2x16x16x32xbf16>
    %31 = vector.shape_cast %30 : vector<2x16x16x32xbf16> to vector<512x32xbf16>
    %c0_51 = arith.constant 0 : index
    %c2_52 = arith.constant 2 : index
    %c0_53 = arith.constant 0 : index
    %c0_54 = arith.constant 0 : index
    %32 = vector.load %arg9[%c0_51, %c2_52, %c0_53, %c0_54] : memref<2x18x18x32xbf16, #tpu.memory_space<vmem>>, vector<2x16x16x32xbf16>
    %33 = vector.shape_cast %32 : vector<2x16x16x32xbf16> to vector<512x32xbf16>
    %c0_55 = arith.constant 0 : index
    %c2_56 = arith.constant 2 : index
    %c1_57 = arith.constant 1 : index
    %c0_58 = arith.constant 0 : index
    %34 = vector.load %arg9[%c0_55, %c2_56, %c1_57, %c0_58] : memref<2x18x18x32xbf16, #tpu.memory_space<vmem>>, vector<2x16x16x32xbf16>
    %35 = vector.shape_cast %34 : vector<2x16x16x32xbf16> to vector<512x32xbf16>
    %c0_59 = arith.constant 0 : index
    %c2_60 = arith.constant 2 : index
    %c2_61 = arith.constant 2 : index
    %c0_62 = arith.constant 0 : index
    %36 = vector.load %arg9[%c0_59, %c2_60, %c2_61, %c0_62] : memref<2x18x18x32xbf16, #tpu.memory_space<vmem>>, vector<2x16x16x32xbf16>
    %37 = vector.shape_cast %36 : vector<2x16x16x32xbf16> to vector<512x32xbf16>
    %38 = tpu.concatenate %21, %23, %25, %27, %29, %31, %33, %35, %37 in 1 : vector<512x32xbf16>, vector<512x32xbf16>, vector<512x32xbf16>, vector<512x32xbf16>, vector<512x32xbf16>, vector<512x32xbf16>, vector<512x32xbf16>, vector<512x32xbf16>, vector<512x32xbf16> -> vector<512x288xbf16>
    %c0_63 = arith.constant 0 : index
    %c0_64 = arith.constant 0 : index
    %39 = vector.load %arg4[%c0_63, %c0_64] : memref<288x32xbf16, #tpu.memory_space<vmem>>, vector<288x32xbf16>
    %cst_65 = arith.constant dense<0.000000e+00> : vector<512x32xf32>
    %40 = tpu.matmul %38, %39, %cst_65 {dimension_numbers = #tpu.dot_dimension_numbers<[1], [0], [0], [1], [0, 0, 1, 1], [], []>} : vector<512x288xbf16>, vector<288x32xbf16>, vector<512x32xf32> -> vector<512x32xf32>
    %c0_66 = arith.constant 0 : index
    %c0_67 = arith.constant 0 : index
    %41 = vector.load %arg5[%c0_66, %c0_67] : memref<1x32xf32, #tpu.memory_space<vmem>>, vector<1x32xf32>
    %42 = vector.broadcast %41 : vector<1x32xf32> to vector<512x32xf32>
    %43 = arith.addf %40, %42 : vector<512x32xf32>
    %cst_68 = arith.constant 2.000000e-01 : f32
    %44 = vector.broadcast %cst_68 : f32 to vector<512x32xf32>
    %45 = arith.mulf %44, %43 : vector<512x32xf32>
    %46 = arith.maximumf %43, %45 : vector<512x32xf32>
    %47 = vector.extract_strided_slice %46 {offsets = [0, 0], sizes = [256, 32], strides = [1, 1]} : vector<512x32xf32> to vector<256x32xf32>
    %c0_69 = arith.constant 0 : index
    %c0_70 = arith.constant 0 : index
    %48 = vector.load %arg6[%c0_69, %c0_70] : memref<4x32xf32, #tpu.memory_space<vmem>>, vector<4x32xf32>
    %cst_71 = arith.constant dense<0.000000e+00> : vector<4x256xf32>
    %49 = tpu.matmul %48, %47, %cst_71 {dimension_numbers = #tpu.dot_dimension_numbers<[1], [1], [0], [0], [0, 0, 1, 0], [], []>} : vector<4x32xf32>, vector<256x32xf32>, vector<4x256xf32> -> vector<4x256xf32>
    %c0_72 = arith.constant 0 : index
    %c0_73 = arith.constant 0 : index
    %50 = vector.load %arg7[%c0_72, %c0_73] : memref<4x1xf32, #tpu.memory_space<vmem>>, vector<4x1xf32>
    %51 = vector.broadcast %50 : vector<4x1xf32> to vector<4x256xf32>
    %52 = arith.addf %49, %51 : vector<4x256xf32>
    %c0_74 = arith.constant 0 : index
    %c0_75 = arith.constant 0 : index
    %c0_76 = arith.constant 0 : index
    %53 = vector.load %arg8[%c0_74, %c0_75, %c0_76] : memref<2x4x256xf32, #tpu.memory_space<vmem>>, vector<1x4x256xf32>
    %54 = vector.shape_cast %53 : vector<1x4x256xf32> to vector<4x256xf32>
    %55 = vector.shape_cast %52 : vector<4x256xf32> to vector<1x4x256xf32>
    tpu.vector_store %arg8[%c0_74, %c0_75, %c0_76], %55 {strides = array<i32>} : memref<2x4x256xf32, #tpu.memory_space<vmem>>, vector<1x4x256xf32>,
    %56 = vector.extract_strided_slice %46 {offsets = [256, 0], sizes = [256, 32], strides = [1, 1]} : vector<512x32xf32> to vector<256x32xf32>
    %c0_77 = arith.constant 0 : index
    %c0_78 = arith.constant 0 : index
    %57 = vector.load %arg6[%c0_77, %c0_78] : memref<4x32xf32, #tpu.memory_space<vmem>>, vector<4x32xf32>
    %cst_79 = arith.constant dense<0.000000e+00> : vector<4x256xf32>
    %58 = tpu.matmul %57, %56, %cst_79 {dimension_numbers = #tpu.dot_dimension_numbers<[1], [1], [0], [0], [0, 0, 1, 0], [], []>} : vector<4x32xf32>, vector<256x32xf32>, vector<4x256xf32> -> vector<4x256xf32>
    %c0_80 = arith.constant 0 : index
    %c0_81 = arith.constant 0 : index
    %59 = vector.load %arg7[%c0_80, %c0_81] : memref<4x1xf32, #tpu.memory_space<vmem>>, vector<4x1xf32>
    %60 = vector.broadcast %59 : vector<4x1xf32> to vector<4x256xf32>
    %61 = arith.addf %58, %60 : vector<4x256xf32>
    %c1_82 = arith.constant 1 : index
    %c0_83 = arith.constant 0 : index
    %c0_84 = arith.constant 0 : index
    %62 = vector.load %arg8[%c1_82, %c0_83, %c0_84] : memref<2x4x256xf32, #tpu.memory_space<vmem>>, vector<1x4x256xf32>
    %63 = vector.shape_cast %62 : vector<1x4x256xf32> to vector<4x256xf32>
    %64 = vector.shape_cast %61 : vector<4x256xf32> to vector<1x4x256xf32>
    tpu.vector_store %arg8[%c1_82, %c0_83, %c0_84], %64 {strides = array<i32>} : memref<2x4x256xf32, #tpu.memory_space<vmem>>, vector<1x4x256xf32>,
    return
  }
  func.func @transform_0(%arg0: i32) -> (i32, i32) {
    %c0_i32 = arith.constant 0 : i32
    %c0_i32_0 = arith.constant 0 : i32
    return %arg0, %c0_i32 : i32, i32
  }
  func.func @transform_1(%arg0: i32) -> (i32, i32) {
    %c0_i32 = arith.constant 0 : i32
    %c0_i32_0 = arith.constant 0 : i32
    %c0_i32_1 = arith.constant 0 : i32
    return %c0_i32, %c0_i32_0 : i32, i32
  }
  func.func @transform_2(%arg0: i32) -> (i32, i32) {
    %c0_i32 = arith.constant 0 : i32
    %c0_i32_0 = arith.constant 0 : i32
    %c0_i32_1 = arith.constant 0 : i32
    return %c0_i32, %c0_i32_0 : i32, i32
  }
  func.func @transform_3(%arg0: i32) -> (i32, i32) {
    %c0_i32 = arith.constant 0 : i32
    %c0_i32_0 = arith.constant 0 : i32
    %c0_i32_1 = arith.constant 0 : i32
    return %c0_i32, %c0_i32_0 : i32, i32
  }
  func.func @transform_4(%arg0: i32) -> (i32, i32) {
    %c0_i32 = arith.constant 0 : i32
    %c0_i32_0 = arith.constant 0 : i32
    %c0_i32_1 = arith.constant 0 : i32
    return %c0_i32, %c0_i32_0 : i32, i32
  }
  func.func @transform_5(%arg0: i32) -> (i32, i32) {
    %c0_i32 = arith.constant 0 : i32
    %c0_i32_0 = arith.constant 0 : i32
    %c0_i32_1 = arith.constant 0 : i32
    return %c0_i32, %c0_i32_0 : i32, i32
  }
  func.func @transform_6(%arg0: i32) -> (i32, i32) {
    %c0_i32 = arith.constant 0 : i32
    %c0_i32_0 = arith.constant 0 : i32
    %c0_i32_1 = arith.constant 0 : i32
    return %c0_i32, %c0_i32_0 : i32, i32
  }
  func.func @transform_7(%arg0: i32) -> (i32, i32, i32) {
    %c0_i32 = arith.constant 0 : i32
    %c0_i32_0 = arith.constant 0 : i32
    %c0_i32_1 = arith.constant 0 : i32
    return %arg0, %c0_i32, %c0_i32_0 : i32, i32, i32
  }
}

</mosaic_0001>

<bundles_post_ra>
// kernel: denoising_network_forward.1
= control target key start
LH: loop header
LB: loop body
LE: loop exit
PB: predicated region body
PF: predicated region fallthrough
CT: control target
= control target key end

     0   :  { %vm372_vm0 = vcmask 1041408   ;;  %vm275_vm1 = vcmask 293888   ;;  %vm676_vm2 = vcmask 253952   ;;  %vm690_vm3 = vsmask.f32 256  ;;  %s9581_s22 = smov 64   ;;  %s13652_s1 = inlined_call_operand.vmem [shape: bf16[36,32], index: 1, kind: input, shape index: {}]   ;;  %s13653_s2 = inlined_call_operand.vmem [shape: f32[1,32], index: 2, kind: input, shape index: {}]   ;;  %s13654_s0 = inlined_call_operand.vmem [shape: bf16[512,36], index: 0, kind: input, shape index: {}]   ;;  %s13655_s3 = inlined_call_operand.vmem [shape: bf16[288,32], index: 3, kind: input, shape index: {}]   ;;  %s13656_s4 = inlined_call_operand.vmem [shape: f32[1,32], index: 4, kind: input, shape index: {}]   ;;  %s13657_s5 = inlined_call_operand.vmem [shape: f32[4,32], index: 5, kind: input, shape index: {}]   ;;  %s13658_s6 = inlined_call_operand.vmem [shape: f32[4,1], index: 6, kind: input, shape index: {}]   ;;  %s13659_s7 = inlined_call_operand.vmem [shape: f32[2,4,256], index: 7, kind: output, shape index: {}]  }
   0x1   :  { %v95_v0 = vld [vmem:[%s13652_s1 + $0x10] sm:$0x3]  ;;  %v9375_v4 = vld [vmem:[%s13652_s1 + $0x8] sm:$0xff]  ;;  %v9374_v5 = vld [vmem:[%s13652_s1] sm:$0xff]  ;;  %vm673_vm5 = vcmask 257024   ;;  %v9580_v16 = vmov 0  }
   0x2   :  { %v269_v1 = vunpack.c.l.b16 %v95_v0  ;;  %v9342_v6 = vld [vmem:[%s13654_s0] sm:$0xff]  ;;  %v9343_v7 = vld [vmem:[%s13654_s0 + $0x8] sm:$0xff]  ;;  %v9344_v8 = vld [vmem:[%s13654_s0 + $0x10] sm:$0xff]  ;;  %674 = vst.msk [vmem:[#allocation2] sm:$0xf] %vm673_vm5, %v9580_v16  ;;  %9495 = vset.pattern.permute.xlu1 %v9580_v16  ;;  %9494 = vset.pattern.permute.xlu0 %v9580_v16  ;;  %vm2813_vm8 = vcmask 1042432  }
   0x3   :  { %v9345_v9 = vld [vmem:[%s13654_s0 + $0x18] sm:$0xff]  ;;  %v9346_v10 = vld [vmem:[%s13654_s0 + $0x20] sm:$0xff]  ;;  %v9347_v11 = vld [vmem:[%s13654_s0 + $0x28] sm:$0xff]  ;;  %675 = vst.msk [vmem:[#allocation2 + $0x4] sm:$0xf] %vm673_vm5, %v9580_v16  ;;  %vm2814_vm9 = vcmask 1046532  }
   0x4   :  { %v272_v2 = vpack.c.b16 %v269_v1, %v269_v1  ;;  %v9348_v12 = vld [vmem:[%s13654_s0 + $0x30] sm:$0xff]  ;;  %vm9663_vm4 = vmand %vm676_vm2, %vm690_vm3  ;;  %v692_v14 = vld [vmem:[#allocation2 + $0xc] sm:$0x1]  ;;  %vm788_vm6 = vsmask.f32 7938  ;;  %s9582_s12 = smov 96  }
   0x5   :  { %v693_v15 = vsel %vm9663_vm4, 0, %v692_v14  ;;  %677 = vst.msk [vmem:[#allocation2 + $0x8] sm:$0x1] %vm676_vm2, %v9580_v16  ;;  %v790_v17 = vld [vmem:[#allocation2 + $0x14] sm:$0x1]  ;;  %vm9676_vm7 = vmand %vm676_vm2, %vm788_vm6  ;;  %v9349_v19 = vld [vmem:[%s13654_s0 + $0x38] sm:$0xff] }
   0x6   :  { %v374_v3 = vsel %vm372_vm0, %v272_v2, 0  ;;  %694 = vst [vmem:[#allocation2 + $0xc] sm:$0x1] %v693_v15  ;;  %v791_v20 = vsel %vm9676_vm7, 0, %v790_v17  ;;  %vm9696_vm10 = vmor %vm2813_vm8, %vm2814_vm9  ;;  %v695_v30 = vld [vmem:[#allocation2 + $0x18] sm:$0x1] }
   0x7   :  { %381 = vmatpush.bf16.msra.mxu0 %v374_v3  ;;  %678 = vst.msk [vmem:[#allocation2 + $0xd8] sm:$0xf] %vm673_vm5, %v9580_v16  ;;  %v696_v33 = vsel %vm9663_vm4, 0, %v695_v30  ;;  %v9713_v36 = vld [vmem:[%s13653_s2] ss:$0 sm:$0xff]  ;;  %vm9727_vm11 = vmand %vm673_vm5, %vm788_vm6  ;;  %v9351_v59 = vld [vmem:[%s13654_s0 + $0x48] sm:$0xff] }
   0x8   :  { %679 = vst.msk [vmem:[#allocation2 + $0xdc] sm:$0xf] %vm673_vm5, %v9580_v16  ;;  %v793_v37 = vld [vmem:[#allocation2 + $0x20] sm:$0x1]  ;;  %v698_v48 = vld [vmem:[#allocation2 + $0x24] sm:$0x1] }
   0x9   :  { %680 = vst.msk [vmem:[#allocation2 + $0xe0] sm:$0x1] %vm676_vm2, %v9580_v16  ;;  %v2685_v23 = vld [vmem:[#allocation2] sm:$0xe]  ;;  %v794_v39 = vsel %vm9676_vm7, 0, %v793_v37  ;;  %v699_v49 = vsel %vm9663_vm4, 0, %v698_v48 }
   0xa   :  { %682 = vst.msk [vmem:[#allocation2 + $0xcc] sm:$0xf] %vm673_vm5, %v9580_v16  ;;  %v9687_v21 = vld [vmem:[#allocation2 + $0x4] sm:$0xf]  ;;  %v8689_v25 = vrot.slane %v2685_v23, 9  ;;  %v9489_v1 = vld [vmem:[%s13655_s3 + $0x88] sm:$0xff] }
   0xb   :  { %382 = vmatpush.bf16.msra.mxu0 %v9375_v4  ;;  %792 = vst [vmem:[#allocation2 + $0x14] sm:$0x1] %v791_v20  ;;  %v2818_v24 = vrot.slane %v9687_v21, 5  ;;  %v9350_v38 = vld [vmem:[%s13654_s0 + $0x40] sm:$0xff]  ;;  %v796_v61 = vld [vmem:[#allocation2 + $0x2c] sm:$0x1]  ;;  %7920 = vmatpush.bf16.msra.mxu3 %v9489_v1 }
   0xc   :  { %683 = vst.msk [vmem:[#allocation2 + $0xd0] sm:$0xf] %vm673_vm5, %v9580_v16  ;;  %v9690_v22 = vld [vmem:[#allocation2 + $0x8] sm:$0x1]  ;;  %vm950_vm12 = vsmask.f32 4368 }
   0xd   :  { %v2821_v26 = vrot.slane %v9690_v22, 5  ;;  %684 = vst.msk [vmem:[#allocation2 + $0xd4] sm:$0x1] %vm676_vm2, %v9580_v16  ;;  %v2820_v28 = vrot.slane %v2818_v24, 4  ;;  %v2819_v29 = vsel %vm9696_vm10, %v8689_v25, %v2818_v24  ;;  %v1594_v54 = vld [vmem:[#allocation2 + $0xc] sm:$0xf]  ;;  %vm9744_vm13 = vmor %vm690_vm3, %vm950_vm12 }
   0xe   :  { %685 = vst.msk [vmem:[#allocation2 + $0x1a4] sm:$0xf] %vm673_vm5, %v9580_v16  ;;  %v5761_v32 = vunpack.c.l.b16 %v2819_v29  ;;  %v797_v0 = vsel %vm9676_vm7, 0, %v796_v61  ;;  %v701_v25 = vld [vmem:[#allocation2 + $0x30] sm:$0x1]  ;;  %s9583_s1 = smov 32  }
   0xf   :  { %383 = vmatpush.bf16.msra.mxu0 %v9374_v5  ;;  %686 = vst.msk [vmem:[#allocation2 + $0x1a8] sm:$0xf] %vm673_vm5, %v9580_v16  ;;  %v2822_v31 = vsel %vm9696_vm10, %v2820_v28, %v2821_v26  ;;  %v702_v30 = vsel %vm9663_vm4, 0, %v701_v25  ;;  %v9352_v37 = vld [vmem:[%s13654_s0 + $0x50] sm:$0xff]  ;;  %vm1914_vm14 = vsmask.f32 3328 }
  0x10   :  { %687 = vst.msk [vmem:[#allocation2 + $0x1ac] sm:$0x1] %vm676_vm2, %v9580_v16  ;;  %v5762_v34 = vunpack.c.l.b16 %v2822_v31  ;;  %vm1915_vm15 = vsmask.f32 7440  ;;  %vm6817_vm2 = vcmask 261120   ;;  %vm6914_vm3 = vcmask 523264  }
  0x11   :  { %697 = vst [vmem:[#allocation2 + $0x18] sm:$0x1] %v696_v33  ;;  %vm9791_vm0 = vmor %vm1914_vm14, %vm1915_vm15  ;;  %vm6979_vm6 = vcmask 785408  }
  0x12   :  { %8657 = vmatmul.msk.bf16.vlgmr.msra.gmra.mxu0 %vm275_vm1, %v9342_v6  ;;  %v5825_v35 = vpack.c.b16 %v5762_v34, %v5761_v32  ;;  %795 = vst [vmem:[#allocation2 + $0x20] sm:$0x1] %v794_v39  ;;  %v1598_v6 = vld [vmem:[#allocation2 + $0x14] sm:$0x1] }
  0x13   :  { %700 = vst [vmem:[#allocation2 + $0x24] sm:$0x1] %v699_v49  ;;  %v799_v49 = vld [vmem:[#allocation2 + $0x38] sm:$0x1] }
  0x14   :  { %5857 = vrot.lane.b32.xlu2 %v5825_v35, %s9581_s22  ;;  %798 = vst [vmem:[#allocation2 + $0x2c] sm:$0x1] %v797_v0 }
  0x15   :  { %703 = vst [vmem:[#allocation2 + $0x30] sm:$0x1] %v702_v30 }
  0x18   :  { %v1601_v31 = vld [vmem:[#allocation2 + $0x18] sm:$0xf] }
  0x22   :  { %8658 = vmatmul.msk.bf16.gmra.mxu0 %vm275_vm1, %v9343_v7 }
  0x32   :  { %8659 = vmatmul.msk.bf16.gmra.mxu0 %vm275_vm1, %v9344_v8 }
  0x42   :  { %8660 = vmatmul.msk.bf16.gmra.mxu0 %vm275_vm1, %v9345_v9 }
  0x52   :  { %8661 = vmatmul.msk.bf16.gmra.mxu0 %vm275_vm1, %v9346_v10 }
  0x62   :  { %8662 = vmatmul.msk.bf16.gmra.mxu0 %vm275_vm1, %v9347_v11  ;;  %v9488_v11 = vld [vmem:[%s13655_s3 + $0x80] sm:$0xff] }
  0x63   :  { %7921 = vmatpush.bf16.msra.mxu3 %v9488_v11 }
  0x72   :  { %8663 = vmatmul.msk.bf16.gmra.mxu0 %vm275_vm1, %v9348_v12 }
  0x82   :  { %8664 = vmatmul.msk.bf16.gmra.mxu0 %vm275_vm1, %v9349_v19 }
  0x8f   :  { %v385_v40 = vpop.f32.mrf.mxu0 }
  0x90   :  { %v386_v41 = vadd.f32 %v9713_v36, %v385_v40 }
  0x92   :  { %v545_v42 = vmul.f32 0.2, %v386_v41  ;;  %8665 = vmatmul.msk.bf16.gmra.mxu0 %vm275_vm1, %v9350_v38 }
  0x94   :  { %v609_v43 = vmax.f32 %v386_v41, %v545_v42 }
  0x96   :  { %v886_v44 = vpack.c.bf16 %v609_v43, %v609_v43  ;;  %v1931_v43 = vshrl.u32 %v9687_v21, 16 }
  0x97   :  { %v387_v45 = vpop.f32.mrf.mxu0 }
  0x98   :  { %v953_v46 = vshrl.u32 %v886_v44, 16  ;;  %v388_v47 = vadd.f32 %v9713_v36, %v387_v45  ;;  %v956_v51 = vshll.u32 %v886_v44, 16 }
  0x9a   :  { %v955_v50 = vrot.slane %v953_v46, 7  ;;  %v546_v52 = vmul.f32 0.2, %v388_v47 }
  0x9c   :  { %v958_v55 = vor.u32 %v956_v51, %v955_v50  ;;  %v610_v56 = vmax.f32 %v388_v47, %v546_v52  ;;  %v959_v7 = vrot.slane %v955_v50, 4  ;;  %v1937_v47 = vshll.u32 %v9690_v22, 16 }
  0x9e   :  { %v1595_v57 = vsel %vm9727_vm11, %v958_v55, %v1594_v54  ;;  %v887_v58 = vpack.c.bf16 %v610_v56, %v610_v56  ;;  %v1605_v54 = vld [vmem:[#allocation2 + $0x20] sm:$0x1] }
  0x9f   :  { %1596 = vst [vmem:[#allocation2 + $0xc] sm:$0xf] %v1595_v57  ;;  %v390_v60 = vpop.f32.mrf.mxu0  ;;  %v800_v57 = vsel %vm9676_vm7, 0, %v799_v49 }
  0xa0   :  { %v961_v62 = vshrl.u32 %v887_v58, 16  ;;  %v391_v63 = vadd.f32 %v9713_v36, %v390_v60  ;;  %v964_v3 = vshll.u32 %v887_v58, 16  ;;  %801 = vst [vmem:[#allocation2 + $0x38] sm:$0x1] %v800_v57 }
  0xa2   :  { %v963_v2 = vrot.slane %v961_v62, 7  ;;  %v547_v4 = vmul.f32 0.2, %v391_v63  ;;  %8666 = vmatmul.msk.bf16.gmra.mxu0 %vm275_vm1, %v9351_v59 }
  0xa4   :  { %v966_v8 = vor.u32 %v964_v3, %v963_v2  ;;  %v968_v9 = vrot.slane %v963_v2, 4  ;;  %v611_v10 = vmax.f32 %v391_v63, %v547_v4 }
  0xa6   :  { %v967_v12 = vsel %vm9744_vm13, %v959_v7, %v966_v8  ;;  %v1599_v14 = vsel %vm9663_vm4, %v968_v9, %v1598_v6  ;;  %v888_v15 = vpack.c.bf16 %v611_v10, %v611_v10  ;;  %v1820_v16 = vld [vmem:[#allocation2 + $0xc] sm:$0xf] }
  0xa7   :  { %1597 = vst.msk [vmem:[#allocation2 + $0x10] sm:$0xf] %vm673_vm5, %v967_v12  ;;  %v392_v17 = vpop.f32.mrf.mxu0  ;;  %v1942_v23 = vshrl.u32 %v1820_v16, 16  ;;  %v1945_v24 = vshll.u32 %v1820_v16, 16  ;;  %v3904_v42 = vld [vmem:[#allocation2 + $0xc] sm:$0xe] }
  0xa8   :  { %1600 = vst [vmem:[#allocation2 + $0x14] sm:$0x1] %v1599_v14  ;;  %v970_v19 = vshrl.u32 %v888_v15, 16  ;;  %v393_v20 = vadd.f32 %v9713_v36, %v392_v17  ;;  %v973_v28 = vshll.u32 %v888_v15, 16  ;;  %v8721_v55 = vrot.slane %v3904_v42, 9 }
  0xa9   :  { %v1944_v34 = vrot.slane %v1942_v23, 4  ;;  %v1947_v35 = vrot.slane %v1945_v24, 5  ;;  %v9779_v11 = vld [vmem:[#allocation2 + $0xc] sm:$0xe] }
  0xaa   :  { %v972_v26 = vrot.slane %v970_v19, 7  ;;  %v548_v29 = vmul.f32 0.2, %v393_v20 }
  0xab   :  { %v1948_v51 = vor.u32 %v1947_v35, %v1944_v34 }
  0xac   :  { %v975_v32 = vor.u32 %v973_v28, %v972_v26  ;;  %v612_v33 = vmax.f32 %v393_v20, %v548_v29  ;;  %v976_v52 = vrot.slane %v972_v26, 4  ;;  %v1818_v20 = vld [vmem:[#allocation2] sm:$0xf] }
  0xad   :  { %v1949_v6 = vrot.slane %v1948_v51, 4  ;;  %v1918_v49 = vshrl.u32 %v1818_v20, 16  ;;  %v1921_v51 = vshll.u32 %v1818_v20, 16 }
  0xae   :  { %v1602_v38 = vsel %vm9727_vm11, %v975_v32, %v1601_v31  ;;  %v889_v39 = vpack.c.bf16 %v612_v33, %v612_v33  ;;  %v9408_v40 = vld [vmem:[#allocation2 + $0xc] sm:$0xff]  ;;  %v704_v32 = vld [vmem:[#allocation2 + $0x3c] sm:$0x1] }
  0xaf   :  { %v3041_v41 = vld [vmem:[#allocation2 + $0x10] sm:$0xf]  ;;  %1603 = vst [vmem:[#allocation2 + $0x18] sm:$0xf] %v1602_v38  ;;  %v395_v44 = vpop.f32.mrf.mxu0  ;;  %v3104_v45 = vld [vmem:[#allocation2 + $0x14] sm:$0x1]  ;;  %6049 = vrot.lane.b32.xlu2 %v9408_v40, %s9582_s12 }
  0xb0   :  { %v978_v46 = vshrl.u32 %v889_v39, 16  ;;  %v396_v48 = vadd.f32 %v9713_v36, %v395_v44  ;;  %v9768_v50 = vld [vmem:[#allocation2 + $0x10] sm:$0xf]  ;;  %v4034_v56 = vrot.slane %v3041_v41, 5  ;;  %v981_v59 = vshll.u32 %v889_v39, 16 }
  0xb1   :  { %v4037_v61 = vrot.slane %v3104_v45, 5  ;;  %v1951_v0 = vshll.u32 %v9768_v50, 16  ;;  %v1955_v1 = vshrl.u32 %v9768_v50, 16  ;;  %v9785_v19 = vld [vmem:[#allocation2 + $0x14] sm:$0x1]  ;;  %v705_v38 = vsel %vm9663_vm4, 0, %v704_v32 }
  0xb2   :  { %v980_v58 = vrot.slane %v978_v46, 7  ;;  %v549_v60 = vmul.f32 0.2, %v396_v48  ;;  %8667 = vmatmul.msk.bf16.gmra.mxu0 %vm275_vm1, %v9352_v37  ;;  %v4035_v62 = vsel %vm9696_vm10, %v8721_v55, %v4034_v56  ;;  %v4036_v63 = vrot.slane %v4034_v56, 4  ;;  %v1608_v41 = vld [vmem:[#allocation2 + $0x24] sm:$0xf] }
  0xb3   :  { %v6209_v8 = vunpack.c.l.b16 %v4035_v62  ;;  %v1953_v9 = vrot.slane %v1951_v0, 5  ;;  %v1957_v10 = vrot.slane %v1955_v1, 4  ;;  %v1961_v39 = vshll.u32 %v9785_v19, 16  ;;  %706 = vst [vmem:[#allocation2 + $0x3c] sm:$0x1] %v705_v38 }
  0xb4   :  { %v983_v2 = vor.u32 %v981_v59, %v980_v58  ;;  %v985_v3 = vrot.slane %v980_v58, 4  ;;  %v613_v4 = vmax.f32 %v396_v48, %v549_v60  ;;  %v4038_v7 = vsel %vm9696_vm10, %v4036_v63, %v4037_v61  ;;  %v9353_v58 = vld [vmem:[%s13654_s0 + $0x58] sm:$0xff] }
  0xb5   :  { %v6210_v16 = vunpack.c.l.b16 %v4038_v7  ;;  %v1958_v44 = vor.u32 %v1957_v10, %v1953_v9  ;;  %v8690_v45 = vrot.slane %v9779_v11, 9  ;;  %v1954_v56 = vsel %vm9791_vm0, %v1949_v6, %v1953_v9 }
  0xb6   :  { %v984_v12 = vsel %vm9744_vm13, %v976_v52, %v983_v2  ;;  %v1606_v14 = vsel %vm9663_vm4, %v985_v3, %v1605_v54  ;;  %v890_v15 = vpack.c.bf16 %v613_v4, %v613_v4  ;;  %v4257_v17 = vld [vmem:[#allocation2 + $0x18] sm:$0xf]  ;;  %v9813_v61 = vrot.slane %v1961_v39, 5 }
  0xb7   :  { %1604 = vst.msk [vmem:[#allocation2 + $0x1c] sm:$0xf] %vm673_vm5, %v984_v12  ;;  %v397_v23 = vpop.f32.mrf.mxu0  ;;  %v5121_v24 = vld [vmem:[#allocation2 + $0x18] sm:$0xe]  ;;  %v4354_v25 = vshrl.u32 %v4257_v17, 16  ;;  %v4357_v26 = vshll.u32 %v4257_v17, 16  ;;  %v6273_v31 = vpack.c.b16 %v6210_v16, %v6209_v8  ;;  %v9817_v8 = vunpack.c.l.b16 %v1954_v56 }
  0xb8   :  { %1607 = vst [vmem:[#allocation2 + $0x20] sm:$0x1] %v1606_v14  ;;  %v987_v28 = vshrl.u32 %v890_v15, 16  ;;  %v990_v29 = vshll.u32 %v890_v15, 16  ;;  %v398_v30 = vadd.f32 %v9713_v36, %v397_v23  ;;  %v3905_v33 = vld [vmem:[#allocation2 + $0x18] sm:$0xe] }
  0xb9   :  { %v4356_v35 = vrot.slane %v4354_v25, 4  ;;  %v4359_v37 = vrot.slane %v4357_v26, 5  ;;  %6305 = vrot.lane.b32.xlu0 %v6273_v31, %s9583_s1  ;;  %v8753_v46 = vrot.slane %v5121_v24, 9  ;;  %v8722_v55 = vrot.slane %v3905_v33, 9 }
  0xba   :  { %v9798_v40 = vrot.slane %v987_v28, 7  ;;  %v550_v42 = vmul.f32 0.2, %v398_v30  ;;  %v9811_v60 = vrot.slane %v1958_v44, 4  ;;  %v1920_v3 = vrot.slane %v1918_v49, 4 }
  0xbb   :  { %v4360_v48 = vor.u32 %v4359_v37, %v4356_v35  ;;  %v1923_v9 = vrot.slane %v1921_v51, 5  ;;  %v1927_v16 = vshll.u32 %v9687_v21, 16 }
  0xbc   :  { %v992_v52 = vor.u32 %v990_v29, %v9798_v40  ;;  %v614_v54 = vmax.f32 %v398_v30, %v550_v42  ;;  %v993_v57 = vrot.slane %v9798_v40, 4  ;;  %v1612_v30 = vld [vmem:[#allocation2 + $0x2c] sm:$0x1] }
  0xbd   :  { %v9809_v59 = vrot.slane %v4360_v48, 4 }
  0xbe   :  { %v1609_v62 = vsel %vm9727_vm11, %v992_v52, %v1608_v41  ;;  %v891_v63 = vpack.c.bf16 %v614_v54, %v614_v54  ;;  %v9440_v0 = vld [vmem:[#allocation2 + $0x18] sm:$0xff] }
  0xbf   :  { %v4258_v1 = vld [vmem:[#allocation2 + $0x1c] sm:$0xf]  ;;  %1610 = vst [vmem:[#allocation2 + $0x24] sm:$0xf] %v1609_v62  ;;  %v400_v4 = vpop.f32.mrf.mxu0  ;;  %v4321_v6 = vld [vmem:[#allocation2 + $0x20] sm:$0x1] }
  0xc0   :  { %v3043_v2 = vld [vmem:[#allocation2 + $0x1c] sm:$0xf]  ;;  %v5251_v7 = vrot.slane %v4258_v1, 5  ;;  %v995_v10 = vshrl.u32 %v891_v63, 16  ;;  %v998_v12 = vshll.u32 %v891_v63, 16  ;;  %v401_v14 = vadd.f32 %v9713_v36, %v400_v4 }
  0xc1   :  { %v3105_v15 = vld [vmem:[#allocation2 + $0x20] sm:$0x1]  ;;  %v5254_v23 = vrot.slane %v4321_v6, 5  ;;  %v4041_v24 = vrot.slane %v3043_v2, 5  ;;  %6497 = vrot.lane.b32.xlu0 %v9440_v0, %s9581_s22  ;;  %v4363_v35 = vshll.u32 %v4258_v1, 16  ;;  %v4367_v44 = vshrl.u32 %v4258_v1, 16 }
  0xc2   :  { %v5252_v17 = vsel %vm9696_vm10, %v8753_v46, %v5251_v7  ;;  %v5253_v20 = vrot.slane %v5251_v7, 4  ;;  %v997_v25 = vrot.slane %v995_v10, 7  ;;  %v551_v26 = vmul.f32 0.2, %v401_v14  ;;  %8668 = vmatmul.msk.bf16.gmra.mxu0 %vm275_vm1, %v9353_v58  ;;  %v802_v2 = vld [vmem:[#allocation2 + $0x44] sm:$0x1] }
  0xc3   :  { %v6721_v28 = vunpack.c.l.b16 %v5252_v17  ;;  %v4044_v29 = vrot.slane %v3105_v15, 5  ;;  %v4042_v32 = vsel %vm9696_vm10, %v8722_v55, %v4041_v24  ;;  %v4043_v33 = vrot.slane %v4041_v24, 4 }
  0xc4   :  { %v5255_v31 = vsel %vm9696_vm10, %v5253_v20, %v5254_v23  ;;  %v1000_v37 = vor.u32 %v998_v12, %v997_v25  ;;  %v1002_v38 = vrot.slane %v997_v25, 4  ;;  %v615_v39 = vmax.f32 %v401_v14, %v551_v26 }
  0xc5   :  { %v6722_v40 = vunpack.c.l.b16 %v5255_v31  ;;  %v4045_v41 = vsel %vm9696_vm10, %v4043_v33, %v4044_v29  ;;  %v4365_v42 = vrot.slane %v4363_v35, 5  ;;  %v1924_v46 = vor.u32 %v1923_v9, %v1920_v3  ;;  %v1615_v3 = vld [vmem:[#allocation2 + $0x30] sm:$0xf]  ;;  %v9354_v33 = vld [vmem:[%s13654_s0 + $0x60] sm:$0xff] }
  0xc6   :  { %v1001_v48 = vsel %vm9744_vm13, %v993_v57, %v1000_v37  ;;  %v1613_v49 = vsel %vm9663_vm4, %v1002_v38, %v1612_v30  ;;  %v892_v51 = vpack.c.bf16 %v615_v39, %v615_v39  ;;  %v6211_v55 = vunpack.c.l.b16 %v4042_v32  ;;  %v5122_v10 = vld [vmem:[#allocation2 + $0x24] sm:$0xe] }
  0xc7   :  { %v6785_v52 = vpack.c.b16 %v6722_v40, %v6721_v28  ;;  %1611 = vst.msk [vmem:[#allocation2 + $0x28] sm:$0xf] %vm673_vm5, %v1001_v48  ;;  %v402_v54 = vpop.f32.mrf.mxu0  ;;  %v6212_v56 = vunpack.c.l.b16 %v4045_v41  ;;  %v4369_v58 = vrot.slane %v4367_v44, 4  ;;  %v4373_v62 = vshll.u32 %v4321_v6, 16  ;;  %v3906_v24 = vld [vmem:[#allocation2 + $0x24] sm:$0xe] }
  0xc8   :  { %1614 = vst [vmem:[#allocation2 + $0x2c] sm:$0x1] %v1613_v49  ;;  %v1004_v63 = vshrl.u32 %v892_v51, 16  ;;  %v1007_v0 = vshll.u32 %v892_v51, 16  ;;  %v403_v1 = vadd.f32 %v9713_v36, %v402_v54  ;;  %v1964_v57 = vsel %vm9791_vm0, %v9811_v60, %v9813_v61  ;;  %v4259_v51 = vld [vmem:[#allocation2 + $0x24] sm:$0xf] }
  0xc9   :  { %9241 = vmatmul.msk.bf16.vlgmr.msra.gmra.mxu3 %vm6817_vm2, %v6785_v52  ;;  %v6274_v4 = vpack.c.b16 %v6212_v56, %v6211_v55  ;;  %v4366_v7 = vsel %vm9791_vm0, %v9809_v59, %v4365_v42  ;;  %v4370_v6 = vor.u32 %v4369_v58, %v4365_v42  ;;  %v1933_v9 = vrot.slane %v1931_v43, 4 }
  0xca   :  { %v9847_v12 = vrot.slane %v1004_v63, 7  ;;  %v552_v14 = vmul.f32 0.2, %v403_v1  ;;  %v1925_v15 = vrot.slane %v1924_v46, 4  ;;  %v1929_v17 = vrot.slane %v1927_v16, 5 }
  0xcb   :  { %6307 = vrot.lane.b32.xlu0 %v6274_v4, %s9583_s1  ;;  %v4371_v60 = vrot.slane %v4370_v6, 4  ;;  %v4375_v61 = vrot.slane %v4373_v62, 5  ;;  %v5604_v20 = vunpack.c.l.b16 %v1964_v57  ;;  %v803_v23 = vsel %vm9676_vm7, 0, %v802_v2 }
  0xcc   :  { %v1009_v59 = vor.u32 %v1007_v0, %v9847_v12  ;;  %v616_v25 = vmax.f32 %v403_v1, %v552_v14  ;;  %v6561_v21 = vunpack.c.l.b16 %v4366_v7  ;;  %v1930_v43 = vsel %vm9791_vm0, %v1925_v15, %v1929_v17  ;;  %804 = vst [vmem:[#allocation2 + $0x44] sm:$0x1] %v803_v23  ;;  %v1619_v1 = vld [vmem:[#allocation2 + $0x38] sm:$0x1] }
  0xcd   :  { %v4376_v16 = vsel %vm9791_vm0, %v4371_v60, %v4375_v61  ;;  %v1934_v26 = vor.u32 %v1933_v9, %v1929_v17  ;;  %v1939_v28 = vrot.slane %v1937_v47, 5  ;;  %v8754_v29 = vrot.slane %v5122_v10, 9 }
  0xce   :  { %v1616_v30 = vsel %vm9727_vm11, %v1009_v59, %v1615_v3  ;;  %v893_v31 = vpack.c.bf16 %v616_v25, %v616_v25  ;;  %v6562_v32 = vunpack.c.l.b16 %v4376_v16  ;;  %v9864_v35 = vld [vmem:[#allocation2 + $0x28] sm:$0xf]  ;;  %v8723_v37 = vrot.slane %v3906_v24, 9 }
  0xcf   :  { %1617 = vst [vmem:[#allocation2 + $0x30] sm:$0xf] %v1616_v30  ;;  %v405_v38 = vpop.f32.mrf.mxu0  ;;  %v5666_v39 = vpack.c.b16 %v5604_v20, %v9817_v8  ;;  %v1935_v40 = vrot.slane %v1934_v26, 4  ;;  %v5601_v22 = vunpack.c.l.b16 %v1930_v43  ;;  %v9867_v47 = vld [vmem:[#allocation2 + $0x2c] sm:$0x1]  ;;  %v5258_v41 = vrot.slane %v9864_v35, 5 }
  0xd0   :  { %v1012_v42 = vshrl.u32 %v893_v31, 16  ;;  %v1015_v44 = vshll.u32 %v893_v31, 16  ;;  %v6625_v46 = vpack.c.b16 %v6562_v32, %v6561_v21  ;;  %v406_v48 = vadd.f32 %v9713_v36, %v405_v38  ;;  %v3045_v49 = vld [vmem:[#allocation2 + $0x28] sm:$0xf]  ;;  %v3106_v0 = vld [vmem:[#allocation2 + $0x2c] sm:$0x1] }
  0xd1   :  { %v1940_v52 = vsel %vm9791_vm0, %v1935_v40, %v1939_v28  ;;  %v5259_v54 = vsel %vm9696_vm10, %v8754_v29, %v5258_v41  ;;  %v5260_v8 = vrot.slane %v5258_v41, 4  ;;  %v5261_v55 = vrot.slane %v9867_v47, 5  ;;  %v707_v16 = vld [vmem:[#allocation2 + $0x48] sm:$0x1]  ;;  %v1822_v31 = vld [vmem:[#allocation2 + $0x18] sm:$0xf] }
  0xd2   :  { %v1010_v56 = vrot.slane %v9847_v12, 4  ;;  %v1014_v58 = vrot.slane %v1012_v42, 7  ;;  %6657 = vrot.lane.b32.xlu1 %v6625_v46, %s9582_s12  ;;  %v553_v62 = vmul.f32 0.2, %v406_v48  ;;  %8669 = vmatmul.msk.bf16.gmra.mxu0 %vm275_vm1, %v9354_v33  ;;  %v5602_v63 = vunpack.c.l.b16 %v1940_v52  ;;  %v1622_v32 = vld [vmem:[#allocation2 + $0x3c] sm:$0xf] }
  0xd3   :  { %5699 = vrot.lane.b32.xlu0 %v5666_v39, %s9583_s1  ;;  %v5262_v57 = vsel %vm9696_vm10, %v5260_v8, %v5261_v55  ;;  %v6723_v2 = vunpack.c.l.b16 %v5259_v54  ;;  %v4048_v3 = vrot.slane %v3045_v49, 5  ;;  %v4378_v4 = vshrl.u32 %v4259_v51, 16 }
  0xd4   :  { %v1017_v7 = vor.u32 %v1015_v44, %v1014_v58  ;;  %v1019_v6 = vrot.slane %v1014_v58, 4  ;;  %v617_v9 = vmax.f32 %v406_v48, %v553_v62  ;;  %v5665_v10 = vpack.c.b16 %v5602_v63, %v5601_v22  ;;  %v9901_v44 = vld [vmem:[#allocation2 + $0x1c] sm:$0xf] }
  0xd5   :  { %v6724_v12 = vunpack.c.l.b16 %v5262_v57  ;;  %v4049_v14 = vsel %vm9696_vm10, %v8723_v37, %v4048_v3  ;;  %v4050_v15 = vrot.slane %v4048_v3, 4  ;;  %v4051_v17 = vrot.slane %v3106_v0, 5  ;;  %v9909_v0 = vld [vmem:[#allocation2 + $0x20] sm:$0x1] }
  0xd6   :  { %v1018_v60 = vsel %vm9744_vm13, %v1010_v56, %v1017_v7  ;;  %v1620_v61 = vsel %vm9663_vm4, %v1019_v6, %v1619_v1  ;;  %v894_v20 = vpack.c.bf16 %v617_v9, %v617_v9  ;;  %v6213_v23 = vunpack.c.l.b16 %v4049_v14  ;;  %v9441_v14 = vld [vmem:[#allocation2 + $0x24] sm:$0xff] }
  0xd7   :  { %1618 = vst.msk [vmem:[#allocation2 + $0x34] sm:$0xf] %vm673_vm5, %v1018_v60  ;;  %v407_v24 = vpop.f32.mrf.mxu0  ;;  %v6786_v59 = vpack.c.b16 %v6724_v12, %v6723_v2  ;;  %v4052_v25 = vsel %vm9696_vm10, %v4050_v15, %v4051_v17  ;;  %v4380_v21 = vrot.slane %v4378_v4, 4  ;;  %v4381_v43 = vshll.u32 %v4259_v51, 16  ;;  %v9355_v2 = vld [vmem:[%s13654_s0 + $0x68] sm:$0xff] }
  0xd8   :  { %1621 = vst [vmem:[#allocation2 + $0x38] sm:$0x1] %v1620_v61  ;;  %v1021_v26 = vshrl.u32 %v894_v20, 16  ;;  %v1024_v28 = vshll.u32 %v894_v20, 16  ;;  %v408_v29 = vadd.f32 %v9713_v36, %v407_v24  ;;  %v6214_v30 = vunpack.c.l.b16 %v4052_v25 }
  0xd9   :  { %9242 = vmatmul.msk.bf16.gmra.mxu3 %vm6817_vm2, %v6786_v59  ;;  %v4383_v33 = vrot.slane %v4381_v43, 5  ;;  %v4387_v37 = vshll.u32 %v9864_v35, 16  ;;  %v4391_v38 = vshrl.u32 %v9864_v35, 16  ;;  %v4397_v39 = vshll.u32 %v9867_v47, 16  ;;  %v1626_v43 = vld [vmem:[#allocation2 + $0x44] sm:$0x1] }
  0xda   :  { %v9896_v40 = vrot.slane %v1021_v26, 7  ;;  %5697 = vrot.lane.b32.xlu1 %v5665_v10, %s9583_s1  ;;  %v554_v22 = vmul.f32 0.2, %v408_v29  ;;  %v6275_v41 = vpack.c.b16 %v6214_v30, %v6213_v23  ;;  %v708_v42 = vsel %vm9663_vm4, 0, %v707_v16 }
  0xdb   :  { %v4384_v46 = vor.u32 %v4383_v33, %v4380_v21  ;;  %v4389_v48 = vrot.slane %v4387_v37, 5  ;;  %v4393_v49 = vrot.slane %v4391_v38, 4  ;;  %v4399_v51 = vrot.slane %v4397_v39, 5  ;;  %709 = vst [vmem:[#allocation2 + $0x48] sm:$0x1] %v708_v42 }
  0xdc   :  { %v1026_v35 = vor.u32 %v1024_v28, %v9896_v40  ;;  %v1027_v47 = vrot.slane %v9896_v40, 4  ;;  %v618_v52 = vmax.f32 %v408_v29, %v554_v22  ;;  %6309 = vrot.lane.b32.xlu0 %v6275_v41, %s9583_s1  ;;  %v1966_v54 = vshrl.u32 %v1822_v31, 16  ;;  %v805_v37 = vld [vmem:[#allocation2 + $0x50] sm:$0x1] }
  0xdd   :  { %v4385_v8 = vrot.slane %v4384_v46, 4  ;;  %v4394_v55 = vor.u32 %v4393_v49, %v4389_v48  ;;  %v1969_v56 = vshll.u32 %v1822_v31, 16  ;;  %v1975_v58 = vshll.u32 %v9901_v44, 16  ;;  %v5123_v49 = vld [vmem:[#allocation2 + $0x30] sm:$0xe] }
  0xde   :  { %v1623_v62 = vsel %vm9727_vm11, %v1026_v35, %v1622_v32  ;;  %v895_v63 = vpack.c.bf16 %v618_v52, %v618_v52  ;;  %v1968_v1 = vrot.slane %v1966_v54, 4  ;;  %v1979_v57 = vshrl.u32 %v9901_v44, 16  ;;  %v9936_v46 = vld [vmem:[#allocation2 + $0x34] sm:$0xf] }
  0xdf   :  { %1624 = vst [vmem:[#allocation2 + $0x3c] sm:$0xf] %v1623_v62  ;;  %v4390_v3 = vsel %vm9791_vm0, %v4385_v8, %v4389_v48  ;;  %v4395_v4 = vrot.slane %v4394_v55, 4  ;;  %v410_v7 = vpop.f32.mrf.mxu0  ;;  %v1971_v6 = vrot.slane %v1969_v56, 5  ;;  %v1977_v9 = vrot.slane %v1975_v58, 5 }
  0xe0   :  { %v1029_v10 = vshrl.u32 %v895_v63, 16  ;;  %v1032_v12 = vshll.u32 %v895_v63, 16  ;;  %v6563_v15 = vunpack.c.l.b16 %v4390_v3  ;;  %v411_v17 = vadd.f32 %v9713_v36, %v410_v7  ;;  %v9938_v48 = vld [vmem:[#allocation2 + $0x38] sm:$0x1]  ;;  %v3907_v56 = vld [vmem:[#allocation2 + $0x30] sm:$0xe] }
  0xe1   :  { %v4400_v60 = vsel %vm9791_vm0, %v4395_v4, %v4399_v51  ;;  %v1972_v61 = vor.u32 %v1971_v6, %v1968_v1  ;;  %v1981_v20 = vrot.slane %v1979_v57, 4  ;;  %v1985_v23 = vshll.u32 %v9909_v0, 16  ;;  %v4261_v57 = vld [vmem:[#allocation2 + $0x30] sm:$0xf]  ;;  %v3047_v7 = vld [vmem:[#allocation2 + $0x34] sm:$0xf] }
  0xe2   :  { %v1031_v24 = vrot.slane %v1029_v10, 7  ;;  %6499 = vrot.lane.b32.xlu1 %v9441_v14, %s9581_s22  ;;  %v6564_v59 = vunpack.c.l.b16 %v4400_v60  ;;  %v555_v25 = vmul.f32 0.2, %v411_v17  ;;  %8670 = vmatmul.msk.bf16.gmra.mxu0 %vm275_vm1, %v9355_v2  ;;  %v2825_v21 = vrot.slane %v9768_v50, 5  ;;  %v3107_v6 = vld [vmem:[#allocation2 + $0x38] sm:$0x1] }
  0xe3   :  { %v1973_v16 = vrot.slane %v1972_v61, 4  ;;  %v1982_v26 = vor.u32 %v1981_v20, %v1977_v9  ;;  %v1987_v28 = vrot.slane %v1985_v23, 5  ;;  %v2828_v29 = vrot.slane %v9785_v19, 5  ;;  %v9409_v60 = vld [vmem:[#allocation2 + $0x18] sm:$0xff] }
  0xe4   :  { %v1034_v30 = vor.u32 %v1032_v12, %v1031_v24  ;;  %v1036_v31 = vrot.slane %v1031_v24, 4  ;;  %v6626_v32 = vpack.c.b16 %v6564_v59, %v6563_v15  ;;  %v619_v33 = vmax.f32 %v411_v17, %v555_v25 }
  0xe5   :  { %v1978_v38 = vsel %vm9791_vm0, %v1973_v16, %v1977_v9  ;;  %v1983_v39 = vrot.slane %v1982_v26, 4  ;;  %v2826_v50 = vsel %vm9696_vm10, %v8690_v45, %v2825_v21  ;;  %v2827_v40 = vrot.slane %v2825_v21, 4  ;;  %v1629_v9 = vld [vmem:[#allocation2 + $0x48] sm:$0xf] }
  0xe6   :  { %v1035_v22 = vsel %vm9744_vm13, %v1027_v47, %v1034_v30  ;;  %v1627_v19 = vsel %vm9663_vm4, %v1036_v31, %v1626_v43  ;;  %6659 = vrot.lane.b32.xlu2 %v6626_v32, %s9582_s12  ;;  %v896_v41 = vpack.c.bf16 %v619_v33, %v619_v33  ;;  %v5605_v42 = vunpack.c.l.b16 %v1978_v38 }
  0xe7   :  { %1625 = vst.msk [vmem:[#allocation2 + $0x40] sm:$0xf] %vm673_vm5, %v1035_v22  ;;  %v1988_v11 = vsel %vm9791_vm0, %v1983_v39, %v1987_v28  ;;  %v2829_v45 = vsel %vm9696_vm10, %v2827_v40, %v2828_v29  ;;  %v5763_v51 = vunpack.c.l.b16 %v2826_v50  ;;  %v412_v35 = vpop.f32.mrf.mxu0  ;;  %v806_v47 = vsel %vm9676_vm7, 0, %v805_v37  ;;  %v9356_v28 = vld [vmem:[%s13654_s0 + $0x70] sm:$0xff]  ;;  %v1824_v22 = vld [vmem:[#allocation2 + $0x24] sm:$0xf] }
  0xe8   :  { %1628 = vst [vmem:[#allocation2 + $0x44] sm:$0x1] %v1627_v19  ;;  %v1038_v52 = vshrl.u32 %v896_v41, 16  ;;  %v1041_v54 = vshll.u32 %v896_v41, 16  ;;  %v5606_v8 = vunpack.c.l.b16 %v1988_v11  ;;  %v5764_v55 = vunpack.c.l.b16 %v2829_v45  ;;  %v710_v40 = vld [vmem:[#allocation2 + $0x54] sm:$0x1] }
  0xe9   :  { %v413_v58 = vadd.f32 %v9713_v36, %v412_v35  ;;  %807 = vst [vmem:[#allocation2 + $0x50] sm:$0x1] %v806_v47  ;;  %v8755_v62 = vrot.slane %v5123_v49, 9  ;;  %v5265_v63 = vrot.slane %v9936_v46, 5  ;;  %v5268_v1 = vrot.slane %v9938_v48, 5  ;;  %v9442_v47 = vld [vmem:[#allocation2 + $0x30] sm:$0xff] }
  0xea   :  { %v9950_v2 = vrot.slane %v1038_v52, 7  ;;  %v5667_v3 = vpack.c.b16 %v5606_v8, %v5605_v42  ;;  %v5826_v4 = vpack.c.b16 %v5764_v55, %v5763_v51  ;;  %v8724_v20 = vrot.slane %v3907_v56, 9  ;;  %v9974_v52 = vld [vmem:[#allocation2 + $0x28] sm:$0xf] }
  0xeb   :  { %v556_v10 = vmul.f32 0.2, %v413_v58  ;;  %v5266_v12 = vsel %vm9696_vm10, %v8755_v62, %v5265_v63  ;;  %v5267_v14 = vrot.slane %v5265_v63, 4  ;;  %v4055_v59 = vrot.slane %v3047_v7, 5 }
  0xec   :  { %v1043_v15 = vor.u32 %v1041_v54, %v9950_v2  ;;  %v1044_v17 = vrot.slane %v9950_v2, 4  ;;  %5701 = vrot.lane.b32.xlu0 %v5667_v3, %s9583_s1  ;;  %5859 = vrot.lane.b32.xlu1 %v5826_v4, %s9581_s22  ;;  %v6725_v61 = vunpack.c.l.b16 %v5266_v12  ;;  %v4058_v25 = vrot.slane %v3107_v6, 5 }
  0xed   :  { %v620_v23 = vmax.f32 %v413_v58, %v556_v10  ;;  %v5269_v24 = vsel %vm9696_vm10, %v5267_v14, %v5268_v1  ;;  %v4402_v16 = vshrl.u32 %v4261_v57, 16  ;;  %v4405_v26 = vshll.u32 %v4261_v57, 16  ;;  %v2687_v14 = vld [vmem:[#allocation2 + $0x18] sm:$0xe] }
  0xee   :  { %v1630_v21 = vsel %vm9727_vm11, %v1043_v15, %v1629_v9  ;;  %6051 = vrot.lane.b32.xlu2 %v9409_v60, %s9582_s12  ;;  %v6726_v43 = vunpack.c.l.b16 %v5269_v24  ;;  %v4056_v30 = vsel %vm9696_vm10, %v8724_v20, %v4055_v59  ;;  %v4057_v31 = vrot.slane %v4055_v59, 4  ;;  %v9984_v9 = vld [vmem:[#allocation2 + $0x2c] sm:$0x1] }
  0xef   :  { %1631 = vst [vmem:[#allocation2 + $0x48] sm:$0xf] %v1630_v21  ;;  %v897_v29 = vpack.c.bf16 %v620_v23, %v620_v23  ;;  %v4411_v32 = vshll.u32 %v9936_v46, 16  ;;  %v6215_v37 = vunpack.c.l.b16 %v4056_v30  ;;  %v4404_v38 = vrot.slane %v4402_v16, 4  ;;  %v415_v50 = vpop.f32.mrf.mxu0 }
  0xf0   :  { %v6787_v33 = vpack.c.b16 %v6726_v43, %v6725_v61  ;;  %v4407_v39 = vrot.slane %v4405_v26, 5  ;;  %v4059_v42 = vsel %vm9696_vm10, %v4057_v31, %v4058_v25  ;;  %v4415_v51 = vshrl.u32 %v9936_v46, 16  ;;  %v1633_v8 = vld [vmem:[#allocation2 + $0x50] sm:$0x1] }
  0xf1   :  { %v1046_v19 = vshrl.u32 %v897_v29, 16  ;;  %v1049_v41 = vshll.u32 %v897_v29, 16  ;;  %v4413_v49 = vrot.slane %v4411_v32, 5  ;;  %v6216_v11 = vunpack.c.l.b16 %v4059_v42 }
  0xf2   :  { %9243 = vmatmul.msk.bf16.gmra.mxu3 %vm6817_vm2, %v6787_v33  ;;  %v4408_v45 = vor.u32 %v4407_v39, %v4404_v38  ;;  %v4421_v35 = vshll.u32 %v9938_v48, 16  ;;  %8671 = vmatmul.msk.bf16.gmra.mxu0 %vm275_vm1, %v9356_v28  ;;  %v416_v55 = vadd.f32 %v9713_v36, %v415_v50  ;;  %v711_v56 = vsel %vm9663_vm4, 0, %v710_v40  ;;  %v808_v38 = vld [vmem:[#allocation2 + $0x5c] sm:$0x1] }
  0xf3   :  { %v1048_v54 = vrot.slane %v1046_v19, 7  ;;  %v1990_v58 = vshrl.u32 %v1824_v22, 16  ;;  %v6276_v62 = vpack.c.b16 %v6216_v11, %v6215_v37  ;;  %v4417_v1 = vrot.slane %v4415_v51, 4  ;;  %712 = vst [vmem:[#allocation2 + $0x54] sm:$0x1] %v711_v56 }
  0xf4   :  { %v4409_v63 = vrot.slane %v4408_v45, 4  ;;  %v4423_v57 = vrot.slane %v4421_v35, 5  ;;  %6501 = vrot.lane.b32.xlu1 %v9442_v47, %s9581_s22  ;;  %v557_v3 = vmul.f32 0.2, %v416_v55  ;;  %v1993_v10 = vshll.u32 %v1824_v22, 16 }
  0xf5   :  { %v1051_v46 = vor.u32 %v1049_v41, %v1048_v54  ;;  %v1053_v48 = vrot.slane %v1048_v54, 4  ;;  %v1992_v4 = vrot.slane %v1990_v58, 4  ;;  %6311 = vrot.lane.b32.xlu0 %v6276_v62, %s9583_s1  ;;  %v4418_v6 = vor.u32 %v4417_v1, %v4413_v49  ;;  %v9357_v54 = vld [vmem:[%s13654_s0 + $0x78] sm:$0xff] }
  0xf6   :  { %v4414_v7 = vsel %vm9791_vm0, %v4409_v63, %v4413_v49  ;;  %v1999_v12 = vshll.u32 %v9974_v52, 16  ;;  %v621_v20 = vmax.f32 %v416_v55, %v557_v3  ;;  %v1995_v24 = vrot.slane %v1993_v10, 5  ;;  %v5124_v49 = vld [vmem:[#allocation2 + $0x3c] sm:$0xe] }
  0xf7   :  { %v1052_v15 = vsel %vm9744_vm13, %v1044_v17, %v1051_v46  ;;  %v1634_v60 = vsel %vm9663_vm4, %v1053_v48, %v1633_v8  ;;  %v6565_v61 = vunpack.c.l.b16 %v4414_v7  ;;  %v4419_v23 = vrot.slane %v4418_v6, 4  ;;  %v417_v30 = vpop.f32.mrf.mxu0  ;;  %v3049_v7 = vld [vmem:[#allocation2 + $0x40] sm:$0xf]  ;;  %v3108_v6 = vld [vmem:[#allocation2 + $0x44] sm:$0x1] }
  0xf8   :  { %1632 = vst.msk [vmem:[#allocation2 + $0x4c] sm:$0xf] %vm673_vm5, %v1052_v15  ;;  %v2001_v59 = vrot.slane %v1999_v12, 5  ;;  %v2003_v25 = vshrl.u32 %v9974_v52, 16  ;;  %v898_v21 = vpack.c.bf16 %v621_v20, %v621_v20  ;;  %v2009_v43 = vshll.u32 %v9984_v9, 16 }
  0xf9   :  { %1635 = vst [vmem:[#allocation2 + $0x50] sm:$0x1] %v1634_v60  ;;  %v8691_v2 = vrot.slane %v2687_v14, 9  ;;  %v2832_v16 = vrot.slane %v9901_v44, 5  ;;  %v4424_v17 = vsel %vm9791_vm0, %v4419_v23, %v4423_v57  ;;  %v1996_v26 = vor.u32 %v1995_v24, %v1992_v4  ;;  %v10002_v44 = vld [vmem:[#allocation2 + $0x40] sm:$0xf] }
  0xfa   :  { %v2005_v28 = vrot.slane %v2003_v25, 4  ;;  %v2835_v29 = vrot.slane %v9909_v0, 5  ;;  %v6566_v31 = vunpack.c.l.b16 %v4424_v17  ;;  %v1055_v32 = vshrl.u32 %v898_v21, 16  ;;  %v10007_v0 = vld [vmem:[#allocation2 + $0x44] sm:$0x1] }
  0xfb   :  { %v1058_v33 = vshll.u32 %v898_v21, 16  ;;  %v2011_v37 = vrot.slane %v2009_v43, 5  ;;  %v1997_v39 = vrot.slane %v1996_v26, 4  ;;  %v2833_v40 = vsel %vm9696_vm10, %v8691_v2, %v2832_v16  ;;  %v1636_v11 = vld [vmem:[#allocation2 + $0x54] sm:$0xf]  ;;  %v9410_v43 = vld [vmem:[#allocation2 + $0x24] sm:$0xff] }
  0xfc   :  { %v2006_v50 = vor.u32 %v2005_v28, %v2001_v59  ;;  %v2834_v22 = vrot.slane %v2832_v16, 4  ;;  %v6627_v19 = vpack.c.b16 %v6566_v31, %v6565_v61  ;;  %v10004_v41 = vrot.slane %v1055_v32, 7  ;;  %v3908_v57 = vld [vmem:[#allocation2 + $0x3c] sm:$0xe] }
  0xfd   :  { %v418_v42 = vadd.f32 %v9713_v36, %v417_v30  ;;  %v2002_v45 = vsel %vm9791_vm0, %v1997_v39, %v2001_v59  ;;  %v809_v47 = vsel %vm9676_vm7, 0, %v808_v38  ;;  %v5765_v55 = vunpack.c.l.b16 %v2833_v40  ;;  %v4263_v15 = vld [vmem:[#allocation2 + $0x3c] sm:$0xf] }
  0xfe   :  { %v2007_v51 = vrot.slane %v2006_v50, 4  ;;  %v2836_v35 = vsel %vm9696_vm10, %v2834_v22, %v2835_v29  ;;  %6661 = vrot.lane.b32.xlu2 %v6627_v19, %s9582_s12  ;;  %v1060_v36 = vor.u32 %v1058_v33, %v10004_v41  ;;  %v5607_v8 = vunpack.c.l.b16 %v2002_v45  ;;  %810 = vst [vmem:[#allocation2 + $0x5c] sm:$0x1] %v809_v47  ;;  %v713_v50 = vld [vmem:[#allocation2 + $0x60] sm:$0x1] }
  0xff   :  { %v5766_v56 = vunpack.c.l.b16 %v2836_v35  ;;  %v558_v62 = vmul.f32 0.2, %v418_v42  ;;  %v8756_v63 = vrot.slane %v5124_v49, 9  ;;  %v5272_v1 = vrot.slane %v10002_v44, 5  ;;  %v420_v39 = vpop.f32.mrf.mxu0  ;;  %v10046_v35 = vld [vmem:[%s13653_s2] ss:$0 sm:$0xff] }
 0x100   :  { %v2012_v58 = vsel %vm9791_vm0, %v2007_v51, %v2011_v37  ;;  %v1637_v46 = vsel %vm9727_vm11, %v1060_v36, %v1636_v11  ;;  %v5275_v4 = vrot.slane %v10007_v0, 5  ;;  %v1061_v60 = vrot.slane %v10004_v41, 4  ;;  %v9443_v51 = vld [vmem:[#allocation2 + $0x3c] sm:$0xff] }
 0x101   :  { %v5608_v48 = vunpack.c.l.b16 %v2012_v58  ;;  %v5827_v3 = vpack.c.b16 %v5766_v56, %v5765_v55  ;;  %1638 = vst [vmem:[#allocation2 + $0x54] sm:$0xf] %v1637_v46  ;;  %v622_v10 = vmax.f32 %v418_v42, %v558_v62  ;;  %v5273_v12 = vsel %vm9696_vm10, %v8756_v63, %v5272_v1  ;;  %v10051_v56 = vld [vmem:[#allocation2 + $0x34] sm:$0xf] }
 0x102   :  { %v5274_v14 = vrot.slane %v5272_v1, 4  ;;  %8672 = vmatmul.msk.bf16.gmra.mxu0 %vm275_vm1, %v9357_v54  ;;  %v6727_v20 = vunpack.c.l.b16 %v5273_v12  ;;  %v8725_v23 = vrot.slane %v3908_v57, 9  ;;  %v4062_v25 = vrot.slane %v3049_v7, 5  ;;  %v1826_v54 = vld [vmem:[#allocation2 + $0x30] sm:$0xf] }
 0x103   :  { %v5668_v61 = vpack.c.b16 %v5608_v48, %v5607_v8  ;;  %5861 = vrot.lane.b32.xlu1 %v5827_v3, %s9581_s22  ;;  %v899_v24 = vpack.c.bf16 %v622_v10, %v622_v10  ;;  %v4065_v21 = vrot.slane %v3108_v6, 5  ;;  %v4426_v16 = vshrl.u32 %v4263_v15, 16  ;;  %v10058_v48 = vld [vmem:[#allocation2 + $0x38] sm:$0x1]  ;;  %v2688_v12 = vld [vmem:[#allocation2 + $0x24] sm:$0xe] }
 0x104   :  { %v5276_v59 = vsel %vm9696_vm10, %v5274_v14, %v5275_v4  ;;  %v4429_v17 = vshll.u32 %v4263_v15, 16  ;;  %v4435_v26 = vshll.u32 %v10002_v44, 16  ;;  %v4063_v30 = vsel %vm9696_vm10, %v8725_v23, %v4062_v25 }
 0x105   :  { %5703 = vrot.lane.b32.xlu0 %v5668_v61, %s9583_s1  ;;  %v6728_v2 = vunpack.c.l.b16 %v5276_v59  ;;  %v1063_v28 = vshrl.u32 %v899_v24, 16  ;;  %v1066_v29 = vshll.u32 %v899_v24, 16  ;;  %v4064_v31 = vrot.slane %v4062_v25, 4  ;;  %v1640_v42 = vld [vmem:[#allocation2 + $0x5c] sm:$0x1] }
 0x106   :  { %6053 = vrot.lane.b32.xlu2 %v9410_v43, %s9582_s12  ;;  %v6217_v33 = vunpack.c.l.b16 %v4063_v30  ;;  %v4428_v37 = vrot.slane %v4426_v16, 4  ;;  %v4431_v38 = vrot.slane %v4429_v17, 5  ;;  %v4437_v19 = vrot.slane %v4435_v26, 5  ;;  %v811_v30 = vld [vmem:[#allocation2 + $0x68] sm:$0x1] }
 0x107   :  { %v6788_v32 = vpack.c.b16 %v6728_v2, %v6727_v20  ;;  %v1065_v40 = vrot.slane %v1063_v28, 7  ;;  %v4066_v22 = vsel %vm9696_vm10, %v4064_v31, %v4065_v21  ;;  %v4439_v41 = vshrl.u32 %v10002_v44, 16  ;;  %v9358_v31 = vld [vmem:[%s13654_s0 + $0x80] sm:$0xff] }
 0x108   :  { %v6218_v49 = vunpack.c.l.b16 %v4066_v22  ;;  %v4432_v11 = vor.u32 %v4431_v38, %v4428_v37  ;;  %v4445_v45 = vshll.u32 %v10007_v0, 16  ;;  %v421_v47 = vadd.f32 %v10046_v35, %v420_v39  ;;  %v10078_v22 = vld [vmem:[#allocation2 + $0x4c] sm:$0xf] }
 0x109   :  { %9244 = vmatmul.msk.bf16.gmra.mxu3 %vm6817_vm2, %v6788_v32  ;;  %v1068_v36 = vor.u32 %v1066_v29, %v1065_v40  ;;  %v1070_v8 = vrot.slane %v1065_v40, 4  ;;  %v4441_v55 = vrot.slane %v4439_v41, 4  ;;  %v714_v44 = vsel %vm9663_vm4, 0, %v713_v50  ;;  %v422_v29 = vpop.f32.mrf.mxu0 }
 0x10a   :  { %v6277_v58 = vpack.c.b16 %v6218_v49, %v6217_v33  ;;  %v4433_v62 = vrot.slane %v4432_v11, 4  ;;  %v4447_v0 = vrot.slane %v4445_v45, 5  ;;  %v559_v63 = vmul.f32 0.2, %v421_v47  ;;  %715 = vst [vmem:[#allocation2 + $0x60] sm:$0x1] %v714_v44 }
 0x10b   :  { %6503 = vrot.lane.b32.xlu1 %v9443_v51, %s9581_s22  ;;  %v1069_v1 = vsel %vm9744_vm13, %v1061_v60, %v1068_v36  ;;  %v1641_v57 = vsel %vm9663_vm4, %v1070_v8, %v1640_v42  ;;  %v4442_v46 = vor.u32 %v4441_v55, %v4437_v19  ;;  %v2014_v3 = vshrl.u32 %v1826_v54, 16  ;;  %v5125_v45 = vld [vmem:[#allocation2 + $0x48] sm:$0xe] }
 0x10c   :  { %1639 = vst.msk [vmem:[#allocation2 + $0x58] sm:$0xf] %vm673_vm5, %v1069_v1  ;;  %v4438_v4 = vsel %vm9791_vm0, %v4433_v62, %v4437_v19  ;;  %v623_v7 = vmax.f32 %v421_v47, %v559_v63  ;;  %v2017_v6 = vshll.u32 %v1826_v54, 16  ;;  %v2023_v10 = vshll.u32 %v10051_v56, 16  ;;  %v10090_v54 = vld [vmem:[#allocation2 + $0x50] sm:$0x1] }
 0x10d   :  { %6313 = vrot.lane.b32.xlu0 %v6277_v58, %s9583_s1  ;;  %1642 = vst [vmem:[#allocation2 + $0x5c] sm:$0x1] %v1641_v57  ;;  %v4443_v14 = vrot.slane %v4442_v46, 4  ;;  %v6567_v15 = vunpack.c.l.b16 %v4438_v4  ;;  %v2016_v60 = vrot.slane %v2014_v3, 4  ;;  %v2027_v61 = vshrl.u32 %v10051_v56, 16 }
 0x10e   :  { %v900_v20 = vpack.c.bf16 %v623_v7, %v623_v7  ;;  %v2019_v23 = vrot.slane %v2017_v6, 5  ;;  %v2025_v24 = vrot.slane %v2023_v10, 5  ;;  %v2033_v59 = vshll.u32 %v10058_v48, 16  ;;  %v3051_v58 = vld [vmem:[#allocation2 + $0x4c] sm:$0xf] }
 0x10f   :  { %v4448_v25 = vsel %vm9791_vm0, %v4443_v14, %v4447_v0  ;;  %v2029_v21 = vrot.slane %v2027_v61, 4  ;;  %v8692_v43 = vrot.slane %v2688_v12, 9  ;;  %v2839_v2 = vrot.slane %v9974_v52, 5  ;;  %v3109_v57 = vld [vmem:[#allocation2 + $0x50] sm:$0x1] }
 0x110   :  { %v6568_v16 = vunpack.c.l.b16 %v4448_v25  ;;  %v1072_v17 = vshrl.u32 %v900_v20, 16  ;;  %v1075_v26 = vshll.u32 %v900_v20, 16  ;;  %v2020_v28 = vor.u32 %v2019_v23, %v2016_v60  ;;  %v3909_v46 = vld [vmem:[#allocation2 + $0x48] sm:$0xe]  ;;  %v10097_v3 = vld [vmem:[#allocation2 + $0x10] sm:$0xf] }
 0x111   :  { %v2030_v32 = vor.u32 %v2029_v21, %v2025_v24  ;;  %v2035_v33 = vrot.slane %v2033_v59, 5  ;;  %v2840_v37 = vsel %vm9696_vm10, %v8692_v43, %v2839_v2  ;;  %v2841_v38 = vrot.slane %v2839_v2, 4  ;;  %v1643_v19 = vld [vmem:[#allocation2 + $0x60] sm:$0xf]  ;;  %v4265_v12 = vld [vmem:[#allocation2 + $0x48] sm:$0xf] }
 0x112   :  { %v6628_v39 = vpack.c.b16 %v6568_v16, %v6567_v15  ;;  %v10075_v50 = vrot.slane %v1072_v17, 7  ;;  %v2021_v52 = vrot.slane %v2020_v28, 4  ;;  %v2842_v40 = vrot.slane %v9984_v9, 5  ;;  %8673 = vmatmul.msk.bf16.gmra.mxu0 %vm275_vm1, %v9358_v31  ;;  %v9411_v25 = vld [vmem:[#allocation2 + $0x30] sm:$0xff] }
 0x113   :  { %v2031_v41 = vrot.slane %v2030_v32, 4  ;;  %v5767_v42 = vunpack.c.l.b16 %v2840_v37  ;;  %v423_v49 = vadd.f32 %v10046_v35, %v422_v29  ;;  %v812_v11 = vsel %vm9676_vm7, 0, %v811_v30  ;;  %v425_v30 = vpop.f32.mrf.mxu0 }
 0x114   :  { %6663 = vrot.lane.b32.xlu2 %v6628_v39, %s9582_s12  ;;  %v1077_v51 = vor.u32 %v1075_v26, %v10075_v50  ;;  %v2026_v9 = vsel %vm9791_vm0, %v2021_v52, %v2025_v24  ;;  %v2843_v47 = vsel %vm9696_vm10, %v2841_v38, %v2842_v40  ;;  %813 = vst [vmem:[#allocation2 + $0x68] sm:$0x1] %v812_v11  ;;  %v8757_v63 = vrot.slane %v5125_v45, 9  ;;  %v716_v45 = vld [vmem:[#allocation2 + $0x6c] sm:$0x1] }
 0x115   :  { %v2036_v36 = vsel %vm9791_vm0, %v2031_v41, %v2035_v33  ;;  %v5609_v8 = vunpack.c.l.b16 %v2026_v9  ;;  %v5768_v55 = vunpack.c.l.b16 %v2843_v47  ;;  %v560_v44 = vmul.f32 0.2, %v423_v49 }
 0x116   :  { %v1644_v62 = vsel %vm9727_vm11, %v1077_v51, %v1643_v19  ;;  %v5610_v0 = vunpack.c.l.b16 %v2036_v36  ;;  %v5279_v1 = vrot.slane %v10078_v22, 5  ;;  %v3146_v4 = vshll.u32 %v10097_v3, 16 }
 0x117   :  { %1645 = vst [vmem:[#allocation2 + $0x60] sm:$0xf] %v1644_v62  ;;  %v5828_v7 = vpack.c.b16 %v5768_v55, %v5767_v42  ;;  %v624_v6 = vmax.f32 %v423_v49, %v560_v44  ;;  %v5282_v10 = vrot.slane %v10090_v54, 5  ;;  %v1078_v14 = vrot.slane %v10075_v50, 4  ;;  %v9444_v49 = vld [vmem:[#allocation2 + $0x48] sm:$0xff] }
 0x118   :  { %v5669_v15 = vpack.c.b16 %v5610_v0, %v5609_v8  ;;  %v5280_v60 = vsel %vm9696_vm10, %v8757_v63, %v5279_v1  ;;  %v5281_v61 = vrot.slane %v5279_v1, 4  ;;  %v8726_v24 = vrot.slane %v3909_v46, 9  ;;  %v1828_v8 = vld [vmem:[#allocation2 + $0x3c] sm:$0xf]  ;;  %v10118_v55 = vld [vmem:[#allocation2 + $0x40] sm:$0xf] }
 0x119   :  { %5863 = vrot.lane.b32.xlu1 %v5828_v7, %s9581_s22  ;;  %v901_v20 = vpack.c.bf16 %v624_v6, %v624_v6  ;;  %v6729_v23 = vunpack.c.l.b16 %v5280_v60  ;;  %v4069_v59 = vrot.slane %v3051_v58, 5  ;;  %v4072_v43 = vrot.slane %v3109_v57, 5  ;;  %v10127_v57 = vld [vmem:[#allocation2 + $0x44] sm:$0x1] }
 0x11a   :  { %5705 = vrot.lane.b32.xlu0 %v5669_v15, %s9583_s1  ;;  %v5283_v21 = vsel %vm9696_vm10, %v5281_v61, %v5282_v10  ;;  %v4450_v2 = vshrl.u32 %v4265_v12, 16  ;;  %v4453_v16 = vshll.u32 %v4265_v12, 16  ;;  %v4459_v50 = vshll.u32 %v10078_v22, 16  ;;  %v2689_v12 = vld [vmem:[#allocation2 + $0x30] sm:$0xe] }
 0x11b   :  { %v1080_v17 = vshrl.u32 %v901_v20, 16  ;;  %v1083_v26 = vshll.u32 %v901_v20, 16  ;;  %v6730_v28 = vunpack.c.l.b16 %v5283_v21  ;;  %v4070_v29 = vsel %vm9696_vm10, %v8726_v24, %v4069_v59  ;;  %v1647_v40 = vld [vmem:[#allocation2 + $0x68] sm:$0x1]  ;;  %v814_v20 = vld [vmem:[#allocation2 + $0x74] sm:$0x1] }
 0x11c   :  { %6055 = vrot.lane.b32.xlu2 %v9411_v25, %s9582_s12  ;;  %v4071_v31 = vrot.slane %v4069_v59, 4  ;;  %v6219_v32 = vunpack.c.l.b16 %v4070_v29  ;;  %v4452_v33 = vrot.slane %v4450_v2, 4  ;;  %v4455_v37 = vrot.slane %v4453_v16, 5 }
 0x11d   :  { %v1082_v38 = vrot.slane %v1080_v17, 7  ;;  %v6789_v39 = vpack.c.b16 %v6730_v28, %v6729_v23  ;;  %v4463_v52 = vshrl.u32 %v10078_v22, 16  ;;  %v4469_v42 = vshll.u32 %v10090_v54, 16  ;;  %v427_v17 = vpop.f32.mrf.mxu0 }
 0x11e   :  { %v4073_v19 = vsel %vm9696_vm10, %v4071_v31, %v4072_v43  ;;  %v4456_v41 = vor.u32 %v4455_v37, %v4452_v33  ;;  %v426_v11 = vadd.f32 %v10046_v35, %v425_v30  ;;  %v4461_v36 = vrot.slane %v4459_v50, 5 }
 0x11f   :  { %v1085_v51 = vor.u32 %v1083_v26, %v1082_v38  ;;  %v1087_v9 = vrot.slane %v1082_v38, 4  ;;  %9245 = vmatmul.msk.bf16.gmra.mxu3 %vm6817_vm2, %v6789_v39  ;;  %v6220_v47 = vunpack.c.l.b16 %v4073_v19  ;;  %v4465_v44 = vrot.slane %v4463_v52, 4  ;;  %v9487_v26 = vld [vmem:[%s13655_s3 + $0x78] sm:$0xff] }
 0x120   :  { %v4457_v22 = vrot.slane %v4456_v41, 4  ;;  %v4471_v58 = vrot.slane %v4469_v42, 5  ;;  %v561_v62 = vmul.f32 0.2, %v426_v11  ;;  %v717_v1 = vsel %vm9663_vm4, 0, %v716_v45  ;;  %7745 = vmatpush.bf16.msra.mxu2 %v9487_v26 }
 0x121   :  { %v1086_v54 = vsel %vm9744_vm13, %v1078_v14, %v1085_v51  ;;  %v1648_v0 = vsel %vm9663_vm4, %v1087_v9, %v1647_v40  ;;  %v6278_v63 = vpack.c.b16 %v6220_v47, %v6219_v32  ;;  %6505 = vrot.lane.b32.xlu1 %v9444_v49, %s9581_s22  ;;  %v4466_v7 = vor.u32 %v4465_v44, %v4461_v36  ;;  %v9359_v32 = vld [vmem:[%s13654_s0 + $0x88] sm:$0xff]  ;;  %v10151_v41 = vld [vmem:[#allocation2 + $0x58] sm:$0xf]  ;;  %v5126_v42 = vld [vmem:[#allocation2 + $0x54] sm:$0xe] }
 0x122   :  { %1646 = vst.msk [vmem:[#allocation2 + $0x64] sm:$0xf] %vm673_vm5, %v1086_v54  ;;  %v4462_v46 = vsel %vm9791_vm0, %v4457_v22, %v4461_v36  ;;  %v625_v6 = vmax.f32 %v426_v11, %v561_v62  ;;  %v2038_v10 = vshrl.u32 %v1828_v8, 16  ;;  %v2041_v15 = vshll.u32 %v1828_v8, 16  ;;  %8674 = vmatmul.msk.bf16.gmra.mxu0 %vm275_vm1, %v9359_v32  ;;  %v10161_v8 = vld [vmem:[#allocation2 + $0x5c] sm:$0x1] }
 0x123   :  { %1649 = vst [vmem:[#allocation2 + $0x68] sm:$0x1] %v1648_v0  ;;  %6315 = vrot.lane.b32.xlu0 %v6278_v63, %s9583_s1  ;;  %v6569_v14 = vunpack.c.l.b16 %v4462_v46  ;;  %v2047_v60 = vshll.u32 %v10118_v55, 16  ;;  %v2051_v61 = vshrl.u32 %v10118_v55, 16  ;;  %v4467_v23 = vrot.slane %v4466_v7, 4 }
 0x124   :  { %718 = vst [vmem:[#allocation2 + $0x6c] sm:$0x1] %v717_v1  ;;  %v902_v24 = vpack.c.bf16 %v625_v6, %v625_v6  ;;  %v2040_v59 = vrot.slane %v2038_v10, 4  ;;  %v2057_v25 = vshll.u32 %v10127_v57, 16  ;;  %v2043_v21 = vrot.slane %v2041_v15, 5 }
 0x125   :  { %v2049_v43 = vrot.slane %v2047_v60, 5  ;;  %v2053_v2 = vrot.slane %v2051_v61, 4  ;;  %v8693_v16 = vrot.slane %v2689_v12, 9  ;;  %v4472_v28 = vsel %vm9791_vm0, %v4467_v23, %v4471_v58  ;;  %v3910_v22 = vld [vmem:[#allocation2 + $0x54] sm:$0xe] }
 0x126   :  { %v1089_v29 = vshrl.u32 %v902_v24, 16  ;;  %v1092_v30 = vshll.u32 %v902_v24, 16  ;;  %v2059_v31 = vrot.slane %v2057_v25, 5  ;;  %v6570_v33 = vunpack.c.l.b16 %v4472_v28  ;;  %v3053_v6 = vld [vmem:[#allocation2 + $0x58] sm:$0xf] }
 0x127   :  { %v2044_v37 = vor.u32 %v2043_v21, %v2040_v59  ;;  %v2054_v38 = vor.u32 %v2053_v2, %v2049_v43  ;;  %v2846_v39 = vrot.slane %v10051_v56, 5  ;;  %v2849_v52 = vrot.slane %v10058_v48, 5  ;;  %v9486_v48 = vld [vmem:[%s13655_s3 + $0x70] sm:$0xff]  ;;  %v3110_v10 = vld [vmem:[#allocation2 + $0x5c] sm:$0x1] }
 0x128   :  { %v10145_v50 = vrot.slane %v1089_v29, 7  ;;  %v428_v40 = vadd.f32 %v10046_v35, %v427_v17  ;;  %v815_v19 = vsel %vm9676_vm7, 0, %v814_v20  ;;  %v6629_v49 = vpack.c.b16 %v6570_v33, %v6569_v14  ;;  %7746 = vmatpush.bf16.msra.mxu2 %v9486_v48  ;;  %v4267_v61 = vld [vmem:[#allocation2 + $0x54] sm:$0xf] }
 0x129   :  { %v2045_v11 = vrot.slane %v2044_v37, 4  ;;  %v2055_v45 = vrot.slane %v2054_v38, 4  ;;  %v2847_v56 = vsel %vm9696_vm10, %v8693_v16, %v2846_v39  ;;  %816 = vst [vmem:[#allocation2 + $0x74] sm:$0x1] %v815_v19  ;;  %v3150_v51 = vshrl.u32 %v10097_v3, 16  ;;  %v9485_v38 = vld [vmem:[%s13655_s3 + $0x68] sm:$0xff] }
 0x12a   :  { %v1094_v9 = vor.u32 %v1092_v30, %v10145_v50  ;;  %v2848_v47 = vrot.slane %v2846_v39, 4  ;;  %v5769_v36 = vunpack.c.l.b16 %v2847_v56  ;;  %6665 = vrot.lane.b32.xlu2 %v6629_v49, %s9582_s12  ;;  %v562_v54 = vmul.f32 0.2, %v428_v40  ;;  %v10174_v20 = vld [vmem:[#allocation2 + $0x14] sm:$0x1]  ;;  %v9412_v30 = vld [vmem:[#allocation2 + $0x3c] sm:$0xff] }
 0x12b   :  { %v1650_v44 = vld [vmem:[#allocation2 + $0x6c] sm:$0xf]  ;;  %v2050_v58 = vsel %vm9791_vm0, %v2045_v11, %v2049_v43  ;;  %v2060_v62 = vsel %vm9791_vm0, %v2055_v45, %v2059_v31  ;;  %v8758_v0 = vrot.slane %v5126_v42, 9  ;;  %v5286_v15 = vrot.slane %v10151_v41, 5  ;;  %v430_v45 = vpop.f32.mrf.mxu0  ;;  %v9476_v3 = vld [vmem:[%s13655_s3 + $0x20] sm:$0xff] }
 0x12c   :  { %v1651_v63 = vsel %vm9727_vm11, %v1094_v9, %v1650_v44  ;;  %v5611_v1 = vunpack.c.l.b16 %v2050_v58  ;;  %v5612_v46 = vunpack.c.l.b16 %v2060_v62  ;;  %v2850_v7 = vsel %vm9696_vm10, %v2848_v47, %v2849_v52  ;;  %7747 = vmatpush.bf16.msra.mxu2 %v9485_v38 }
 0x12d   :  { %1652 = vst [vmem:[#allocation2 + $0x6c] sm:$0xf] %v1651_v63  ;;  %v5770_v12 = vunpack.c.l.b16 %v2850_v7  ;;  %v626_v14 = vmax.f32 %v428_v40, %v562_v54  ;;  %v5289_v60 = vrot.slane %v10161_v8, 5  ;;  %v3156_v23 = vshll.u32 %v10174_v20, 16  ;;  %v719_v54 = vld [vmem:[#allocation2 + $0x78] sm:$0x1] }
 0x12e   :  { %v1095_v24 = vrot.slane %v10145_v50, 4  ;;  %v5670_v59 = vpack.c.b16 %v5612_v46, %v5611_v1  ;;  %v8727_v25 = vrot.slane %v3910_v22, 9  ;;  %v5287_v2 = vsel %vm9696_vm10, %v8758_v0, %v5286_v15  ;;  %v1830_v0 = vld [vmem:[#allocation2 + $0x48] sm:$0xf]  ;;  %v9479_v63 = vld [vmem:[%s13655_s3 + $0x38] sm:$0xff] }
 0x12f   :  { %v5829_v21 = vpack.c.b16 %v5770_v12, %v5769_v36  ;;  %v903_v43 = vpack.c.bf16 %v626_v14, %v626_v14  ;;  %v5288_v16 = vrot.slane %v5286_v15, 4  ;;  %v6731_v17 = vunpack.c.l.b16 %v5287_v2  ;;  %v9445_v15 = vld [vmem:[#allocation2 + $0x54] sm:$0xff]  ;;  %7576 = vmatpush.bf16.msra.mxu1 %v9479_v63 }
 0x130   :  { %5707 = vrot.lane.b32.xlu0 %v5670_v59, %s9583_s1  ;;  %v4076_v26 = vrot.slane %v3053_v6, 5  ;;  %v4079_v28 = vrot.slane %v3110_v10, 5  ;;  %v4474_v29 = vshrl.u32 %v4267_v61, 16  ;;  %v4477_v37 = vshll.u32 %v4267_v61, 16  ;;  %v1654_v56 = vld [vmem:[#allocation2 + $0x74] sm:$0x1] }
 0x131   :  { %5865 = vrot.lane.b32.xlu1 %v5829_v21, %s9581_s22  ;;  %v1097_v31 = vshrl.u32 %v903_v43, 16  ;;  %v1100_v32 = vshll.u32 %v903_v43, 16  ;;  %v5290_v33 = vsel %vm9696_vm10, %v5288_v16, %v5289_v60  ;;  %v4483_v11 = vshll.u32 %v10151_v41, 16  ;;  %v10206_v60 = vld [vmem:[#allocation2 + $0x50] sm:$0x1] }
 0x132   :  { %v6732_v39 = vunpack.c.l.b16 %v5290_v33  ;;  %v4077_v50 = vsel %vm9696_vm10, %v8727_v25, %v4076_v26  ;;  %v4078_v52 = vrot.slane %v4076_v26, 4  ;;  %v4476_v40 = vrot.slane %v4474_v29, 4  ;;  %6057 = vrot.lane.b32.xlu2 %v9412_v30, %s9582_s12  ;;  %v2690_v61 = vld [vmem:[#allocation2 + $0x3c] sm:$0xe] }
 0x133   :  { %v1099_v19 = vrot.slane %v1097_v31, 7  ;;  %v6221_v42 = vunpack.c.l.b16 %v4077_v50  ;;  %v4479_v49 = vrot.slane %v4477_v37, 5  ;;  %v4487_v47 = vshrl.u32 %v10151_v41, 16  ;;  %v10200_v41 = vld [vmem:[#allocation2 + $0x4c] sm:$0xf]  ;;  %v9484_v31 = vld [vmem:[%s13655_s3 + $0x60] sm:$0xff] }
 0x134   :  { %v6790_v48 = vpack.c.b16 %v6732_v39, %v6731_v17  ;;  %v4080_v9 = vsel %vm9696_vm10, %v4078_v52, %v4079_v28  ;;  %v4493_v36 = vshll.u32 %v10161_v8, 16  ;;  %v4485_v1 = vrot.slane %v4483_v11, 5  ;;  %7748 = vmatpush.bf16.msra.mxu2 %v9484_v31 }
 0x135   :  { %v1102_v22 = vor.u32 %v1100_v32, %v1099_v19  ;;  %v1104_v44 = vrot.slane %v1099_v19, 4  ;;  %v6222_v58 = vunpack.c.l.b16 %v4080_v9  ;;  %v4480_v62 = vor.u32 %v4479_v49, %v4476_v40 }
 0x136   :  { %9246 = vmatmul.msk.bf16.gmra.mxu3 %vm6817_vm2, %v6790_v48  ;;  %v4489_v46 = vrot.slane %v4487_v47, 4  ;;  %v4495_v7 = vrot.slane %v4493_v36, 5  ;;  %v431_v6 = vadd.f32 %v10046_v35, %v430_v45  ;;  %v720_v21 = vsel %vm9663_vm4, 0, %v719_v54  ;;  %v432_v45 = vpop.f32.mrf.mxu0 }
 0x137   :  { %v1103_v8 = vsel %vm9744_vm13, %v1095_v24, %v1102_v22  ;;  %v1655_v10 = vsel %vm9663_vm4, %v1104_v44, %v1654_v56  ;;  %v6279_v12 = vpack.c.b16 %v6222_v58, %v6221_v42  ;;  %v4481_v14 = vrot.slane %v4480_v62, 4  ;;  %721 = vst [vmem:[#allocation2 + $0x78] sm:$0x1] %v720_v21  ;;  %v817_v56 = vld [vmem:[#allocation2 + $0x80] sm:$0x1] }
 0x138   :  { %1653 = vst.msk [vmem:[#allocation2 + $0x70] sm:$0xf] %vm673_vm5, %v1103_v8  ;;  %v4490_v59 = vor.u32 %v4489_v46, %v4485_v1  ;;  %v563_v25 = vmul.f32 0.2, %v431_v6  ;;  %v2062_v43 = vshrl.u32 %v1830_v0, 16  ;;  %v2065_v2 = vshll.u32 %v1830_v0, 16 }
 0x139   :  { %1656 = vst [vmem:[#allocation2 + $0x74] sm:$0x1] %v1655_v10  ;;  %6317 = vrot.lane.b32.xlu0 %v6279_v12, %s9583_s1  ;;  %v4486_v24 = vsel %vm9791_vm0, %v4481_v14, %v4485_v1  ;;  %6507 = vrot.lane.b32.xlu1 %v9445_v15, %s9581_s22  ;;  %v2071_v16 = vshll.u32 %v10200_v41, 16  ;;  %v2075_v17 = vshrl.u32 %v10200_v41, 16  ;;  %v2081_v38 = vshll.u32 %v10206_v60, 16  ;;  %v9483_v0 = vld [vmem:[%s13655_s3 + $0x58] sm:$0xff] }
 0x13a   :  { %v4491_v26 = vrot.slane %v4490_v59, 4  ;;  %v6571_v28 = vunpack.c.l.b16 %v4486_v24  ;;  %v627_v29 = vmax.f32 %v431_v6, %v563_v25  ;;  %v2064_v30 = vrot.slane %v2062_v43, 4  ;;  %v5127_v22 = vld [vmem:[#allocation2 + $0x60] sm:$0xe]  ;;  %v10238_v6 = vld [vmem:[#allocation2 + $0x64] sm:$0xf]  ;;  %7749 = vmatpush.bf16.msra.mxu2 %v9483_v0 }
 0x13b   :  { %v2067_v32 = vrot.slane %v2065_v2, 5  ;;  %v2073_v33 = vrot.slane %v2071_v16, 5  ;;  %v2077_v37 = vrot.slane %v2075_v17, 4  ;;  %v8694_v52 = vrot.slane %v2690_v61, 9  ;;  %v10240_v8 = vld [vmem:[#allocation2 + $0x68] sm:$0x1] }
 0x13c   :  { %v4496_v39 = vsel %vm9791_vm0, %v4491_v26, %v4495_v7  ;;  %v904_v50 = vpack.c.bf16 %v627_v29, %v627_v29  ;;  %v2853_v40 = vrot.slane %v10118_v55, 5  ;;  %v2083_v11 = vrot.slane %v2081_v38, 5  ;;  %v9478_v55 = vld [vmem:[%s13655_s3 + $0x30] sm:$0xff]  ;;  %v3055_v24 = vld [vmem:[#allocation2 + $0x64] sm:$0xf]  ;;  %v9477_v16 = vld [vmem:[%s13655_s3 + $0x28] sm:$0xff] }
 0x13d   :  { %v6572_v19 = vunpack.c.l.b16 %v4496_v39  ;;  %v2068_v42 = vor.u32 %v2067_v32, %v2064_v30  ;;  %v2078_v49 = vor.u32 %v2077_v37, %v2073_v33  ;;  %v2856_v54 = vrot.slane %v10127_v57, 5  ;;  %v9360_v61 = vld [vmem:[%s13654_s0 + $0x90] sm:$0xff]  ;;  %v3111_v2 = vld [vmem:[#allocation2 + $0x68] sm:$0x1]  ;;  %7577 = vmatpush.bf16.msra.mxu1 %v9478_v55  ;;  %v3911_v30 = vld [vmem:[#allocation2 + $0x60] sm:$0xe] }
 0x13e   :  { %v1106_v48 = vshrl.u32 %v904_v50, 16  ;;  %v1109_v9 = vshll.u32 %v904_v50, 16  ;;  %v2854_v47 = vsel %vm9696_vm10, %v8694_v52, %v2853_v40  ;;  %v2855_v36 = vrot.slane %v2853_v40, 4  ;;  %v1657_v57 = vld [vmem:[#allocation2 + $0x78] sm:$0xf]  ;;  %8675 = vmatmul.msk.bf16.gmra.mxu0 %vm275_vm1, %v9360_v61  ;;  %v9482_v38 = vld [vmem:[%s13655_s3 + $0x50] sm:$0xff] }
 0x13f   :  { %v6630_v44 = vpack.c.b16 %v6572_v19, %v6571_v28  ;;  %v2069_v58 = vrot.slane %v2068_v42, 4  ;;  %v2079_v62 = vrot.slane %v2078_v49, 4  ;;  %v5771_v1 = vunpack.c.l.b16 %v2854_v47  ;;  %v3040_v37 = vld [vmem:[#allocation2 + $0xc] sm:$0xf]  ;;  %7750 = vmatpush.bf16.msra.mxu2 %v9482_v38  ;;  %v1832_v38 = vld [vmem:[#allocation2 + $0x54] sm:$0xf] }
 0x140   :  { %v10233_v63 = vrot.slane %v1106_v48, 7  ;;  %v433_v46 = vadd.f32 %v10046_v35, %v432_v45  ;;  %v818_v7 = vsel %vm9676_vm7, 0, %v817_v56  ;;  %v2857_v14 = vsel %vm9696_vm10, %v2855_v36, %v2856_v54  ;;  %v9413_v49 = vld [vmem:[#allocation2 + $0x48] sm:$0xff] }
 0x141   :  { %6667 = vrot.lane.b32.xlu2 %v6630_v44, %s9582_s12  ;;  %v2074_v10 = vsel %vm9791_vm0, %v2069_v58, %v2073_v33  ;;  %v2084_v12 = vsel %vm9791_vm0, %v2079_v62, %v2083_v11  ;;  %819 = vst [vmem:[#allocation2 + $0x80] sm:$0x1] %v818_v7  ;;  %v8759_v15 = vrot.slane %v5127_v22, 9  ;;  %v3152_v59 = vrot.slane %v3150_v51, 4  ;;  %7578 = vmatpush.bf16.msra.mxu1 %v9477_v16  ;;  %v4269_v44 = vld [vmem:[#allocation2 + $0x60] sm:$0xf]  ;;  %v435_v58 = vpop.f32.mrf.mxu0 }
 0x142   :  { %v1111_v25 = vor.u32 %v1109_v9, %v10233_v63  ;;  %v5613_v21 = vunpack.c.l.b16 %v2074_v10  ;;  %v5614_v43 = vunpack.c.l.b16 %v2084_v12  ;;  %v5772_v17 = vunpack.c.l.b16 %v2857_v14 }
 0x143   :  { %v564_v26 = vmul.f32 0.2, %v433_v46  ;;  %v5293_v28 = vrot.slane %v10238_v6, 5  ;;  %v5296_v29 = vrot.slane %v10240_v8, 5  ;;  %v3158_v51 = vrot.slane %v3156_v23, 5 }
 0x144   :  { %v1112_v31 = vrot.slane %v10233_v63, 4  ;;  %v1658_v32 = vsel %vm9727_vm11, %v1111_v25, %v1657_v57  ;;  %v5671_v33 = vpack.c.b16 %v5614_v43, %v5613_v21  ;;  %v5830_v39 = vpack.c.b16 %v5772_v17, %v5771_v1 }
 0x145   :  { %1659 = vst [vmem:[#allocation2 + $0x78] sm:$0xf] %v1658_v32  ;;  %v628_v50 = vmax.f32 %v433_v46, %v564_v26  ;;  %v5294_v52 = vsel %vm9696_vm10, %v8759_v15, %v5293_v28  ;;  %v5295_v40 = vrot.slane %v5293_v28, 4  ;;  %v8728_v23 = vrot.slane %v3911_v30, 9  ;;  %7579 = vmatpush.bf16.msra.mxu1 %v9476_v3  ;;  %v9446_v28 = vld [vmem:[#allocation2 + $0x60] sm:$0xff] }
 0x146   :  { %5709 = vrot.lane.b32.xlu0 %v5671_v33, %s9583_s1  ;;  %v6733_v20 = vunpack.c.l.b16 %v5294_v52  ;;  %v4083_v19 = vrot.slane %v3055_v24, 5  ;;  %v4086_v42 = vrot.slane %v3111_v2, 5  ;;  %5867 = vrot.lane.b32.xlu1 %v5830_v39, %s9581_s22  ;;  %v3148_v56 = vrot.slane %v3146_v4, 5  ;;  %v9481_v4 = vld [vmem:[%s13655_s3 + $0x48] sm:$0xff]  ;;  %v9475_v24 = vld [vmem:[%s13655_s3 + $0x18] sm:$0xff] }
 0x147   :  { %v905_v11 = vpack.c.bf16 %v628_v50, %v628_v50  ;;  %v5297_v45 = vsel %vm9696_vm10, %v5295_v40, %v5296_v29  ;;  %v3137_v48 = vshrl.u32 %v3040_v37, 16  ;;  %v3140_v22 = vshll.u32 %v3040_v37, 16  ;;  %7751 = vmatpush.bf16.msra.mxu2 %v9481_v4  ;;  %v722_v29 = vld [vmem:[#allocation2 + $0x84] sm:$0x1] }
 0x148   :  { %v6734_v9 = vunpack.c.l.b16 %v5297_v45  ;;  %v4084_v47 = vsel %vm9696_vm10, %v8728_v23, %v4083_v19  ;;  %v4085_v36 = vrot.slane %v4083_v19, 4  ;;  %v3153_v0 = vor.u32 %v3152_v59, %v3148_v56  ;;  %v1661_v61 = vld [vmem:[#allocation2 + $0x80] sm:$0x1] }
 0x149   :  { %6059 = vrot.lane.b32.xlu2 %v9413_v49, %s9582_s12  ;;  %v1114_v62 = vshrl.u32 %v905_v11, 16  ;;  %v1117_v54 = vshll.u32 %v905_v11, 16  ;;  %v6223_v55 = vunpack.c.l.b16 %v4084_v47  ;;  %v3139_v7 = vrot.slane %v3137_v48, 4  ;;  %7580 = vmatpush.bf16.msra.mxu1 %v9475_v24 }
 0x14a   :  { %v6791_v1 = vpack.c.b16 %v6734_v9, %v6733_v20  ;;  %v4087_v46 = vsel %vm9696_vm10, %v4085_v36, %v4086_v42  ;;  %v3142_v57 = vrot.slane %v3140_v22, 5  ;;  %v3154_v14 = vrot.slane %v3153_v0, 4  ;;  %v10315_v42 = vld [vmem:[#allocation2 + $0x58] sm:$0xf] }
 0x14b   :  { %v1116_v10 = vrot.slane %v1114_v62, 7  ;;  %v6224_v12 = vunpack.c.l.b16 %v4087_v46  ;;  %v4498_v15 = vshrl.u32 %v4269_v44, 16  ;;  %v4501_v25 = vshll.u32 %v4269_v44, 16 }
 0x14c   :  { %9247 = vmatmul.msk.bf16.gmra.mxu3 %vm6817_vm2, %v6791_v1  ;;  %v3143_v59 = vor.u32 %v3142_v57, %v3139_v7  ;;  %v4507_v21 = vshll.u32 %v10238_v6, 16  ;;  %v4511_v43 = vshrl.u32 %v10238_v6, 16  ;;  %v3159_v26 = vsel %vm9791_vm0, %v3154_v14, %v3158_v51  ;;  %v10331_v14 = vld [vmem:[#allocation2 + $0x1c] sm:$0xf] }
 0x14d   :  { %v1119_v2 = vor.u32 %v1117_v54, %v1116_v10  ;;  %v1121_v16 = vrot.slane %v1116_v10, 4  ;;  %v6280_v17 = vpack.c.b16 %v6224_v12, %v6223_v55  ;;  %v10296_v30 = vunpack.c.l.b16 %v3159_v26  ;;  %v2691_v55 = vld [vmem:[#allocation2 + $0x48] sm:$0xe]  ;;  %v9480_v12 = vld [vmem:[%s13655_s3 + $0x40] sm:$0xff] }
 0x14e   :  { %v3144_v32 = vrot.slane %v3143_v59, 4  ;;  %v4500_v33 = vrot.slane %v4498_v15, 4  ;;  %v4503_v37 = vrot.slane %v4501_v25, 5  ;;  %v4509_v50 = vrot.slane %v4507_v21, 5  ;;  %6509 = vrot.lane.b32.xlu1 %v9446_v28, %s9581_s22  ;;  %7752 = vmatpush.bf16.msra.mxu2 %v9480_v12  ;;  %v3112_v12 = vld [vmem:[#allocation2 + $0x74] sm:$0x1] }
 0x14f   :  { %v1120_v6 = vsel %vm9744_vm13, %v1112_v31, %v1119_v2  ;;  %v1662_v39 = vsel %vm9663_vm4, %v1121_v16, %v1661_v61  ;;  %6319 = vrot.lane.b32.xlu0 %v6280_v17, %s9583_s1  ;;  %v4513_v51 = vrot.slane %v4511_v43, 4  ;;  %v4517_v63 = vshll.u32 %v10240_v8, 16  ;;  %v820_v2 = vld [vmem:[#allocation2 + $0x8c] sm:$0x1]  ;;  %v10335_v16 = vld [vmem:[#allocation2 + $0x20] sm:$0x1] }
 0x150   :  { %1660 = vst.msk [vmem:[#allocation2 + $0x7c] sm:$0xf] %vm673_vm5, %v1120_v6  ;;  %v3149_v52 = vsel %vm9791_vm0, %v3144_v32, %v3148_v56  ;;  %v4504_v40 = vor.u32 %v4503_v37, %v4500_v33  ;;  %v436_v20 = vadd.f32 %v10046_v35, %v435_v58  ;;  %v723_v19 = vsel %vm9663_vm4, 0, %v722_v29  ;;  %v437_v56 = vpop.f32.mrf.mxu0  ;;  %v10321_v58 = vld [vmem:[#allocation2 + $0x5c] sm:$0x1] }
 0x151   :  { %1663 = vst [vmem:[#allocation2 + $0x80] sm:$0x1] %v1662_v39  ;;  %v10311_v31 = vunpack.c.l.b16 %v3149_v52  ;;  %v4514_v23 = vor.u32 %v4513_v51, %v4509_v50  ;;  %v2086_v49 = vshrl.u32 %v1832_v38, 16  ;;  %v4519_v45 = vrot.slane %v4517_v63, 5  ;;  %v10339_v32 = vld [vmem:[#allocation2 + $0x70] sm:$0xf] }
 0x152   :  { %v4505_v11 = vrot.slane %v4504_v40, 4  ;;  %v565_v48 = vmul.f32 0.2, %v436_v20  ;;  %724 = vst [vmem:[#allocation2 + $0x84] sm:$0x1] %v723_v19  ;;  %v2089_v36 = vshll.u32 %v1832_v38, 16  ;;  %v438_v1 = vadd.f32 %v10046_v35, %v437_v56 }
 0x153   :  { %v6177_v8 = vpack.c.b16 %v10296_v30, %v10311_v31  ;;  %v4515_v9 = vrot.slane %v4514_v23, 4  ;;  %v2088_v47 = vrot.slane %v2086_v49, 4  ;;  %v2095_v62 = vshll.u32 %v10315_v42, 16  ;;  %v9474_v39 = vld [vmem:[%s13655_s3 + $0x10] sm:$0xff]  ;;  %v5128_v63 = vld [vmem:[#allocation2 + $0x6c] sm:$0xe] }
 0x154   :  { %v4510_v22 = vsel %vm9791_vm0, %v4505_v11, %v4509_v50  ;;  %v629_v44 = vmax.f32 %v436_v20, %v565_v48  ;;  %v2099_v54 = vshrl.u32 %v10315_v42, 16  ;;  %v2091_v4 = vrot.slane %v2089_v36, 5  ;;  %v10354_v20 = vld [vmem:[#allocation2 + $0x28] sm:$0xf]  ;;  %v10360_v11 = vld [vmem:[#allocation2 + $0x74] sm:$0x1]  ;;  %7581 = vmatpush.bf16.msra.mxu1 %v9474_v39 }
 0x155   :  { %v4520_v0 = vsel %vm9791_vm0, %v4515_v9, %v4519_v45  ;;  %v6573_v3 = vunpack.c.l.b16 %v4510_v22  ;;  %v2097_v57 = vrot.slane %v2095_v62, 5  ;;  %v3174_v15 = vshrl.u32 %v10331_v14, 16  ;;  %v9361_v36 = vld [vmem:[%s13654_s0 + $0x98] sm:$0xff]  ;;  %v9473_v22 = vld [vmem:[%s13655_s3 + $0x8] sm:$0xff]  ;;  %v1834_v31 = vld [vmem:[#allocation2 + $0x60] sm:$0xf] }
 0x156   :  { %v6574_v46 = vunpack.c.l.b16 %v4520_v0  ;;  %v906_v7 = vpack.c.bf16 %v629_v44, %v629_v44  ;;  %v2101_v10 = vrot.slane %v2099_v54, 4  ;;  %v2092_v61 = vor.u32 %v2091_v4, %v2088_v47  ;;  %v3042_v47 = vld [vmem:[#allocation2 + $0x18] sm:$0xf]  ;;  %v3057_v0 = vld [vmem:[#allocation2 + $0x70] sm:$0xf]  ;;  %8676 = vmatmul.msk.bf16.gmra.mxu0 %vm275_vm1, %v9361_v36 }
 0x157   :  { %v2105_v59 = vshll.u32 %v10321_v58, 16  ;;  %v8695_v25 = vrot.slane %v2691_v55, 9  ;;  %v3180_v17 = vshll.u32 %v10335_v16, 16  ;;  %v2860_v29 = vrot.slane %v10200_v41, 5  ;;  %v10373_v4 = vld [vmem:[#allocation2 + $0x2c] sm:$0x1] }
 0x158   :  { %v6631_v21 = vpack.c.b16 %v6574_v46, %v6573_v3  ;;  %v1123_v43 = vshrl.u32 %v906_v7, 16  ;;  %v1126_v24 = vshll.u32 %v906_v7, 16  ;;  %v2102_v35 = vor.u32 %v2101_v10, %v2097_v57  ;;  %v3912_v3 = vld [vmem:[#allocation2 + $0x6c] sm:$0xe]  ;;  %v10376_v46 = vpop.permute.xlu0 %6305  ;;  %7582 = vmatpush.bf16.msra.mxu1 %v9473_v22 }
 0x159   :  { %v2093_v26 = vrot.slane %v2092_v61, 4  ;;  %v2107_v28 = vrot.slane %v2105_v59, 5  ;;  %v2863_v38 = vrot.slane %v10206_v60, 5  ;;  %v566_v6 = vmul.f32 0.2, %v438_v1 }
 0x15a   :  { %6669 = vrot.lane.b32.xlu2 %v6631_v21, %s9582_s12  ;;  %v10342_v33 = vrot.slane %v1123_v43, 7  ;;  %v2103_v37 = vrot.slane %v2102_v35, 4  ;;  %v1664_v50 = vld [vmem:[#allocation2 + $0x84] sm:$0xf]  ;;  %v2861_v41 = vsel %vm9696_vm10, %v8695_v25, %v2860_v29  ;;  %v2862_v52 = vrot.slane %v2860_v29, 4  ;;  %v9414_v25 = vld [vmem:[#allocation2 + $0x54] sm:$0xff] }
 0x15b   :  { %v2098_v51 = vsel %vm9791_vm0, %v2093_v26, %v2097_v57  ;;  %v821_v40 = vsel %vm9676_vm7, 0, %v820_v2  ;;  %v3198_v60 = vshrl.u32 %v10354_v20, 16  ;;  %v5773_v56 = vunpack.c.l.b16 %v2861_v41  ;;  %v10380_v61 = vld [vmem:[#allocation2 + $0x34] sm:$0xf] }
 0x15c   :  { %v1128_v23 = vor.u32 %v1126_v24, %v10342_v33  ;;  %v2108_v19 = vsel %vm9791_vm0, %v2103_v37, %v2107_v28  ;;  %v5615_v49 = vunpack.c.l.b16 %v2098_v51  ;;  %822 = vst [vmem:[#allocation2 + $0x8c] sm:$0x1] %v821_v40  ;;  %v2864_v48 = vsel %vm9696_vm10, %v2862_v52, %v2863_v38 }
 0x15d   :  { %v5616_v45 = vunpack.c.l.b16 %v2108_v19  ;;  %v630_v9 = vmax.f32 %v438_v1, %v566_v6  ;;  %v5774_v62 = vunpack.c.l.b16 %v2864_v48  ;;  %v8760_v54 = vrot.slane %v5128_v63, 9  ;;  %v4271_v19 = vld [vmem:[#allocation2 + $0x6c] sm:$0xf] }
 0x15e   :  { %v1665_v44 = vsel %vm9727_vm11, %v1128_v23, %v1664_v50  ;;  %v5300_v55 = vrot.slane %v10339_v32, 5  ;;  %v3204_v1 = vshll.u32 %v10373_v4, 16  ;;  %v5303_v10 = vrot.slane %v10360_v11, 5 }
 0x15f   :  { %1666 = vst [vmem:[#allocation2 + $0x84] sm:$0xf] %v1665_v44  ;;  %v5672_v7 = vpack.c.b16 %v5616_v45, %v5615_v49  ;;  %v907_v57 = vpack.c.bf16 %v630_v9, %v630_v9  ;;  %v3222_v59 = vshrl.u32 %v10380_v61, 16  ;;  %v5831_v21 = vpack.c.b16 %v5774_v62, %v5773_v56 }
 0x160   :  { %v5301_v43 = vsel %vm9696_vm10, %v8760_v54, %v5300_v55  ;;  %v5302_v24 = vrot.slane %v5300_v55, 4  ;;  %v8729_v28 = vrot.slane %v3912_v3, 9  ;;  %v4090_v37 = vrot.slane %v3057_v0, 5  ;;  %v9447_v55 = vld [vmem:[#allocation2 + $0x6c] sm:$0xff] }
 0x161   :  { %5711 = vrot.lane.b32.xlu0 %v5672_v7, %s9583_s1  ;;  %v1131_v35 = vshrl.u32 %v907_v57, 16  ;;  %v1134_v2 = vshll.u32 %v907_v57, 16  ;;  %v6735_v26 = vunpack.c.l.b16 %v5301_v43  ;;  %5869 = vrot.lane.b32.xlu1 %v5831_v21, %s9581_s22  ;;  %v4093_v38 = vrot.slane %v3112_v12, 5  ;;  %v725_v0 = vld [vmem:[#allocation2 + $0x90] sm:$0x1]  ;;  %v6498_v12 = vpop.permute.xlu0 %6497 }
 0x162   :  { %6061 = vrot.lane.b32.xlu2 %v9414_v25, %s9582_s12  ;;  %v5304_v29 = vsel %vm9696_vm10, %v5302_v24, %v5303_v10  ;;  %v3161_v6 = vshrl.u32 %v3042_v47, 16  ;;  %v1129_v39 = vrot.slane %v10342_v33, 4  ;;  %v3164_v41 = vshll.u32 %v3042_v47, 16  ;;  %v9472_v47 = vld [vmem:[%s13655_s3] sm:$0xff] }
 0x163   :  { %v1133_v50 = vrot.slane %v1131_v35, 7  ;;  %v6736_v51 = vunpack.c.l.b16 %v5304_v29  ;;  %v1668_v52 = vld [vmem:[#allocation2 + $0x8c] sm:$0x1]  ;;  %v4091_v40 = vsel %vm9696_vm10, %v8729_v28, %v4090_v37  ;;  %v4092_v63 = vrot.slane %v4090_v37, 4  ;;  %7583 = vmatpush.bf16.msra.mxu1 %v9472_v47  ;;  %v440_v35 = vpop.f32.mrf.mxu0  ;;  %v10425_v37 = vld [vmem:[%s13653_s2] ss:$0 sm:$0xff] }
 0x164   :  { %v3170_v23 = vshll.u32 %v10331_v14, 16  ;;  %v6225_v56 = vunpack.c.l.b16 %v4091_v40  ;;  %v3163_v33 = vrot.slane %v3161_v6, 4  ;;  %v3166_v36 = vrot.slane %v3164_v41, 5 }
 0x165   :  { %v1136_v49 = vor.u32 %v1134_v2, %v1133_v50  ;;  %v1138_v45 = vrot.slane %v1133_v50, 4  ;;  %v6792_v48 = vpack.c.b16 %v6736_v51, %v6735_v26  ;;  %v4094_v9 = vsel %vm9696_vm10, %v4092_v63, %v4093_v38  ;;  %v10412_v2 = vld [vmem:[#allocation2 + $0x38] sm:$0x1] }
 0x166   :  { %v6226_v62 = vunpack.c.l.b16 %v4094_v9  ;;  %v4522_v54 = vshrl.u32 %v4271_v19, 16  ;;  %v10405_v3 = vrot.slane %v3170_v23, 5  ;;  %v3176_v7 = vrot.slane %v3174_v15, 4 }
 0x167   :  { %v1137_v22 = vsel %vm9744_vm13, %v1129_v39, %v1136_v49  ;;  %v1669_v44 = vsel %vm9663_vm4, %v1138_v45, %v1668_v52  ;;  %9248 = vmatmul.msk.bf16.gmra.mxu3 %vm6817_vm2, %v6792_v48  ;;  %v4525_v57 = vshll.u32 %v4271_v19, 16  ;;  %v4531_v10 = vshll.u32 %v10339_v32, 16  ;;  %v10435_v39 = vld [vmem:[#allocation2 + $0x64] sm:$0xf] }
 0x168   :  { %1667 = vst.msk [vmem:[#allocation2 + $0x88] sm:$0xf] %vm673_vm5, %v1137_v22  ;;  %v6281_v25 = vpack.c.b16 %v6226_v62, %v6225_v56  ;;  %v4524_v21 = vrot.slane %v4522_v54, 4  ;;  %v4535_v43 = vshrl.u32 %v10339_v32, 16  ;;  %v4541_v24 = vshll.u32 %v10360_v11, 16  ;;  %v6658_v11 = vpop.permute.xlu1 %6657 }
 0x169   :  { %1670 = vst [vmem:[#allocation2 + $0x8c] sm:$0x1] %v1669_v44  ;;  %v3228_v26 = vshll.u32 %v10412_v2, 16  ;;  %v7078_v14 = vsel %vm6817_vm2, %v6177_v8, %v10376_v46  ;;  %v4527_v15 = vrot.slane %v4525_v57, 5  ;;  %v4533_v28 = vrot.slane %v4531_v10, 5  ;;  %6511 = vrot.lane.b32.xlu1 %v9447_v55, %s9581_s22 }
 0x16a   :  { %6321 = vrot.lane.b32.xlu0 %v6281_v25, %s9583_s1  ;;  %v3167_v32 = vor.u32 %v3166_v36, %v3163_v33  ;;  %v4537_v29 = vrot.slane %v4535_v43, 4  ;;  %v441_v38 = vadd.f32 %v10425_v37, %v440_v35  ;;  %v726_v30 = vsel %vm9663_vm4, 0, %v725_v0  ;;  %v10442_v56 = vld [vmem:[#allocation2 + $0x68] sm:$0x1]  ;;  %v2692_v54 = vld [vmem:[#allocation2 + $0x54] sm:$0xe] }
 0x16b   :  { %v7173_v8 = vsel %vm6914_vm3, %v7078_v14, %v6498_v12  ;;  %v10433_v46 = vrot.slane %v3180_v17, 5  ;;  %v4528_v6 = vor.u32 %v4527_v15, %v4524_v21  ;;  %727 = vst [vmem:[#allocation2 + $0x90] sm:$0x1] %v726_v30  ;;  %v3177_v50 = vor.u32 %v3176_v7, %v10405_v3  ;;  %v442_v43 = vpop.f32.mrf.mxu0 }
 0x16c   :  { %v4538_v51 = vor.u32 %v4537_v29, %v4533_v28  ;;  %v4543_v41 = vrot.slane %v4541_v24, 5  ;;  %v567_v52 = vmul.f32 0.2, %v441_v38  ;;  %v7237_v63 = vsel %vm6979_vm6, %v7173_v8, %v6658_v11  ;;  %v10451_v24 = vpop.permute.xlu2 %5857 }
 0x16d   :  { %v4529_v40 = vrot.slane %v4528_v6, 4  ;;  %v2110_v23 = vshrl.u32 %v1834_v31, 16  ;;  %v2113_v19 = vshll.u32 %v1834_v31, 16  ;;  %v3168_v49 = vrot.slane %v3167_v32, 4  ;;  %7753 = vmatmul.bf16.vlgmr.msra.gmra.mxu2 %v7237_v63  ;;  %v10469_v63 = vld [vmem:[#allocation2 + $0x7c] sm:$0xf] }
 0x16e   :  { %v4539_v45 = vrot.slane %v4538_v51, 4  ;;  %v631_v16 = vmax.f32 %v441_v38, %v567_v52  ;;  %v2119_v17 = vshll.u32 %v10435_v39, 16  ;;  %v2123_v36 = vshrl.u32 %v10435_v39, 16  ;;  %v823_v38 = vld [vmem:[#allocation2 + $0x98] sm:$0x1] }
 0x16f   :  { %v4534_v48 = vsel %vm9791_vm0, %v4529_v40, %v4533_v28  ;;  %v2112_v9 = vrot.slane %v2110_v23, 4  ;;  %v2115_v33 = vrot.slane %v2113_v19, 5  ;;  %v3178_v47 = vrot.slane %v3177_v50, 4  ;;  %v5129_v51 = vld [vmem:[#allocation2 + $0x78] sm:$0xe]  ;;  %v9376_v40 = vld [vmem:[#allocation2] sm:$0xff] }
 0x170   :  { %v4544_v22 = vsel %vm9791_vm0, %v4539_v45, %v4543_v41  ;;  %v6575_v44 = vunpack.c.l.b16 %v4534_v48  ;;  %v908_v62 = vpack.c.bf16 %v631_v16, %v631_v16  ;;  %v2121_v7 = vrot.slane %v2119_v17, 5  ;;  %v10471_v23 = vld [vmem:[#allocation2 + $0x80] sm:$0x1]  ;;  %v5698_v45 = vpop.permute.xlu1 %5697  ;;  %v3059_v17 = vld [vmem:[#allocation2 + $0x7c] sm:$0xf] }
 0x171   :  { %v6576_v55 = vunpack.c.l.b16 %v4544_v22  ;;  %v2116_v0 = vor.u32 %v2115_v33, %v2112_v9  ;;  %v2125_v57 = vrot.slane %v2123_v36, 4  ;;  %v3173_v10 = vsel %vm9791_vm0, %v3168_v49, %v10405_v3  ;;  %v9362_v22 = vld [vmem:[%s13654_s0 + $0xa0] sm:$0xff] }
 0x172   :  { %v1140_v12 = vshrl.u32 %v908_v62, 16  ;;  %v1143_v25 = vshll.u32 %v908_v62, 16  ;;  %v2129_v21 = vshll.u32 %v10442_v56, 16  ;;  %v8696_v28 = vrot.slane %v2692_v54, 9  ;;  %v1671_v30 = vld [vmem:[#allocation2 + $0x90] sm:$0xf]  ;;  %8677 = vmatmul.msk.bf16.gmra.mxu0 %vm275_vm1, %v9362_v22 }
 0x173   :  { %v6632_v35 = vpack.c.b16 %v6576_v55, %v6575_v44  ;;  %v2117_v14 = vrot.slane %v2116_v0, 4  ;;  %v2126_v15 = vor.u32 %v2125_v57, %v2121_v7  ;;  %v3183_v32 = vsel %vm9791_vm0, %v3178_v47, %v10433_v46  ;;  %v3913_v47 = vld [vmem:[#allocation2 + $0x78] sm:$0xe]  ;;  %v3113_v0 = vld [vmem:[#allocation2 + $0x80] sm:$0x1] }
 0x174   :  { %v10456_v29 = vrot.slane %v1140_v12, 7  ;;  %v2131_v11 = vrot.slane %v2129_v21, 5  ;;  %v2867_v3 = vrot.slane %v10315_v42, 5  ;;  %v2870_v6 = vrot.slane %v10321_v58, 5 }
 0x175   :  { %6671 = vrot.lane.b32.xlu2 %v6632_v35, %s9582_s12  ;;  %v2122_v31 = vsel %vm9791_vm0, %v2117_v14, %v2121_v7  ;;  %v2127_v8 = vrot.slane %v2126_v15, 4  ;;  %v443_v50 = vadd.f32 %v10425_v37, %v442_v43  ;;  %v10464_v41 = vunpack.c.l.b16 %v3173_v10  ;;  %v6308_v15 = vpop.permute.xlu0 %6307 }
 0x176   :  { %v1145_v46 = vor.u32 %v1143_v25, %v10456_v29  ;;  %v5617_v52 = vunpack.c.l.b16 %v2122_v31  ;;  %v2868_v42 = vsel %vm9696_vm10, %v8696_v28, %v2867_v3  ;;  %v2869_v58 = vrot.slane %v2867_v3, 4  ;;  %v9415_v25 = vld [vmem:[#allocation2 + $0x60] sm:$0xff] }
 0x177   :  { %v2132_v19 = vsel %vm9791_vm0, %v2127_v8, %v2131_v11  ;;  %v5775_v49 = vunpack.c.l.b16 %v2868_v42  ;;  %v568_v16 = vmul.f32 0.2, %v443_v50  ;;  %v824_v33 = vsel %vm9676_vm7, 0, %v823_v38  ;;  %v6050_v38 = vpop.permute.xlu2 %6049 }
 0x178   :  { %v1672_v48 = vsel %vm9727_vm11, %v1145_v46, %v1671_v30  ;;  %v5618_v9 = vunpack.c.l.b16 %v2132_v19  ;;  %v8761_v36 = vrot.slane %v5129_v51, 9  ;;  %v2871_v44 = vsel %vm9696_vm10, %v2869_v58, %v2870_v6  ;;  %825 = vst [vmem:[#allocation2 + $0x98] sm:$0x1] %v824_v33 }
 0x179   :  { %1673 = vst [vmem:[#allocation2 + $0x90] sm:$0xf] %v1672_v48  ;;  %v632_v62 = vmax.f32 %v443_v50, %v568_v16  ;;  %v5307_v54 = vrot.slane %v10469_v63, 5  ;;  %v5310_v55 = vrot.slane %v10471_v23, 5  ;;  %v6116_v7 = vunpack.c.l.b16 %v3183_v32  ;;  %v3044_v50 = vld [vmem:[#allocation2 + $0x24] sm:$0xf] }
 0x17a   :  { %v5673_v57 = vpack.c.b16 %v5618_v9, %v5617_v52  ;;  %v5776_v10 = vunpack.c.l.b16 %v2871_v44  ;;  %v6820_v12 = vsel %vm6817_vm2, %v9376_v40, %v5698_v45  ;;  %v8730_v14 = vrot.slane %v3913_v47, 9  ;;  %v4273_v45 = vld [vmem:[#allocation2 + $0x78] sm:$0xf]  ;;  %v10504_v9 = vld [vmem:[#allocation2 + $0x40] sm:$0xf] }
 0x17b   :  { %v909_v21 = vpack.c.bf16 %v632_v62, %v632_v62  ;;  %v5308_v43 = vsel %vm9696_vm10, %v8761_v36, %v5307_v54  ;;  %v5309_v35 = vrot.slane %v5307_v54, 4  ;;  %v4097_v32 = vrot.slane %v3059_v17, 5  ;;  %v10507_v44 = vld [vmem:[#allocation2 + $0x44] sm:$0x1] }
 0x17c   :  { %5713 = vrot.lane.b32.xlu0 %v5673_v57, %s9583_s1  ;;  %v5832_v28 = vpack.c.b16 %v5776_v10, %v5775_v49  ;;  %v6737_v11 = vunpack.c.l.b16 %v5308_v43  ;;  %v4100_v3 = vrot.slane %v3113_v0, 5  ;;  %v6916_v6 = vsel %vm6914_vm3, %v6820_v12, %v10451_v24  ;;  %v6500_v0 = vpop.permute.xlu1 %6499 }
 0x17d   :  { %6063 = vrot.lane.b32.xlu2 %v9415_v25, %s9582_s12  ;;  %v1148_v30 = vshrl.u32 %v909_v21, 16  ;;  %v1151_v31 = vshll.u32 %v909_v21, 16  ;;  %v5311_v8 = vsel %vm9696_vm10, %v5309_v35, %v5310_v55  ;;  %v4098_v46 = vsel %vm9696_vm10, %v8730_v14, %v4097_v32  ;;  %v9448_v25 = vld [vmem:[#allocation2 + $0x78] sm:$0xff] }
 0x17e   :  { %5871 = vrot.lane.b32.xlu1 %v5832_v28, %s9581_s22  ;;  %v6738_v51 = vunpack.c.l.b16 %v5311_v8  ;;  %v4099_v52 = vrot.slane %v4097_v32, 4  ;;  %v6981_v42 = vsel %vm6979_vm6, %v6916_v6, %v6050_v38  ;;  %v6178_v40 = vpack.c.b16 %v6116_v7, %v10464_v41  ;;  %v728_v21 = vld [vmem:[#allocation2 + $0x9c] sm:$0x1]  ;;  %v445_v38 = vpop.f32.mrf.mxu0  ;;  %v5700_v8 = vpop.permute.xlu0 %5699 }
 0x17f   :  { %v1146_v19 = vrot.slane %v10456_v29, 4  ;;  %v1150_v58 = vrot.slane %v1148_v30, 7  ;;  %v6227_v49 = vunpack.c.l.b16 %v4098_v46  ;;  %7584 = vmatmul.bf16.vlgmr.msra.gmra.mxu1 %v6981_v42  ;;  %v3185_v17 = vshrl.u32 %v3044_v50, 16  ;;  %v1675_v22 = vld [vmem:[#allocation2 + $0x98] sm:$0x1] }
 0x180   :  { %v6793_v16 = vpack.c.b16 %v6738_v51, %v6737_v11  ;;  %v4101_v24 = vsel %vm9696_vm10, %v4099_v52, %v4100_v3  ;;  %v3188_v48 = vshll.u32 %v3044_v50, 16  ;;  %v3246_v33 = vshrl.u32 %v10504_v9, 16  ;;  %v10523_v30 = vld [vmem:[#allocation2 + $0x4c] sm:$0xf] }
 0x181   :  { %v1153_v36 = vor.u32 %v1151_v31, %v1150_v58  ;;  %v1155_v47 = vrot.slane %v1150_v58, 4  ;;  %v6228_v41 = vunpack.c.l.b16 %v4101_v24  ;;  %v3252_v29 = vshll.u32 %v10507_v44, 16  ;;  %v1836_v46 = vld [vmem:[#allocation2 + $0x6c] sm:$0xf]  ;;  %v10534_v58 = vld [vmem:[#allocation2 + $0x70] sm:$0xf] }
 0x182   :  { %v7081_v62 = vsel %vm6817_vm2, %v6178_v40, %v6308_v15  ;;  %9249 = vmatmul.msk.bf16.gmra.mxu3 %vm6817_vm2, %v6793_v16  ;;  %v3194_v54 = vshll.u32 %v10354_v20, 16  ;;  %v4546_v55 = vshrl.u32 %v4273_v45, 16  ;;  %v4549_v12 = vshll.u32 %v4273_v45, 16  ;;  %v9377_v52 = vld [vmem:[#allocation2 + $0xc] sm:$0xff] }
 0x183   :  { %v1154_v7 = vsel %vm9744_vm13, %v1146_v19, %v1153_v36  ;;  %v1676_v57 = vsel %vm9663_vm4, %v1155_v47, %v1675_v22  ;;  %v6282_v10 = vpack.c.b16 %v6228_v41, %v6227_v49  ;;  %v3187_v43 = vrot.slane %v3185_v17, 4  ;;  %v10536_v49 = vld [vmem:[#allocation2 + $0x50] sm:$0x1] }
 0x184   :  { %1674 = vst.msk [vmem:[#allocation2 + $0x94] sm:$0xf] %vm673_vm5, %v1154_v7  ;;  %v3190_v35 = vrot.slane %v3188_v48, 5  ;;  %v4548_v14 = vrot.slane %v4546_v55, 4  ;;  %v4555_v15 = vshll.u32 %v10469_v63, 16  ;;  %v4551_v28 = vrot.slane %v4549_v12, 5 }
 0x185   :  { %1677 = vst [vmem:[#allocation2 + $0x98] sm:$0x1] %v1676_v57  ;;  %6323 = vrot.lane.b32.xlu0 %v6282_v10, %s9583_s1  ;;  %v4559_v11 = vshrl.u32 %v10469_v63, 16  ;;  %v4565_v32 = vshll.u32 %v10471_v23, 16  ;;  %v7175_v3 = vsel %vm6914_vm3, %v7081_v62, %v6500_v0  ;;  %v3270_v31 = vshrl.u32 %v10523_v30, 16  ;;  %v6660_v63 = vpop.permute.xlu2 %6659 }
 0x186   :  { %v3200_v6 = vrot.slane %v3198_v60, 4  ;;  %v4557_v50 = vrot.slane %v4555_v15, 5  ;;  %6513 = vrot.lane.b32.xlu1 %v9448_v25, %s9581_s22  ;;  %v446_v51 = vadd.f32 %v10425_v37, %v445_v38  ;;  %v10530_v23 = vrot.slane %v3194_v54, 5  ;;  %v10547_v7 = vld [vmem:[#allocation2 + $0x74] sm:$0x1] }
 0x187   :  { %v4552_v42 = vor.u32 %v4551_v28, %v4548_v14  ;;  %v4561_v40 = vrot.slane %v4559_v11, 4  ;;  %v729_v19 = vsel %vm9663_vm4, 0, %v728_v21  ;;  %v3276_v20 = vshll.u32 %v10536_v49, 16 }
 0x188   :  { %v3191_v60 = vor.u32 %v3190_v35, %v3187_v43  ;;  %v569_v45 = vmul.f32 0.2, %v446_v51  ;;  %730 = vst [vmem:[#allocation2 + $0x9c] sm:$0x1] %v729_v19  ;;  %v7240_v16 = vsel %vm6979_vm6, %v7175_v3, %v6660_v63  ;;  %v10541_v24 = vsel %vm6817_vm2, %v9377_v52, %v5700_v8  ;;  %v2693_v43 = vld [vmem:[#allocation2 + $0x60] sm:$0xe] }
 0x189   :  { %v4553_v17 = vrot.slane %v4552_v42, 4  ;;  %v4562_v48 = vor.u32 %v4561_v40, %v4557_v50  ;;  %v4567_v36 = vrot.slane %v4565_v32, 5  ;;  %7758 = vmatmul.bf16.gmra.mxu2 %v7240_v16  ;;  %v2134_v22 = vshrl.u32 %v1836_v46, 16  ;;  %v826_v40 = vld [vmem:[#allocation2 + $0xa4] sm:$0x1] }
 0x18a   :  { %v633_v47 = vmax.f32 %v446_v51, %v569_v45  ;;  %v2137_v41 = vshll.u32 %v1836_v46, 16  ;;  %v2143_v62 = vshll.u32 %v10534_v58, 16  ;;  %v3201_v54 = vor.u32 %v3200_v6, %v10530_v23 }
 0x18b   :  { %v4558_v55 = vsel %vm9791_vm0, %v4553_v17, %v4557_v50  ;;  %v4563_v0 = vrot.slane %v4562_v48, 4  ;;  %v2147_v57 = vshrl.u32 %v10534_v58, 16  ;;  %v10550_v10 = vrot.slane %v3191_v60, 4 }
 0x18c   :  { %v910_v12 = vpack.c.bf16 %v633_v47, %v633_v47  ;;  %v2136_v25 = vrot.slane %v2134_v22, 4  ;;  %v2139_v21 = vrot.slane %v2137_v41, 5  ;;  %v6577_v14 = vunpack.c.l.b16 %v4558_v55  ;;  %v10575_v47 = vld [vmem:[#allocation2 + $0x88] sm:$0xf]  ;;  %v10577_v22 = vld [vmem:[#allocation2 + $0x8c] sm:$0x1]  ;;  %v5860_v55 = vpop.permute.xlu1 %5859 }
 0x18d   :  { %v4568_v35 = vsel %vm9791_vm0, %v4563_v0, %v4567_v36  ;;  %v2145_v15 = vrot.slane %v2143_v62, 5  ;;  %v2149_v28 = vrot.slane %v2147_v57, 4  ;;  %v10556_v8 = vrot.slane %v3204_v1, 5  ;;  %v447_v1 = vpop.f32.mrf.mxu0 }
 0x18e   :  { %v6578_v11 = vunpack.c.l.b16 %v4568_v35  ;;  %v1157_v32 = vshrl.u32 %v910_v12, 16  ;;  %v1160_v3 = vshll.u32 %v910_v12, 16  ;;  %v2140_v38 = vor.u32 %v2139_v21, %v2136_v25  ;;  %v3061_v25 = vld [vmem:[#allocation2 + $0x88] sm:$0xf]  ;;  %v3914_v21 = vld [vmem:[#allocation2 + $0x84] sm:$0xe] }
 0x18f   :  { %v2150_v6 = vor.u32 %v2149_v28, %v2145_v15  ;;  %v2153_v50 = vshll.u32 %v10547_v7, 16  ;;  %v8697_v51 = vrot.slane %v2693_v43, 9  ;;  %v2874_v42 = vrot.slane %v10435_v39, 5  ;;  %v1678_v60 = vld [vmem:[#allocation2 + $0x9c] sm:$0xf] }
 0x190   :  { %v6633_v46 = vpack.c.b16 %v6578_v11, %v6577_v14  ;;  %v10559_v63 = vrot.slane %v1157_v32, 7  ;;  %v2141_v52 = vrot.slane %v2140_v38, 4  ;;  %v10562_v19 = vrot.slane %v3201_v54, 4  ;;  %v3046_v43 = vld [vmem:[#allocation2 + $0x30] sm:$0xf]  ;;  %v9363_v11 = vld [vmem:[%s13654_s0 + $0xa8] sm:$0xff]  ;;  %v10593_v32 = vpop.permute.xlu0 %6309 }
 0x191   :  { %v2151_v45 = vrot.slane %v2150_v6, 4  ;;  %v2155_v16 = vrot.slane %v2153_v50, 5  ;;  %v2877_v4 = vrot.slane %v10442_v56, 5  ;;  %v3197_v17 = vsel %vm9791_vm0, %v10550_v10, %v10530_v23  ;;  %v5130_v56 = vld [vmem:[#allocation2 + $0x84] sm:$0xe]  ;;  %8678 = vmatmul.msk.bf16.gmra.mxu0 %vm275_vm1, %v9363_v11 }
 0x192   :  { %6673 = vrot.lane.b32.xlu2 %v6633_v46, %s9582_s12  ;;  %v1162_v48 = vor.u32 %v1160_v3, %v10559_v63  ;;  %v2146_v39 = vsel %vm9791_vm0, %v2141_v52, %v2145_v15  ;;  %v2875_v36 = vsel %vm9696_vm10, %v8697_v51, %v2874_v42  ;;  %v2876_v23 = vrot.slane %v2874_v42, 4  ;;  %v3114_v51 = vld [vmem:[#allocation2 + $0x8c] sm:$0x1] }
 0x193   :  { %v2156_v41 = vsel %vm9791_vm0, %v2151_v45, %v2155_v16  ;;  %v5619_v62 = vunpack.c.l.b16 %v2146_v39  ;;  %v5777_v54 = vunpack.c.l.b16 %v2875_v36  ;;  %v448_v10 = vadd.f32 %v10425_v37, %v447_v1  ;;  %v9416_v45 = vld [vmem:[#allocation2 + $0x6c] sm:$0xff] }
 0x194   :  { %v1679_v0 = vsel %vm9727_vm11, %v1162_v48, %v1678_v60  ;;  %v5620_v57 = vunpack.c.l.b16 %v2156_v41  ;;  %v827_v12 = vsel %vm9676_vm7, 0, %v826_v40  ;;  %v2878_v35 = vsel %vm9696_vm10, %v2876_v23, %v2877_v4  ;;  %v6052_v60 = vpop.permute.xlu2 %6051 }
 0x195   :  { %1680 = vst [vmem:[#allocation2 + $0x9c] sm:$0xf] %v1679_v0  ;;  %v8762_v14 = vrot.slane %v5130_v56, 9  ;;  %v5314_v15 = vrot.slane %v10575_v47, 5  ;;  %v5317_v28 = vrot.slane %v10577_v22, 5  ;;  %v5778_v38 = vunpack.c.l.b16 %v2878_v35 }
 0x196   :  { %v5674_v3 = vpack.c.b16 %v5620_v57, %v5619_v62  ;;  %v6918_v6 = vsel %vm6914_vm3, %v10541_v24, %v5860_v55  ;;  %v570_v50 = vmul.f32 0.2, %v448_v10  ;;  %828 = vst [vmem:[#allocation2 + $0xa4] sm:$0x1] %v827_v12  ;;  %v3207_v46 = vsel %vm9791_vm0, %v10562_v19, %v10556_v8  ;;  %v4275_v57 = vld [vmem:[#allocation2 + $0x84] sm:$0xf] }
 0x197   :  { %v5315_v52 = vsel %vm9696_vm10, %v8762_v14, %v5314_v15  ;;  %v5316_v42 = vrot.slane %v5314_v15, 4  ;;  %v8731_v40 = vrot.slane %v3914_v21, 9  ;;  %v5833_v24 = vpack.c.b16 %v5778_v38, %v5777_v54 }
 0x198   :  { %5715 = vrot.lane.b32.xlu0 %v5674_v3, %s9583_s1  ;;  %v634_v16 = vmax.f32 %v448_v10, %v570_v50  ;;  %v6739_v4 = vunpack.c.l.b16 %v5315_v52  ;;  %v4104_v1 = vrot.slane %v3061_v25, 5  ;;  %v4107_v39 = vrot.slane %v3114_v51, 5 }
 0x199   :  { %v5318_v48 = vsel %vm9696_vm10, %v5316_v42, %v5317_v28  ;;  %v6984_v8 = vsel %vm6979_vm6, %v6918_v6, %v6052_v60  ;;  %v3209_v19 = vshrl.u32 %v3046_v43, 16  ;;  %5873 = vrot.lane.b32.xlu1 %v5833_v24, %s9581_s22  ;;  %v6117_v23 = vunpack.c.l.b16 %v3197_v17 }
 0x19a   :  { %6065 = vrot.lane.b32.xlu2 %v9416_v45, %s9582_s12  ;;  %v911_v36 = vpack.c.bf16 %v634_v16, %v634_v16  ;;  %v6740_v56 = vunpack.c.l.b16 %v5318_v48  ;;  %v4105_v41 = vsel %vm9696_vm10, %v8731_v40, %v4104_v1  ;;  %v4106_v62 = vrot.slane %v4104_v1, 4  ;;  %7589 = vmatmul.bf16.gmra.mxu1 %v6984_v8  ;;  %v9378_v16 = vld [vmem:[#allocation2 + $0x18] sm:$0xff] }
 0x19b   :  { %v6229_v54 = vunpack.c.l.b16 %v4105_v41  ;;  %v3212_v55 = vshll.u32 %v3046_v43, 16  ;;  %v3218_v0 = vshll.u32 %v10380_v61, 16  ;;  %v6118_v35 = vunpack.c.l.b16 %v3207_v46  ;;  %v5702_v46 = vpop.permute.xlu0 %5701  ;;  %v10630_v41 = vld [vmem:[#allocation2 + $0x58] sm:$0xf] }
 0x19c   :  { %v1165_v10 = vshrl.u32 %v911_v36, 16  ;;  %v1168_v12 = vshll.u32 %v911_v36, 16  ;;  %v6794_v25 = vpack.c.b16 %v6740_v56, %v6739_v4  ;;  %v4108_v21 = vsel %vm9696_vm10, %v4106_v62, %v4107_v39  ;;  %v731_v36 = vld [vmem:[#allocation2 + $0xa8] sm:$0x1]  ;;  %v1838_v56 = vld [vmem:[#allocation2 + $0x78] sm:$0xf] }
 0x19d   :  { %v6230_v14 = vunpack.c.l.b16 %v4108_v21  ;;  %v3211_v15 = vrot.slane %v3209_v19, 4  ;;  %v3214_v28 = vrot.slane %v3212_v55, 5  ;;  %v1163_v11 = vrot.slane %v10559_v63, 4  ;;  %v1682_v38 = vld [vmem:[#allocation2 + $0xa4] sm:$0x1]  ;;  %v450_v19 = vpop.f32.mrf.mxu0  ;;  %v6502_v55 = vpop.permute.xlu1 %6501 }
 0x19e   :  { %v1167_v3 = vrot.slane %v1165_v10, 7  ;;  %9250 = vmatmul.msk.bf16.gmra.mxu3 %vm6817_vm2, %v6794_v25  ;;  %v4570_v17 = vshrl.u32 %v4275_v57, 16  ;;  %v4573_v43 = vshll.u32 %v4275_v57, 16  ;;  %v10617_v50 = vrot.slane %v3218_v0, 5  ;;  %v9449_v63 = vld [vmem:[#allocation2 + $0x84] sm:$0xff] }
 0x19f   :  { %v6283_v6 = vpack.c.b16 %v6230_v14, %v6229_v54  ;;  %v3224_v51 = vrot.slane %v3222_v59, 4  ;;  %v4579_v52 = vshll.u32 %v10575_v47, 16  ;;  %v6179_v24 = vpack.c.b16 %v6118_v35, %v6117_v23  ;;  %v10649_v35 = vld [vmem:[#allocation2 + $0x80] sm:$0x1] }
 0x1a0   :  { %v1170_v42 = vor.u32 %v1168_v12, %v1167_v3  ;;  %v1172_v40 = vrot.slane %v1167_v3, 4  ;;  %v4572_v60 = vrot.slane %v4570_v17, 4  ;;  %v4575_v45 = vrot.slane %v4573_v43, 5 }
 0x1a1   :  { %6325 = vrot.lane.b32.xlu0 %v6283_v6, %s9583_s1  ;;  %v3215_v4 = vor.u32 %v3214_v28, %v3211_v15  ;;  %v4581_v1 = vrot.slane %v4579_v52, 5  ;;  %v4583_v48 = vshrl.u32 %v10575_v47, 16  ;;  %v4589_v8 = vshll.u32 %v10577_v22, 16  ;;  %6515 = vrot.lane.b32.xlu1 %v9449_v63, %s9581_s22  ;;  %v10639_v22 = vld [vmem:[#allocation2 + $0x7c] sm:$0xf] }
 0x1a2   :  { %v1171_v61 = vsel %vm9744_vm13, %v1163_v11, %v1170_v42  ;;  %v1683_v59 = vsel %vm9663_vm4, %v1172_v40, %v1682_v38  ;;  %v4576_v39 = vor.u32 %v4575_v45, %v4572_v60  ;;  %v3294_v62 = vshrl.u32 %v10630_v41, 16  ;;  %v6662_v38 = vpop.permute.xlu2 %6661  ;;  %v2694_v42 = vld [vmem:[#allocation2 + $0x6c] sm:$0xe] }
 0x1a3   :  { %v7084_v47 = vsel %vm6817_vm2, %v6179_v24, %v10593_v32  ;;  %v10636_v23 = vsel %vm6817_vm2, %v9378_v16, %v5702_v46  ;;  %1681 = vst.msk [vmem:[#allocation2 + $0xa0] sm:$0xf] %vm673_vm5, %v1171_v61  ;;  %v4585_v54 = vrot.slane %v4583_v48, 4  ;;  %v3225_v0 = vor.u32 %v3224_v51, %v10617_v50 }
 0x1a4   :  { %1684 = vst [vmem:[#allocation2 + $0xa4] sm:$0x1] %v1683_v59  ;;  %v10644_v57 = vrot.slane %v3228_v26, 5  ;;  %v4577_v10 = vrot.slane %v4576_v39, 4  ;;  %v4591_v12 = vrot.slane %v4589_v8, 5  ;;  %v451_v32 = vadd.f32 %v10425_v37, %v450_v19 }
 0x1a5   :  { %v4586_v25 = vor.u32 %v4585_v54, %v4581_v1  ;;  %v732_v21 = vsel %vm9663_vm4, 0, %v731_v36  ;;  %v2158_v14 = vshrl.u32 %v1838_v56, 16  ;;  %v10651_v15 = vrot.slane %v3215_v4, 4  ;;  %v829_v54 = vld [vmem:[#allocation2 + $0xb0] sm:$0x1] }
 0x1a6   :  { %v7177_v28 = vsel %vm6914_vm3, %v7084_v47, %v6502_v55  ;;  %733 = vst [vmem:[#allocation2 + $0xa8] sm:$0x1] %v732_v21  ;;  %v2161_v11 = vshll.u32 %v1838_v56, 16  ;;  %v2167_v2 = vshll.u32 %v10639_v22, 16  ;;  %v4582_v26 = vsel %vm9791_vm0, %v4577_v10, %v4581_v1  ;;  %v452_v47 = vpop.f32.mrf.mxu0 }
 0x1a7   :  { %v4587_v3 = vrot.slane %v4586_v25, 4  ;;  %v571_v17 = vmul.f32 0.2, %v451_v32  ;;  %v2160_v43 = vrot.slane %v2158_v14, 4  ;;  %v3226_v6 = vrot.slane %v3225_v0, 4 }
 0x1a8   :  { %v2163_v51 = vrot.slane %v2161_v11, 5  ;;  %v2169_v52 = vrot.slane %v2167_v2, 5  ;;  %v2171_v46 = vshrl.u32 %v10639_v22, 16  ;;  %v2177_v45 = vshll.u32 %v10649_v35, 16  ;;  %v5131_v25 = vld [vmem:[#allocation2 + $0x90] sm:$0xe] }
 0x1a9   :  { %v4592_v40 = vsel %vm9791_vm0, %v4587_v3, %v4591_v12  ;;  %v635_v60 = vmax.f32 %v451_v32, %v571_v17  ;;  %v7243_v63 = vsel %vm6979_vm6, %v7177_v28, %v6662_v38  ;;  %v6579_v24 = vunpack.c.l.b16 %v4582_v26  ;;  %v10673_v14 = vld [vmem:[#allocation2 + $0x94] sm:$0xf]  ;;  %v5862_v26 = vpop.permute.xlu1 %5861  ;;  %v10683_v17 = vld [vmem:[#allocation2 + $0x98] sm:$0x1] }
 0x1aa   :  { %v6580_v16 = vunpack.c.l.b16 %v4592_v40  ;;  %v2164_v4 = vor.u32 %v2163_v51, %v2160_v43  ;;  %v2173_v1 = vrot.slane %v2171_v46, 4  ;;  %7763 = vmatmul.bf16.gmra.mxu2 %v7243_v63  ;;  %v2179_v61 = vrot.slane %v2177_v45, 5  ;;  %v3063_v43 = vld [vmem:[#allocation2 + $0x94] sm:$0xf]  ;;  %v3915_v63 = vld [vmem:[#allocation2 + $0x90] sm:$0xe] }
 0x1ab   :  { %v912_v48 = vpack.c.bf16 %v635_v60, %v635_v60  ;;  %v8698_v59 = vrot.slane %v2694_v42, 9  ;;  %v2881_v39 = vrot.slane %v10534_v58, 5  ;;  %v2884_v56 = vrot.slane %v10547_v7, 5 }
 0x1ac   :  { %v6634_v8 = vpack.c.b16 %v6580_v16, %v6579_v24  ;;  %v2165_v19 = vrot.slane %v2164_v4, 4  ;;  %v2174_v36 = vor.u32 %v2173_v1, %v2169_v52  ;;  %v3221_v32 = vsel %vm9791_vm0, %v10651_v15, %v10617_v50 }
 0x1ad   :  { %v1174_v55 = vshrl.u32 %v912_v48, 16  ;;  %v1177_v0 = vshll.u32 %v912_v48, 16  ;;  %v2882_v10 = vsel %vm9696_vm10, %v8698_v59, %v2881_v39  ;;  %v2883_v12 = vrot.slane %v2881_v39, 4  ;;  %v1685_v38 = vld [vmem:[#allocation2 + $0xa8] sm:$0xf]  ;;  %v10700_v59 = vpop.permute.xlu0 %6311 }
 0x1ae   :  { %6675 = vrot.lane.b32.xlu2 %v6634_v8, %s9582_s12  ;;  %v2170_v58 = vsel %vm9791_vm0, %v2165_v19, %v2169_v52  ;;  %v2175_v7 = vrot.slane %v2174_v36, 4  ;;  %v5779_v21 = vunpack.c.l.b16 %v2882_v10  ;;  %v3231_v28 = vsel %vm9791_vm0, %v3226_v6, %v10644_v57  ;;  %v9364_v6 = vld [vmem:[%s13654_s0 + $0xb0] sm:$0xff]  ;;  %v3115_v48 = vld [vmem:[#allocation2 + $0x98] sm:$0x1]  ;;  %v3048_v36 = vld [vmem:[#allocation2 + $0x3c] sm:$0xf]  ;;  %v455_v15 = vpop.f32.mrf.mxu0 }
 0x1af   :  { %v10678_v11 = vrot.slane %v1174_v55, 7  ;;  %v2885_v2 = vsel %vm9696_vm10, %v2883_v12, %v2884_v56  ;;  %v453_v3 = vadd.f32 %v10425_v37, %v452_v47  ;;  %v830_v46 = vsel %vm9676_vm7, 0, %v829_v54  ;;  %8679 = vmatmul.msk.bf16.gmra.mxu0 %vm275_vm1, %v9364_v6  ;;  %v6054_v56 = vpop.permute.xlu2 %6053 }
 0x1b0   :  { %v2180_v51 = vsel %vm9791_vm0, %v2175_v7, %v2179_v61  ;;  %v5780_v52 = vunpack.c.l.b16 %v2885_v2  ;;  %v8763_v57 = vrot.slane %v5131_v25, 9  ;;  %v5621_v40 = vunpack.c.l.b16 %v2170_v58  ;;  %831 = vst [vmem:[#allocation2 + $0xb0] sm:$0x1] %v830_v46 }
 0x1b1   :  { %v1179_v42 = vor.u32 %v1177_v0, %v10678_v11  ;;  %v5622_v60 = vunpack.c.l.b16 %v2180_v51  ;;  %v572_v45 = vmul.f32 0.2, %v453_v3  ;;  %v6920_v16 = vsel %vm6914_vm3, %v10636_v23, %v5862_v26  ;;  %v9417_v23 = vld [vmem:[#allocation2 + $0x78] sm:$0xff]  ;;  %v4277_v51 = vld [vmem:[#allocation2 + $0x90] sm:$0xf] }
 0x1b2   :  { %v5834_v24 = vpack.c.b16 %v5780_v52, %v5779_v21  ;;  %v5321_v4 = vrot.slane %v10673_v14, 5  ;;  %v5324_v1 = vrot.slane %v10683_v17, 5  ;;  %v10698_v61 = vunpack.c.l.b16 %v3231_v28 }
 0x1b3   :  { %v1686_v39 = vsel %vm9727_vm11, %v1179_v42, %v1685_v38  ;;  %v5675_v8 = vpack.c.b16 %v5622_v60, %v5621_v40  ;;  %v636_v19 = vmax.f32 %v453_v3, %v572_v45  ;;  %v8732_v55 = vrot.slane %v3915_v63, 9  ;;  %v9450_v63 = vld [vmem:[#allocation2 + $0x90] sm:$0xff] }
 0x1b4   :  { %1687 = vst [vmem:[#allocation2 + $0xa8] sm:$0xf] %v1686_v39  ;;  %5875 = vrot.lane.b32.xlu1 %v5834_v24, %s9581_s22  ;;  %v5322_v47 = vsel %vm9696_vm10, %v8763_v57, %v5321_v4  ;;  %v5323_v54 = vrot.slane %v5321_v4, 4  ;;  %v4111_v0 = vrot.slane %v3063_v43, 5  ;;  %v4114_v25 = vrot.slane %v3115_v48, 5 }
 0x1b5   :  { %5717 = vrot.lane.b32.xlu0 %v5675_v8, %s9583_s1  ;;  %v913_v10 = vpack.c.bf16 %v636_v19, %v636_v19  ;;  %v6741_v12 = vunpack.c.l.b16 %v5322_v47  ;;  %v6987_v58 = vsel %vm6979_vm6, %v6920_v16, %v6054_v56  ;;  %v3233_v2 = vshrl.u32 %v3048_v36, 16 }
 0x1b6   :  { %6067 = vrot.lane.b32.xlu2 %v9417_v23, %s9582_s12  ;;  %v5325_v7 = vsel %vm9696_vm10, %v5323_v54, %v5324_v1  ;;  %v4112_v21 = vsel %vm9696_vm10, %v8732_v55, %v4111_v0  ;;  %v4113_v28 = vrot.slane %v4111_v0, 4  ;;  %7594 = vmatmul.bf16.gmra.mxu1 %v6987_v58  ;;  %v3236_v57 = vshll.u32 %v3048_v36, 16  ;;  %v1840_v58 = vld [vmem:[#allocation2 + $0x84] sm:$0xf] }
 0x1b7   :  { %v1182_v26 = vshrl.u32 %v913_v10, 16  ;;  %v1185_v3 = vshll.u32 %v913_v10, 16  ;;  %v6742_v43 = vunpack.c.l.b16 %v5325_v7  ;;  %v6231_v38 = vunpack.c.l.b16 %v4112_v21  ;;  %v1689_v24 = vld [vmem:[#allocation2 + $0xb0] sm:$0x1] }
 0x1b8   :  { %v4115_v52 = vsel %vm9696_vm10, %v4113_v28, %v4114_v25  ;;  %v3235_v46 = vrot.slane %v3233_v2, 4  ;;  %v3242_v6 = vshll.u32 %v10504_v9, 16  ;;  %v1180_v42 = vrot.slane %v10678_v11, 4  ;;  %v9379_v9 = vld [vmem:[#allocation2 + $0x24] sm:$0xff] }
 0x1b9   :  { %v1184_v40 = vrot.slane %v1182_v26, 7  ;;  %v6795_v60 = vpack.c.b16 %v6742_v43, %v6741_v12  ;;  %v6232_v45 = vunpack.c.l.b16 %v4115_v52  ;;  %v3238_v16 = vrot.slane %v3236_v57, 5  ;;  %v10741_v26 = vld [vmem:[#allocation2 + $0x88] sm:$0xf] }
 0x1ba   :  { %v10718_v4 = vrot.slane %v3242_v6, 5  ;;  %v3248_v1 = vrot.slane %v3246_v33, 4  ;;  %v4594_v48 = vshrl.u32 %v4277_v51, 16  ;;  %v4597_v36 = vshll.u32 %v4277_v51, 16  ;;  %v5704_v33 = vpop.permute.xlu0 %5703 }
 0x1bb   :  { %v1187_v39 = vor.u32 %v1185_v3, %v1184_v40  ;;  %v1189_v8 = vrot.slane %v1184_v40, 4  ;;  %9251 = vmatmul.msk.bf16.gmra.mxu3 %vm6817_vm2, %v6795_v60  ;;  %v6284_v19 = vpack.c.b16 %v6232_v45, %v6231_v38  ;;  %v6119_v11 = vunpack.c.l.b16 %v3221_v32  ;;  %v734_v32 = vld [vmem:[#allocation2 + $0xb4] sm:$0x1]  ;;  %v10759_v40 = vld [vmem:[#allocation2 + $0x8c] sm:$0x1] }
 0x1bc   :  { %v3239_v56 = vor.u32 %v3238_v16, %v3235_v46  ;;  %v4596_v23 = vrot.slane %v4594_v48, 4  ;;  %v4603_v47 = vshll.u32 %v10673_v14, 16  ;;  %6517 = vrot.lane.b32.xlu1 %v9450_v63, %s9581_s22  ;;  %v4599_v0 = vrot.slane %v4597_v36, 5  ;;  %v6664_v36 = vpop.permute.xlu2 %6663 }
 0x1bd   :  { %v1188_v54 = vsel %vm9744_vm13, %v1180_v42, %v1187_v39  ;;  %v1690_v55 = vsel %vm9663_vm4, %v1189_v8, %v1689_v24  ;;  %6327 = vrot.lane.b32.xlu0 %v6284_v19, %s9583_s1  ;;  %v4607_v50 = vshrl.u32 %v10673_v14, 16  ;;  %v6180_v10 = vpack.c.b16 %v10698_v61, %v6119_v11 }
 0x1be   :  { %1688 = vst.msk [vmem:[#allocation2 + $0xac] sm:$0xf] %vm673_vm5, %v1188_v54  ;;  %v4605_v12 = vrot.slane %v4603_v47, 5  ;;  %v4613_v25 = vshll.u32 %v10683_v17, 16  ;;  %v3249_v7 = vor.u32 %v3248_v1, %v10718_v4  ;;  %v4600_v21 = vor.u32 %v4599_v0, %v4596_v23  ;;  %v2695_v1 = vld [vmem:[#allocation2 + $0x78] sm:$0xe]  ;;  %v457_v0 = vpop.f32.mrf.mxu0 }
 0x1bf   :  { %1691 = vst [vmem:[#allocation2 + $0xb0] sm:$0x1] %v1690_v55  ;;  %v4609_v28 = vrot.slane %v4607_v50, 4  ;;  %v456_v2 = vadd.f32 %v10425_v37, %v455_v15  ;;  %v7087_v14 = vsel %vm6817_vm2, %v6180_v10, %v10700_v59  ;;  %v10746_v61 = vsel %vm6817_vm2, %v9379_v9, %v5704_v33  ;;  %v6504_v37 = vpop.permute.xlu1 %6503 }
 0x1c0   :  { %v10750_v3 = vrot.slane %v3252_v29, 5  ;;  %v735_v17 = vsel %vm9663_vm4, 0, %v734_v32  ;;  %v3240_v43 = vrot.slane %v3239_v56, 4  ;;  %v4601_v38 = vrot.slane %v4600_v21, 4 }
 0x1c1   :  { %v4610_v51 = vor.u32 %v4609_v28, %v4605_v12  ;;  %v4615_v52 = vrot.slane %v4613_v25, 5  ;;  %736 = vst [vmem:[#allocation2 + $0xb4] sm:$0x1] %v735_v17  ;;  %v573_v46 = vmul.f32 0.2, %v456_v2  ;;  %v2182_v57 = vshrl.u32 %v1840_v58, 16 }
 0x1c2   :  { %v2185_v6 = vshll.u32 %v1840_v58, 16  ;;  %v2191_v59 = vshll.u32 %v10741_v26, 16  ;;  %v10755_v42 = vrot.slane %v3249_v7, 4  ;;  %v4606_v44 = vsel %vm9791_vm0, %v4601_v38, %v4605_v12 }
 0x1c3   :  { %v4611_v29 = vrot.slane %v4610_v51, 4  ;;  %v2195_v60 = vshrl.u32 %v10741_v26, 16  ;;  %v7179_v45 = vsel %vm6914_vm3, %v7087_v14, %v6504_v37  ;;  %v637_v63 = vmax.f32 %v456_v2, %v573_v46  ;;  %v10784_v2 = vld [vmem:[%s13653_s2] ss:$0 sm:$0xff]  ;;  %v5132_v14 = vld [vmem:[#allocation2 + $0x9c] sm:$0xe] }
 0x1c4   :  { %v2184_v24 = vrot.slane %v2182_v57, 4  ;;  %v2187_v16 = vrot.slane %v2185_v6, 5  ;;  %v6581_v39 = vunpack.c.l.b16 %v4606_v44  ;;  %v2193_v8 = vrot.slane %v2191_v59, 5  ;;  %v3065_v44 = vld [vmem:[#allocation2 + $0xa0] sm:$0xf] }
 0x1c5   :  { %v4616_v48 = vsel %vm9791_vm0, %v4611_v29, %v4615_v52  ;;  %v2197_v19 = vrot.slane %v2195_v60, 4  ;;  %v914_v56 = vpack.c.bf16 %v637_v63, %v637_v63  ;;  %v2201_v47 = vshll.u32 %v10759_v40, 16  ;;  %v10793_v52 = vld [vmem:[#allocation2 + $0xa0] sm:$0xf]  ;;  %v9365_v29 = vld [vmem:[%s13654_s0 + $0xb8] sm:$0xff] }
 0x1c6   :  { %v6582_v11 = vunpack.c.l.b16 %v4616_v48  ;;  %v2188_v23 = vor.u32 %v2187_v16, %v2184_v24  ;;  %v3245_v9 = vsel %vm9791_vm0, %v3240_v43, %v10718_v4  ;;  %v7246_v54 = vsel %vm6979_vm6, %v7179_v45, %v6664_v36  ;;  %v3916_v16 = vld [vmem:[#allocation2 + $0x9c] sm:$0xe]  ;;  %8680 = vmatmul.msk.bf16.gmra.mxu0 %vm275_vm1, %v9365_v29 }
 0x1c7   :  { %v2198_v33 = vor.u32 %v2197_v19, %v2193_v8  ;;  %v8699_v55 = vrot.slane %v2695_v1, 9  ;;  %v1191_v15 = vshrl.u32 %v914_v56, 16  ;;  %v1194_v32 = vshll.u32 %v914_v56, 16  ;;  %7768 = vmatmul.bf16.gmra.mxu2 %v7246_v54  ;;  %v5864_v59 = vpop.permute.xlu1 %5863  ;;  %v3116_v19 = vld [vmem:[#allocation2 + $0xa4] sm:$0x1] }
 0x1c8   :  { %v6635_v50 = vpack.c.b16 %v6582_v11, %v6581_v39  ;;  %v2189_v10 = vrot.slane %v2188_v23, 4  ;;  %v2203_v25 = vrot.slane %v2201_v47, 5  ;;  %v2888_v58 = vrot.slane %v10639_v22, 5  ;;  %v1692_v43 = vld [vmem:[#allocation2 + $0xb4] sm:$0xf] }
 0x1c9   :  { %v2199_v12 = vrot.slane %v2198_v33, 4  ;;  %v2891_v7 = vrot.slane %v10649_v35, 5  ;;  %v3255_v4 = vsel %vm9791_vm0, %v10755_v42, %v10750_v3  ;;  %v10777_v21 = vrot.slane %v1191_v15, 7  ;;  %v832_v35 = vld [vmem:[#allocation2 + $0xbc] sm:$0x1] }
 0x1ca   :  { %6677 = vrot.lane.b32.xlu2 %v6635_v50, %s9582_s12  ;;  %v2194_v28 = vsel %vm9791_vm0, %v2189_v10, %v2193_v8  ;;  %v458_v22 = vadd.f32 %v10784_v2, %v457_v0  ;;  %v10787_v17 = vunpack.c.l.b16 %v3245_v9  ;;  %v2889_v38 = vsel %vm9696_vm10, %v8699_v55, %v2888_v58  ;;  %v10796_v42 = vld [vmem:[#allocation2 + $0xa4] sm:$0x1]  ;;  %v3050_v47 = vld [vmem:[#allocation2 + $0x48] sm:$0xf]  ;;  %v6056_v50 = vpop.permute.xlu2 %6055 }
 0x1cb   :  { %v2204_v3 = vsel %vm9791_vm0, %v2199_v12, %v2203_v25  ;;  %v2890_v51 = vrot.slane %v2888_v58, 4  ;;  %v1196_v37 = vor.u32 %v1194_v32, %v10777_v21  ;;  %v5623_v46 = vunpack.c.l.b16 %v2194_v28  ;;  %v9418_v9 = vld [vmem:[#allocation2 + $0x84] sm:$0xff] }
 0x1cc   :  { %v5624_v57 = vunpack.c.l.b16 %v2204_v3  ;;  %v5781_v6 = vunpack.c.l.b16 %v2889_v38  ;;  %v574_v45 = vmul.f32 0.2, %v458_v22  ;;  %v833_v63 = vsel %vm9676_vm7, 0, %v832_v35 }
 0x1cd   :  { %v2892_v60 = vsel %vm9696_vm10, %v2890_v51, %v2891_v7  ;;  %v8764_v24 = vrot.slane %v5132_v14, 9  ;;  %v1693_v1 = vsel %vm9727_vm11, %v1196_v37, %v1692_v43  ;;  %834 = vst [vmem:[#allocation2 + $0xbc] sm:$0x1] %v833_v63  ;;  %v5328_v8 = vrot.slane %v10793_v52, 5  ;;  %v4279_v14 = vld [vmem:[#allocation2 + $0x9c] sm:$0xf]  ;;  %v6314_v63 = vpop.permute.xlu0 %6313 }
 0x1ce   :  { %v5676_v48 = vpack.c.b16 %v5624_v57, %v5623_v46  ;;  %v5782_v39 = vunpack.c.l.b16 %v2892_v60  ;;  %v10809_v36 = vunpack.c.l.b16 %v3255_v4  ;;  %1694 = vst [vmem:[#allocation2 + $0xb4] sm:$0xf] %v1693_v1  ;;  %v6922_v11 = vsel %vm6914_vm3, %v10746_v61, %v5864_v59 }
 0x1cf   :  { %v638_v56 = vmax.f32 %v458_v22, %v574_v45  ;;  %v5331_v23 = vrot.slane %v10796_v42, 5  ;;  %v5329_v54 = vsel %vm9696_vm10, %v8764_v24, %v5328_v8  ;;  %v5330_v55 = vrot.slane %v5328_v8, 4 }
 0x1d0   :  { %5719 = vrot.lane.b32.xlu0 %v5676_v48, %s9583_s1  ;;  %v5835_v33 = vpack.c.b16 %v5782_v39, %v5781_v6  ;;  %v8733_v0 = vrot.slane %v3916_v16, 9  ;;  %v6743_v32 = vunpack.c.l.b16 %v5329_v54  ;;  %v4118_v10 = vrot.slane %v3065_v44, 5 }
 0x1d1   :  { %v915_v15 = vpack.c.bf16 %v638_v56, %v638_v56  ;;  %v4121_v12 = vrot.slane %v3116_v19, 5  ;;  %v5332_v61 = vsel %vm9696_vm10, %v5330_v55, %v5331_v23  ;;  %v6990_v25 = vsel %vm6979_vm6, %v6922_v11, %v6056_v50  ;;  %v9451_v19 = vld [vmem:[#allocation2 + $0x9c] sm:$0xff]  ;;  %v10848_v50 = vld [vmem:[#allocation2 + $0x64] sm:$0xf] }
 0x1d2   :  { %6069 = vrot.lane.b32.xlu2 %v9418_v9, %s9582_s12  ;;  %5877 = vrot.lane.b32.xlu1 %v5835_v33, %s9581_s22  ;;  %v3257_v58 = vshrl.u32 %v3050_v47, 16  ;;  %v3260_v7 = vshll.u32 %v3050_v47, 16  ;;  %v6744_v22 = vunpack.c.l.b16 %v5332_v61  ;;  %v4119_v35 = vsel %vm9696_vm10, %v8733_v0, %v4118_v10  ;;  %v737_v47 = vld [vmem:[#allocation2 + $0xc0] sm:$0x1]  ;;  %v1842_v9 = vld [vmem:[#allocation2 + $0x90] sm:$0xf]  ;;  %v460_v0 = vpop.f32.mrf.mxu0 }
 0x1d3   :  { %v1199_v4 = vshrl.u32 %v915_v15, 16  ;;  %v1202_v28 = vshll.u32 %v915_v15, 16  ;;  %7599 = vmatmul.bf16.gmra.mxu1 %v6990_v25  ;;  %v1197_v43 = vrot.slane %v10777_v21, 4  ;;  %v4120_v3 = vrot.slane %v4118_v10, 4 }
 0x1d4   :  { %v3259_v38 = vrot.slane %v3257_v58, 4  ;;  %v3262_v51 = vrot.slane %v3260_v7, 5  ;;  %v6796_v46 = vpack.c.b16 %v6744_v22, %v6743_v32  ;;  %v6233_v57 = vunpack.c.l.b16 %v4119_v35  ;;  %v1696_v44 = vld [vmem:[#allocation2 + $0xbc] sm:$0x1]  ;;  %v10861_v7 = vld [vmem:[#allocation2 + $0x94] sm:$0xf] }
 0x1d5   :  { %v1201_v37 = vrot.slane %v1199_v4, 7  ;;  %v3266_v6 = vshll.u32 %v10523_v30, 16  ;;  %v6181_v59 = vpack.c.b16 %v10809_v36, %v10787_v17  ;;  %v4122_v29 = vsel %vm9696_vm10, %v4120_v3, %v4121_v12  ;;  %v10842_v30 = vld [vmem:[#allocation2 + $0x5c] sm:$0x1]  ;;  %v10868_v3 = vld [vmem:[#allocation2 + $0x98] sm:$0x1] }
 0x1d6   :  { %v3263_v60 = vor.u32 %v3262_v51, %v3259_v38  ;;  %v4618_v45 = vshrl.u32 %v4279_v14, 16  ;;  %9252 = vmatmul.msk.bf16.gmra.mxu3 %vm6817_vm2, %v6796_v46  ;;  %v6234_v16 = vunpack.c.l.b16 %v4122_v29  ;;  %v3272_v1 = vrot.slane %v3270_v31, 4  ;;  %v5706_v29 = vpop.permute.xlu0 %5705 }
 0x1d7   :  { %v1204_v24 = vor.u32 %v1202_v28, %v1201_v37  ;;  %v1206_v21 = vrot.slane %v1201_v37, 4  ;;  %v10833_v48 = vrot.slane %v3266_v6, 5  ;;  %v4621_v8 = vshll.u32 %v4279_v14, 16 }
 0x1d8   :  { %v4620_v39 = vrot.slane %v4618_v45, 4  ;;  %v4627_v17 = vshll.u32 %v10793_v52, 16  ;;  %v6285_v56 = vpack.c.b16 %v6234_v16, %v6233_v57  ;;  %v10840_v23 = vrot.slane %v3263_v60, 4  ;;  %v9380_v16 = vld [vmem:[#allocation2 + $0x30] sm:$0xff] }
 0x1d9   :  { %v1205_v36 = vsel %vm9744_vm13, %v1197_v43, %v1204_v24  ;;  %v1697_v11 = vsel %vm9663_vm4, %v1206_v21, %v1696_v44  ;;  %v3300_v31 = vshll.u32 %v10842_v30, 16  ;;  %v4623_v33 = vrot.slane %v4621_v8, 5  ;;  %v6666_v21 = vpop.permute.xlu2 %6665 }
 0x1da   :  { %1695 = vst.msk [vmem:[#allocation2 + $0xb8] sm:$0xf] %vm673_vm5, %v1205_v36  ;;  %v4629_v54 = vrot.slane %v4627_v17, 5  ;;  %v4631_v55 = vshrl.u32 %v10793_v52, 16  ;;  %6519 = vrot.lane.b32.xlu1 %v9451_v19, %s9581_s22  ;;  %v3318_v15 = vshrl.u32 %v10848_v50, 16  ;;  %v7090_v32 = vsel %vm6817_vm2, %v6181_v59, %v6314_v63  ;;  %6329 = vrot.lane.b32.xlu0 %v6285_v56, %s9583_s1 }
 0x1db   :  { %1698 = vst [vmem:[#allocation2 + $0xbc] sm:$0x1] %v1697_v11  ;;  %v10855_v10 = vrot.slane %v3276_v20, 5  ;;  %v4637_v12 = vshll.u32 %v10796_v42, 16  ;;  %v4624_v61 = vor.u32 %v4623_v33, %v4620_v39  ;;  %v461_v25 = vadd.f32 %v10784_v2, %v460_v0  ;;  %v6506_v20 = vpop.permute.xlu1 %6505  ;;  %v2696_v17 = vld [vmem:[#allocation2 + $0x84] sm:$0xe] }
 0x1dc   :  { %v4633_v52 = vrot.slane %v4631_v55, 4  ;;  %v738_v58 = vsel %vm9663_vm4, 0, %v737_v47  ;;  %v3269_v4 = vsel %vm9791_vm0, %v10840_v23, %v10833_v48  ;;  %v3273_v49 = vor.u32 %v3272_v1, %v10833_v48  ;;  %v835_v55 = vld [vmem:[#allocation2 + $0xc8] sm:$0x1] }
 0x1dd   :  { %739 = vst [vmem:[#allocation2 + $0xc0] sm:$0x1] %v738_v58  ;;  %v2206_v28 = vshrl.u32 %v1842_v9, 16  ;;  %v2209_v42 = vshll.u32 %v1842_v9, 16  ;;  %v4625_v22 = vrot.slane %v4624_v61, 4  ;;  %v4639_v14 = vrot.slane %v4637_v12, 5 }
 0x1de   :  { %v4634_v35 = vor.u32 %v4633_v52, %v4629_v54  ;;  %v575_v43 = vmul.f32 0.2, %v461_v25  ;;  %v2215_v37 = vshll.u32 %v10861_v7, 16  ;;  %v2219_v46 = vshrl.u32 %v10861_v7, 16 }
 0x1df   :  { %v2208_v38 = vrot.slane %v2206_v28, 4  ;;  %v2211_v51 = vrot.slane %v2209_v42, 5  ;;  %v4630_v57 = vsel %vm9791_vm0, %v4625_v22, %v4629_v54  ;;  %v7181_v59 = vsel %vm6914_vm3, %v7090_v32, %v6506_v20  ;;  %v462_v54 = vpop.f32.mrf.mxu0  ;;  %v10890_v20 = vld [vmem:[#allocation2 + $0xac] sm:$0xf]  ;;  %v5133_v28 = vld [vmem:[#allocation2 + $0xa8] sm:$0xe] }
 0x1e0   :  { %v4635_v6 = vrot.slane %v4634_v35, 4  ;;  %v639_v44 = vmax.f32 %v461_v25, %v575_v43  ;;  %v3274_v60 = vrot.slane %v3273_v49, 4  ;;  %v2217_v63 = vrot.slane %v2215_v37, 5 }
 0x1e1   :  { %v2212_v45 = vor.u32 %v2211_v51, %v2208_v38  ;;  %v2221_v24 = vrot.slane %v2219_v46, 4  ;;  %v6583_v48 = vunpack.c.l.b16 %v4630_v57  ;;  %v2225_v8 = vshll.u32 %v10868_v3, 16  ;;  %v3067_v46 = vld [vmem:[#allocation2 + $0xac] sm:$0xf]  ;;  %v3917_v57 = vld [vmem:[#allocation2 + $0xa8] sm:$0xe] }
 0x1e2   :  { %v4640_v1 = vsel %vm9791_vm0, %v4635_v6, %v4639_v14  ;;  %v916_v39 = vpack.c.bf16 %v639_v44, %v639_v44  ;;  %v7249_v56 = vsel %vm6979_vm6, %v7181_v59, %v6666_v21  ;;  %v6832_v23 = vsel %vm6817_vm2, %v9380_v16, %v5706_v29  ;;  %v10904_v6 = vpop.f32.mrf.mxu3  ;;  %v3117_v16 = vld [vmem:[#allocation2 + $0xb0] sm:$0x1] }
 0x1e3   :  { %v6584_v19 = vunpack.c.l.b16 %v4640_v1  ;;  %v2213_v36 = vrot.slane %v2212_v45, 4  ;;  %v2222_v11 = vor.u32 %v2221_v24, %v2217_v63  ;;  %v2227_v33 = vrot.slane %v2225_v8, 5  ;;  %7773 = vmatmul.bf16.gmra.mxu2 %v7249_v56  ;;  %v5866_v37 = vpop.permute.xlu1 %5865 }
 0x1e4   :  { %v1208_v47 = vshrl.u32 %v916_v39, 16  ;;  %v1211_v9 = vshll.u32 %v916_v39, 16  ;;  %v8700_v61 = vrot.slane %v2696_v17, 9  ;;  %v3279_v52 = vsel %vm9791_vm0, %v3274_v60, %v10855_v10  ;;  %v1699_v42 = vld [vmem:[#allocation2 + $0xc0] sm:$0xf] }
 0x1e5   :  { %v6636_v0 = vpack.c.b16 %v6584_v19, %v6583_v48  ;;  %v2218_v32 = vsel %vm9791_vm0, %v2213_v36, %v2217_v63  ;;  %v2223_v12 = vrot.slane %v2222_v11, 4  ;;  %v10885_v25 = vunpack.c.l.b16 %v3269_v4  ;;  %v10899_v4 = vld [vmem:[#allocation2 + $0xb0] sm:$0x1]  ;;  %v9366_v60 = vld [vmem:[%s13654_s0 + $0xc0] sm:$0xff]  ;;  %v10915_v48 = vpop.permute.xlu0 %6315  ;;  %v3052_v19 = vld [vmem:[#allocation2 + $0x54] sm:$0xf] }
 0x1e6   :  { %v10887_v58 = vrot.slane %v1208_v47, 7  ;;  %v2895_v49 = vrot.slane %v10741_v26, 5  ;;  %v2898_v35 = vrot.slane %v10759_v40, 5  ;;  %v463_v14 = vadd.f32 %v10784_v2, %v462_v54  ;;  %8681 = vmatmul.msk.bf16.gmra.mxu0 %vm275_vm1, %v9366_v60 }
 0x1e7   :  { %6679 = vrot.lane.b32.xlu2 %v6636_v0, %s9582_s12  ;;  %v2228_v22 = vsel %vm9791_vm0, %v2223_v12, %v2227_v33  ;;  %v836_v10 = vsel %vm9676_vm7, 0, %v835_v55  ;;  %v5625_v43 = vunpack.c.l.b16 %v2218_v32  ;;  %v8765_v29 = vrot.slane %v5133_v28, 9  ;;  %v9419_v33 = vld [vmem:[#allocation2 + $0x90] sm:$0xff] }
 0x1e8   :  { %v1213_v26 = vor.u32 %v1211_v9, %v10887_v58  ;;  %v5626_v38 = vunpack.c.l.b16 %v2228_v22  ;;  %v2896_v51 = vsel %vm9696_vm10, %v8700_v61, %v2895_v49  ;;  %837 = vst [vmem:[#allocation2 + $0xc8] sm:$0x1] %v836_v10  ;;  %v2897_v40 = vrot.slane %v2895_v49, 4  ;;  %v6058_v9 = vpop.permute.xlu2 %6057 }
 0x1e9   :  { %v5783_v59 = vunpack.c.l.b16 %v2896_v51  ;;  %v576_v44 = vmul.f32 0.2, %v463_v14  ;;  %v5335_v24 = vrot.slane %v10890_v20, 5  ;;  %v5338_v21 = vrot.slane %v10899_v4, 5 }
 0x1ea   :  { %v1700_v45 = vsel %vm9727_vm11, %v1213_v26, %v1699_v42  ;;  %v5677_v63 = vpack.c.b16 %v5626_v38, %v5625_v43  ;;  %v10913_v1 = vunpack.c.l.b16 %v3279_v52  ;;  %v2899_v39 = vsel %vm9696_vm10, %v2897_v40, %v2898_v35  ;;  %v4281_v35 = vld [vmem:[#allocation2 + $0xa8] sm:$0xf] }
 0x1eb   :  { %1701 = vst [vmem:[#allocation2 + $0xc0] sm:$0xf] %v1700_v45  ;;  %v6924_v8 = vsel %vm6914_vm3, %v6832_v23, %v5866_v37  ;;  %v640_v17 = vmax.f32 %v463_v14, %v576_v44  ;;  %v5784_v36 = vunpack.c.l.b16 %v2899_v39  ;;  %v5336_v11 = vsel %vm9696_vm10, %v8765_v29, %v5335_v24 }
 0x1ec   :  { %5721 = vrot.lane.b32.xlu0 %v5677_v63, %s9583_s1  ;;  %v5337_v56 = vrot.slane %v5335_v24, 4  ;;  %v8734_v47 = vrot.slane %v3917_v57, 9  ;;  %v6745_v55 = vunpack.c.l.b16 %v5336_v11  ;;  %v4125_v0 = vrot.slane %v3067_v46, 5  ;;  %v740_v11 = vld [vmem:[#allocation2 + $0xe4] sm:$0x1] }
 0x1ed   :  { %v917_v54 = vpack.c.bf16 %v640_v17, %v640_v17  ;;  %v4128_v32 = vrot.slane %v3117_v16, 5  ;;  %v5836_v12 = vpack.c.b16 %v5784_v36, %v5783_v59  ;;  %v6993_v61 = vsel %vm6979_vm6, %v6924_v8, %v6058_v9  ;;  %v5708_v39 = vpop.permute.xlu0 %5707  ;;  %v6508_v9 = vpop.permute.xlu1 %6507 }
 0x1ee   :  { %v5339_v23 = vsel %vm9696_vm10, %v5337_v56, %v5338_v21  ;;  %v3281_v52 = vshrl.u32 %v3052_v19, 16  ;;  %v4126_v22 = vsel %vm9696_vm10, %v8734_v47, %v4125_v0  ;;  %7604 = vmatmul.bf16.gmra.mxu1 %v6993_v61  ;;  %v1214_v14 = vrot.slane %v10887_v58, 4  ;;  %v10937_v58 = vpop.f32.mrf.mxu3  ;;  %v9452_v47 = vld [vmem:[#allocation2 + $0xa8] sm:$0xff] }
 0x1ef   :  { %6071 = vrot.lane.b32.xlu2 %v9419_v33, %s9582_s12  ;;  %v1216_v49 = vshrl.u32 %v917_v54, 16  ;;  %v1219_v28 = vshll.u32 %v917_v54, 16  ;;  %v6746_v42 = vunpack.c.l.b16 %v5339_v23  ;;  %5879 = vrot.lane.b32.xlu1 %v5836_v12, %s9581_s22  ;;  %v4127_v10 = vrot.slane %v4125_v0, 4  ;;  %v1703_v40 = vld [vmem:[#allocation2 + $0xc8] sm:$0x1]  ;;  %v465_v33 = vpop.f32.mrf.mxu0 }
 0x1f0   :  { %v6235_v26 = vunpack.c.l.b16 %v4126_v22  ;;  %v3284_v43 = vshll.u32 %v3052_v19, 16  ;;  %v3283_v37 = vrot.slane %v3281_v52, 4  ;;  %v3290_v46 = vshll.u32 %v10630_v41, 16  ;;  %v1844_v12 = vld [vmem:[#allocation2 + $0x9c] sm:$0xf] }
 0x1f1   :  { %v1218_v38 = vrot.slane %v1216_v49, 7  ;;  %v6797_v51 = vpack.c.b16 %v6746_v42, %v6745_v55  ;;  %v6182_v57 = vpack.c.b16 %v10913_v1, %v10885_v25  ;;  %v4129_v59 = vsel %vm9696_vm10, %v4127_v10, %v4128_v32  ;;  %v9381_v55 = vld [vmem:[#allocation2 + $0x3c] sm:$0xff] }
 0x1f2   :  { %v3286_v44 = vrot.slane %v3284_v43, 5  ;;  %v4642_v29 = vshrl.u32 %v4281_v35, 16  ;;  %v6236_v63 = vunpack.c.l.b16 %v4129_v59  ;;  %v3296_v24 = vrot.slane %v3294_v62, 4  ;;  %v10960_v49 = vld [vmem:[#allocation2 + $0xa0] sm:$0xf] }
 0x1f3   :  { %v1221_v60 = vor.u32 %v1219_v28, %v1218_v38  ;;  %v1223_v45 = vrot.slane %v1218_v38, 4  ;;  %9253 = vmatmul.msk.bf16.gmra.mxu3 %vm6817_vm2, %v6797_v51  ;;  %v10942_v21 = vrot.slane %v3290_v46, 5  ;;  %v4645_v25 = vshll.u32 %v4281_v35, 16  ;;  %v10969_v43 = vld [vmem:[#allocation2 + $0xa4] sm:$0x1] }
 0x1f4   :  { %v4644_v16 = vrot.slane %v4642_v29, 4  ;;  %v4651_v1 = vshll.u32 %v10890_v20, 16  ;;  %v6286_v19 = vpack.c.b16 %v6236_v63, %v6235_v26  ;;  %v3287_v36 = vor.u32 %v3286_v44, %v3283_v37 }
 0x1f5   :  { %v1222_v8 = vsel %vm9744_vm13, %v1214_v14, %v1221_v60  ;;  %v1704_v17 = vsel %vm9663_vm4, %v1223_v45, %v1703_v40  ;;  %v4647_v41 = vrot.slane %v4645_v25, 5  ;;  %v4655_v56 = vshrl.u32 %v10890_v20, 16  ;;  %v6668_v25 = vpop.permute.xlu2 %6667 }
 0x1f6   :  { %1702 = vst.msk [vmem:[#allocation2 + $0xc4] sm:$0xf] %vm673_vm5, %v1222_v8  ;;  %v4653_v62 = vrot.slane %v4651_v1, 5  ;;  %v7093_v54 = vsel %vm6817_vm2, %v6182_v57, %v10915_v48  ;;  %6331 = vrot.lane.b32.xlu0 %v6286_v19, %s9583_s1  ;;  %v4661_v0 = vshll.u32 %v10899_v4, 16  ;;  %v466_v32 = vadd.f32 %v10784_v2, %v465_v33 }
 0x1f7   :  { %1705 = vst [vmem:[#allocation2 + $0xc8] sm:$0x1] %v1704_v17  ;;  %v3297_v23 = vor.u32 %v3296_v24, %v10942_v21  ;;  %v4648_v61 = vor.u32 %v4647_v41, %v4644_v16  ;;  %v4657_v52 = vrot.slane %v4655_v56, 4  ;;  %6521 = vrot.lane.b32.xlu1 %v9452_v47, %s9581_s22  ;;  %v741_v20 = vsel %vm9663_vm4, 0, %v740_v11  ;;  %v2697_v16 = vld [vmem:[#allocation2 + $0x90] sm:$0xe]  ;;  %v467_v56 = vpop.f32.mrf.mxu0 }
 0x1f8   :  { %v6835_v48 = vsel %vm6817_vm2, %v9381_v55, %v5708_v39  ;;  %v10963_v28 = vrot.slane %v3287_v36, 4  ;;  %v10967_v4 = vrot.slane %v3300_v31, 5  ;;  %v577_v42 = vmul.f32 0.2, %v466_v32  ;;  %742 = vst [vmem:[#allocation2 + $0xe4] sm:$0x1] %v741_v20 }
 0x1f9   :  { %v4649_v22 = vrot.slane %v4648_v61, 4  ;;  %v4658_v35 = vor.u32 %v4657_v52, %v4653_v62  ;;  %v4663_v14 = vrot.slane %v4661_v0, 5  ;;  %v2230_v10 = vshrl.u32 %v1844_v12, 16 }
 0x1fa   :  { %v641_v26 = vmax.f32 %v466_v32, %v577_v42  ;;  %v2233_v38 = vshll.u32 %v1844_v12, 16  ;;  %v2239_v51 = vshll.u32 %v10960_v49, 16  ;;  %v2243_v37 = vshrl.u32 %v10960_v49, 16  ;;  %v11000_v42 = vld [vmem:[#allocation2 + $0xb8] sm:$0xf] }
 0x1fb   :  { %v10973_v46 = vrot.slane %v3297_v23, 4  ;;  %v4654_v30 = vsel %vm9791_vm0, %v4649_v22, %v4653_v62  ;;  %v4659_v31 = vrot.slane %v4658_v35, 4  ;;  %v2232_v57 = vrot.slane %v2230_v10, 4  ;;  %v5868_v62 = vpop.permute.xlu1 %5867  ;;  %v11008_v10 = vpop.f32.mrf.mxu3 }
 0x1fc   :  { %v7183_v40 = vsel %vm6914_vm3, %v7093_v54, %v6508_v9  ;;  %v918_v59 = vpack.c.bf16 %v641_v26, %v641_v26  ;;  %v2235_v44 = vrot.slane %v2233_v38, 5  ;;  %v2241_v29 = vrot.slane %v2239_v51, 5 }
 0x1fd   :  { %v4664_v60 = vsel %vm9791_vm0, %v4659_v31, %v4663_v14  ;;  %v6585_v45 = vunpack.c.l.b16 %v4654_v30  ;;  %v2245_v63 = vrot.slane %v2243_v37, 4  ;;  %v2249_v24 = vshll.u32 %v10969_v43, 16  ;;  %v11006_v14 = vld [vmem:[#allocation2 + $0xbc] sm:$0x1]  ;;  %v3069_v37 = vld [vmem:[#allocation2 + $0xb8] sm:$0xf] }
 0x1fe   :  { %v6586_v1 = vunpack.c.l.b16 %v4664_v60  ;;  %v1225_v39 = vshrl.u32 %v918_v59, 16  ;;  %v1228_v8 = vshll.u32 %v918_v59, 16  ;;  %v2236_v17 = vor.u32 %v2235_v44, %v2232_v57  ;;  %v9367_v30 = vld [vmem:[%s13654_s0 + $0xc8] sm:$0xff]  ;;  %v11020_v44 = vpop.permute.xlu0 %6317 }
 0x1ff   :  { %v3293_v19 = vsel %vm9791_vm0, %v10963_v28, %v10942_v21  ;;  %v2246_v36 = vor.u32 %v2245_v63, %v2241_v29  ;;  %v2251_v11 = vrot.slane %v2249_v24, 5  ;;  %v7252_v41 = vsel %vm6979_vm6, %v7183_v40, %v6668_v25  ;;  %v1706_v0 = vld [vmem:[#allocation2 + $0xe4] sm:$0xf]  ;;  %v838_v28 = vld [vmem:[#allocation2 + $0xec] sm:$0x1]  ;;  %8682 = vmatmul.msk.bf16.gmra.mxu0 %vm275_vm1, %v9367_v30 }
 0x200   :  { %v6637_v47 = vpack.c.b16 %v6586_v1, %v6585_v45  ;;  %v10986_v9 = vrot.slane %v1225_v39, 7  ;;  %v2237_v33 = vrot.slane %v2236_v17, 4  ;;  %7778 = vmatmul.bf16.gmra.mxu2 %v7252_v41  ;;  %v8701_v54 = vrot.slane %v2697_v16, 9  ;;  %v3118_v24 = vld [vmem:[#allocation2 + $0xbc] sm:$0x1]  ;;  %v6060_v17 = vpop.permute.xlu2 %6059 }
 0x201   :  { %v3303_v55 = vsel %vm9791_vm0, %v10973_v46, %v10967_v4  ;;  %v2247_v32 = vrot.slane %v2246_v36, 4  ;;  %v2902_v21 = vrot.slane %v10861_v7, 5  ;;  %v2905_v12 = vrot.slane %v10868_v3, 5  ;;  %v5134_v4 = vld [vmem:[#allocation2 + $0xb4] sm:$0xe]  ;;  %v9420_v36 = vld [vmem:[#allocation2 + $0x9c] sm:$0xff] }
 0x202   :  { %6681 = vrot.lane.b32.xlu2 %v6637_v47, %s9582_s12  ;;  %v1230_v23 = vor.u32 %v1228_v8, %v10986_v9  ;;  %v2242_v61 = vsel %vm9791_vm0, %v2237_v33, %v2241_v29  ;;  %v6926_v52 = vsel %vm6914_vm3, %v6835_v48, %v5868_v62  ;;  %v468_v20 = vadd.f32 %v10784_v2, %v467_v56  ;;  %v3918_v46 = vld [vmem:[#allocation2 + $0xb4] sm:$0xe]  ;;  %v3054_v8 = vld [vmem:[#allocation2 + $0x60] sm:$0xf] }
 0x203   :  { %v2252_v7 = vsel %vm9791_vm0, %v2247_v32, %v2251_v11  ;;  %v5627_v22 = vunpack.c.l.b16 %v2242_v61  ;;  %v2903_v3 = vsel %vm9696_vm10, %v8701_v54, %v2902_v21  ;;  %v2904_v35 = vrot.slane %v2902_v21, 4 }
 0x204   :  { %v1707_v48 = vsel %vm9727_vm11, %v1230_v23, %v1706_v0  ;;  %v5628_v26 = vunpack.c.l.b16 %v2252_v7  ;;  %v5785_v38 = vunpack.c.l.b16 %v2903_v3  ;;  %v578_v51 = vmul.f32 0.2, %v468_v20  ;;  %v9516_v3 = vld [vmem:[#allocation2 + $0x68] sm:$0x1] }
 0x205   :  { %1708 = vst [vmem:[#allocation2 + $0xe4] sm:$0xf] %v1707_v48  ;;  %v2906_v31 = vsel %vm9696_vm10, %v2904_v35, %v2905_v12  ;;  %v839_v57 = vsel %vm9676_vm7, 0, %v838_v28  ;;  %v8766_v40 = vrot.slane %v5134_v4, 9  ;;  %v5342_v59 = vrot.slane %v11000_v42, 5 }
 0x206   :  { %v5678_v29 = vpack.c.b16 %v5628_v26, %v5627_v22  ;;  %v5786_v60 = vunpack.c.l.b16 %v2906_v31  ;;  %v642_v45 = vmax.f32 %v468_v20, %v578_v51  ;;  %840 = vst [vmem:[#allocation2 + $0xec] sm:$0x1] %v839_v57  ;;  %v5345_v63 = vrot.slane %v11006_v14, 5  ;;  %v4283_v22 = vld [vmem:[#allocation2 + $0xb4] sm:$0xf] }
 0x207   :  { %v11024_v16 = vunpack.c.l.b16 %v3293_v19  ;;  %v6126_v25 = vunpack.c.l.b16 %v3303_v55  ;;  %v5343_v1 = vsel %vm9696_vm10, %v8766_v40, %v5342_v59  ;;  %v5344_v39 = vrot.slane %v5342_v59, 4 }
 0x208   :  { %5723 = vrot.lane.b32.xlu0 %v5678_v29, %s9583_s1  ;;  %v5837_v11 = vpack.c.b16 %v5786_v60, %v5785_v38  ;;  %v919_v41 = vpack.c.bf16 %v642_v45, %v642_v45  ;;  %v6747_v62 = vunpack.c.l.b16 %v5343_v1  ;;  %v8735_v56 = vrot.slane %v3918_v46, 9  ;;  %v9382_v60 = vld [vmem:[#allocation2 + $0x48] sm:$0xff]  ;;  %v5710_v45 = vpop.permute.xlu0 %5709  ;;  %v9453_v1 = vld [vmem:[#allocation2 + $0xb4] sm:$0xff] }
 0x209   :  { %v5346_v47 = vsel %vm9696_vm10, %v5344_v39, %v5345_v63  ;;  %v4132_v33 = vrot.slane %v3069_v37, 5  ;;  %v4135_v19 = vrot.slane %v3118_v24, 5  ;;  %v6996_v54 = vsel %vm6979_vm6, %v6926_v52, %v6060_v17  ;;  %v11041_v37 = vpop.f32.mrf.mxu3  ;;  %v743_v39 = vld [vmem:[#allocation2 + $0xf0] sm:$0x1]  ;;  %v1846_v17 = vld [vmem:[#allocation2 + $0xa8] sm:$0xf] }
 0x20a   :  { %6073 = vrot.lane.b32.xlu2 %v9420_v36, %s9582_s12  ;;  %5881 = vrot.lane.b32.xlu1 %v5837_v11, %s9581_s22  ;;  %v1233_v55 = vshrl.u32 %v919_v41, 16  ;;  %v1236_v0 = vshll.u32 %v919_v41, 16  ;;  %v6748_v32 = vunpack.c.l.b16 %v5346_v47  ;;  %v3305_v21 = vshrl.u32 %v3054_v8, 16 }
 0x20b   :  { %v4133_v12 = vsel %vm9696_vm10, %v8735_v56, %v4132_v33  ;;  %v4134_v23 = vrot.slane %v4132_v33, 4  ;;  %7609 = vmatmul.bf16.gmra.mxu1 %v6996_v54  ;;  %v3308_v61 = vshll.u32 %v3054_v8, 16  ;;  %v3314_v20 = vshll.u32 %v10848_v50, 16  ;;  %v470_v56 = vpop.f32.mrf.mxu0 }
 0x20c   :  { %v1231_v28 = vrot.slane %v10986_v9, 4  ;;  %v1235_v4 = vrot.slane %v1233_v55, 7  ;;  %v6798_v52 = vpack.c.b16 %v6748_v32, %v6747_v62  ;;  %v6237_v7 = vunpack.c.l.b16 %v4133_v12 }
 0x20d   :  { %v3324_v35 = vshll.u32 %v9516_v3, 16  ;;  %v6183_v48 = vpack.c.b16 %v6126_v25, %v11024_v16  ;;  %v1710_v26 = vld [vmem:[#allocation2 + $0xec] sm:$0x1]  ;;  %v4136_v38 = vsel %vm9696_vm10, %v4134_v23, %v4135_v19  ;;  %v3307_v51 = vrot.slane %v3305_v21, 4 }
 0x20e   :  { %v1238_v46 = vor.u32 %v1236_v0, %v1235_v4  ;;  %v1240_v30 = vrot.slane %v1235_v4, 4  ;;  %9254 = vmatmul.msk.bf16.gmra.mxu3 %vm6817_vm2, %v6798_v52  ;;  %v6238_v9 = vunpack.c.l.b16 %v4136_v38  ;;  %v3310_v31 = vrot.slane %v3308_v61, 5 }
 0x20f   :  { %v11044_v57 = vrot.slane %v3314_v20, 5  ;;  %v3320_v40 = vrot.slane %v3318_v15, 4  ;;  %v4666_v59 = vshrl.u32 %v4283_v22, 16  ;;  %v4669_v29 = vshll.u32 %v4283_v22, 16  ;;  %v6510_v15 = vpop.permute.xlu1 %6509 }
 0x210   :  { %v1239_v63 = vsel %vm9744_vm13, %v1231_v28, %v1238_v46  ;;  %v1711_v24 = vsel %vm9663_vm4, %v1240_v30, %v1710_v26  ;;  %v6287_v16 = vpack.c.b16 %v6238_v9, %v6237_v7  ;;  %v4675_v25 = vshll.u32 %v11000_v42, 16  ;;  %v6670_v46 = vpop.permute.xlu2 %6669 }
 0x211   :  { %1709 = vst.msk [vmem:[#allocation2 + $0xe8] sm:$0xf] %vm673_vm5, %v1239_v63  ;;  %v4668_v8 = vrot.slane %v4666_v59, 4  ;;  %v4671_v50 = vrot.slane %v4669_v29, 5  ;;  %v7096_v36 = vsel %vm6817_vm2, %v6183_v48, %v11020_v44  ;;  %v4679_v41 = vshrl.u32 %v11000_v42, 16 }
 0x212   :  { %1712 = vst [vmem:[#allocation2 + $0xec] sm:$0x1] %v1711_v24  ;;  %6333 = vrot.lane.b32.xlu0 %v6287_v16, %s9583_s1  ;;  %v4677_v11 = vrot.slane %v4675_v25, 5  ;;  %v4685_v62 = vshll.u32 %v11006_v14, 16  ;;  %6523 = vrot.lane.b32.xlu1 %v9453_v1, %s9581_s22  ;;  %v11061_v47 = vsel %vm6817_vm2, %v9382_v60, %v5710_v45  ;;  %v11063_v33 = vrot.slane %v3324_v35, 5 }
 0x213   :  { %v4672_v19 = vor.u32 %v4671_v50, %v4668_v8  ;;  %v471_v54 = vadd.f32 %v10784_v2, %v470_v56  ;;  %v11066_v44 = vld [vmem:[#allocation2 + $0xac] sm:$0xf]  ;;  %v3311_v55 = vor.u32 %v3310_v31, %v3307_v51  ;;  %v3321_v0 = vor.u32 %v3320_v40, %v11044_v57  ;;  %v11070_v14 = vld [vmem:[#allocation2 + $0xb0] sm:$0x1]  ;;  %v2698_v59 = vld [vmem:[#allocation2 + $0x9c] sm:$0xe]  ;;  %v472_v56 = vpop.f32.mrf.mxu0 }
 0x214   :  { %v4681_v32 = vrot.slane %v4679_v41, 4  ;;  %v7185_v42 = vsel %vm6914_vm3, %v7096_v36, %v6510_v15  ;;  %v744_v23 = vsel %vm9663_vm4, 0, %v743_v39  ;;  %v2254_v61 = vshrl.u32 %v1846_v17, 16 }
 0x215   :  { %v4673_v21 = vrot.slane %v4672_v19, 4  ;;  %v579_v12 = vmul.f32 0.2, %v471_v54  ;;  %v4687_v28 = vrot.slane %v4685_v62, 5  ;;  %745 = vst [vmem:[#allocation2 + $0xf0] sm:$0x1] %v744_v23  ;;  %v7255_v63 = vsel %vm6979_vm6, %v7185_v42, %v6670_v46 }
 0x216   :  { %v4682_v20 = vor.u32 %v4681_v32, %v4677_v11  ;;  %v2257_v4 = vshll.u32 %v1846_v17, 16  ;;  %v2263_v52 = vshll.u32 %v11066_v44, 16  ;;  %v2256_v3 = vrot.slane %v2254_v61, 4  ;;  %7783 = vmatmul.bf16.gmra.mxu2 %v7255_v63  ;;  %v841_v19 = vld [vmem:[#allocation2 + $0xf8] sm:$0x1] }
 0x217   :  { %v4678_v7 = vsel %vm9791_vm0, %v4673_v21, %v4677_v11  ;;  %v643_v22 = vmax.f32 %v471_v54, %v579_v12  ;;  %v2267_v35 = vshrl.u32 %v11066_v44, 16  ;;  %v11078_v48 = vrot.slane %v3311_v55, 4  ;;  %v5870_v17 = vpop.permute.xlu1 %5869  ;;  %v5135_v42 = vld [vmem:[#allocation2 + $0xc0] sm:$0xe]  ;;  %v11104_v23 = vld [vmem:[#allocation2 + $0xc4] sm:$0xf] }
 0x218   :  { %v11080_v26 = vrot.slane %v3321_v0, 4  ;;  %v4683_v38 = vrot.slane %v4682_v20, 4  ;;  %v2259_v51 = vrot.slane %v2257_v4, 5  ;;  %v2265_v9 = vrot.slane %v2263_v52, 5  ;;  %v11106_v61 = vld [vmem:[#allocation2 + $0xc8] sm:$0x1] }
 0x219   :  { %v920_v30 = vpack.c.bf16 %v643_v22, %v643_v22  ;;  %v2269_v31 = vrot.slane %v2267_v35, 4  ;;  %v2273_v40 = vshll.u32 %v11070_v14, 16  ;;  %v6587_v60 = vunpack.c.l.b16 %v4678_v7  ;;  %v3919_v7 = vld [vmem:[#allocation2 + $0xc0] sm:$0xe]  ;;  %v11111_v22 = vpop.f32.mrf.mxu3  ;;  %v3119_v46 = vld [vmem:[#allocation2 + $0xc8] sm:$0x1] }
 0x21a   :  { %v4688_v29 = vsel %vm9791_vm0, %v4683_v38, %v4687_v28  ;;  %v2260_v45 = vor.u32 %v2259_v51, %v2256_v3  ;;  %v8702_v50 = vrot.slane %v2698_v59, 9  ;;  %v2909_v15 = vrot.slane %v10960_v49, 5  ;;  %v11113_v3 = vpop.permute.xlu0 %6319  ;;  %v3071_v51 = vld [vmem:[#allocation2 + $0xc4] sm:$0xf] }
 0x21b   :  { %v6588_v24 = vunpack.c.l.b16 %v4688_v29  ;;  %v1242_v16 = vshrl.u32 %v920_v30, 16  ;;  %v1245_v25 = vshll.u32 %v920_v30, 16  ;;  %v2270_v1 = vor.u32 %v2269_v31, %v2265_v9 }
 0x21c   :  { %v2261_v39 = vrot.slane %v2260_v45, 4  ;;  %v2275_v8 = vrot.slane %v2273_v40, 5  ;;  %v2912_v62 = vrot.slane %v10969_v43, 5  ;;  %v3327_v54 = vsel %vm9791_vm0, %v11080_v26, %v11063_v33  ;;  %v1713_v55 = vld [vmem:[#allocation2 + $0xf0] sm:$0xf]  ;;  %v6062_v45 = vpop.permute.xlu2 %6061 }
 0x21d   :  { %v6638_v36 = vpack.c.b16 %v6588_v24, %v6587_v60  ;;  %v11087_v11 = vrot.slane %v1242_v16, 7  ;;  %v2271_v41 = vrot.slane %v2270_v1, 4  ;;  %v2910_v49 = vsel %vm9696_vm10, %v8702_v50, %v2909_v15  ;;  %v9368_v60 = vld [vmem:[%s13654_s0 + $0xd0] sm:$0xff] }
 0x21e   :  { %v2266_v0 = vsel %vm9791_vm0, %v2261_v39, %v2265_v9  ;;  %v2911_v32 = vrot.slane %v2909_v15, 4  ;;  %v6928_v33 = vsel %vm6914_vm3, %v11061_v47, %v5870_v17  ;;  %v5787_v4 = vunpack.c.l.b16 %v2910_v49  ;;  %v9421_v39 = vld [vmem:[#allocation2 + $0xa8] sm:$0xff]  ;;  %8683 = vmatmul.msk.bf16.gmra.mxu0 %vm275_vm1, %v9368_v60 }
 0x21f   :  { %6683 = vrot.lane.b32.xlu2 %v6638_v36, %s9582_s12  ;;  %v1247_v43 = vor.u32 %v1245_v25, %v11087_v11  ;;  %v2276_v21 = vsel %vm9791_vm0, %v2271_v41, %v2275_v8  ;;  %v5629_v12 = vunpack.c.l.b16 %v2266_v0  ;;  %v473_v52 = vadd.f32 %v10784_v2, %v472_v56 }
 0x220   :  { %v5630_v20 = vunpack.c.l.b16 %v2276_v21  ;;  %v2913_v28 = vsel %vm9696_vm10, %v2911_v32, %v2912_v62  ;;  %v842_v26 = vsel %vm9676_vm7, 0, %v841_v19  ;;  %v8767_v38 = vrot.slane %v5135_v42, 9  ;;  %v3056_v19 = vld [vmem:[#allocation2 + $0x6c] sm:$0xf] }
 0x221   :  { %v1714_v35 = vsel %vm9727_vm11, %v1247_v43, %v1713_v55  ;;  %v5788_v47 = vunpack.c.l.b16 %v2913_v28  ;;  %v580_v9 = vmul.f32 0.2, %v473_v52  ;;  %v5349_v2 = vrot.slane %v11104_v23, 5  ;;  %843 = vst [vmem:[#allocation2 + $0xf8] sm:$0x1] %v842_v26 }
 0x222   :  { %1715 = vst [vmem:[#allocation2 + $0xf0] sm:$0xf] %v1714_v35  ;;  %v5679_v30 = vpack.c.b16 %v5630_v20, %v5629_v12  ;;  %v5352_v31 = vrot.slane %v11106_v61, 5  ;;  %v3317_v40 = vsel %vm9791_vm0, %v11078_v48, %v11044_v57  ;;  %v8736_v29 = vrot.slane %v3919_v7, 9  ;;  %v9517_v55 = vld [vmem:[#allocation2 + $0x70] sm:$0xf]  ;;  %v11142_v35 = vpop.f32.mrf.mxu3 }
 0x223   :  { %v5838_v59 = vpack.c.b16 %v5788_v47, %v5787_v4  ;;  %v644_v63 = vmax.f32 %v473_v52, %v580_v9  ;;  %v5350_v24 = vsel %vm9696_vm10, %v8767_v38, %v5349_v2  ;;  %v5351_v16 = vrot.slane %v5349_v2, 4  ;;  %v9518_v43 = vld [vmem:[#allocation2 + $0x74] sm:$0x1]  ;;  %13676 = vst [vmem:[#allocation3_spill] sm:$0xff] %v11142_v35  ;;  %v5712_v47 = vpop.permute.xlu0 %5711  ;;  %v9454_v9 = vld [vmem:[#allocation2 + $0xc0] sm:$0xff] }
 0x224   :  { %5725 = vrot.lane.b32.xlu0 %v5679_v30, %s9583_s1  ;;  %v4139_v25 = vrot.slane %v3071_v51, 5  ;;  %v6128_v1 = vunpack.c.l.b16 %v3327_v54  ;;  %v6749_v57 = vunpack.c.l.b16 %v5350_v24  ;;  %v4142_v48 = vrot.slane %v3119_v46, 5  ;;  %v4285_v54 = vld [vmem:[#allocation2 + $0xc0] sm:$0xf]  ;;  %v9383_v2 = vld [vmem:[#allocation2 + $0x54] sm:$0xff] }
 0x225   :  { %5883 = vrot.lane.b32.xlu1 %v5838_v59, %s9581_s22  ;;  %v6999_v8 = vsel %vm6979_vm6, %v6928_v33, %v6062_v45  ;;  %v921_v50 = vpack.c.bf16 %v644_v63, %v644_v63  ;;  %v5353_v15 = vsel %vm9696_vm10, %v5351_v16, %v5352_v31  ;;  %v6127_v41 = vunpack.c.l.b16 %v3317_v40 }
 0x226   :  { %v4140_v17 = vsel %vm9696_vm10, %v8736_v29, %v4139_v25  ;;  %v4141_v36 = vrot.slane %v4139_v25, 4  ;;  %7614 = vmatmul.bf16.gmra.mxu1 %v6999_v8  ;;  %v6750_v62 = vunpack.c.l.b16 %v5353_v15  ;;  %v3342_v0 = vshrl.u32 %v9517_v55, 16  ;;  %v6512_v29 = vpop.permute.xlu1 %6511 }
 0x227   :  { %6075 = vrot.lane.b32.xlu2 %v9421_v39, %s9582_s12  ;;  %v6239_v56 = vunpack.c.l.b16 %v4140_v17  ;;  %v1250_v49 = vshrl.u32 %v921_v50, 16  ;;  %v1253_v32 = vshll.u32 %v921_v50, 16  ;;  %v3348_v21 = vshll.u32 %v9518_v43, 16  ;;  %v11161_v17 = vld [vmem:[#allocation2 + $0xb8] sm:$0xf] }
 0x228   :  { %v4143_v42 = vsel %vm9696_vm10, %v4141_v36, %v4142_v48  ;;  %v6184_v12 = vpack.c.b16 %v6128_v1, %v6127_v41  ;;  %v6799_v33 = vpack.c.b16 %v6750_v62, %v6749_v57  ;;  %v1248_v28 = vrot.slane %v11087_v11, 4  ;;  %v1717_v26 = vld [vmem:[#allocation2 + $0xf8] sm:$0x1]  ;;  %v746_v57 = vld [vmem:[#allocation2 + $0xfc] sm:$0x1] }
 0x229   :  { %v6240_v20 = vunpack.c.l.b16 %v4143_v42  ;;  %v1252_v4 = vrot.slane %v1250_v49, 7  ;;  %v3329_v52 = vshrl.u32 %v3056_v19, 16  ;;  %v4690_v7 = vshrl.u32 %v4285_v54, 16  ;;  %v1848_v48 = vld [vmem:[#allocation2 + $0xb4] sm:$0xf] }
 0x22a   :  { %9255 = vmatmul.msk.bf16.gmra.mxu3 %vm6817_vm2, %v6799_v33  ;;  %v3332_v51 = vshll.u32 %v3056_v19, 16  ;;  %v4693_v46 = vshll.u32 %v4285_v54, 16  ;;  %v4699_v30 = vshll.u32 %v11104_v23, 16  ;;  %v3338_v59 = vshll.u32 %v9517_v55, 16  ;;  %v6672_v19 = vpop.permute.xlu2 %6671 }
 0x22b   :  { %v6288_v38 = vpack.c.b16 %v6240_v20, %v6239_v56  ;;  %v1255_v31 = vor.u32 %v1253_v32, %v1252_v4  ;;  %v1257_v40 = vrot.slane %v1252_v4, 4  ;;  %v4692_v11 = vrot.slane %v4690_v7, 4  ;;  %v11178_v4 = vld [vmem:[#allocation2 + $0xbc] sm:$0x1] }
 0x22c   :  { %v7099_v60 = vsel %vm6817_vm2, %v6184_v12, %v11113_v3  ;;  %v4695_v45 = vrot.slane %v4693_v46, 5  ;;  %v4701_v63 = vrot.slane %v4699_v30, 5  ;;  %v4703_v24 = vshrl.u32 %v11104_v23, 16  ;;  %v475_v3 = vpop.f32.mrf.mxu0 }
 0x22d   :  { %6335 = vrot.lane.b32.xlu0 %v6288_v38, %s9583_s1  ;;  %6525 = vrot.lane.b32.xlu1 %v9454_v9, %s9581_s22  ;;  %v11152_v16 = vsel %vm6817_vm2, %v9383_v2, %v5712_v47  ;;  %v1256_v25 = vsel %vm9744_vm13, %v1248_v28, %v1255_v31  ;;  %v1718_v1 = vsel %vm9663_vm4, %v1257_v40, %v1717_v26  ;;  %v4709_v39 = vshll.u32 %v11106_v61, 16  ;;  %v11168_v61 = vld [vmem:[%s13653_s2] ss:$0 sm:$0xff] }
 0x22e   :  { %1716 = vst.msk [vmem:[#allocation2 + $0xf4] sm:$0xf] %vm673_vm5, %v1256_v25  ;;  %v3331_v8 = vrot.slane %v3329_v52, 4  ;;  %v4696_v23 = vor.u32 %v4695_v45, %v4692_v11  ;;  %v4705_v50 = vrot.slane %v4703_v24, 4  ;;  %v7187_v15 = vsel %vm6914_vm3, %v7099_v60, %v6512_v29 }
 0x22f   :  { %1719 = vst [vmem:[#allocation2 + $0xf8] sm:$0x1] %v1718_v1  ;;  %v3334_v36 = vrot.slane %v3332_v51, 5  ;;  %v11163_v41 = vrot.slane %v3338_v59, 5  ;;  %v3344_v62 = vrot.slane %v3342_v0, 4  ;;  %v476_v56 = vadd.f32 %v11168_v61, %v475_v3 }
 0x230   :  { %v4697_v54 = vrot.slane %v4696_v23, 4  ;;  %v4706_v55 = vor.u32 %v4705_v50, %v4701_v63  ;;  %v4711_v49 = vrot.slane %v4709_v39, 5  ;;  %v747_v32 = vsel %vm9663_vm4, 0, %v746_v57  ;;  %v2699_v51 = vld [vmem:[#allocation2 + $0xa8] sm:$0xe] }
 0x231   :  { %v581_v42 = vmul.f32 0.2, %v476_v56  ;;  %748 = vst [vmem:[#allocation2 + $0xfc] sm:$0x1] %v747_v32  ;;  %v2278_v43 = vshrl.u32 %v1848_v48, 16  ;;  %v2281_v12 = vshll.u32 %v1848_v48, 16  ;;  %v7258_v0 = vsel %vm6979_vm6, %v7187_v15, %v6672_v19 }
 0x232   :  { %v11174_v33 = vrot.slane %v3348_v21, 5  ;;  %v4702_v20 = vsel %vm9791_vm0, %v4697_v54, %v4701_v63  ;;  %v4707_v28 = vrot.slane %v4706_v55, 4  ;;  %v2287_v52 = vshll.u32 %v11161_v17, 16  ;;  %7788 = vmatmul.bf16.gmra.mxu2 %v7258_v0  ;;  %v844_v23 = vld [vmem:[#allocation2 + $0x104] sm:$0x1] }
 0x233   :  { %v3335_v7 = vor.u32 %v3334_v36, %v3331_v8  ;;  %v645_v47 = vmax.f32 %v476_v56, %v581_v42  ;;  %v2280_v26 = vrot.slane %v2278_v43, 4  ;;  %v2283_v38 = vrot.slane %v2281_v12, 5  ;;  %v11189_v50 = vld [vmem:[#allocation2 + $0xd0] sm:$0xf]  ;;  %v5136_v56 = vld [vmem:[#allocation2 + $0xcc] sm:$0xe] }
 0x234   :  { %v4712_v46 = vsel %vm9791_vm0, %v4707_v28, %v4711_v49  ;;  %v6589_v30 = vunpack.c.l.b16 %v4702_v20  ;;  %v2289_v21 = vrot.slane %v2287_v52, 5  ;;  %v2291_v9 = vshrl.u32 %v11161_v17, 16  ;;  %v477_v39 = vpop.f32.mrf.mxu0  ;;  %v11198_v42 = vld [vmem:[#allocation2 + $0xd4] sm:$0x1]  ;;  %v5872_v20 = vpop.permute.xlu1 %5871  ;;  %v9369_v52 = vld [vmem:[%s13654_s0 + $0xd8] sm:$0xff] }
 0x235   :  { %v6590_v2 = vunpack.c.l.b16 %v4712_v46  ;;  %v922_v31 = vpack.c.bf16 %v645_v47, %v645_v47  ;;  %v2284_v40 = vor.u32 %v2283_v38, %v2280_v26  ;;  %v2297_v59 = vshll.u32 %v11178_v4, 16  ;;  %v11212_v46 = vpop.permute.xlu0 %6321  ;;  %8684 = vmatmul.msk.bf16.gmra.mxu0 %vm275_vm1, %v9369_v52  ;;  %v11238_v52 = vld [vmem:[#allocation2 + $0x7c] sm:$0xf] }
 0x236   :  { %v3345_v11 = vor.u32 %v3344_v62, %v11163_v41  ;;  %v2293_v29 = vrot.slane %v2291_v9, 4  ;;  %v8703_v60 = vrot.slane %v2699_v51, 9  ;;  %v2916_v45 = vrot.slane %v11066_v44, 5 }
 0x237   :  { %v6639_v63 = vpack.c.b16 %v6590_v2, %v6589_v30  ;;  %v1259_v24 = vshrl.u32 %v922_v31, 16  ;;  %v1262_v25 = vshll.u32 %v922_v31, 16  ;;  %v2285_v1 = vrot.slane %v2284_v40, 4  ;;  %v3073_v31 = vld [vmem:[#allocation2 + $0xe8] sm:$0xf] }
 0x238   :  { %v2294_v3 = vor.u32 %v2293_v29, %v2289_v21  ;;  %v2299_v57 = vrot.slane %v2297_v59, 5  ;;  %v2917_v48 = vsel %vm9696_vm10, %v8703_v60, %v2916_v45  ;;  %v2918_v8 = vrot.slane %v2916_v45, 4  ;;  %v1720_v54 = vld [vmem:[#allocation2 + $0xfc] sm:$0xf]  ;;  %v3120_v60 = vld [vmem:[#allocation2 + $0xec] sm:$0x1] }
 0x239   :  { %v3336_v15 = vrot.slane %v3335_v7, 4  ;;  %6685 = vrot.lane.b32.xlu2 %v6639_v63, %s9582_s12  ;;  %v11192_v36 = vrot.slane %v1259_v24, 7  ;;  %v2290_v44 = vsel %vm9791_vm0, %v2285_v1, %v2289_v21  ;;  %v2919_v62 = vrot.slane %v11070_v14, 5  ;;  %v3920_v14 = vld [vmem:[#allocation2 + $0xe4] sm:$0xe]  ;;  %v11208_v7 = vpop.f32.mrf.mxu3  ;;  %v9422_v63 = vld [vmem:[#allocation2 + $0xb4] sm:$0xff] }
 0x23a   :  { %v3346_v19 = vrot.slane %v3345_v11, 4  ;;  %v2295_v55 = vrot.slane %v2294_v3, 4  ;;  %v5789_v49 = vunpack.c.l.b16 %v2917_v48  ;;  %v478_v32 = vadd.f32 %v11168_v61, %v477_v39  ;;  %13677 = vst [vmem:[#allocation4_spill] sm:$0xff] %v11208_v7  ;;  %v6064_v39 = vpop.permute.xlu2 %6063 }
 0x23b   :  { %v1264_v43 = vor.u32 %v1262_v25, %v11192_v36  ;;  %v5631_v12 = vunpack.c.l.b16 %v2290_v44  ;;  %v2920_v0 = vsel %vm9696_vm10, %v2918_v8, %v2919_v62  ;;  %v845_v28 = vsel %vm9676_vm7, 0, %v844_v23 }
 0x23c   :  { %v2300_v47 = vsel %vm9791_vm0, %v2295_v55, %v2299_v57  ;;  %v5790_v26 = vunpack.c.l.b16 %v2920_v0  ;;  %v582_v38 = vmul.f32 0.2, %v478_v32  ;;  %846 = vst [vmem:[#allocation2 + $0x104] sm:$0x1] %v845_v28  ;;  %v8768_v51 = vrot.slane %v5136_v56, 9 }
 0x23d   :  { %v1721_v30 = vsel %vm9727_vm11, %v1264_v43, %v1720_v54  ;;  %v5632_v21 = vunpack.c.l.b16 %v2300_v47  ;;  %v5356_v9 = vrot.slane %v11189_v50, 5  ;;  %v5359_v2 = vrot.slane %v11198_v42, 5  ;;  %v4287_v54 = vld [vmem:[#allocation2 + $0xcc] sm:$0xf] }
 0x23e   :  { %v3351_v40 = vsel %vm9791_vm0, %v3346_v19, %v11174_v33  ;;  %1722 = vst [vmem:[#allocation2 + $0xfc] sm:$0xf] %v1721_v30  ;;  %v5839_v59 = vpack.c.b16 %v5790_v26, %v5789_v49  ;;  %v6930_v11 = vsel %vm6914_vm3, %v11152_v16, %v5872_v20  ;;  %v646_v29 = vmax.f32 %v478_v32, %v582_v38  ;;  %v3058_v16 = vld [vmem:[#allocation2 + $0x78] sm:$0xf] }
 0x23f   :  { %v5680_v45 = vpack.c.b16 %v5632_v21, %v5631_v12  ;;  %v5357_v24 = vsel %vm9696_vm10, %v8768_v51, %v5356_v9  ;;  %v5358_v25 = vrot.slane %v5356_v9, 4  ;;  %v8737_v1 = vrot.slane %v3920_v14, 9  ;;  %v9455_v14 = vld [vmem:[#allocation2 + $0xcc] sm:$0xff] }
 0x240   :  { %v3341_v3 = vsel %vm9791_vm0, %v3336_v15, %v11163_v41  ;;  %5885 = vrot.lane.b32.xlu1 %v5839_v59, %s9581_s22  ;;  %v923_v33 = vpack.c.bf16 %v646_v29, %v646_v29  ;;  %v6751_v57 = vunpack.c.l.b16 %v5357_v24  ;;  %v4146_v48 = vrot.slane %v3073_v31, 5  ;;  %v5714_v31 = vpop.permute.xlu0 %5713 }
 0x241   :  { %v6130_v8 = vunpack.c.l.b16 %v3351_v40  ;;  %5727 = vrot.lane.b32.xlu0 %v5680_v45, %s9583_s1  ;;  %6077 = vrot.lane.b32.xlu2 %v9422_v63, %s9582_s12  ;;  %v5360_v23 = vsel %vm9696_vm10, %v5358_v25, %v5359_v2  ;;  %v4149_v44 = vrot.slane %v3120_v60, 5  ;;  %v7002_v62 = vsel %vm6979_vm6, %v6930_v11, %v6064_v39  ;;  %v11243_v30 = vpop.f32.mrf.mxu3  ;;  %v9384_v60 = vld [vmem:[#allocation2 + $0x60] sm:$0xff]  ;;  %v1850_v39 = vld [vmem:[#allocation2 + $0xd8] sm:$0xf] }
 0x242   :  { %v1267_v56 = vshrl.u32 %v923_v33, 16  ;;  %v1270_v19 = vshll.u32 %v923_v33, 16  ;;  %v6752_v41 = vunpack.c.l.b16 %v5360_v23  ;;  %v4147_v15 = vsel %vm9696_vm10, %v8737_v1, %v4146_v48  ;;  %7619 = vmatmul.bf16.gmra.mxu1 %v7002_v62  ;;  %13678 = vst [vmem:[#allocation5_spill] sm:$0xff] %v11243_v30  ;;  %v749_v1 = vld [vmem:[#allocation2 + $0x108] sm:$0x1] }
 0x243   :  { %v6129_v55 = vunpack.c.l.b16 %v3341_v3  ;;  %v1265_v49 = vrot.slane %v11192_v36, 4  ;;  %v4148_v32 = vrot.slane %v4146_v48, 4  ;;  %v3353_v43 = vshrl.u32 %v3058_v16, 16  ;;  %v1724_v26 = vld [vmem:[#allocation2 + $0x104] sm:$0x1] }
 0x244   :  { %v1269_v12 = vrot.slane %v1267_v56, 7  ;;  %v6800_v0 = vpack.c.b16 %v6752_v41, %v6751_v57  ;;  %v6241_v20 = vunpack.c.l.b16 %v4147_v15  ;;  %v3356_v28 = vshll.u32 %v3058_v16, 16  ;;  %v9521_v3 = vld [vmem:[#allocation2 + $0x80] sm:$0x1] }
 0x245   :  { %v3366_v47 = vshrl.u32 %v11238_v52, 16  ;;  %v4150_v38 = vsel %vm9696_vm10, %v4148_v32, %v4149_v44  ;;  %v4714_v51 = vshrl.u32 %v4287_v54, 16  ;;  %v6185_v21 = vpack.c.b16 %v6130_v8, %v6129_v55  ;;  %v480_v8 = vpop.f32.mrf.mxu0 }
 0x246   :  { %v1272_v36 = vor.u32 %v1270_v19, %v1269_v12  ;;  %v1274_v9 = vrot.slane %v1269_v12, 4  ;;  %9256 = vmatmul.msk.bf16.gmra.mxu3 %vm6817_vm2, %v6800_v0  ;;  %v6242_v2 = vunpack.c.l.b16 %v4150_v38  ;;  %v11246_v40 = vrot.slane %v3353_v43, 4 }
 0x247   :  { %v4716_v59 = vrot.slane %v4714_v51, 4  ;;  %v4717_v11 = vshll.u32 %v4287_v54, 16  ;;  %v4723_v29 = vshll.u32 %v11189_v50, 16  ;;  %v11253_v25 = vrot.slane %v3356_v28, 5  ;;  %v11269_v54 = vld [vmem:[#allocation2 + $0xdc] sm:$0xf] }
 0x248   :  { %v1273_v45 = vsel %vm9744_vm13, %v1265_v49, %v1272_v36  ;;  %v1725_v63 = vsel %vm9663_vm4, %v1274_v9, %v1724_v26  ;;  %v6289_v24 = vpack.c.b16 %v6242_v2, %v6241_v20  ;;  %6527 = vrot.lane.b32.xlu1 %v9455_v14, %s9581_s22  ;;  %v3372_v33 = vshll.u32 %v9521_v3, 16  ;;  %v6514_v49 = vpop.permute.xlu1 %6513  ;;  %v11275_v28 = vld [vmem:[#allocation2 + $0xe0] sm:$0x1] }
 0x249   :  { %1723 = vst.msk [vmem:[#allocation2 + $0x100] sm:$0xf] %vm673_vm5, %v1273_v45  ;;  %v4719_v57 = vrot.slane %v4717_v11, 5  ;;  %v4725_v48 = vrot.slane %v4723_v29, 5  ;;  %v4727_v16 = vshrl.u32 %v11189_v50, 16  ;;  %v7102_v23 = vsel %vm6817_vm2, %v6185_v21, %v11212_v46 }
 0x24a   :  { %v11261_v44 = vsel %vm6817_vm2, %v9384_v60, %v5714_v31  ;;  %1726 = vst [vmem:[#allocation2 + $0x104] sm:$0x1] %v1725_v63  ;;  %6337 = vrot.lane.b32.xlu0 %v6289_v24, %s9583_s1  ;;  %v3362_v62 = vshll.u32 %v11238_v52, 16  ;;  %v4733_v56 = vshll.u32 %v11198_v42, 16  ;;  %v481_v15 = vadd.f32 %v11168_v61, %v480_v8  ;;  %v2700_v63 = vld [vmem:[#allocation2 + $0xb4] sm:$0xe] }
 0x24b   :  { %v4720_v19 = vor.u32 %v4719_v57, %v4716_v59  ;;  %v4729_v41 = vrot.slane %v4727_v16, 4  ;;  %v750_v50 = vsel %vm9663_vm4, 0, %v749_v1  ;;  %v3359_v46 = vor.u32 %v11253_v25, %v11246_v40  ;;  %v6674_v59 = vpop.permute.xlu2 %6673  ;;  %v847_v8 = vld [vmem:[#allocation2 + $0x110] sm:$0x1] }
 0x24c   :  { %v11273_v55 = vrot.slane %v3366_v47, 4  ;;  %751 = vst [vmem:[#allocation2 + $0x108] sm:$0x1] %v750_v50  ;;  %v2302_v32 = vshrl.u32 %v1850_v39, 16  ;;  %v2305_v43 = vshll.u32 %v1850_v39, 16  ;;  %v4735_v0 = vrot.slane %v4733_v56, 5 }
 0x24d   :  { %v4721_v12 = vrot.slane %v4720_v19, 4  ;;  %v4730_v42 = vor.u32 %v4729_v41, %v4725_v48  ;;  %v583_v20 = vmul.f32 0.2, %v481_v15  ;;  %v2311_v26 = vshll.u32 %v11269_v54, 16 }
 0x24e   :  { %v2304_v14 = vrot.slane %v2302_v32, 4  ;;  %v2307_v52 = vrot.slane %v2305_v43, 5  ;;  %v2315_v38 = vshrl.u32 %v11269_v54, 16  ;;  %v7189_v21 = vsel %vm6914_vm3, %v7102_v23, %v6514_v49  ;;  %v7585_v43 = vpop.f32.mrf.mxu1 }
 0x24f   :  { %v4726_v47 = vsel %vm9791_vm0, %v4721_v12, %v4725_v48  ;;  %v4731_v51 = vrot.slane %v4730_v42, 4  ;;  %v647_v36 = vmax.f32 %v481_v15, %v583_v20  ;;  %v2313_v31 = vrot.slane %v2311_v26, 5  ;;  %v11295_v15 = vld [vmem:[%s13656_s4] ss:$0 sm:$0xff]  ;;  %v11302_v12 = vld [vmem:[#allocation2 + $0xf4] sm:$0xf] }
 0x250   :  { %v6591_v9 = vunpack.c.l.b16 %v4726_v47  ;;  %v2308_v2 = vor.u32 %v2307_v52, %v2304_v14  ;;  %v2317_v40 = vrot.slane %v2315_v38, 4  ;;  %v11282_v11 = vrot.slane %v3372_v33, 5  ;;  %v482_v33 = vpop.f32.mrf.mxu0  ;;  %v5137_v52 = vld [vmem:[#allocation2 + $0xf0] sm:$0xe] }
 0x251   :  { %v4736_v29 = vsel %vm9791_vm0, %v4731_v51, %v4735_v0  ;;  %v924_v60 = vpack.c.bf16 %v647_v36, %v647_v36  ;;  %v2321_v45 = vshll.u32 %v11275_v28, 16  ;;  %v7261_v39 = vsel %vm6979_vm6, %v7189_v21, %v6674_v59  ;;  %v11316_v51 = vld [vmem:[#allocation2 + $0xf8] sm:$0x1]  ;;  %v11318_v21 = vpop.f32.mrf.mxu3  ;;  %v5874_v59 = vpop.permute.xlu1 %5873 }
 0x252   :  { %v6592_v24 = vunpack.c.l.b16 %v4736_v29  ;;  %v2309_v25 = vrot.slane %v2308_v2, 4  ;;  %v2318_v1 = vor.u32 %v2317_v40, %v2313_v31  ;;  %v11288_v3 = vrot.slane %v3362_v62, 5  ;;  %7793 = vmatmul.bf16.gmra.mxu2 %v7261_v39  ;;  %13679 = vst [vmem:[#allocation6_spill] sm:$0xff] %v11318_v21  ;;  %v7754_v40 = vpop.f32.mrf.mxu2  ;;  %v3921_v39 = vld [vmem:[#allocation2 + $0xf0] sm:$0xe] }
 0x253   :  { %v1276_v57 = vshrl.u32 %v924_v60, 16  ;;  %v1279_v48 = vshll.u32 %v924_v60, 16  ;;  %v2323_v16 = vrot.slane %v2321_v45, 5  ;;  %v8704_v41 = vrot.slane %v2700_v63, 9  ;;  %v1727_v42 = vld [vmem:[#allocation2 + $0x108] sm:$0xf] }
 0x254   :  { %v6640_v23 = vpack.c.b16 %v6592_v24, %v6591_v9  ;;  %v2314_v56 = vsel %vm9791_vm0, %v2309_v25, %v2313_v31  ;;  %v2319_v19 = vrot.slane %v2318_v1, 4  ;;  %v11297_v50 = vrot.slane %v3359_v46, 4  ;;  %v3075_v45 = vld [vmem:[#allocation2 + $0xf4] sm:$0xf] }
 0x255   :  { %v11299_v62 = vrot.slane %v1276_v57, 7  ;;  %v5633_v49 = vunpack.c.l.b16 %v2314_v56  ;;  %v2923_v32 = vrot.slane %v11161_v17, 5  ;;  %v2926_v20 = vrot.slane %v11178_v4, 5 }
 0x256   :  { %6687 = vrot.lane.b32.xlu2 %v6640_v23, %s9582_s12  ;;  %v2324_v0 = vsel %vm9791_vm0, %v2319_v19, %v2323_v16  ;;  %v483_v14 = vadd.f32 %v11168_v61, %v482_v33  ;;  %v848_v46 = vsel %vm9676_vm7, 0, %v847_v8  ;;  %v3369_v17 = vor.u32 %v11273_v55, %v11288_v3  ;;  %v3121_v8 = vld [vmem:[#allocation2 + $0xf8] sm:$0x1]  ;;  %v9370_v23 = vld [vmem:[%s13654_s0 + $0xe0] sm:$0xff] }
 0x257   :  { %v1281_v26 = vor.u32 %v1279_v48, %v11299_v62  ;;  %v5634_v38 = vunpack.c.l.b16 %v2324_v0  ;;  %v2924_v47 = vsel %vm9696_vm10, %v8704_v41, %v2923_v32  ;;  %849 = vst [vmem:[#allocation2 + $0x110] sm:$0x1] %v848_v46  ;;  %v2925_v4 = vrot.slane %v2923_v32, 4  ;;  %v9423_v19 = vld [vmem:[#allocation2 + $0xc0] sm:$0xff]  ;;  %8685 = vmatmul.msk.bf16.gmra.mxu0 %vm275_vm1, %v9370_v23  ;;  %v6066_v46 = vpop.permute.xlu2 %6065 }
 0x258   :  { %v5791_v36 = vunpack.c.l.b16 %v2924_v47  ;;  %v584_v9 = vmul.f32 0.2, %v483_v14  ;;  %v7586_v2 = vadd.f32 %v11295_v15, %v7585_v43  ;;  %v8769_v29 = vrot.slane %v5137_v52, 9  ;;  %v11341_v43 = vpop.permute.xlu0 %6323 }
 0x259   :  { %v1728_v31 = vsel %vm9727_vm11, %v1281_v26, %v1727_v42  ;;  %v5681_v55 = vpack.c.b16 %v5634_v38, %v5633_v49  ;;  %v5363_v60 = vrot.slane %v11302_v12, 5  ;;  %v2927_v63 = vsel %vm9696_vm10, %v2925_v4, %v2926_v20 }
 0x25a   :  { %1729 = vst [vmem:[#allocation2 + $0x108] sm:$0xf] %v1728_v31  ;;  %v648_v24 = vmax.f32 %v483_v14, %v584_v9  ;;  %v11326_v25 = vadd.f32 %v7754_v40, %v7586_v2  ;;  %v5366_v1 = vrot.slane %v11316_v51, 5  ;;  %v3370_v57 = vrot.slane %v3369_v17, 4  ;;  %v4289_v31 = vld [vmem:[#allocation2 + $0xf0] sm:$0xf] }
 0x25b   :  { %5729 = vrot.lane.b32.xlu0 %v5681_v55, %s9583_s1  ;;  %v5792_v48 = vunpack.c.l.b16 %v2927_v63  ;;  %v5364_v16 = vsel %vm9696_vm10, %v8769_v29, %v5363_v60  ;;  %v5365_v33 = vrot.slane %v5363_v60, 4  ;;  %v3365_v56 = vsel %vm9791_vm0, %v11297_v50, %v11288_v3  ;;  %v9522_v55 = vld [vmem:[#allocation2 + $0x88] sm:$0xf]  ;;  %v11358_v29 = vld [vmem:[#allocation2 + $0x94] sm:$0xf] }
 0x25c   :  { %v6932_v41 = vsel %vm6914_vm3, %v11261_v44, %v5874_v59  ;;  %v925_v49 = vpack.c.bf16 %v648_v24, %v648_v24  ;;  %v6753_v32 = vunpack.c.l.b16 %v5364_v16  ;;  %v8738_v20 = vrot.slane %v3921_v39, 9  ;;  %v11355_v59 = vld [vmem:[#allocation2 + $0x8c] sm:$0x1] }
 0x25d   :  { %v5840_v42 = vpack.c.b16 %v5792_v48, %v5791_v36  ;;  %v5367_v0 = vsel %vm9696_vm10, %v5365_v33, %v5366_v1  ;;  %v4153_v14 = vrot.slane %v3075_v45, 5  ;;  %v4156_v17 = vrot.slane %v3121_v8, 5  ;;  %v11366_v48 = vld [vmem:[#allocation2 + $0x98] sm:$0x1]  ;;  %v3060_v8 = vld [vmem:[#allocation2 + $0x84] sm:$0xf] }
 0x25e   :  { %6079 = vrot.lane.b32.xlu2 %v9423_v19, %s9582_s12  ;;  %v1284_v3 = vshrl.u32 %v925_v49, 16  ;;  %v1287_v50 = vshll.u32 %v925_v49, 16  ;;  %v6754_v52 = vunpack.c.l.b16 %v5367_v0  ;;  %v3375_v44 = vsel %vm9791_vm0, %v3370_v57, %v11282_v11  ;;  %v1731_v45 = vld [vmem:[#allocation2 + $0x110] sm:$0x1]  ;;  %v752_v0 = vld [vmem:[#allocation2 + $0x114] sm:$0x1] }
 0x25f   :  { %5887 = vrot.lane.b32.xlu1 %v5840_v42, %s9581_s22  ;;  %v4154_v26 = vsel %vm9696_vm10, %v8738_v20, %v4153_v14  ;;  %v4155_v38 = vrot.slane %v4153_v14, 4  ;;  %v7005_v47 = vsel %vm6979_vm6, %v6932_v41, %v6066_v46  ;;  %v1282_v4 = vrot.slane %v11299_v62, 4  ;;  %v11363_v62 = vpop.f32.mrf.mxu3 }
 0x260   :  { %v1286_v36 = vrot.slane %v1284_v3, 7  ;;  %v6801_v9 = vpack.c.b16 %v6754_v52, %v6753_v32  ;;  %v6243_v2 = vunpack.c.l.b16 %v4154_v26  ;;  %7624 = vmatmul.bf16.gmra.mxu1 %v7005_v47  ;;  %v3390_v40 = vshrl.u32 %v9522_v55, 16  ;;  %13680 = vst [vmem:[#allocation7_spill] sm:$0xff] %v11363_v62  ;;  %v9456_v3 = vld [vmem:[#allocation2 + $0xf0] sm:$0xff] }
 0x261   :  { %v3396_v11 = vshll.u32 %v11355_v59, 16  ;;  %v3414_v60 = vshrl.u32 %v11358_v29, 16  ;;  %v4157_v63 = vsel %vm9696_vm10, %v4155_v38, %v4156_v17  ;;  %v6132_v24 = vunpack.c.l.b16 %v3375_v44  ;;  %v485_v44 = vpop.f32.mrf.mxu0  ;;  %v9385_v26 = vld [vmem:[#allocation2 + $0x6c] sm:$0xff]  ;;  %v5716_v38 = vpop.permute.xlu0 %5715 }
 0x262   :  { %v1289_v1 = vor.u32 %v1287_v50, %v1286_v36  ;;  %v1291_v39 = vrot.slane %v1286_v36, 4  ;;  %9257 = vmatmul.msk.bf16.gmra.mxu3 %vm6817_vm2, %v6801_v9  ;;  %v6244_v57 = vunpack.c.l.b16 %v4157_v63  ;;  %v3420_v16 = vshll.u32 %v11366_v48, 16  ;;  %v11384_v63 = vld [vmem:[#allocation2 + $0xe8] sm:$0xf] }
 0x263   :  { %v6131_v33 = vunpack.c.l.b16 %v3365_v56  ;;  %v4738_v23 = vshrl.u32 %v4289_v31, 16  ;;  %v4741_v19 = vshll.u32 %v4289_v31, 16  ;;  %v3386_v42 = vshll.u32 %v9522_v55, 16 }
 0x264   :  { %v1290_v41 = vsel %vm9744_vm13, %v1282_v4, %v1289_v1  ;;  %v1732_v49 = vsel %vm9663_vm4, %v1291_v39, %v1731_v45  ;;  %v6290_v32 = vpack.c.b16 %v6244_v57, %v6243_v2  ;;  %v4747_v46 = vshll.u32 %v11302_v12, 16  ;;  %v1852_v2 = vld [vmem:[#allocation2 + $0xe4] sm:$0xf] }
 0x265   :  { %1730 = vst.msk [vmem:[#allocation2 + $0x10c] sm:$0xf] %vm673_vm5, %v1290_v41  ;;  %v4740_v20 = vrot.slane %v4738_v23, 4  ;;  %v4743_v14 = vrot.slane %v4741_v19, 5  ;;  %v6186_v56 = vpack.c.b16 %v6132_v24, %v6131_v33  ;;  %v3377_v50 = vshrl.u32 %v3060_v8, 16  ;;  %v11391_v33 = vpop.f32.mrf.mxu1  ;;  %v6516_v19 = vpop.permute.xlu1 %6515 }
 0x266   :  { %1733 = vst [vmem:[#allocation2 + $0x110] sm:$0x1] %v1732_v49  ;;  %6339 = vrot.lane.b32.xlu0 %v6290_v32, %s9583_s1  ;;  %v4751_v52 = vshrl.u32 %v11302_v12, 16  ;;  %v4757_v17 = vshll.u32 %v11316_v51, 16  ;;  %v3380_v47 = vshll.u32 %v3060_v8, 16  ;;  %v4749_v36 = vrot.slane %v4747_v46, 5 }
 0x267   :  { %v4744_v4 = vor.u32 %v4743_v14, %v4740_v20  ;;  %6529 = vrot.lane.b32.xlu1 %v9456_v3, %s9581_s22  ;;  %v486_v9 = vadd.f32 %v11168_v61, %v485_v44  ;;  %v11380_v31 = vrot.slane %v3386_v42, 5  ;;  %v3392_v55 = vrot.slane %v3390_v40, 4  ;;  %v11386_v51 = vld [vmem:[#allocation2 + $0xa0] sm:$0xf]  ;;  %v11404_v3 = vpop.f32.mrf.mxu2 }
 0x268   :  { %v4753_v45 = vrot.slane %v4751_v52, 4  ;;  %v753_v12 = vsel %vm9663_vm4, 0, %v752_v0  ;;  %v7105_v1 = vsel %vm6817_vm2, %v6186_v56, %v11341_v43  ;;  %v11394_v40 = vsel %vm6817_vm2, %v9385_v26, %v5716_v38 }
 0x269   :  { %v4745_v39 = vrot.slane %v4744_v4, 4  ;;  %v585_v57 = vmul.f32 0.2, %v486_v9  ;;  %754 = vst [vmem:[#allocation2 + $0x114] sm:$0x1] %v753_v12  ;;  %v4759_v23 = vrot.slane %v4757_v17, 5  ;;  %v3393_v14 = vor.u32 %v3392_v55, %v11380_v31 }
 0x26a   :  { %v4754_v8 = vor.u32 %v4753_v45, %v4749_v36  ;;  %v2326_v41 = vshrl.u32 %v1852_v2, 16  ;;  %v2329_v42 = vshll.u32 %v1852_v2, 16  ;;  %v2335_v0 = vshll.u32 %v11384_v63, 16  ;;  %v11407_v17 = vld [vmem:[#allocation2 + $0xec] sm:$0x1] }
 0x26b   :  { %v4750_v49 = vsel %vm9791_vm0, %v4745_v39, %v4749_v36  ;;  %v649_v32 = vmax.f32 %v486_v9, %v585_v57  ;;  %v11399_v43 = vrot.slane %v3377_v50, 4  ;;  %v11401_v20 = vrot.slane %v3380_v47, 5  ;;  %v2701_v36 = vld [vmem:[#allocation2 + $0xd8] sm:$0xe]  ;;  %v6676_v9 = vpop.permute.xlu2 %6675 }
 0x26c   :  { %v4755_v46 = vrot.slane %v4754_v8, 4  ;;  %v7191_v56 = vsel %vm6914_vm3, %v7105_v1, %v6516_v19  ;;  %v2328_v44 = vrot.slane %v2326_v41, 4  ;;  %v2331_v26 = vrot.slane %v2329_v42, 5 }
 0x26d   :  { %v926_v52 = vpack.c.bf16 %v649_v32, %v649_v32  ;;  %v6593_v4 = vunpack.c.l.b16 %v4750_v49  ;;  %v2337_v50 = vrot.slane %v2335_v0, 5  ;;  %v2339_v47 = vshrl.u32 %v11384_v63, 16  ;;  %v850_v32 = vld [vmem:[#allocation2 + $0x11c] sm:$0x1] }
 0x26e   :  { %v4760_v38 = vsel %vm9791_vm0, %v4755_v46, %v4759_v23  ;;  %v2332_v12 = vor.u32 %v2331_v26, %v2328_v44  ;;  %v11414_v1 = vrot.slane %v3396_v11, 5  ;;  %v2345_v57 = vshll.u32 %v11407_v17, 16  ;;  %v487_v11 = vpop.f32.mrf.mxu0 }
 0x26f   :  { %v6594_v2 = vunpack.c.l.b16 %v4760_v38  ;;  %v1293_v55 = vshrl.u32 %v926_v52, 16  ;;  %v1296_v45 = vshll.u32 %v926_v52, 16  ;;  %v2341_v39 = vrot.slane %v2339_v47, 4  ;;  %v5138_v47 = vld [vmem:[#allocation2 + $0xfc] sm:$0xe] }
 0x270   :  { %v7264_v8 = vsel %vm6979_vm6, %v7191_v56, %v6676_v9  ;;  %v2333_v41 = vrot.slane %v2332_v12, 4  ;;  %v8705_v49 = vrot.slane %v2701_v36, 9  ;;  %v1734_v42 = vld [vmem:[#allocation2 + $0x114] sm:$0xf]  ;;  %v2347_v46 = vrot.slane %v2345_v57, 5 }
 0x271   :  { %v6641_v23 = vpack.c.b16 %v6594_v2, %v6593_v4  ;;  %v11418_v19 = vrot.slane %v1293_v55, 7  ;;  %7798 = vmatmul.bf16.gmra.mxu2 %v7264_v8  ;;  %v2342_v0 = vor.u32 %v2341_v39, %v2337_v50  ;;  %v2930_v52 = vrot.slane %v11269_v54, 5  ;;  %v7590_v4 = vpop.f32.mrf.mxu1  ;;  %v11432_v2 = vld [vmem:[#allocation2 + $0x100] sm:$0xf] }
 0x272   :  { %v2933_v59 = vrot.slane %v11275_v28, 5  ;;  %v3383_v44 = vor.u32 %v11401_v20, %v11399_v43  ;;  %v11424_v26 = vrot.slane %v3393_v14, 4  ;;  %v2338_v38 = vsel %vm9791_vm0, %v2333_v41, %v2337_v50  ;;  %v5876_v14 = vpop.permute.xlu1 %5875  ;;  %v11446_v41 = vpop.f32.mrf.mxu3 }
 0x273   :  { %6689 = vrot.lane.b32.xlu2 %v6641_v23, %s9582_s12  ;;  %v1298_v56 = vor.u32 %v1296_v45, %v11418_v19  ;;  %v2343_v36 = vrot.slane %v2342_v0, 4  ;;  %v5635_v9 = vunpack.c.l.b16 %v2338_v38  ;;  %v2931_v54 = vsel %vm9696_vm10, %v8705_v49, %v2930_v52  ;;  %v11439_v45 = vld [vmem:[#allocation2 + $0x104] sm:$0x1]  ;;  %v3922_v23 = vld [vmem:[#allocation2 + $0xfc] sm:$0xe]  ;;  %13681 = vst [vmem:[#allocation8_spill] sm:$0xff] %v11446_v41 }
 0x274   :  { %v2932_v28 = vrot.slane %v2930_v52, 4  ;;  %v5793_v20 = vunpack.c.l.b16 %v2931_v54  ;;  %v488_v55 = vadd.f32 %v11168_v61, %v487_v11  ;;  %v851_v50 = vsel %vm9676_vm7, 0, %v850_v32  ;;  %v3077_v38 = vld [vmem:[#allocation2 + $0x100] sm:$0xf] }
 0x275   :  { %v1735_v43 = vsel %vm9727_vm11, %v1298_v56, %v1734_v42  ;;  %v2348_v12 = vsel %vm9791_vm0, %v2343_v36, %v2347_v46  ;;  %v7591_v57 = vadd.f32 %v11295_v15, %v7590_v4  ;;  %v8770_v8 = vrot.slane %v5138_v47, 9  ;;  %v7759_v42 = vpop.f32.mrf.mxu2  ;;  %852 = vst [vmem:[#allocation2 + $0x11c] sm:$0x1] %v851_v50  ;;  %v11454_v4 = vpop.permute.xlu0 %6325  ;;  %v9424_v36 = vld [vmem:[#allocation2 + $0xe4] sm:$0xff] }
 0x276   :  { %1736 = vst [vmem:[#allocation2 + $0x114] sm:$0xf] %v1735_v43  ;;  %v2934_v39 = vsel %vm9696_vm10, %v2932_v28, %v2933_v59  ;;  %v5636_v49 = vunpack.c.l.b16 %v2348_v12  ;;  %v586_v52 = vmul.f32 0.2, %v488_v55  ;;  %v5370_v32 = vrot.slane %v11432_v2, 5  ;;  %v6068_v12 = vpop.permute.xlu2 %6067 }
 0x277   :  { %v5794_v0 = vunpack.c.l.b16 %v2934_v39  ;;  %v3384_v11 = vrot.slane %v3383_v44, 4  ;;  %v6934_v46 = vsel %vm6914_vm3, %v11394_v40, %v5876_v14  ;;  %v11451_v56 = vadd.f32 %v7759_v42, %v7591_v57  ;;  %v3122_v50 = vld [vmem:[#allocation2 + $0x104] sm:$0x1]  ;;  %v9371_v44 = vld [vmem:[%s13654_s0 + $0xe8] sm:$0xff] }
 0x278   :  { %v5373_v59 = vrot.slane %v11439_v45, 5  ;;  %v5682_v47 = vpack.c.b16 %v5636_v49, %v5635_v9  ;;  %v650_v28 = vmax.f32 %v488_v55, %v586_v52  ;;  %v5371_v43 = vsel %vm9696_vm10, %v8770_v8, %v5370_v32  ;;  %v11461_v40 = vld [vmem:[#allocation2 + $0xa4] sm:$0x1]  ;;  %v11471_v42 = vld [vmem:[#allocation2 + $0xac] sm:$0xf]  ;;  %8686 = vmatmul.msk.bf16.gmra.mxu0 %vm275_vm1, %v9371_v44 }
 0x279   :  { %v5841_v54 = vpack.c.b16 %v5794_v0, %v5793_v20  ;;  %v3399_v9 = vsel %vm9791_vm0, %v11424_v26, %v11414_v1  ;;  %v5372_v20 = vrot.slane %v5370_v32, 4  ;;  %v8739_v55 = vrot.slane %v3922_v23, 9 }
 0x27a   :  { %5731 = vrot.lane.b32.xlu0 %v5682_v47, %s9583_s1  ;;  %v927_v39 = vpack.c.bf16 %v650_v28, %v650_v28  ;;  %v6755_v57 = vunpack.c.l.b16 %v5371_v43  ;;  %v4160_v8 = vrot.slane %v3077_v38, 5  ;;  %v7008_v49 = vsel %vm6979_vm6, %v6934_v46, %v6068_v12  ;;  %v3062_v47 = vld [vmem:[#allocation2 + $0x90] sm:$0xf]  ;;  %v11492_v14 = vpop.f32.mrf.mxu3 }
 0x27b   :  { %6081 = vrot.lane.b32.xlu2 %v9424_v36, %s9582_s12  ;;  %v3389_v52 = vsel %vm9791_vm0, %v3384_v11, %v11380_v31  ;;  %5889 = vrot.lane.b32.xlu1 %v5841_v54, %s9581_s22  ;;  %v5374_v1 = vsel %vm9696_vm10, %v5372_v20, %v5373_v59  ;;  %v4163_v26 = vrot.slane %v3122_v50, 5  ;;  %v4291_v36 = vld [vmem:[#allocation2 + $0xfc] sm:$0xf]  ;;  %v11483_v28 = vld [vmem:[#allocation2 + $0xb0] sm:$0x1]  ;;  %v6134_v54 = vunpack.c.l.b16 %v3399_v9  ;;  %13682 = vst [vmem:[#allocation9_spill] sm:$0xff] %v11492_v14 }
 0x27c   :  { %7629 = vmatmul.bf16.gmra.mxu1 %v7008_v49  ;;  %v1301_v23 = vshrl.u32 %v927_v39, 16  ;;  %v1304_v32 = vshll.u32 %v927_v39, 16  ;;  %v6756_v38 = vunpack.c.l.b16 %v5374_v1  ;;  %v4161_v46 = vsel %vm9696_vm10, %v8739_v55, %v4160_v8  ;;  %v11486_v11 = vld [vmem:[#allocation2 + $0xb8] sm:$0xf]  ;;  %v1738_v49 = vld [vmem:[#allocation2 + $0x11c] sm:$0x1] }
 0x27d   :  { %v4162_v43 = vrot.slane %v4160_v8, 4  ;;  %v1299_v50 = vrot.slane %v11418_v19, 4  ;;  %v6245_v39 = vunpack.c.l.b16 %v4161_v46  ;;  %v6133_v55 = vunpack.c.l.b16 %v3389_v52  ;;  %v9457_v52 = vld [vmem:[#allocation2 + $0xfc] sm:$0xff] }
 0x27e   :  { %v1303_v12 = vrot.slane %v1301_v23, 7  ;;  %v6802_v20 = vpack.c.b16 %v6756_v38, %v6755_v57  ;;  %v3401_v1 = vshrl.u32 %v3062_v47, 16  ;;  %v4762_v0 = vshrl.u32 %v4291_v36, 16  ;;  %v5718_v38 = vpop.permute.xlu0 %5717 }
 0x27f   :  { %v4164_v44 = vsel %vm9696_vm10, %v4162_v43, %v4163_v26  ;;  %v3404_v8 = vshll.u32 %v3062_v47, 16  ;;  %v6187_v59 = vpack.c.b16 %v6134_v54, %v6133_v55  ;;  %v4765_v23 = vshll.u32 %v4291_v36, 16  ;;  %v490_v54 = vpop.f32.mrf.mxu0 }
 0x280   :  { %v1306_v31 = vor.u32 %v1304_v32, %v1303_v12  ;;  %v1308_v24 = vrot.slane %v1303_v12, 4  ;;  %9258 = vmatmul.msk.bf16.gmra.mxu3 %vm6817_vm2, %v6802_v20  ;;  %v6246_v9 = vunpack.c.l.b16 %v4164_v44  ;;  %v4764_v19 = vrot.slane %v4762_v0, 4  ;;  %v755_v12 = vld [vmem:[#allocation2 + $0x120] sm:$0x1]  ;;  %v1854_v20 = vld [vmem:[#allocation2 + $0xf0] sm:$0xf] }
 0x281   :  { %v4771_v57 = vshll.u32 %v11432_v2, 16  ;;  %v3410_v32 = vshll.u32 %v11358_v29, 16  ;;  %v9386_v44 = vld [vmem:[#allocation2 + $0x78] sm:$0xff]  ;;  %v4767_v0 = vrot.slane %v4765_v23, 5  ;;  %v4775_v36 = vshrl.u32 %v11432_v2, 16 }
 0x282   :  { %v1307_v26 = vsel %vm9744_vm13, %v1299_v50, %v1306_v31  ;;  %v1739_v46 = vsel %vm9663_vm4, %v1308_v24, %v1738_v49  ;;  %v6291_v43 = vpack.c.b16 %v6246_v9, %v6245_v39  ;;  %v7108_v31 = vsel %vm6817_vm2, %v6187_v59, %v11454_v4  ;;  %v11512_v23 = vld [vmem:[#allocation2 + $0xf4] sm:$0xf]  ;;  %v6518_v59 = vpop.permute.xlu1 %6517 }
 0x283   :  { %1737 = vst.msk [vmem:[#allocation2 + $0x118] sm:$0xf] %vm673_vm5, %v1307_v26  ;;  %v4773_v47 = vrot.slane %v4771_v57, 5  ;;  %6531 = vrot.lane.b32.xlu1 %v9457_v52, %s9581_s22  ;;  %v3403_v24 = vrot.slane %v3401_v1, 4  ;;  %v3406_v50 = vrot.slane %v3404_v8, 5  ;;  %v4781_v39 = vshll.u32 %v11439_v45, 16  ;;  %v11520_v8 = vpop.f32.mrf.mxu1 }
 0x284   :  { %1740 = vst [vmem:[#allocation2 + $0x11c] sm:$0x1] %v1739_v46  ;;  %6341 = vrot.lane.b32.xlu0 %v6291_v43, %s9583_s1  ;;  %v11509_v55 = vsel %vm6817_vm2, %v9386_v44, %v5718_v38  ;;  %v4768_v49 = vor.u32 %v4767_v0, %v4764_v19  ;;  %v4777_v9 = vrot.slane %v4775_v36, 4  ;;  %v491_v2 = vadd.f32 %v11168_v61, %v490_v54  ;;  %v11522_v46 = vld [vmem:[#allocation2 + $0xf8] sm:$0x1] }
 0x285   :  { %v11514_v57 = vrot.slane %v3410_v32, 5  ;;  %v3416_v4 = vrot.slane %v3414_v60, 4  ;;  %v756_v1 = vsel %vm9663_vm4, 0, %v755_v12  ;;  %v2350_v45 = vshrl.u32 %v1854_v20, 16 }
 0x286   :  { %v4769_v52 = vrot.slane %v4768_v49, 4  ;;  %v4778_v38 = vor.u32 %v4777_v9, %v4773_v47  ;;  %v4783_v19 = vrot.slane %v4781_v39, 5  ;;  %v587_v26 = vmul.f32 0.2, %v491_v2  ;;  %757 = vst [vmem:[#allocation2 + $0x120] sm:$0x1] %v756_v1 }
 0x287   :  { %v3407_v61 = vor.u32 %v3406_v50, %v3403_v24  ;;  %v2352_v43 = vrot.slane %v2350_v45, 4  ;;  %v2353_v32 = vshll.u32 %v1854_v20, 16  ;;  %v2359_v29 = vshll.u32 %v11512_v23, 16  ;;  %v11533_v24 = vpop.f32.mrf.mxu2  ;;  %v6678_v20 = vpop.permute.xlu2 %6677 }
 0x288   :  { %v4774_v60 = vsel %vm9791_vm0, %v4769_v52, %v4773_v47  ;;  %v4779_v44 = vrot.slane %v4778_v38, 4  ;;  %v7193_v12 = vsel %vm6914_vm3, %v7108_v31, %v6518_v59  ;;  %v651_v0 = vmax.f32 %v491_v2, %v587_v26  ;;  %v2702_v2 = vld [vmem:[#allocation2 + $0xe4] sm:$0xe]  ;;  %v492_v26 = vpop.f32.mrf.mxu0 }
 0x289   :  { %v3417_v36 = vor.u32 %v3416_v4, %v11514_v57  ;;  %v11531_v54 = vrot.slane %v3420_v16, 5  ;;  %v2355_v50 = vrot.slane %v2353_v32, 5  ;;  %v2361_v39 = vrot.slane %v2359_v29, 5 }
 0x28a   :  { %v4784_v49 = vsel %vm9791_vm0, %v4779_v44, %v4783_v19  ;;  %v928_v9 = vpack.c.bf16 %v651_v0, %v651_v0  ;;  %v2363_v47 = vshrl.u32 %v11512_v23, 16  ;;  %v2369_v31 = vshll.u32 %v11522_v46, 16 }
 0x28b   :  { %v6595_v59 = vunpack.c.l.b16 %v4774_v60  ;;  %v6596_v4 = vunpack.c.l.b16 %v4784_v49  ;;  %v2356_v1 = vor.u32 %v2355_v50, %v2352_v43  ;;  %v7267_v48 = vsel %vm6979_vm6, %v7193_v12, %v6678_v20  ;;  %v853_v50 = vld [vmem:[#allocation2 + $0x128] sm:$0x1]  ;;  %v3124_v14 = vld [vmem:[#allocation2 + $0x11c] sm:$0x1] }
 0x28c   :  { %v11540_v16 = vrot.slane %v3407_v61, 4  ;;  %v1310_v45 = vshrl.u32 %v928_v9, 16  ;;  %v1313_v52 = vshll.u32 %v928_v9, 16  ;;  %v2365_v38 = vrot.slane %v2363_v47, 4  ;;  %7803 = vmatmul.bf16.gmra.mxu2 %v7267_v48  ;;  %v7595_v47 = vpop.f32.mrf.mxu1 }
 0x28d   :  { %v6642_v32 = vpack.c.b16 %v6596_v4, %v6595_v59  ;;  %v2357_v19 = vrot.slane %v2356_v1, 4  ;;  %v8706_v29 = vrot.slane %v2702_v2, 9  ;;  %v2937_v44 = vrot.slane %v11384_v63, 5  ;;  %v1741_v61 = vld [vmem:[#allocation2 + $0x120] sm:$0xf] }
 0x28e   :  { %v11543_v0 = vrot.slane %v1310_v45, 7  ;;  %v2366_v35 = vor.u32 %v2365_v38, %v2361_v39  ;;  %v2371_v60 = vrot.slane %v2369_v31, 5  ;;  %v2940_v43 = vrot.slane %v11407_v17, 5  ;;  %v11554_v63 = vld [vmem:[%s13653_s2] ss:$0 sm:$0xff]  ;;  %v5878_v45 = vpop.permute.xlu1 %5877 }
 0x28f   :  { %6691 = vrot.lane.b32.xlu2 %v6642_v32, %s9582_s12  ;;  %v2362_v12 = vsel %vm9791_vm0, %v2357_v19, %v2361_v39  ;;  %v2938_v20 = vsel %vm9696_vm10, %v8706_v29, %v2937_v44  ;;  %v2939_v49 = vrot.slane %v2937_v44, 4  ;;  %v493_v9 = vadd.f32 %v11554_v63, %v492_v26  ;;  %v11560_v4 = vld [vmem:[#allocation2 + $0x10c] sm:$0xf]  ;;  %v5139_v39 = vld [vmem:[#allocation2 + $0x108] sm:$0xe] }
 0x290   :  { %v11557_v17 = vrot.slane %v3417_v36, 4  ;;  %v1315_v31 = vor.u32 %v1313_v52, %v11543_v0  ;;  %v2367_v2 = vrot.slane %v2366_v35, 4  ;;  %v5637_v59 = vunpack.c.l.b16 %v2362_v12  ;;  %v11566_v26 = vld [vmem:[#allocation2 + $0x110] sm:$0x1]  ;;  %v11568_v36 = vpop.f32.mrf.mxu3 }
 0x291   :  { %v2941_v1 = vsel %vm9696_vm10, %v2939_v49, %v2940_v43  ;;  %v5795_v48 = vunpack.c.l.b16 %v2938_v20  ;;  %v588_v38 = vmul.f32 0.2, %v493_v9  ;;  %v854_v32 = vsel %vm9676_vm7, 0, %v853_v50  ;;  %13683 = vst [vmem:[#allocation10_spill] sm:$0xff] %v11568_v36  ;;  %v7764_v43 = vpop.f32.mrf.mxu2  ;;  %v3923_v49 = vld [vmem:[#allocation2 + $0x108] sm:$0xe] }
 0x292   :  { %v1742_v35 = vsel %vm9727_vm11, %v1315_v31, %v1741_v61  ;;  %v2372_v52 = vsel %vm9791_vm0, %v2367_v2, %v2371_v60  ;;  %v5796_v19 = vunpack.c.l.b16 %v2941_v1  ;;  %855 = vst [vmem:[#allocation2 + $0x128] sm:$0x1] %v854_v32  ;;  %v7596_v29 = vadd.f32 %v11295_v15, %v7595_v47  ;;  %v11581_v31 = vld [vmem:[#allocation2 + $0x10c] sm:$0xf]  ;;  %v9425_v47 = vld [vmem:[#allocation2 + $0xf0] sm:$0xff] }
 0x293   :  { %1743 = vst [vmem:[#allocation2 + $0x120] sm:$0xf] %v1742_v35  ;;  %v5638_v44 = vunpack.c.l.b16 %v2372_v52  ;;  %v652_v12 = vmax.f32 %v493_v9, %v588_v38  ;;  %v8771_v20 = vrot.slane %v5139_v39, 9  ;;  %v5377_v50 = vrot.slane %v11560_v4, 5  ;;  %v3123_v38 = vld [vmem:[#allocation2 + $0x110] sm:$0x1]  ;;  %v6070_v52 = vpop.permute.xlu2 %6069 }
 0x294   :  { %v5842_v62 = vpack.c.b16 %v5796_v19, %v5795_v48  ;;  %v6936_v41 = vsel %vm6914_vm3, %v11509_v55, %v5878_v45  ;;  %v11578_v61 = vadd.f32 %v7764_v43, %v7596_v29  ;;  %v5380_v60 = vrot.slane %v11566_v26, 5  ;;  %v9372_v48 = vld [vmem:[%s13654_s0 + $0xf0] sm:$0xff]  ;;  %v11588_v32 = vld [vmem:[#allocation2 + $0xbc] sm:$0x1] }
 0x295   :  { %v5683_v2 = vpack.c.b16 %v5638_v44, %v5637_v59  ;;  %v929_v1 = vpack.c.bf16 %v652_v12, %v652_v12  ;;  %v5378_v9 = vsel %vm9696_vm10, %v8771_v20, %v5377_v50  ;;  %v5379_v39 = vrot.slane %v5377_v50, 4  ;;  %8687 = vmatmul.msk.bf16.gmra.mxu0 %vm275_vm1, %v9372_v48  ;;  %v4293_v48 = vld [vmem:[#allocation2 + $0x108] sm:$0xf] }
 0x296   :  { %v3413_v59 = vsel %vm9791_vm0, %v11540_v16, %v11514_v57  ;;  %5891 = vrot.lane.b32.xlu1 %v5842_v62, %s9581_s22  ;;  %v6757_v45 = vunpack.c.l.b16 %v5378_v9  ;;  %v8740_v35 = vrot.slane %v3923_v49, 9  ;;  %v4167_v43 = vrot.slane %v11581_v31, 5  ;;  %v6328_v62 = vpop.permute.xlu0 %6327 }
 0x297   :  { %5733 = vrot.lane.b32.xlu0 %v5683_v2, %s9583_s1  ;;  %6083 = vrot.lane.b32.xlu2 %v9425_v47, %s9582_s12  ;;  %v1318_v19 = vshrl.u32 %v929_v1, 16  ;;  %v1321_v29 = vshll.u32 %v929_v1, 16  ;;  %v5381_v44 = vsel %vm9696_vm10, %v5379_v39, %v5380_v60  ;;  %v3423_v57 = vsel %vm9791_vm0, %v11557_v17, %v11531_v54  ;;  %v3064_v47 = vld [vmem:[#allocation2 + $0x9c] sm:$0xf]  ;;  %v11610_v1 = vld [vmem:[#allocation2 + $0xc4] sm:$0xf] }
 0x298   :  { %v6758_v16 = vunpack.c.l.b16 %v5381_v44  ;;  %v4170_v12 = vrot.slane %v3123_v38, 5  ;;  %v7011_v20 = vsel %vm6979_vm6, %v6936_v41, %v6070_v52  ;;  %v1316_v50 = vrot.slane %v11543_v0, 4  ;;  %v11613_v17 = vld [vmem:[#allocation2 + $0xc8] sm:$0x1]  ;;  %v758_v52 = vld [vmem:[#allocation2 + $0x12c] sm:$0x1] }
 0x299   :  { %v1320_v49 = vrot.slane %v1318_v19, 7  ;;  %v4168_v60 = vsel %vm9696_vm10, %v8740_v35, %v4167_v43  ;;  %v4169_v2 = vrot.slane %v4167_v43, 4  ;;  %7634 = vmatmul.bf16.gmra.mxu1 %v7011_v20  ;;  %v1745_v41 = vld [vmem:[#allocation2 + $0x128] sm:$0x1]  ;;  %v11621_v43 = vpop.f32.mrf.mxu3  ;;  %v6135_v20 = vunpack.c.l.b16 %v3413_v59 }
 0x29a   :  { %v6803_v39 = vpack.c.b16 %v6758_v16, %v6757_v45  ;;  %v6247_v38 = vunpack.c.l.b16 %v4168_v60  ;;  %v11616_v0 = vld [vmem:[#allocation2 + $0xe8] sm:$0xf]  ;;  %13684 = vst [vmem:[#allocation11_spill] sm:$0xff] %v11621_v43  ;;  %v6136_v54 = vunpack.c.l.b16 %v3423_v57  ;;  %v3425_v55 = vshrl.u32 %v3064_v47, 16 }
 0x29b   :  { %v1323_v35 = vor.u32 %v1321_v29, %v1320_v49  ;;  %v1325_v19 = vrot.slane %v1320_v49, 4  ;;  %v4171_v44 = vsel %vm9696_vm10, %v4169_v2, %v4170_v12  ;;  %v9458_v45 = vld [vmem:[#allocation2 + $0x108] sm:$0xff]  ;;  %v3428_v29 = vshll.u32 %v3064_v47, 16 }
 0x29c   :  { %9259 = vmatmul.msk.bf16.gmra.mxu3 %vm6817_vm2, %v6803_v39  ;;  %v6248_v9 = vunpack.c.l.b16 %v4171_v44  ;;  %v4786_v49 = vshrl.u32 %v4293_v48, 16  ;;  %v3434_v59 = vshll.u32 %v11386_v51, 16  ;;  %v4789_v57 = vshll.u32 %v4293_v48, 16  ;;  %v11632_v39 = vld [vmem:[#allocation2 + $0xec] sm:$0x1]  ;;  %v495_v44 = vpop.f32.mrf.mxu0 }
 0x29d   :  { %v1324_v16 = vsel %vm9744_vm13, %v1316_v50, %v1323_v35  ;;  %v1746_v60 = vsel %vm9663_vm4, %v1325_v19, %v1745_v41  ;;  %v4795_v2 = vshll.u32 %v11560_v4, 16  ;;  %13685 = vst [vmem:[#allocation12_spill] sm:$0xff] %v11632_v39  ;;  %v4799_v47 = vshrl.u32 %v11560_v4, 16 }
 0x29e   :  { %1744 = vst.msk [vmem:[#allocation2 + $0x124] sm:$0xf] %vm673_vm5, %v1324_v16  ;;  %v6292_v12 = vpack.c.b16 %v6248_v9, %v6247_v38  ;;  %6533 = vrot.lane.b32.xlu1 %v9458_v45, %s9581_s22  ;;  %v4788_v35 = vrot.slane %v4786_v49, 4  ;;  %v4805_v41 = vshll.u32 %v11566_v26, 16  ;;  %v11639_v9 = vadd.f32 %v11295_v15, %v11391_v33  ;;  %v1856_v45 = vld [vmem:[#allocation2 + $0xfc] sm:$0xf]  ;;  %v5720_v30 = vpop.permute.xlu0 %5719 }
 0x29f   :  { %1747 = vst [vmem:[#allocation2 + $0x128] sm:$0x1] %v1746_v60  ;;  %v6188_v38 = vpack.c.b16 %v6136_v54, %v6135_v20  ;;  %v4791_v48 = vrot.slane %v4789_v57, 5  ;;  %v4797_v19 = vrot.slane %v4795_v2, 5  ;;  %v3427_v16 = vrot.slane %v3425_v55, 4  ;;  %v9387_v26 = vld [vmem:[#allocation2 + $0x84] sm:$0xff]  ;;  %v11650_v20 = vpop.f32.mrf.mxu1  ;;  %v6520_v2 = vpop.permute.xlu1 %6519 }
 0x2a0   :  { %6343 = vrot.lane.b32.xlu0 %v6292_v12, %s9583_s1  ;;  %v3430_v21 = vrot.slane %v3428_v29, 5  ;;  %v4801_v50 = vrot.slane %v4799_v47, 4  ;;  %v496_v60 = vadd.f32 %v11554_v63, %v495_v44  ;;  %v11643_v49 = vld [vmem:[#allocation2 + $0x100] sm:$0xf]  ;;  %v11646_v15 = vrot.slane %v3434_v59, 5 }
 0x2a1   :  { %v7111_v4 = vsel %vm6817_vm2, %v6188_v38, %v6328_v62  ;;  %v4792_v33 = vor.u32 %v4791_v48, %v4788_v35  ;;  %v759_v54 = vsel %vm9663_vm4, 0, %v758_v52  ;;  %v13686_v55 = vshrl.u32 %v11386_v51, 16 }
 0x2a2   :  { %v4802_v12 = vor.u32 %v4801_v50, %v4797_v19  ;;  %v4807_v57 = vrot.slane %v4805_v41, 5  ;;  %v589_v47 = vmul.f32 0.2, %v496_v60  ;;  %760 = vst [vmem:[#allocation2 + $0x12c] sm:$0x1] %v759_v54  ;;  %v2374_v62 = vshrl.u32 %v1856_v45, 16 }
 0x2a3   :  { %v3440_v29 = vrot.slane %v13686_v55, 4  ;;  %v4793_v44 = vrot.slane %v4792_v33, 4  ;;  %v2377_v38 = vshll.u32 %v1856_v45, 16  ;;  %v2383_v59 = vshll.u32 %v11643_v49, 16  ;;  %v11660_v55 = vpop.f32.mrf.mxu2  ;;  %v11663_v41 = vld [vmem:[#allocation2 + $0x104] sm:$0x1] }
 0x2a4   :  { %v11656_v35 = vsel %vm6817_vm2, %v9387_v26, %v5720_v30  ;;  %v3431_v48 = vor.u32 %v3430_v21, %v3427_v16  ;;  %v4803_v52 = vrot.slane %v4802_v12, 4  ;;  %v653_v7 = vmax.f32 %v496_v60, %v589_v47  ;;  %v6680_v16 = vpop.permute.xlu2 %6679 }
 0x2a5   :  { %v4798_v51 = vsel %vm9791_vm0, %v4793_v44, %v4797_v19  ;;  %v7195_v50 = vsel %vm6914_vm3, %v7111_v4, %v6520_v2  ;;  %v2376_v33 = vrot.slane %v2374_v62, 4  ;;  %v2379_v54 = vrot.slane %v2377_v38, 5  ;;  %v2703_v44 = vld [vmem:[#allocation2 + $0xf0] sm:$0xe] }
 0x2a6   :  { %v3441_v45 = vor.u32 %v3440_v29, %v11646_v15  ;;  %v4808_v30 = vsel %vm9791_vm0, %v4803_v52, %v4807_v57  ;;  %v930_v26 = vpack.c.bf16 %v653_v7, %v653_v7  ;;  %v2385_v21 = vrot.slane %v2383_v59, 5 }
 0x2a7   :  { %v6597_v60 = vunpack.c.l.b16 %v4798_v51  ;;  %v6598_v12 = vunpack.c.l.b16 %v4808_v30  ;;  %v2380_v47 = vor.u32 %v2379_v54, %v2376_v33  ;;  %v2387_v19 = vshrl.u32 %v11643_v49, 16  ;;  %v497_v30 = vpop.f32.mrf.mxu0 }
 0x2a8   :  { %v1327_v43 = vshrl.u32 %v930_v26, 16  ;;  %v1330_v4 = vshll.u32 %v930_v26, 16  ;;  %v2393_v2 = vshll.u32 %v11663_v41, 16  ;;  %v7270_v62 = vsel %vm6979_vm6, %v7195_v50, %v6680_v16  ;;  %v856_v26 = vld [vmem:[#allocation2 + $0x134] sm:$0x1] }
 0x2a9   :  { %v13687_v29 = vshll.u32 %v11461_v40, 16  ;;  %v6643_v57 = vpack.c.b16 %v6598_v12, %v6597_v60  ;;  %v2381_v7 = vrot.slane %v2380_v47, 4  ;;  %v2389_v59 = vrot.slane %v2387_v19, 4  ;;  %7808 = vmatmul.bf16.gmra.mxu2 %v7270_v62  ;;  %v1748_v50 = vld [vmem:[#allocation2 + $0x12c] sm:$0xf]  ;;  %v7600_v47 = vpop.f32.mrf.mxu1 }
 0x2aa   :  { %v11675_v52 = vrot.slane %v3431_v48, 4  ;;  %v11677_v51 = vrot.slane %v1327_v43, 7  ;;  %v8707_v33 = vrot.slane %v2703_v44, 9  ;;  %v2944_v54 = vrot.slane %v11512_v23, 5  ;;  %v5140_v48 = vld [vmem:[#allocation2 + $0x114] sm:$0xe] }
 0x2ab   :  { %v11673_v38 = vrot.slane %v13687_v29, 5  ;;  %6693 = vrot.lane.b32.xlu2 %v6643_v57, %s9582_s12  ;;  %v2386_v40 = vsel %vm9791_vm0, %v2381_v7, %v2385_v21  ;;  %v2390_v16 = vor.u32 %v2389_v59, %v2385_v21  ;;  %v2395_v60 = vrot.slane %v2393_v2, 5  ;;  %v11687_v62 = vld [vmem:[#allocation2 + $0x118] sm:$0xf]  ;;  %v11690_v21 = vld [vmem:[#allocation2 + $0x11c] sm:$0x1]  ;;  %v11692_v2 = vpop.f32.mrf.mxu3 }
 0x2ac   :  { %v2947_v12 = vrot.slane %v11522_v46, 5  ;;  %v3442_v19 = vrot.slane %v3441_v45, 4  ;;  %v1332_v43 = vor.u32 %v1330_v4, %v11677_v51  ;;  %v5639_v44 = vunpack.c.l.b16 %v2386_v40  ;;  %13688 = vst [vmem:[#allocation13_spill] sm:$0xff] %v11692_v2  ;;  %v5880_v45 = vpop.permute.xlu1 %5879  ;;  %v11701_v59 = vld [vmem:[%s13656_s4] ss:$0 sm:$0xff] }
 0x2ad   :  { %v2945_v23 = vsel %vm9696_vm10, %v8707_v33, %v2944_v54  ;;  %v2391_v29 = vrot.slane %v2390_v16, 4  ;;  %v2946_v57 = vrot.slane %v2944_v54, 4  ;;  %v498_v7 = vadd.f32 %v11554_v63, %v497_v30 }
 0x2ae   :  { %v5797_v36 = vunpack.c.l.b16 %v2945_v23  ;;  %v1749_v46 = vsel %vm9727_vm11, %v1332_v43, %v1748_v50  ;;  %v857_v4 = vsel %vm9676_vm7, 0, %v856_v26  ;;  %v7601_v33 = vadd.f32 %v11701_v59, %v7600_v47  ;;  %v7769_v50 = vpop.f32.mrf.mxu2  ;;  %v9426_v23 = vld [vmem:[#allocation2 + $0xfc] sm:$0xff] }
 0x2af   :  { %v8772_v54 = vrot.slane %v5140_v48, 9  ;;  %1750 = vst [vmem:[#allocation2 + $0x12c] sm:$0xf] %v1749_v46  ;;  %v2396_v30 = vsel %vm9791_vm0, %v2391_v29, %v2395_v60  ;;  %v2948_v40 = vsel %vm9696_vm10, %v2946_v57, %v2947_v12  ;;  %v590_v16 = vmul.f32 0.2, %v498_v7 }
 0x2b0   :  { %v5384_v43 = vrot.slane %v11687_v62, 5  ;;  %v5640_v26 = vunpack.c.l.b16 %v2396_v30  ;;  %v5798_v2 = vunpack.c.l.b16 %v2948_v40  ;;  %858 = vst [vmem:[#allocation2 + $0x134] sm:$0x1] %v857_v4  ;;  %v11709_v39 = vadd.f32 %v7769_v50, %v7601_v33  ;;  %v3924_v48 = vld [vmem:[#allocation2 + $0x114] sm:$0xe]  ;;  %v9373_v4 = vld [vmem:[%s13654_s0 + $0xf8] sm:$0xff] }
 0x2b1   :  { %v5387_v47 = vrot.slane %v11690_v21, 5  ;;  %v6938_v46 = vsel %vm6914_vm3, %v11656_v35, %v5880_v45  ;;  %v654_v60 = vmax.f32 %v498_v7, %v590_v16  ;;  %v11716_v57 = vld [vmem:[#allocation2 + $0x118] sm:$0xf]  ;;  %v3447_v33 = vsel %vm9791_vm0, %v3442_v19, %v11673_v38  ;;  %v6072_v35 = vpop.permute.xlu2 %6071  ;;  %v6330_v45 = vpop.permute.xlu0 %6329  ;;  %8688 = vmatmul.msk.bf16.gmra.mxu0 %vm275_vm1, %v9373_v4 }
 0x2b2   :  { %13689 = vst [vmem:[#allocation14_spill] sm:$0xff] %v11709_v39  ;;  %v5385_v12 = vsel %vm9696_vm10, %v8772_v54, %v5384_v43  ;;  %v5386_v29 = vrot.slane %v5384_v43, 4  ;;  %v5684_v30 = vpack.c.b16 %v5640_v26, %v5639_v44  ;;  %v5843_v40 = vpack.c.b16 %v5798_v2, %v5797_v36 }
 0x2b3   :  { %v6759_v50 = vunpack.c.l.b16 %v5385_v12  ;;  %v3437_v7 = vsel %vm9791_vm0, %v11675_v52, %v11646_v15  ;;  %6085 = vrot.lane.b32.xlu2 %v9426_v23, %s9582_s12  ;;  %v931_v54 = vpack.c.bf16 %v654_v60, %v654_v60  ;;  %v8741_v43 = vrot.slane %v3924_v48, 9  ;;  %v11736_v52 = vld [vmem:[#allocation2 + $0xf4] sm:$0xf] }
 0x2b4   :  { %v5388_v16 = vsel %vm9696_vm10, %v5386_v29, %v5387_v47  ;;  %5735 = vrot.lane.b32.xlu0 %v5684_v30, %s9583_s1  ;;  %5893 = vrot.lane.b32.xlu1 %v5843_v40, %s9581_s22  ;;  %v4174_v38 = vrot.slane %v11716_v57, 5  ;;  %v4177_v19 = vrot.slane %v3124_v14, 5  ;;  %v7014_v15 = vsel %vm6979_vm6, %v6938_v46, %v6072_v35  ;;  %v11746_v30 = vld [vmem:[#allocation2 + $0xa8] sm:$0xf]  ;;  %v11748_v40 = vpop.f32.mrf.mxu3  ;;  %v11750_v35 = vld [vmem:[#allocation2 + $0xf8] sm:$0x1] }
 0x2b5   :  { %v6760_v36 = vunpack.c.l.b16 %v5388_v16  ;;  %v6138_v2 = vunpack.c.l.b16 %v3447_v33  ;;  %v1335_v26 = vshrl.u32 %v931_v54, 16  ;;  %v1338_v23 = vshll.u32 %v931_v54, 16  ;;  %7639 = vmatmul.bf16.gmra.mxu1 %v7014_v15  ;;  %v4295_v33 = vld [vmem:[#allocation2 + $0x114] sm:$0xf] }
 0x2b6   :  { %v11741_v47 = vadd.f32 %v10904_v6, %v11326_v25  ;;  %v4175_v60 = vsel %vm9696_vm10, %v8741_v43, %v4174_v38  ;;  %v4176_v12 = vrot.slane %v4174_v38, 4  ;;  %v6137_v14 = vunpack.c.l.b16 %v3437_v7 }
 0x2b7   :  { %v6804_v48 = vpack.c.b16 %v6760_v36, %v6759_v50  ;;  %v1333_v46 = vrot.slane %v11677_v51, 4  ;;  %v1337_v29 = vrot.slane %v1335_v26, 7  ;;  %v6249_v4 = vunpack.c.l.b16 %v4175_v60  ;;  %v1752_v7 = vld [vmem:[#allocation2 + $0x134] sm:$0x1] }
 0x2b8   :  { %13690 = vst [vmem:[#allocation15_spill] sm:$0xff] %v11741_v47  ;;  %v7757_v25 = vadd.f32 %v11404_v3, %v11639_v9  ;;  %v7593_v50 = vadd.f32 %v11701_v59, %v11520_v8  ;;  %v4178_v51 = vsel %vm9696_vm10, %v4176_v12, %v4177_v19  ;;  %v6189_v54 = vpack.c.b16 %v6138_v2, %v6137_v14  ;;  %v9459_v3 = vld [vmem:[#allocation2 + $0x114] sm:$0xff] }
 0x2b9   :  { %9260 = vmatmul.msk.bf16.gmra.mxu3 %vm6817_vm2, %v6804_v48  ;;  %v1340_v16 = vor.u32 %v1338_v23, %v1337_v29  ;;  %v1342_v43 = vrot.slane %v1337_v29, 4  ;;  %v6250_v36 = vunpack.c.l.b16 %v4178_v51  ;;  %v3449_v38 = vshrl.u32 %v11746_v30, 16  ;;  %v761_v2 = vld [vmem:[#allocation2 + $0x138] sm:$0x1] }
 0x2ba   :  { %v4810_v15 = vshrl.u32 %v4295_v33, 16  ;;  %v4813_v26 = vshll.u32 %v4295_v33, 16  ;;  %v4819_v60 = vshll.u32 %v11687_v62, 16  ;;  %v3458_v19 = vshll.u32 %v11471_v42, 16  ;;  %v1858_v33 = vld [vmem:[#allocation2 + $0x108] sm:$0xf] }
 0x2bb   :  { %v1341_v8 = vsel %vm9744_vm13, %v1333_v46, %v1340_v16  ;;  %v1753_v9 = vsel %vm9663_vm4, %v1342_v43, %v1752_v7  ;;  %v6293_v48 = vpack.c.b16 %v6250_v36, %v6249_v4  ;;  %v11768_v23 = vadd.f32 %v10937_v58, %v7757_v25  ;;  %v500_v46 = vpop.f32.mrf.mxu0  ;;  %v5722_v4 = vpop.permute.xlu0 %5721  ;;  %v9388_v25 = vld [vmem:[#allocation2 + $0x90] sm:$0xff] }
 0x2bc   :  { %v11771_v12 = vadd.f32 %v11533_v24, %v7593_v50  ;;  %1751 = vst.msk [vmem:[#allocation2 + $0x130] sm:$0xf] %vm673_vm5, %v1341_v8  ;;  %v4812_v14 = vrot.slane %v4810_v15, 4  ;;  %v4815_v29 = vrot.slane %v4813_v26, 5  ;;  %6535 = vrot.lane.b32.xlu1 %v9459_v3, %s9581_s22  ;;  %v7114_v7 = vsel %vm6817_vm2, %v6189_v54, %v6330_v45  ;;  %v11783_v15 = vld [vmem:[#allocation2 + $0x10c] sm:$0xf]  ;;  %v6522_v3 = vpop.permute.xlu1 %6521 }
 0x2bd   :  { %13691 = vst [vmem:[#allocation16_spill] sm:$0xff] %v11768_v23  ;;  %6345 = vrot.lane.b32.xlu0 %v6293_v48, %s9583_s1  ;;  %v4821_v51 = vrot.slane %v4819_v60, 5  ;;  %v4823_v58 = vshrl.u32 %v11687_v62, 16  ;;  %v4829_v24 = vshll.u32 %v11690_v21, 16  ;;  %v11779_v50 = vrot.slane %v3449_v38, 4  ;;  %v11791_v21 = vpop.f32.mrf.mxu1 }
 0x2be   :  { %1754 = vst [vmem:[#allocation2 + $0x134] sm:$0x1] %v1753_v9  ;;  %v3452_v16 = vshll.u32 %v11746_v30, 16  ;;  %v4816_v43 = vor.u32 %v4815_v29, %v4812_v14  ;;  %v501_v36 = vadd.f32 %v11554_v63, %v500_v46  ;;  %v11785_v45 = vrot.slane %v3458_v19, 5 }
 0x2bf   :  { %v13692_v54 = vshrl.u32 %v11471_v42, 16  ;;  %v4825_v60 = vrot.slane %v4823_v58, 4  ;;  %v762_v62 = vsel %vm9663_vm4, 0, %v761_v2  ;;  %v11794_v38 = vsel %vm6817_vm2, %v9388_v25, %v5722_v4  ;;  %v11800_v58 = vld [vmem:[#allocation2 + $0x110] sm:$0x1] }
 0x2c0   :  { %v4817_v30 = vrot.slane %v4816_v43, 4  ;;  %v591_v8 = vmul.f32 0.2, %v501_v36  ;;  %763 = vst [vmem:[#allocation2 + $0x138] sm:$0x1] %v762_v62  ;;  %v2398_v9 = vshrl.u32 %v1858_v33, 16  ;;  %v7197_v46 = vsel %vm6914_vm3, %v7114_v7, %v6522_v3  ;;  %v11805_v62 = vpop.f32.mrf.mxu2 }
 0x2c1   :  { %v3464_v26 = vrot.slane %v13692_v54, 4  ;;  %v4826_v48 = vor.u32 %v4825_v60, %v4821_v51  ;;  %v4831_v19 = vrot.slane %v4829_v24, 5  ;;  %v2401_v14 = vshll.u32 %v1858_v33, 16  ;;  %v6682_v33 = vpop.permute.xlu2 %6681 }
 0x2c2   :  { %v2407_v42 = vshll.u32 %v11783_v15, 16  ;;  %v4822_v29 = vsel %vm9791_vm0, %v4817_v30, %v4821_v51  ;;  %v655_v2 = vmax.f32 %v501_v36, %v591_v8  ;;  %v2400_v54 = vrot.slane %v2398_v9, 4  ;;  %v2704_v30 = vld [vmem:[#allocation2 + $0xfc] sm:$0xe] }
 0x2c3   :  { %v11802_v4 = vrot.slane %v3452_v16, 5  ;;  %v3465_v25 = vor.u32 %v3464_v26, %v11785_v45  ;;  %v4827_v43 = vrot.slane %v4826_v48, 4  ;;  %v2403_v24 = vrot.slane %v2401_v14, 5  ;;  %v502_v14 = vpop.f32.mrf.mxu0 }
 0x2c4   :  { %v6599_v60 = vunpack.c.l.b16 %v4822_v29  ;;  %v932_v6 = vpack.c.bf16 %v655_v2, %v655_v2  ;;  %v2409_v44 = vrot.slane %v2407_v42, 5  ;;  %v2411_v51 = vshrl.u32 %v11783_v15, 16 }
 0x2c5   :  { %v4832_v7 = vsel %vm9791_vm0, %v4827_v43, %v4831_v19  ;;  %v2404_v36 = vor.u32 %v2403_v24, %v2400_v54  ;;  %v2417_v16 = vshll.u32 %v11800_v58, 16  ;;  %v7273_v3 = vsel %vm6979_vm6, %v7197_v46, %v6682_v33  ;;  %v859_v46 = vld [vmem:[#allocation2 + $0x140] sm:$0x1] }
 0x2c6   :  { %v6600_v26 = vunpack.c.l.b16 %v4832_v7  ;;  %v1344_v8 = vshrl.u32 %v932_v6, 16  ;;  %v1347_v9 = vshll.u32 %v932_v6, 16  ;;  %v2413_v48 = vrot.slane %v2411_v51, 4  ;;  %7813 = vmatmul.bf16.gmra.mxu2 %v7273_v3  ;;  %v7605_v7 = vpop.f32.mrf.mxu1  ;;  %v5141_v3 = vld [vmem:[#allocation2 + $0x120] sm:$0xe] }
 0x2c7   :  { %v13693_v29 = vshll.u32 %v11483_v28, 16  ;;  %v2405_v2 = vrot.slane %v2404_v36, 4  ;;  %v2419_v47 = vrot.slane %v2417_v16, 5  ;;  %v8708_v23 = vrot.slane %v2704_v30, 9  ;;  %v1755_v24 = vld [vmem:[#allocation2 + $0x138] sm:$0xf] }
 0x2c8   :  { %v6644_v39 = vpack.c.b16 %v6600_v26, %v6599_v60  ;;  %v11816_v19 = vrot.slane %v1344_v8, 7  ;;  %v2414_v54 = vor.u32 %v2413_v48, %v2409_v44  ;;  %v2951_v43 = vrot.slane %v11643_v49, 5  ;;  %v11827_v16 = vld [vmem:[#allocation2 + $0x124] sm:$0xf]  ;;  %v11833_v26 = vld [vmem:[#allocation2 + $0x128] sm:$0x1] }
 0x2c9   :  { %v11814_v42 = vrot.slane %v13693_v29, 5  ;;  %v3455_v6 = vor.u32 %v11802_v4, %v11779_v50  ;;  %v2410_v33 = vsel %vm9791_vm0, %v2405_v2, %v2409_v44  ;;  %v2954_v28 = vrot.slane %v11663_v41, 5  ;;  %v7774_v2 = vpop.f32.mrf.mxu2 }
 0x2ca   :  { %v503_v51 = vadd.f32 %v11554_v63, %v502_v14  ;;  %v3466_v30 = vrot.slane %v3465_v25, 4  ;;  %6695 = vrot.lane.b32.xlu2 %v6644_v39, %s9582_s12  ;;  %v1349_v60 = vor.u32 %v1347_v9, %v11816_v19  ;;  %v2415_v36 = vrot.slane %v2414_v54, 4  ;;  %v5882_v9 = vpop.permute.xlu1 %5881  ;;  %v11840_v14 = vpop.f32.mrf.mxu3 }
 0x2cb   :  { %v5641_v49 = vunpack.c.l.b16 %v2410_v33  ;;  %v2952_v50 = vsel %vm9696_vm10, %v8708_v23, %v2951_v43  ;;  %v2953_v4 = vrot.slane %v2951_v43, 4  ;;  %v860_v41 = vsel %vm9676_vm7, 0, %v859_v46  ;;  %13694 = vst [vmem:[#allocation17_spill] sm:$0xff] %v11840_v14 }
 0x2cc   :  { %v592_v44 = vmul.f32 0.2, %v503_v51  ;;  %v1756_v39 = vsel %vm9727_vm11, %v1349_v60, %v1755_v24  ;;  %v2420_v25 = vsel %vm9791_vm0, %v2415_v36, %v2419_v47  ;;  %v5799_v8 = vunpack.c.l.b16 %v2952_v50  ;;  %861 = vst [vmem:[#allocation2 + $0x140] sm:$0x1] %v860_v41  ;;  %v3925_v60 = vld [vmem:[#allocation2 + $0x120] sm:$0xe] }
 0x2cd   :  { %v7606_v48 = vadd.f32 %v11701_v59, %v7605_v7  ;;  %1757 = vst [vmem:[#allocation2 + $0x138] sm:$0xf] %v1756_v39  ;;  %v5642_v23 = vunpack.c.l.b16 %v2420_v25  ;;  %v2955_v29 = vsel %vm9696_vm10, %v2953_v4, %v2954_v28  ;;  %v8773_v43 = vrot.slane %v5141_v3, 9  ;;  %v3083_v39 = vld [vmem:[#allocation2 + $0x124] sm:$0xf] }
 0x2ce   :  { %v656_v54 = vmax.f32 %v503_v51, %v592_v44  ;;  %v5800_v46 = vunpack.c.l.b16 %v2955_v29  ;;  %v5391_v47 = vrot.slane %v11827_v16, 5  ;;  %v5394_v33 = vrot.slane %v11833_v26, 5  ;;  %v3125_v25 = vld [vmem:[#allocation2 + $0x128] sm:$0x1]  ;;  %v6332_v29 = vpop.permute.xlu0 %6331 }
 0x2cf   :  { %v11844_v24 = vadd.f32 %v7774_v2, %v7606_v48  ;;  %v3456_v36 = vrot.slane %v3455_v6, 4  ;;  %v5685_v7 = vpack.c.b16 %v5642_v23, %v5641_v49  ;;  %v6940_v50 = vsel %vm6914_vm3, %v11794_v38, %v5882_v9  ;;  %v9427_v51 = vld [vmem:[#allocation2 + $0x108] sm:$0xff]  ;;  %v6074_v48 = vpop.permute.xlu2 %6073 }
 0x2d0   :  { %v933_v41 = vpack.c.bf16 %v656_v54, %v656_v54  ;;  %v3471_v28 = vsel %vm9791_vm0, %v3466_v30, %v11814_v42  ;;  %v5844_v3 = vpack.c.b16 %v5800_v46, %v5799_v8  ;;  %v5392_v4 = vsel %vm9696_vm10, %v8773_v43, %v5391_v47 }
 0x2d1   :  { %v5393_v44 = vrot.slane %v5391_v47, 4  ;;  %5737 = vrot.lane.b32.xlu0 %v5685_v7, %s9583_s1  ;;  %v6761_v38 = vunpack.c.l.b16 %v5392_v4  ;;  %v8742_v9 = vrot.slane %v3925_v60, 9  ;;  %v4181_v30 = vrot.slane %v3083_v39, 5  ;;  %v11865_v47 = vld [vmem:[#allocation2 + $0x100] sm:$0xf]  ;;  %v9428_v60 = vld [vmem:[#allocation2 + $0x114] sm:$0xff] }
 0x2d2   :  { %v1352_v6 = vshrl.u32 %v933_v41, 16  ;;  %v1355_v49 = vshll.u32 %v933_v41, 16  ;;  %6087 = vrot.lane.b32.xlu2 %v9427_v51, %s9582_s12  ;;  %5895 = vrot.lane.b32.xlu1 %v5844_v3, %s9581_s22  ;;  %v4184_v8 = vrot.slane %v3125_v25, 5  ;;  %v7017_v23 = vsel %vm6979_vm6, %v6940_v50, %v6074_v48  ;;  %v11874_v4 = vld [vmem:[#allocation2 + $0x104] sm:$0x1] }
 0x2d3   :  { %v5395_v42 = vsel %vm9696_vm10, %v5393_v44, %v5394_v33  ;;  %v3461_v2 = vsel %vm9791_vm0, %v3456_v36, %v11785_v45  ;;  %v1350_v54 = vrot.slane %v11816_v19, 4  ;;  %7644 = vmatmul.bf16.gmra.mxu1 %v7017_v23  ;;  %v6140_v7 = vunpack.c.l.b16 %v3471_v28  ;;  %v1759_v41 = vld [vmem:[#allocation2 + $0x140] sm:$0x1]  ;;  %v3068_v45 = vld [vmem:[#allocation2 + $0xb4] sm:$0xf] }
 0x2d4   :  { %v1354_v43 = vrot.slane %v1352_v6, 7  ;;  %v6762_v46 = vunpack.c.l.b16 %v5395_v42  ;;  %v4182_v33 = vsel %vm9696_vm10, %v8742_v9, %v4181_v30  ;;  %v4183_v39 = vrot.slane %v4181_v30, 4  ;;  %v4297_v36 = vld [vmem:[#allocation2 + $0x120] sm:$0xf]  ;;  %v11879_v6 = vpop.f32.mrf.mxu3 }
 0x2d5   :  { %v6251_v3 = vunpack.c.l.b16 %v4182_v33  ;;  %v11872_v19 = vadd.f32 %v11008_v10, %v11451_v56  ;;  %v6139_v28 = vunpack.c.l.b16 %v3461_v2  ;;  %13696 = vst [vmem:[#allocation19_spill] sm:$0xff] %v11879_v6  ;;  %v3473_v42 = vshrl.u32 %v3068_v45, 16  ;;  %v9460_v23 = vld [vmem:[#allocation2 + $0x120] sm:$0xff]  ;;  %v505_v33 = vpop.f32.mrf.mxu0 }
 0x2d6   :  { %v1357_v50 = vor.u32 %v1355_v49, %v1354_v43  ;;  %v1359_v25 = vrot.slane %v1354_v43, 4  ;;  %v6805_v51 = vpack.c.b16 %v6762_v46, %v6761_v38  ;;  %v4185_v48 = vsel %vm9696_vm10, %v4183_v39, %v4184_v8  ;;  %v764_v39 = vld [vmem:[#allocation2 + $0x144] sm:$0x1] }
 0x2d7   :  { %13695 = vst [vmem:[#allocation18_spill] sm:$0xff] %v11872_v19  ;;  %v11883_v49 = vadd.f32 %v11041_v37, %v11771_v12  ;;  %v6252_v56 = vunpack.c.l.b16 %v4185_v48  ;;  %v6190_v9 = vpack.c.b16 %v6140_v7, %v6139_v28  ;;  %v4834_v30 = vshrl.u32 %v4297_v36, 16 }
 0x2d8   :  { %v1358_v38 = vsel %vm9744_vm13, %v1350_v54, %v1357_v50  ;;  %v1760_v10 = vsel %vm9663_vm4, %v1359_v25, %v1759_v41  ;;  %9261 = vmatmul.msk.bf16.gmra.mxu3 %vm6817_vm2, %v6805_v51  ;;  %v4837_v8 = vshll.u32 %v4297_v36, 16  ;;  %v4843_v37 = vshll.u32 %v11827_v16, 16  ;;  %v5724_v25 = vpop.permute.xlu0 %5723  ;;  %v9389_v36 = vld [vmem:[#allocation2 + $0x9c] sm:$0xff] }
 0x2d9   :  { %1758 = vst.msk [vmem:[#allocation2 + $0x13c] sm:$0xf] %vm673_vm5, %v1358_v38  ;;  %v6294_v2 = vpack.c.b16 %v6252_v56, %v6251_v3  ;;  %v4847_v12 = vshrl.u32 %v11827_v16, 16  ;;  %v4853_v54 = vshll.u32 %v11833_v26, 16  ;;  %v11896_v43 = vadd.f32 %v11111_v22, %v11578_v61  ;;  %v1860_v3 = vld [vmem:[#allocation2 + $0x114] sm:$0xf] }
 0x2da   :  { %1761 = vst [vmem:[#allocation2 + $0x140] sm:$0x1] %v1760_v10  ;;  %v4836_v7 = vrot.slane %v4834_v30, 4  ;;  %v4839_v41 = vrot.slane %v4837_v8, 5  ;;  %6537 = vrot.lane.b32.xlu1 %v9460_v23, %s9581_s22  ;;  %v7117_v50 = vsel %vm6817_vm2, %v6190_v9, %v6332_v29  ;;  %v3476_v16 = vshll.u32 %v3068_v45, 16  ;;  %v6524_v8 = vpop.permute.xlu1 %6523  ;;  %v11911_v23 = vpop.f32.mrf.mxu1 }
 0x2db   :  { %6347 = vrot.lane.b32.xlu0 %v6294_v2, %s9583_s1  ;;  %v4845_v51 = vrot.slane %v4843_v37, 5  ;;  %v4849_v26 = vrot.slane %v4847_v12, 4  ;;  %v9542_v22 = vld [vmem:[#allocation2 + $0xb8] sm:$0xf]  ;;  %v13697_v28 = vshrl.u32 %v11486_v11, 16  ;;  %v506_v10 = vadd.f32 %v11554_v63, %v505_v33 }
 0x2dc   :  { %v3482_v61 = vshll.u32 %v9542_v22, 16  ;;  %v4840_v38 = vor.u32 %v4839_v41, %v4836_v7  ;;  %v11907_v56 = vld [vmem:[#allocation2 + $0x118] sm:$0xf]  ;;  %v3475_v29 = vrot.slane %v3473_v42, 4  ;;  %v4855_v30 = vrot.slane %v4853_v54, 5 }
 0x2dd   :  { %v11904_v48 = vrot.slane %v13697_v28, 4  ;;  %v4850_v9 = vor.u32 %v4849_v26, %v4845_v51  ;;  %v765_v45 = vsel %vm9663_vm4, 0, %v764_v39  ;;  %v11914_v2 = vsel %vm6817_vm2, %v9389_v36, %v5724_v25  ;;  %v11920_v22 = vld [vmem:[#allocation2 + $0x11c] sm:$0x1] }
 0x2de   :  { %v4841_v11 = vrot.slane %v4840_v38, 4  ;;  %v593_v37 = vmul.f32 0.2, %v506_v10  ;;  %766 = vst [vmem:[#allocation2 + $0x144] sm:$0x1] %v765_v45  ;;  %v2422_v12 = vshrl.u32 %v1860_v3, 16  ;;  %v7199_v26 = vsel %vm6914_vm3, %v7117_v50, %v6524_v8  ;;  %v6684_v45 = vpop.permute.xlu2 %6683 }
 0x2df   :  { %v3478_v7 = vrot.slane %v3476_v16, 5  ;;  %v4851_v41 = vrot.slane %v4850_v9, 4  ;;  %v2425_v33 = vshll.u32 %v1860_v3, 16  ;;  %v2431_v42 = vshll.u32 %v11907_v56, 16  ;;  %v11930_v3 = vpop.f32.mrf.mxu2  ;;  %v2705_v8 = vld [vmem:[#allocation2 + $0x108] sm:$0xe] }
 0x2e0   :  { %v4846_v54 = vsel %vm9791_vm0, %v4841_v11, %v4845_v51  ;;  %v657_v39 = vmax.f32 %v506_v10, %v593_v37  ;;  %v2424_v28 = vrot.slane %v2422_v12, 4  ;;  %v11922_v25 = vrot.slane %v3482_v61, 5 }
 0x2e1   :  { %v13698_v36 = vshll.u32 %v11588_v32, 16  ;;  %v4856_v16 = vsel %vm9791_vm0, %v4851_v41, %v4855_v30  ;;  %v2427_v9 = vrot.slane %v2425_v33, 5  ;;  %v6601_v51 = vunpack.c.l.b16 %v4846_v54  ;;  %v507_v41 = vpop.f32.mrf.mxu0  ;;  %v862_v33 = vld [vmem:[#allocation2 + $0x14c] sm:$0x1] }
 0x2e2   :  { %v6602_v11 = vunpack.c.l.b16 %v4856_v16  ;;  %v934_v50 = vpack.c.bf16 %v657_v39, %v657_v39  ;;  %v2433_v10 = vrot.slane %v2431_v42, 5  ;;  %v2435_v61 = vshrl.u32 %v11907_v56, 16 }
 0x2e3   :  { %v11926_v38 = vrot.slane %v13698_v36, 5  ;;  %v2428_v37 = vor.u32 %v2427_v9, %v2424_v28  ;;  %v2441_v12 = vshll.u32 %v11920_v22, 16  ;;  %v7276_v32 = vsel %vm6979_vm6, %v7199_v26, %v6684_v45 }
 0x2e4   :  { %v3479_v36 = vor.u32 %v3478_v7, %v3475_v29  ;;  %v6645_v46 = vpack.c.b16 %v6602_v11, %v6601_v51  ;;  %v1361_v44 = vshrl.u32 %v934_v50, 16  ;;  %v1364_v30 = vshll.u32 %v934_v50, 16  ;;  %7818 = vmatmul.bf16.gmra.mxu2 %v7276_v32  ;;  %v11942_v7 = vld [vmem:[#allocation2 + $0x130] sm:$0xf] }
 0x2e5   :  { %v3489_v54 = vor.u32 %v11904_v48, %v11922_v25  ;;  %v2429_v39 = vrot.slane %v2428_v37, 4  ;;  %v2437_v42 = vrot.slane %v2435_v61, 4  ;;  %v8709_v16 = vrot.slane %v2705_v8, 9  ;;  %v1762_v45 = vld [vmem:[#allocation2 + $0x144] sm:$0xf] }
 0x2e6   :  { %6697 = vrot.lane.b32.xlu2 %v6645_v46, %s9582_s12  ;;  %v11938_v28 = vrot.slane %v1361_v44, 7  ;;  %v2443_v9 = vrot.slane %v2441_v12, 5  ;;  %v2958_v26 = vrot.slane %v11783_v15, 5  ;;  %v2961_v29 = vrot.slane %v11800_v58, 5  ;;  %v7610_v46 = vpop.f32.mrf.mxu1  ;;  %v5142_v44 = vld [vmem:[#allocation2 + $0x12c] sm:$0xe] }
 0x2e7   :  { %v2434_v51 = vsel %vm9791_vm0, %v2429_v39, %v2433_v10  ;;  %v2438_v11 = vor.u32 %v2437_v42, %v2433_v10  ;;  %v508_v48 = vadd.f32 %v11554_v63, %v507_v41  ;;  %v863_v50 = vsel %vm9676_vm7, 0, %v862_v33  ;;  %v11954_v61 = vld [vmem:[#allocation2 + $0x134] sm:$0x1]  ;;  %v11956_v41 = vpop.f32.mrf.mxu3 }
 0x2e8   :  { %v11949_v8 = vrot.slane %v3479_v36, 4  ;;  %v1366_v15 = vor.u32 %v1364_v30, %v11938_v28  ;;  %v5643_v37 = vunpack.c.l.b16 %v2434_v51  ;;  %v2959_v58 = vsel %vm9696_vm10, %v8709_v16, %v2958_v26  ;;  %864 = vst [vmem:[#allocation2 + $0x14c] sm:$0x1] %v863_v50  ;;  %v5884_v36 = vpop.permute.xlu1 %5883  ;;  %v7779_v51 = vpop.f32.mrf.mxu2 }
 0x2e9   :  { %v2439_v12 = vrot.slane %v2438_v11, 4  ;;  %v2960_v10 = vrot.slane %v2958_v26, 4  ;;  %v5801_v32 = vunpack.c.l.b16 %v2959_v58  ;;  %v594_v63 = vmul.f32 0.2, %v508_v48  ;;  %13699 = vst [vmem:[#allocation20_spill] sm:$0xff] %v11956_v41 }
 0x2ea   :  { %v1763_v33 = vsel %vm9727_vm11, %v1366_v15, %v1762_v45  ;;  %v7611_v39 = vadd.f32 %v11701_v59, %v7610_v46  ;;  %v8774_v30 = vrot.slane %v5142_v44, 9  ;;  %v5398_v42 = vrot.slane %v11942_v7, 5  ;;  %v3926_v44 = vld [vmem:[#allocation2 + $0x12c] sm:$0xe] }
 0x2eb   :  { %1764 = vst [vmem:[#allocation2 + $0x144] sm:$0xf] %v1763_v33  ;;  %v2444_v16 = vsel %vm9791_vm0, %v2439_v12, %v2443_v9  ;;  %v2962_v26 = vsel %vm9696_vm10, %v2960_v10, %v2961_v29  ;;  %v658_v11 = vmax.f32 %v508_v48, %v594_v63  ;;  %v5401_v50 = vrot.slane %v11954_v61, 5  ;;  %v3085_v29 = vld [vmem:[#allocation2 + $0x130] sm:$0xf] }
 0x2ec   :  { %v5644_v58 = vunpack.c.l.b16 %v2444_v16  ;;  %v5802_v45 = vunpack.c.l.b16 %v2962_v26  ;;  %v11967_v15 = vadd.f32 %v7779_v51, %v7611_v39  ;;  %v5399_v46 = vsel %vm9696_vm10, %v8774_v30, %v5398_v42  ;;  %v3126_v10 = vld [vmem:[#allocation2 + $0x134] sm:$0x1]  ;;  %v6076_v26 = vpop.permute.xlu2 %6075 }
 0x2ed   :  { %v3490_v33 = vrot.slane %v3489_v54, 4  ;;  %v6942_v9 = vsel %vm6914_vm3, %v11914_v2, %v5884_v36  ;;  %v935_v12 = vpack.c.bf16 %v658_v11, %v658_v11  ;;  %v5400_v14 = vrot.slane %v5398_v42, 4  ;;  %v11989_v11 = vld [vmem:[#allocation2 + $0x110] sm:$0x1] }
 0x2ee   :  { %v7598_v48 = vadd.f32 %v11701_v59, %v11650_v20  ;;  %v5686_v63 = vpack.c.b16 %v5644_v58, %v5643_v37  ;;  %6089 = vrot.lane.b32.xlu2 %v9428_v60, %s9582_s12  ;;  %v5845_v39 = vpack.c.b16 %v5802_v45, %v5801_v32  ;;  %v6763_v16 = vunpack.c.l.b16 %v5399_v46 }
 0x2ef   :  { %v1369_v51 = vshrl.u32 %v935_v12, 16  ;;  %v1372_v30 = vshll.u32 %v935_v12, 16  ;;  %v5402_v54 = vsel %vm9696_vm10, %v5400_v14, %v5401_v50  ;;  %v8743_v6 = vrot.slane %v3926_v44, 9  ;;  %v1766_v58 = vld [vmem:[#allocation2 + $0x14c] sm:$0x1]  ;;  %v11997_v12 = vpop.f32.mrf.mxu3 }
 0x2f0   :  { %5739 = vrot.lane.b32.xlu0 %v5686_v63, %s9583_s1  ;;  %5897 = vrot.lane.b32.xlu1 %v5845_v39, %s9581_s22  ;;  %v6764_v2 = vunpack.c.l.b16 %v5402_v54  ;;  %v4188_v36 = vrot.slane %v3085_v29, 5  ;;  %v4191_v42 = vrot.slane %v3126_v10, 5  ;;  %v7020_v20 = vsel %vm6979_vm6, %v6942_v9, %v6076_v26  ;;  %v4299_v9 = vld [vmem:[#allocation2 + $0x12c] sm:$0xf]  ;;  %13700 = vst [vmem:[#allocation21_spill] sm:$0xff] %v11997_v12  ;;  %v6334_v39 = vpop.permute.xlu0 %6333 }
 0x2f1   :  { %v3485_v60 = vsel %vm9791_vm0, %v11949_v8, %v11922_v25  ;;  %v3495_v37 = vsel %vm9791_vm0, %v3490_v33, %v11926_v38  ;;  %v1367_v14 = vrot.slane %v11938_v28, 4  ;;  %v1371_v32 = vrot.slane %v1369_v51, 7  ;;  %7649 = vmatmul.bf16.gmra.mxu1 %v7020_v20  ;;  %v3070_v28 = vld [vmem:[#allocation2 + $0xc0] sm:$0xf]  ;;  %v9461_v51 = vld [vmem:[#allocation2 + $0x12c] sm:$0xff] }
 0x2f2   :  { %v6806_v45 = vpack.c.b16 %v6764_v2, %v6763_v16  ;;  %v4189_v46 = vsel %vm9696_vm10, %v8743_v6, %v4188_v36  ;;  %v4190_v44 = vrot.slane %v4188_v36, 4  ;;  %v11995_v25 = vadd.f32 %v11660_v55, %v7598_v48 }
 0x2f3   :  { %v1374_v8 = vor.u32 %v1372_v30, %v1371_v32  ;;  %v1376_v38 = vrot.slane %v1371_v32, 4  ;;  %v6253_v33 = vunpack.c.l.b16 %v4189_v46  ;;  %v7603_v29 = vadd.f32 %v11701_v59, %v11791_v21  ;;  %v767_v30 = vld [vmem:[#allocation2 + $0x150] sm:$0x1]  ;;  %v510_v46 = vpop.f32.mrf.mxu0 }
 0x2f4   :  { %v6141_v10 = vunpack.c.l.b16 %v3485_v60  ;;  %v6142_v63 = vunpack.c.l.b16 %v3495_v37  ;;  %9262 = vmatmul.msk.bf16.gmra.mxu3 %vm6817_vm2, %v6806_v45  ;;  %v4192_v6 = vsel %vm9696_vm10, %v4190_v44, %v4191_v42  ;;  %v4858_v26 = vshrl.u32 %v4299_v9, 16 }
 0x2f5   :  { %v1375_v55 = vsel %vm9744_vm13, %v1367_v14, %v1374_v8  ;;  %v1767_v48 = vsel %vm9663_vm4, %v1376_v38, %v1766_v58  ;;  %v6254_v16 = vunpack.c.l.b16 %v4192_v6  ;;  %v3497_v21 = vshrl.u32 %v3070_v28, 16  ;;  %v1862_v8 = vld [vmem:[#allocation2 + $0x120] sm:$0xf] }
 0x2f6   :  { %1765 = vst.msk [vmem:[#allocation2 + $0x148] sm:$0xf] %vm673_vm5, %v1375_v55  ;;  %v3500_v54 = vshll.u32 %v3070_v28, 16  ;;  %v4861_v2 = vshll.u32 %v4299_v9, 16  ;;  %v4867_v36 = vshll.u32 %v11942_v7, 16  ;;  %v4860_v20 = vrot.slane %v4858_v26, 4  ;;  %v6526_v26 = vpop.permute.xlu1 %6525 }
 0x2f7   :  { %1768 = vst [vmem:[#allocation2 + $0x14c] sm:$0x1] %v1767_v48  ;;  %v6295_v42 = vpack.c.b16 %v6254_v16, %v6253_v33  ;;  %v4871_v60 = vshrl.u32 %v11942_v7, 16  ;;  %v4877_v37 = vshll.u32 %v11954_v61, 16  ;;  %v12014_v32 = vadd.f32 %v11805_v62, %v7603_v29  ;;  %v12025_v61 = vld [vmem:[%s13653_s2] ss:$0 sm:$0xff] }
 0x2f8   :  { %v4863_v58 = vrot.slane %v4861_v2, 5  ;;  %v4869_v45 = vrot.slane %v4867_v36, 5  ;;  %6539 = vrot.lane.b32.xlu1 %v9461_v51, %s9581_s22  ;;  %v6191_v44 = vpack.c.b16 %v6142_v63, %v6141_v10  ;;  %v12019_v9 = vadd.f32 %v11701_v59, %v11911_v23  ;;  %v9545_v33 = vld [vmem:[#allocation2 + $0xc4] sm:$0xf] }
 0x2f9   :  { %6349 = vrot.lane.b32.xlu0 %v6295_v42, %s9583_s1  ;;  %v4873_v7 = vrot.slane %v4871_v60, 4  ;;  %v511_v62 = vadd.f32 %v12025_v61, %v510_v46  ;;  %v3499_v38 = vrot.slane %v3497_v21, 4  ;;  %v3506_v28 = vshll.u32 %v9545_v33, 16  ;;  %v12030_v59 = vld [vmem:[#allocation2 + $0x124] sm:$0xf]  ;;  %v5726_v46 = vpop.permute.xlu0 %5725 }
 0x2fa   :  { %v4864_v29 = vor.u32 %v4863_v58, %v4860_v20  ;;  %v768_v10 = vsel %vm9663_vm4, 0, %v767_v30  ;;  %v3502_v23 = vrot.slane %v3500_v54, 5  ;;  %v4879_v6 = vrot.slane %v4877_v37, 5  ;;  %v12040_v37 = vld [vmem:[#allocation2 + $0x128] sm:$0x1] }
 0x2fb   :  { %v4874_v63 = vor.u32 %v4873_v7, %v4869_v45  ;;  %v595_v55 = vmul.f32 0.2, %v511_v62  ;;  %769 = vst [vmem:[#allocation2 + $0x150] sm:$0x1] %v768_v10  ;;  %v7120_v48 = vsel %vm6817_vm2, %v6191_v44, %v6334_v39  ;;  %v2446_v51 = vshrl.u32 %v1862_v8, 16 }
 0x2fc   :  { %v4865_v16 = vrot.slane %v4864_v29, 4  ;;  %v2449_v2 = vshll.u32 %v1862_v8, 16  ;;  %v13701_v21 = vshrl.u32 %v11610_v1, 16  ;;  %v2455_v30 = vshll.u32 %v12030_v59, 16 }
 0x2fd   :  { %v4875_v42 = vrot.slane %v4874_v63, 4  ;;  %v659_v20 = vmax.f32 %v511_v62, %v595_v55  ;;  %v12036_v60 = vrot.slane %v3506_v28, 5  ;;  %v2448_v58 = vrot.slane %v2446_v51, 4  ;;  %v9390_v62 = vld [vmem:[#allocation2 + $0xa8] sm:$0xff]  ;;  %v2706_v63 = vld [vmem:[#allocation2 + $0x114] sm:$0xe]  ;;  %v6686_v55 = vpop.permute.xlu2 %6685 }
 0x2fe   :  { %v3512_v36 = vrot.slane %v13701_v21, 4  ;;  %v4870_v54 = vsel %vm9791_vm0, %v4865_v16, %v4869_v45  ;;  %v2451_v39 = vrot.slane %v2449_v2, 5  ;;  %v3503_v44 = vor.u32 %v3502_v23, %v3499_v38 }
 0x2ff   :  { %v4880_v7 = vsel %vm9791_vm0, %v4875_v42, %v4879_v6  ;;  %v7201_v1 = vsel %vm6914_vm3, %v7120_v48, %v6526_v26  ;;  %v936_v8 = vpack.c.bf16 %v659_v20, %v659_v20  ;;  %v6603_v33 = vunpack.c.l.b16 %v4870_v54  ;;  %v865_v54 = vld [vmem:[#allocation2 + $0x158] sm:$0x1] }
 0x300   :  { %v6604_v29 = vunpack.c.l.b16 %v4880_v7  ;;  %v2452_v28 = vor.u32 %v2451_v39, %v2448_v58  ;;  %v2457_v10 = vrot.slane %v2455_v30, 5  ;;  %v2459_v51 = vshrl.u32 %v12030_v59, 16  ;;  %v512_v30 = vpop.f32.mrf.mxu0 }
 0x301   :  { %v1378_v45 = vshrl.u32 %v936_v8, 16  ;;  %v1381_v16 = vshll.u32 %v936_v8, 16  ;;  %v2465_v2 = vshll.u32 %v12040_v37, 16  ;;  %v6862_v38 = vsel %vm6817_vm2, %v9390_v62, %v5726_v46 }
 0x302   :  { %v6646_v23 = vpack.c.b16 %v6604_v29, %v6603_v33  ;;  %v2453_v6 = vrot.slane %v2452_v28, 4  ;;  %v7279_v48 = vsel %vm6979_vm6, %v7201_v1, %v6686_v55  ;;  %v3513_v26 = vor.u32 %v3512_v36, %v12036_v60  ;;  %v1769_v46 = vld [vmem:[#allocation2 + $0x150] sm:$0xf]  ;;  %v5143_v28 = vld [vmem:[#allocation2 + $0x138] sm:$0xe] }
 0x303   :  { %v12050_v21 = vrot.slane %v1378_v45, 7  ;;  %v2461_v42 = vrot.slane %v2459_v51, 4  ;;  %7823 = vmatmul.bf16.gmra.mxu2 %v7279_v48  ;;  %v8710_v20 = vrot.slane %v2706_v63, 9  ;;  %v12052_v58 = vrot.slane %v3503_v44, 4  ;;  %v12064_v44 = vld [vmem:[#allocation2 + $0x13c] sm:$0xf]  ;;  %v12073_v45 = vpop.f32.mrf.mxu3 }
 0x304   :  { %v13702_v39 = vshll.u32 %v11613_v17, 16  ;;  %6699 = vrot.lane.b32.xlu2 %v6646_v23, %s9582_s12  ;;  %v2965_v1 = vrot.slane %v11907_v56, 5  ;;  %v2968_v36 = vrot.slane %v11920_v22, 5  ;;  %v2458_v62 = vsel %vm9791_vm0, %v2453_v6, %v2457_v10  ;;  %v12071_v22 = vld [vmem:[#allocation2 + $0x140] sm:$0x1]  ;;  %13703 = vst [vmem:[#allocation22_spill] sm:$0xff] %v12073_v45  ;;  %v5886_v6 = vpop.permute.xlu1 %5885 }
 0x305   :  { %v1383_v8 = vor.u32 %v1381_v16, %v12050_v21  ;;  %v2462_v33 = vor.u32 %v2461_v42, %v2457_v10  ;;  %v2467_v29 = vrot.slane %v2465_v2, 5  ;;  %v513_v55 = vadd.f32 %v12025_v61, %v512_v30 }
 0x306   :  { %v12056_v7 = vrot.slane %v13702_v39, 5  ;;  %v2966_v17 = vsel %vm9696_vm10, %v8710_v20, %v2965_v1  ;;  %v2967_v63 = vrot.slane %v2965_v1, 4  ;;  %v866_v56 = vsel %vm9676_vm7, 0, %v865_v54 }
 0x307   :  { %v3514_v16 = vrot.slane %v3513_v26, 4  ;;  %v1770_v10 = vsel %vm9727_vm11, %v1383_v8, %v1769_v46  ;;  %v2463_v51 = vrot.slane %v2462_v33, 4  ;;  %v5803_v2 = vunpack.c.l.b16 %v2966_v17  ;;  %867 = vst [vmem:[#allocation2 + $0x158] sm:$0x1] %v866_v56  ;;  %v3087_v46 = vld [vmem:[#allocation2 + $0x13c] sm:$0xf] }
 0x308   :  { %1771 = vst [vmem:[#allocation2 + $0x150] sm:$0xf] %v1770_v10  ;;  %v2969_v23 = vsel %vm9696_vm10, %v2967_v63, %v2968_v36  ;;  %v596_v48 = vmul.f32 0.2, %v513_v55  ;;  %v8775_v42 = vrot.slane %v5143_v28, 9  ;;  %v5405_v20 = vrot.slane %v12064_v44, 5 }
 0x309   :  { %v2468_v30 = vsel %vm9791_vm0, %v2463_v51, %v2467_v29  ;;  %v5645_v54 = vunpack.c.l.b16 %v2458_v62  ;;  %v5804_v26 = vunpack.c.l.b16 %v2969_v23  ;;  %v5408_v39 = vrot.slane %v12071_v22, 5  ;;  %v9429_v8 = vld [vmem:[#allocation2 + $0x120] sm:$0xff]  ;;  %v3927_v56 = vld [vmem:[#allocation2 + $0x138] sm:$0xe]  ;;  %v7612_v29 = vpop.f32.mrf.mxu1 }
 0x30a   :  { %v5646_v1 = vunpack.c.l.b16 %v2468_v30  ;;  %v660_v33 = vmax.f32 %v513_v55, %v596_v48  ;;  %v5406_v17 = vsel %vm9696_vm10, %v8775_v42, %v5405_v20  ;;  %v5407_v36 = vrot.slane %v5405_v20, 4  ;;  %v3127_v63 = vld [vmem:[#allocation2 + $0x140] sm:$0x1]  ;;  %v3072_v23 = vld [vmem:[#allocation2 + $0xe4] sm:$0xf]  ;;  %v6078_v30 = vpop.permute.xlu2 %6077 }
 0x30b   :  { %v3509_v28 = vsel %vm9791_vm0, %v12052_v58, %v12036_v60  ;;  %v5846_v62 = vpack.c.b16 %v5804_v26, %v5803_v2  ;;  %v6944_v10 = vsel %vm6914_vm3, %v6862_v38, %v5886_v6  ;;  %v6765_v51 = vunpack.c.l.b16 %v5406_v17 }
 0x30c   :  { %v3519_v55 = vsel %vm9791_vm0, %v3514_v16, %v12056_v7  ;;  %v5687_v48 = vpack.c.b16 %v5646_v1, %v5645_v54  ;;  %6091 = vrot.lane.b32.xlu2 %v9429_v8, %s9582_s12  ;;  %v937_v42 = vpack.c.bf16 %v660_v33, %v660_v33  ;;  %v5409_v20 = vsel %vm9696_vm10, %v5407_v36, %v5408_v39 }
 0x30d   :  { %5899 = vrot.lane.b32.xlu1 %v5846_v62, %s9581_s22  ;;  %v6766_v60 = vunpack.c.l.b16 %v5409_v20  ;;  %v8744_v58 = vrot.slane %v3927_v56, 9  ;;  %v4195_v2 = vrot.slane %v3087_v46, 5  ;;  %v4198_v38 = vrot.slane %v3127_v63, 5  ;;  %v12105_v46 = vld [vmem:[%s13656_s4] ss:$0 sm:$0xff]  ;;  %v12108_v62 = vpop.f32.mrf.mxu3 }
 0x30e   :  { %5741 = vrot.lane.b32.xlu0 %v5687_v48, %s9583_s1  ;;  %v1386_v6 = vshrl.u32 %v937_v42, 16  ;;  %v1389_v26 = vshll.u32 %v937_v42, 16  ;;  %v7023_v7 = vsel %vm6979_vm6, %v6944_v10, %v6078_v30  ;;  %v3521_v16 = vshrl.u32 %v3072_v23, 16  ;;  %v4301_v56 = vld [vmem:[#allocation2 + $0x138] sm:$0xf]  ;;  %13704 = vst [vmem:[#allocation23_spill] sm:$0xff] %v12108_v62  ;;  %v7781_v48 = vpop.f32.mrf.mxu2 }
 0x30f   :  { %v6807_v54 = vpack.c.b16 %v6766_v60, %v6765_v51  ;;  %v4196_v1 = vsel %vm9696_vm10, %v8744_v58, %v4195_v2  ;;  %v4197_v8 = vrot.slane %v4195_v2, 4  ;;  %7654 = vmatmul.bf16.gmra.mxu1 %v7023_v7  ;;  %v3524_v39 = vshll.u32 %v3072_v23, 16  ;;  %v1773_v42 = vld [vmem:[#allocation2 + $0x158] sm:$0x1]  ;;  %v9547_v23 = vld [vmem:[#allocation2 + $0xe8] sm:$0xf]  ;;  %v6336_v2 = vpop.permute.xlu0 %6335 }
 0x310   :  { %v1384_v33 = vrot.slane %v12050_v21, 4  ;;  %v7613_v17 = vadd.f32 %v12105_v46, %v7612_v29  ;;  %v1388_v36 = vrot.slane %v1386_v6, 7  ;;  %v6255_v63 = vunpack.c.l.b16 %v4196_v1 }
 0x311   :  { %v6143_v10 = vunpack.c.l.b16 %v3509_v28  ;;  %v6144_v51 = vunpack.c.l.b16 %v3519_v55  ;;  %9263 = vmatmul.msk.bf16.gmra.mxu3 %vm6817_vm2, %v6807_v54  ;;  %v4199_v21 = vsel %vm9696_vm10, %v4197_v8, %v4198_v38  ;;  %v3530_v20 = vshll.u32 %v9547_v23, 16  ;;  %v9462_v55 = vld [vmem:[#allocation2 + $0x138] sm:$0xff] }
 0x312   :  { %v1391_v30 = vor.u32 %v1389_v26, %v1388_v36  ;;  %v1393_v60 = vrot.slane %v1388_v36, 4  ;;  %v6256_v58 = vunpack.c.l.b16 %v4199_v21  ;;  %v3523_v29 = vrot.slane %v3521_v16, 4  ;;  %v770_v23 = vld [vmem:[#allocation2 + $0x15c] sm:$0x1]  ;;  %v7615_v26 = vpop.f32.mrf.mxu1 }
 0x313   :  { %v3526_v6 = vrot.slane %v3524_v39, 5  ;;  %v4882_v7 = vshrl.u32 %v4301_v56, 16  ;;  %v4885_v1 = vshll.u32 %v4301_v56, 16  ;;  %v4891_v28 = vshll.u32 %v12064_v44, 16 }
 0x314   :  { %v7782_v14 = vadd.f32 %v7781_v48, %v7613_v17  ;;  %v1392_v54 = vsel %vm9744_vm13, %v1384_v33, %v1391_v30  ;;  %v1774_v38 = vsel %vm9663_vm4, %v1393_v60, %v1773_v42  ;;  %v6296_v8 = vpack.c.b16 %v6256_v58, %v6255_v63  ;;  %v515_v42 = vpop.f32.mrf.mxu0  ;;  %v1864_v58 = vld [vmem:[#allocation2 + $0x12c] sm:$0xf] }
 0x315   :  { %1772 = vst.msk [vmem:[#allocation2 + $0x154] sm:$0xf] %vm673_vm5, %v1392_v54  ;;  %v12119_v16 = vrot.slane %v3530_v20, 5  ;;  %v13705_v39 = vshrl.u32 %v11616_v0, 16  ;;  %v4884_v56 = vrot.slane %v4882_v7, 4  ;;  %v4887_v21 = vrot.slane %v4885_v1, 5  ;;  %6541 = vrot.lane.b32.xlu1 %v9462_v55, %s9581_s22  ;;  %v6528_v55 = vpop.permute.xlu1 %6527 }
 0x316   :  { %v6192_v17 = vpack.c.b16 %v6144_v51, %v6143_v10  ;;  %1775 = vst [vmem:[#allocation2 + $0x158] sm:$0x1] %v1774_v38  ;;  %6351 = vrot.lane.b32.xlu0 %v6296_v8, %s9583_s1  ;;  %v4893_v33 = vrot.slane %v4891_v28, 5  ;;  %v4895_v63 = vshrl.u32 %v12064_v44, 16  ;;  %v4901_v48 = vshll.u32 %v12071_v22, 16  ;;  %v13706_v51 = vld [vmem:[#allocation9_spill] sm:$0xff] }
 0x317   :  { %v3536_v36 = vrot.slane %v13705_v39, 4  ;;  %v3527_v30 = vor.u32 %v3526_v6, %v3523_v29  ;;  %v4888_v20 = vor.u32 %v4887_v21, %v4884_v56  ;;  %v516_v60 = vadd.f32 %v12025_v61, %v515_v42  ;;  %v12130_v7 = vld [vmem:[#allocation2 + $0x130] sm:$0xf]  ;;  %v7784_v56 = vpop.f32.mrf.mxu2  ;;  %v13707_v21 = vld [vmem:[#allocation12_spill] sm:$0xff] }
 0x318   :  { %v771_v0 = vsel %vm9663_vm4, 0, %v770_v23  ;;  %v7123_v10 = vsel %vm6817_vm2, %v6192_v17, %v6336_v2  ;;  %v12134_v1 = vadd.f32 %v13706_v51, %v7782_v14  ;;  %v7616_v44 = vadd.f32 %v12105_v46, %v7615_v26 }
 0x319   :  { %v4897_v28 = vrot.slane %v4895_v63, 4  ;;  %772 = vst [vmem:[#allocation2 + $0x15c] sm:$0x1] %v771_v0  ;;  %v3537_v22 = vor.u32 %v3536_v36, %v12119_v16  ;;  %v4889_v29 = vrot.slane %v4888_v20, 4  ;;  %v4903_v6 = vrot.slane %v4901_v48, 5 }
 0x31a   :  { %v597_v54 = vmul.f32 0.2, %v516_v60  ;;  %v2470_v8 = vshrl.u32 %v1864_v58, 16  ;;  %v2473_v23 = vshll.u32 %v1864_v58, 16  ;;  %v2479_v39 = vshll.u32 %v12130_v7, 16  ;;  %v5728_v58 = vpop.permute.xlu0 %5727 }
 0x31b   :  { %v4898_v38 = vor.u32 %v4897_v28, %v4893_v33  ;;  %v3528_v2 = vrot.slane %v3527_v30, 4  ;;  %v13708_v14 = vshll.u32 %v13707_v21, 16  ;;  %v4894_v26 = vsel %vm9791_vm0, %v4889_v29, %v4893_v33  ;;  %v12145_v36 = vld [vmem:[#allocation2 + $0x134] sm:$0x1]  ;;  %v6688_v21 = vpop.permute.xlu2 %6687 }
 0x31c   :  { %v661_v63 = vmax.f32 %v516_v60, %v597_v54  ;;  %v7203_v42 = vsel %vm6914_vm3, %v7123_v10, %v6528_v55  ;;  %v2472_v20 = vrot.slane %v2470_v8, 4  ;;  %v2475_v0 = vrot.slane %v2473_v23, 5  ;;  %v2707_v54 = vld [vmem:[#allocation2 + $0x120] sm:$0xe] }
 0x31d   :  { %v12141_v17 = vrot.slane %v13708_v14, 5  ;;  %v4899_v48 = vrot.slane %v4898_v38, 4  ;;  %v12148_v51 = vrot.slane %v3537_v22, 4  ;;  %v6605_v28 = vunpack.c.l.b16 %v4894_v26  ;;  %v9391_v14 = vld [vmem:[#allocation2 + $0xb4] sm:$0xff] }
 0x31e   :  { %v938_v30 = vpack.c.bf16 %v661_v63, %v661_v63  ;;  %v2481_v50 = vrot.slane %v2479_v39, 5  ;;  %v2476_v33 = vor.u32 %v2475_v0, %v2472_v20  ;;  %v2483_v60 = vshrl.u32 %v12130_v7, 16  ;;  %v12159_v39 = vpop.f32.mrf.mxu1  ;;  %v517_v0 = vpop.f32.mrf.mxu0 }
 0x31f   :  { %v4904_v41 = vsel %vm9791_vm0, %v4899_v48, %v4903_v6  ;;  %v2489_v29 = vshll.u32 %v12145_v36, 16  ;;  %v7282_v22 = vsel %vm6979_vm6, %v7203_v42, %v6688_v21  ;;  %v6865_v8 = vsel %vm6817_vm2, %v9391_v14, %v5728_v58 }
 0x320   :  { %v6606_v10 = vunpack.c.l.b16 %v4904_v41  ;;  %v1395_v55 = vshrl.u32 %v938_v30, 16  ;;  %v1398_v38 = vshll.u32 %v938_v30, 16  ;;  %v3533_v23 = vsel %vm9791_vm0, %v3528_v2, %v12119_v16  ;;  %7828 = vmatmul.bf16.gmra.mxu2 %v7282_v22  ;;  %v868_v30 = vld [vmem:[#allocation2 + $0x164] sm:$0x1]  ;;  %v1776_v58 = vld [vmem:[#allocation2 + $0x15c] sm:$0xf]  ;;  %v5888_v22 = vpop.permute.xlu1 %5887 }
 0x321   :  { %v2477_v6 = vrot.slane %v2476_v33, 4  ;;  %v2485_v26 = vrot.slane %v2483_v60, 4  ;;  %v8711_v20 = vrot.slane %v2707_v54, 9  ;;  %v2972_v41 = vrot.slane %v12030_v59, 5  ;;  %v5144_v2 = vld [vmem:[#allocation2 + $0x144] sm:$0xe]  ;;  %v12179_v60 = vpop.f32.mrf.mxu3 }
 0x322   :  { %v6647_v63 = vpack.c.b16 %v6606_v10, %v6605_v28  ;;  %v12161_v48 = vrot.slane %v1395_v55, 7  ;;  %v12164_v42 = vadd.f32 %v7784_v56, %v7616_v44  ;;  %v2491_v14 = vrot.slane %v2489_v29, 5  ;;  %v12177_v56 = vld [vmem:[#allocation2 + $0x148] sm:$0xf]  ;;  %13709 = vst [vmem:[#allocation9_spill] sm:$0xff] %v12179_v60  ;;  %v12186_v10 = vpop.f32.mrf.mxu2 }
 0x323   :  { %v2486_v21 = vor.u32 %v2485_v26, %v2481_v50  ;;  %v2975_v16 = vrot.slane %v12040_v37, 5  ;;  %v3543_v28 = vsel %vm9791_vm0, %v12148_v51, %v12141_v17  ;;  %v12171_v33 = vunpack.c.l.b16 %v3533_v23  ;;  %v12184_v51 = vld [vmem:[#allocation2 + $0x14c] sm:$0x1]  ;;  %v6080_v45 = vpop.permute.xlu2 %6079 }
 0x324   :  { %6701 = vrot.lane.b32.xlu2 %v6647_v63, %s9582_s12  ;;  %v1400_v59 = vor.u32 %v1398_v38, %v12161_v48  ;;  %v2973_v44 = vsel %vm9696_vm10, %v8711_v20, %v2972_v41  ;;  %v2482_v37 = vsel %vm9791_vm0, %v2477_v6, %v2481_v50  ;;  %v2974_v54 = vrot.slane %v2972_v41, 4 }
 0x325   :  { %v2487_v29 = vrot.slane %v2486_v21, 4  ;;  %v518_v17 = vadd.f32 %v12025_v61, %v517_v0  ;;  %v5805_v38 = vunpack.c.l.b16 %v2973_v44  ;;  %v869_v23 = vsel %vm9676_vm7, 0, %v868_v30 }
 0x326   :  { %v1777_v55 = vsel %vm9727_vm11, %v1400_v59, %v1776_v58  ;;  %v8776_v26 = vrot.slane %v5144_v2, 9  ;;  %v2976_v6 = vsel %vm9696_vm10, %v2974_v54, %v2975_v16  ;;  %v5412_v20 = vrot.slane %v12177_v56, 5  ;;  %870 = vst [vmem:[#allocation2 + $0x164] sm:$0x1] %v869_v23  ;;  %v3928_v59 = vld [vmem:[#allocation2 + $0x144] sm:$0xe]  ;;  %v6338_v54 = vpop.permute.xlu0 %6337  ;;  %v7620_v19 = vpop.f32.mrf.mxu1 }
 0x327   :  { %1778 = vst [vmem:[#allocation2 + $0x15c] sm:$0xf] %v1777_v55  ;;  %v2492_v50 = vsel %vm9791_vm0, %v2487_v29, %v2491_v14  ;;  %v598_v63 = vmul.f32 0.2, %v518_v17  ;;  %v5647_v41 = vunpack.c.l.b16 %v2482_v37  ;;  %v5806_v21 = vunpack.c.l.b16 %v2976_v6  ;;  %v3089_v29 = vld [vmem:[#allocation2 + $0x148] sm:$0xf] }
 0x328   :  { %v5648_v0 = vunpack.c.l.b16 %v2492_v50  ;;  %v5415_v58 = vrot.slane %v12184_v51, 5  ;;  %v6946_v30 = vsel %vm6914_vm3, %v6865_v8, %v5888_v22  ;;  %v5413_v44 = vsel %vm9696_vm10, %v8776_v26, %v5412_v20  ;;  %v3128_v55 = vld [vmem:[#allocation2 + $0x14c] sm:$0x1]  ;;  %v3074_v23 = vld [vmem:[#allocation2 + $0xf0] sm:$0xf] }
 0x329   :  { %v662_v2 = vmax.f32 %v518_v17, %v598_v63  ;;  %v5414_v14 = vrot.slane %v5412_v20, 4  ;;  %v6146_v16 = vunpack.c.l.b16 %v3543_v28  ;;  %v1401_v12 = vrot.slane %v12161_v48, 4  ;;  %v9430_v50 = vld [vmem:[#allocation2 + $0x12c] sm:$0xff] }
 0x32a   :  { %v5688_v37 = vpack.c.b16 %v5648_v0, %v5647_v41  ;;  %v6767_v6 = vunpack.c.l.b16 %v5413_v44  ;;  %v5847_v62 = vpack.c.b16 %v5806_v21, %v5805_v38  ;;  %v8745_v17 = vrot.slane %v3928_v59, 9  ;;  %v9548_v59 = vld [vmem:[#allocation2 + $0xf4] sm:$0xf] }
 0x32b   :  { %v939_v60 = vpack.c.bf16 %v662_v2, %v662_v2  ;;  %v5416_v8 = vsel %vm9696_vm10, %v5414_v14, %v5415_v58  ;;  %v4202_v22 = vrot.slane %v3089_v29, 5  ;;  %v4205_v26 = vrot.slane %v3128_v55, 5 }
 0x32c   :  { %5743 = vrot.lane.b32.xlu0 %v5688_v37, %s9583_s1  ;;  %6093 = vrot.lane.b32.xlu2 %v9430_v50, %s9582_s12  ;;  %v6768_v28 = vunpack.c.l.b16 %v5416_v8  ;;  %v7026_v48 = vsel %vm6979_vm6, %v6946_v30, %v6080_v45  ;;  %v3545_v38 = vshrl.u32 %v3074_v23, 16  ;;  %v3548_v41 = vshll.u32 %v3074_v23, 16  ;;  %v4303_v37 = vld [vmem:[#allocation2 + $0x144] sm:$0xf]  ;;  %v12210_v45 = vpop.f32.mrf.mxu3  ;;  %v7789_v50 = vpop.f32.mrf.mxu2 }
 0x32d   :  { %5901 = vrot.lane.b32.xlu1 %v5847_v62, %s9581_s22  ;;  %v1403_v63 = vshrl.u32 %v939_v60, 16  ;;  %v1406_v20 = vshll.u32 %v939_v60, 16  ;;  %7659 = vmatmul.bf16.gmra.mxu1 %v7026_v48  ;;  %v4203_v21 = vsel %vm9696_vm10, %v8745_v17, %v4202_v22  ;;  %v4204_v58 = vrot.slane %v4202_v22, 4  ;;  %13710 = vst [vmem:[#allocation12_spill] sm:$0xff] %v12210_v45  ;;  %v13711_v62 = vld [vmem:[#allocation10_spill] sm:$0xff]  ;;  %v9392_v17 = vld [vmem:[#allocation2 + $0xd8] sm:$0xff] }
 0x32e   :  { %v6808_v0 = vpack.c.b16 %v6768_v28, %v6767_v6  ;;  %v3554_v2 = vshll.u32 %v9548_v59, 16  ;;  %v6257_v14 = vunpack.c.l.b16 %v4203_v21  ;;  %v3547_v29 = vrot.slane %v3545_v38, 4  ;;  %v1780_v6 = vld [vmem:[#allocation2 + $0x164] sm:$0x1] }
 0x32f   :  { %v1405_v44 = vrot.slane %v1403_v63, 7  ;;  %v3550_v55 = vrot.slane %v3548_v41, 5  ;;  %v12214_v60 = vadd.f32 %v13711_v62, %v12164_v42  ;;  %v6193_v30 = vpack.c.b16 %v6146_v16, %v12171_v33  ;;  %v520_v62 = vpop.f32.mrf.mxu0 }
 0x330   :  { %v7621_v23 = vadd.f32 %v12105_v46, %v7620_v19  ;;  %9264 = vmatmul.msk.bf16.gmra.mxu3 %vm6817_vm2, %v6808_v0  ;;  %v4206_v8 = vsel %vm9696_vm10, %v4204_v58, %v4205_v26  ;;  %v12221_v63 = vrot.slane %v3554_v2, 5  ;;  %v13712_v42 = vshrl.u32 %v11736_v52, 16  ;;  %v773_v58 = vld [vmem:[#allocation2 + $0x168] sm:$0x1]  ;;  %v5730_v2 = vpop.permute.xlu0 %5729 }
 0x331   :  { %v1408_v28 = vor.u32 %v1406_v20, %v1405_v44  ;;  %v1410_v22 = vrot.slane %v1405_v44, 4  ;;  %v6258_v48 = vunpack.c.l.b16 %v4206_v8  ;;  %v4906_v41 = vshrl.u32 %v4303_v37, 16  ;;  %v9463_v20 = vld [vmem:[#allocation2 + $0x144] sm:$0xff] }
 0x332   :  { %v3560_v38 = vrot.slane %v13712_v42, 4  ;;  %v4909_v33 = vshll.u32 %v4303_v37, 16  ;;  %v4915_v16 = vshll.u32 %v12177_v56, 16  ;;  %v3551_v21 = vor.u32 %v3550_v55, %v3547_v29  ;;  %v7622_v55 = vpop.f32.mrf.mxu1 }
 0x333   :  { %v1409_v19 = vsel %vm9744_vm13, %v1401_v12, %v1408_v28  ;;  %v1781_v0 = vsel %vm9663_vm4, %v1410_v22, %v1780_v6  ;;  %v6297_v26 = vpack.c.b16 %v6258_v48, %v6257_v14  ;;  %v7126_v59 = vsel %vm6817_vm2, %v6193_v30, %v6338_v54  ;;  %v1866_v12 = vld [vmem:[#allocation2 + $0x138] sm:$0xf]  ;;  %v12250_v48 = vld [vmem:[#allocation2 + $0x13c] sm:$0xf] }
 0x334   :  { %v12233_v52 = vadd.f32 %v12105_v46, %v12159_v39  ;;  %1779 = vst.msk [vmem:[#allocation2 + $0x160] sm:$0xf] %vm673_vm5, %v1409_v19  ;;  %v4908_v44 = vrot.slane %v4906_v41, 4  ;;  %v4911_v37 = vrot.slane %v4909_v33, 5  ;;  %v12237_v8 = vsel %vm6817_vm2, %v9392_v17, %v5730_v2  ;;  %v6530_v39 = vpop.permute.xlu1 %6529 }
 0x335   :  { %1782 = vst [vmem:[#allocation2 + $0x164] sm:$0x1] %v1781_v0  ;;  %6353 = vrot.lane.b32.xlu0 %v6297_v26, %s9583_s1  ;;  %v4917_v14 = vrot.slane %v4915_v16, 5  ;;  %v4919_v54 = vshrl.u32 %v12177_v56, 16  ;;  %v4925_v29 = vshll.u32 %v12184_v51, 16  ;;  %6543 = vrot.lane.b32.xlu1 %v9463_v20, %s9581_s22  ;;  %v12243_v30 = vadd.f32 %v7789_v50, %v7621_v23  ;;  %v7791_v20 = vpop.f32.mrf.mxu2 }
 0x336   :  { %v13713_v6 = vshll.u32 %v11750_v35, 16  ;;  %v4912_v17 = vor.u32 %v4911_v37, %v4908_v44  ;;  %v521_v22 = vadd.f32 %v12025_v61, %v520_v62  ;;  %v12252_v42 = vrot.slane %v3551_v21, 4  ;;  %v12262_v44 = vld [vmem:[#allocation2 + $0x140] sm:$0x1] }
 0x337   :  { %v3561_v56 = vor.u32 %v3560_v38, %v12221_v63  ;;  %v4921_v51 = vrot.slane %v4919_v54, 4  ;;  %v774_v41 = vsel %vm9663_vm4, 0, %v773_v58  ;;  %v7623_v35 = vadd.f32 %v12105_v46, %v7622_v55 }
 0x338   :  { %v12247_v28 = vrot.slane %v13713_v6, 5  ;;  %v4913_v33 = vrot.slane %v4912_v17, 4  ;;  %v599_v50 = vmul.f32 0.2, %v521_v22  ;;  %775 = vst [vmem:[#allocation2 + $0x168] sm:$0x1] %v774_v41  ;;  %v7205_v38 = vsel %vm6914_vm3, %v7126_v59, %v6530_v39  ;;  %v6690_v6 = vpop.permute.xlu2 %6689 }
 0x339   :  { %v2494_v23 = vshrl.u32 %v1866_v12, 16  ;;  %v4922_v16 = vor.u32 %v4921_v51, %v4917_v14  ;;  %v4927_v19 = vrot.slane %v4925_v29, 5  ;;  %v2497_v0 = vshll.u32 %v1866_v12, 16  ;;  %v2708_v41 = vld [vmem:[#allocation2 + $0x12c] sm:$0xe] }
 0x33a   :  { %v2503_v26 = vshll.u32 %v12250_v48, 16  ;;  %v4918_v21 = vsel %vm9791_vm0, %v4913_v33, %v4917_v14  ;;  %v663_v2 = vmax.f32 %v521_v22, %v599_v50  ;;  %v12264_v37 = vrot.slane %v3561_v56, 4 }
 0x33b   :  { %v2496_v58 = vrot.slane %v2494_v23, 4  ;;  %v4923_v62 = vrot.slane %v4922_v16, 4  ;;  %v7792_v54 = vadd.f32 %v7791_v20, %v7623_v35  ;;  %v2499_v55 = vrot.slane %v2497_v0, 5  ;;  %v522_v23 = vpop.f32.mrf.mxu0 }
 0x33c   :  { %v6607_v29 = vunpack.c.l.b16 %v4918_v21  ;;  %v940_v12 = vpack.c.bf16 %v663_v2, %v663_v2  ;;  %v2505_v17 = vrot.slane %v2503_v26, 5  ;;  %v2507_v51 = vshrl.u32 %v12250_v48, 16 }
 0x33d   :  { %v4928_v14 = vsel %vm9791_vm0, %v4923_v62, %v4927_v19  ;;  %v2500_v59 = vor.u32 %v2499_v55, %v2496_v58  ;;  %v2513_v39 = vshll.u32 %v12262_v44, 16  ;;  %v7285_v22 = vsel %vm6979_vm6, %v7205_v38, %v6690_v6  ;;  %v5890_v19 = vpop.permute.xlu1 %5889  ;;  %v871_v62 = vld [vmem:[#allocation2 + $0x170] sm:$0x1] }
 0x33e   :  { %v6608_v56 = vunpack.c.l.b16 %v4928_v14  ;;  %v1412_v33 = vshrl.u32 %v940_v12, 16  ;;  %v1415_v50 = vshll.u32 %v940_v12, 16  ;;  %v2509_v35 = vrot.slane %v2507_v51, 4  ;;  %7833 = vmatmul.bf16.gmra.mxu2 %v7285_v22  ;;  %v12289_v22 = vld [vmem:[#allocation2 + $0x154] sm:$0xf] }
 0x33f   :  { %v2501_v0 = vrot.slane %v2500_v59, 4  ;;  %v2515_v26 = vrot.slane %v2513_v39, 5  ;;  %v8712_v21 = vrot.slane %v2708_v41, 9  ;;  %v2979_v38 = vrot.slane %v12130_v7, 5  ;;  %v1783_v55 = vld [vmem:[#allocation2 + $0x168] sm:$0xf]  ;;  %v7625_v41 = vpop.f32.mrf.mxu1 }
 0x340   :  { %v6648_v20 = vpack.c.b16 %v6608_v56, %v6607_v29  ;;  %v12275_v2 = vrot.slane %v1412_v33, 7  ;;  %v2510_v58 = vor.u32 %v2509_v35, %v2505_v17  ;;  %v12279_v6 = vadd.f32 %v11748_v40, %v7792_v54  ;;  %v5145_v40 = vld [vmem:[#allocation2 + $0x150] sm:$0xe]  ;;  %v12295_v33 = vld [vmem:[#allocation2 + $0x158] sm:$0x1] }
 0x341   :  { %v2506_v12 = vsel %vm9791_vm0, %v2501_v0, %v2505_v17  ;;  %v2982_v51 = vrot.slane %v12145_v36, 5  ;;  %v523_v14 = vadd.f32 %v12025_v61, %v522_v23  ;;  %v6948_v7 = vsel %vm6914_vm3, %v12237_v8, %v5890_v19  ;;  %v3091_v0 = vld [vmem:[#allocation2 + $0x154] sm:$0xf]  ;;  %v3929_v19 = vld [vmem:[#allocation2 + $0x150] sm:$0xe] }
 0x342   :  { %6703 = vrot.lane.b32.xlu2 %v6648_v20, %s9582_s12  ;;  %v1417_v29 = vor.u32 %v1415_v50, %v12275_v2  ;;  %v2511_v59 = vrot.slane %v2510_v58, 4  ;;  %v5649_v39 = vunpack.c.l.b16 %v2506_v12  ;;  %v2980_v54 = vsel %vm9696_vm10, %v8712_v21, %v2979_v38  ;;  %v12302_v21 = vpop.f32.mrf.mxu3 }
 0x343   :  { %v2981_v17 = vrot.slane %v2979_v38, 4  ;;  %v600_v36 = vmul.f32 0.2, %v523_v14  ;;  %v872_v56 = vsel %vm9676_vm7, 0, %v871_v62  ;;  %v5807_v8 = vunpack.c.l.b16 %v2980_v54  ;;  %13714 = vst [vmem:[#allocation10_spill] sm:$0xff] %v12302_v21  ;;  %v7794_v38 = vpop.f32.mrf.mxu2 }
 0x344   :  { %v1784_v50 = vsel %vm9727_vm11, %v1417_v29, %v1783_v55  ;;  %v2516_v35 = vsel %vm9791_vm0, %v2511_v59, %v2515_v26  ;;  %873 = vst [vmem:[#allocation2 + $0x170] sm:$0x1] %v872_v56  ;;  %v7626_v23 = vadd.f32 %v12105_v46, %v7625_v41  ;;  %v8777_v12 = vrot.slane %v5145_v40, 9  ;;  %v3129_v56 = vld [vmem:[#allocation2 + $0x158] sm:$0x1] }
 0x345   :  { %1785 = vst [vmem:[#allocation2 + $0x168] sm:$0xf] %v1784_v50  ;;  %v5650_v20 = vunpack.c.l.b16 %v2516_v35  ;;  %v2983_v58 = vsel %vm9696_vm10, %v2981_v17, %v2982_v51  ;;  %v664_v62 = vmax.f32 %v523_v14, %v600_v36  ;;  %v5419_v26 = vrot.slane %v12289_v22, 5  ;;  %v12310_v50 = vpop.permute.xlu0 %6339  ;;  %v9431_v51 = vld [vmem:[#allocation2 + $0x138] sm:$0xff] }
 0x346   :  { %v5808_v55 = vunpack.c.l.b16 %v2983_v58  ;;  %v12306_v29 = vadd.f32 %v7794_v38, %v7626_v23  ;;  %v5422_v59 = vrot.slane %v12295_v33, 5  ;;  %v8746_v16 = vrot.slane %v3929_v19, 9  ;;  %v3076_v19 = vld [vmem:[#allocation2 + $0xfc] sm:$0xf] }
 0x347   :  { %v5689_v41 = vpack.c.b16 %v5650_v20, %v5649_v39  ;;  %v941_v54 = vpack.c.bf16 %v664_v62, %v664_v62  ;;  %v4209_v45 = vrot.slane %v3091_v0, 5  ;;  %v1418_v35 = vrot.slane %v12275_v2, 4  ;;  %v6082_v0 = vpop.permute.xlu2 %6081 }
 0x348   :  { %13715 = vst [vmem:[#allocation24_spill] sm:$0xff] %v12306_v29  ;;  %v5848_v17 = vpack.c.b16 %v5808_v55, %v5807_v8  ;;  %v5420_v14 = vsel %vm9696_vm10, %v8777_v12, %v5419_v26  ;;  %v5421_v40 = vrot.slane %v5419_v26, 4  ;;  %v4212_v20 = vrot.slane %v3129_v56, 5 }
 0x349   :  { %5745 = vrot.lane.b32.xlu0 %v5689_v41, %s9583_s1  ;;  %v1420_v36 = vshrl.u32 %v941_v54, 16  ;;  %v1423_v23 = vshll.u32 %v941_v54, 16  ;;  %v6769_v58 = vunpack.c.l.b16 %v5420_v14  ;;  %v4210_v39 = vsel %vm9696_vm10, %v8746_v16, %v4209_v45 }
 0x34a   :  { %6095 = vrot.lane.b32.xlu2 %v9431_v51, %s9582_s12  ;;  %5903 = vrot.lane.b32.xlu1 %v5848_v17, %s9581_s22  ;;  %v5423_v2 = vsel %vm9696_vm10, %v5421_v40, %v5422_v59  ;;  %v4211_v8 = vrot.slane %v4209_v45, 4  ;;  %v6259_v38 = vunpack.c.l.b16 %v4210_v39  ;;  %v7029_v55 = vsel %vm6979_vm6, %v6948_v7, %v6082_v0  ;;  %v4305_v40 = vld [vmem:[#allocation2 + $0x150] sm:$0xf] }
 0x34b   :  { %v1422_v62 = vrot.slane %v1420_v36, 7  ;;  %v6770_v12 = vunpack.c.l.b16 %v5423_v2  ;;  %v8098_v26 = vmul.f32 0.2, %v12279_v6  ;;  %v3557_v16 = vsel %vm9791_vm0, %v12252_v42, %v12221_v63  ;;  %v1787_v41 = vld [vmem:[#allocation2 + $0x170] sm:$0x1]  ;;  %7664 = vmatmul.bf16.gmra.mxu1 %v7029_v55  ;;  %v13716_v36 = vld [vmem:[#allocation13_spill] sm:$0xff] }
 0x34c   :  { %v4213_v54 = vsel %vm9696_vm10, %v4211_v8, %v4212_v20  ;;  %v3569_v59 = vshrl.u32 %v3076_v19, 16  ;;  %v3572_v45 = vshll.u32 %v3076_v19, 16  ;;  %v7787_v7 = vadd.f32 %v12186_v10, %v12233_v52  ;;  %v12340_v19 = vpop.f32.mrf.mxu3  ;;  %v9549_v52 = vld [vmem:[#allocation2 + $0x100] sm:$0xf]  ;;  %v9464_v8 = vld [vmem:[#allocation2 + $0x150] sm:$0xff] }
 0x34d   :  { %v1425_v56 = vor.u32 %v1423_v23, %v1422_v62  ;;  %v1427_v51 = vrot.slane %v1422_v62, 4  ;;  %v6809_v17 = vpack.c.b16 %v6770_v12, %v6769_v58  ;;  %v6260_v14 = vunpack.c.l.b16 %v4213_v54  ;;  %v13718_v12 = vld [vmem:[#allocation11_spill] sm:$0xff] }
 0x34e   :  { %v7959_v39 = vadd.f32 %v13716_v36, %v12243_v30  ;;  %v13717_v63 = vsel %vm9791_vm0, %v12264_v37, %v12247_v28  ;;  %v8162_v0 = vmax.f32 %v12279_v6, %v8098_v26  ;;  %v3578_v30 = vshll.u32 %v9549_v52, 16  ;;  %v12366_v52 = vld [vmem:[#allocation2 + $0x148] sm:$0xf] }
 0x34f   :  { %v6148_v42 = vunpack.c.l.b16 %v13717_v63  ;;  %v1426_v23 = vsel %vm9744_vm13, %v1418_v35, %v1425_v56  ;;  %v1788_v58 = vsel %vm9663_vm4, %v1427_v51, %v1787_v41  ;;  %9265 = vmatmul.msk.bf16.gmra.mxu3 %vm6817_vm2, %v6809_v17  ;;  %v6298_v10 = vpack.c.b16 %v6260_v14, %v6259_v38 }
 0x350   :  { %v6147_v2 = vunpack.c.l.b16 %v3557_v16  ;;  %1786 = vst.msk [vmem:[#allocation2 + $0x16c] sm:$0xf] %vm673_vm5, %v1426_v23  ;;  %9273 = vmatpush.xpose.msk.msrb.mxu3 %vm6817_vm2, %v8162_v0  ;;  %v3571_v28 = vrot.slane %v3569_v59, 4  ;;  %v4930_v37 = vshrl.u32 %v4305_v40, 16  ;;  %v4933_v6 = vshll.u32 %v4305_v40, 16  ;;  %v5732_v16 = vpop.permute.xlu0 %5731  ;;  %v525_v40 = vpop.f32.mrf.mxu0 }
 0x351   :  { %1789 = vst [vmem:[#allocation2 + $0x170] sm:$0x1] %v1788_v58  ;;  %6355 = vrot.lane.b32.xlu0 %v6298_v10, %s9583_s1  ;;  %v3574_v35 = vrot.slane %v3572_v45, 5  ;;  %v4939_v20 = vshll.u32 %v12289_v22, 16  ;;  %v4943_v62 = vshrl.u32 %v12289_v22, 16  ;;  %v4949_v38 = vshll.u32 %v12295_v33, 16  ;;  %v6532_v22 = vpop.permute.xlu1 %6531 }
 0x352   :  { %v12354_v55 = vadd.f32 %v13718_v12, %v7787_v7  ;;  %v6194_v26 = vpack.c.b16 %v6148_v42, %v6147_v2  ;;  %v4932_v41 = vrot.slane %v4930_v37, 4  ;;  %v4935_v54 = vrot.slane %v4933_v6, 5  ;;  %6545 = vrot.lane.b32.xlu1 %v9464_v8, %s9581_s22  ;;  %v776_v59 = vld [vmem:[#allocation2 + $0x174] sm:$0x1]  ;;  %v9393_v7 = vld [vmem:[#allocation2 + $0xe4] sm:$0xff] }
 0x353   :  { %v12357_v56 = vrot.slane %v3578_v30, 5  ;;  %v13719_v45 = vshrl.u32 %v11865_v47, 16  ;;  %v4941_v17 = vrot.slane %v4939_v20, 5  ;;  %v4945_v14 = vrot.slane %v4943_v62, 4  ;;  %v1868_v0 = vld [vmem:[#allocation2 + $0x144] sm:$0xf] }
 0x354   :  { %v7129_v33 = vsel %vm6817_vm2, %v6194_v26, %v12310_v50  ;;  %v4936_v36 = vor.u32 %v4935_v54, %v4932_v41  ;;  %v8097_v63 = vmul.f32 0.2, %v7959_v39  ;;  %v526_v42 = vadd.f32 %v12025_v61, %v525_v40  ;;  %v12369_v50 = vpop.f32.mrf.mxu1 }
 0x355   :  { %v3584_v51 = vrot.slane %v13719_v45, 4  ;;  %v3575_v23 = vor.u32 %v3574_v35, %v3571_v28  ;;  %v4946_v58 = vor.u32 %v4945_v14, %v4941_v17  ;;  %v4951_v10 = vrot.slane %v4949_v38, 5  ;;  %13720 = vst [vmem:[#allocation13_spill] sm:$0xff] %v12369_v50 }
 0x356   :  { %v777_v47 = vsel %vm9663_vm4, 0, %v776_v59  ;;  %v6871_v30 = vsel %vm6817_vm2, %v9393_v7, %v5732_v16  ;;  %v4937_v2 = vrot.slane %v4936_v36, 4  ;;  %v8161_v37 = vmax.f32 %v7959_v39, %v8097_v63  ;;  %v12379_v39 = vld [vmem:[#allocation2 + $0x14c] sm:$0x1] }
 0x357   :  { %v601_v6 = vmul.f32 0.2, %v526_v42  ;;  %778 = vst [vmem:[#allocation2 + $0x174] sm:$0x1] %v777_v47  ;;  %v3585_v8 = vor.u32 %v3584_v51, %v12357_v56  ;;  %v4947_v61 = vrot.slane %v4946_v58, 4  ;;  %v2518_v20 = vshrl.u32 %v1868_v0, 16  ;;  %v12387_v51 = vpop.f32.mrf.mxu2 }
 0x358   :  { %v2521_v28 = vshll.u32 %v1868_v0, 16  ;;  %v13721_v35 = vshll.u32 %v11874_v4, 16  ;;  %v4942_v38 = vsel %vm9791_vm0, %v4937_v2, %v4941_v17  ;;  %9274 = vmatpush.xpose.msk.msrb.mxu3 %vm6817_vm2, %v8161_v37  ;;  %v2527_v26 = vshll.u32 %v12366_v52, 16  ;;  %13722 = vst [vmem:[#allocation11_spill] sm:$0xff] %v12387_v51  ;;  %v6692_v0 = vpop.permute.xlu2 %6691 }
 0x359   :  { %v665_v12 = vmax.f32 %v526_v42, %v601_v6  ;;  %v12382_v16 = vrot.slane %v3575_v23, 4  ;;  %v4952_v41 = vsel %vm9791_vm0, %v4947_v61, %v4951_v10  ;;  %v7207_v54 = vsel %vm6914_vm3, %v7129_v33, %v6532_v22  ;;  %v2709_v42 = vld [vmem:[#allocation2 + $0x138] sm:$0xe]  ;;  %v5892_v6 = vpop.permute.xlu1 %5891 }
 0x35a   :  { %v12374_v62 = vrot.slane %v13721_v35, 5  ;;  %v2520_v4 = vrot.slane %v2518_v20, 4  ;;  %v6609_v59 = vunpack.c.l.b16 %v4942_v38  ;;  %v6610_v45 = vunpack.c.l.b16 %v4952_v41 }
 0x35b   :  { %v942_v17 = vpack.c.bf16 %v665_v12, %v665_v12  ;;  %v2523_v14 = vrot.slane %v2521_v28, 5  ;;  %v12389_v40 = vrot.slane %v3585_v8, 4  ;;  %v2529_v7 = vrot.slane %v2527_v26, 5 }
 0x35c   :  { %v2531_v36 = vshrl.u32 %v12366_v52, 16  ;;  %v2537_v63 = vshll.u32 %v12379_v39, 16  ;;  %v6649_v23 = vpack.c.b16 %v6610_v45, %v6609_v59  ;;  %v3581_v33 = vsel %vm9791_vm0, %v12382_v16, %v12357_v56 }
 0x35d   :  { %v1429_v58 = vshrl.u32 %v942_v17, 16  ;;  %v1432_v10 = vshll.u32 %v942_v17, 16  ;;  %v2524_v22 = vor.u32 %v2523_v14, %v2520_v4  ;;  %v7288_v2 = vsel %vm6979_vm6, %v7207_v54, %v6692_v0  ;;  %v527_v54 = vpop.f32.mrf.mxu0  ;;  %v874_v14 = vld [vmem:[#allocation2 + $0x17c] sm:$0x1] }
 0x35e   :  { %v2533_v47 = vrot.slane %v2531_v36, 4  ;;  %v8096_v37 = vmul.f32 0.2, %v12354_v55  ;;  %6705 = vrot.lane.b32.xlu2 %v6649_v23, %s9582_s12  ;;  %v2539_v20 = vrot.slane %v2537_v63, 5  ;;  %7838 = vmatmul.bf16.gmra.mxu2 %v7288_v2  ;;  %v8713_v28 = vrot.slane %v2709_v42, 9  ;;  %v7630_v36 = vpop.f32.mrf.mxu1 }
 0x35f   :  { %v12400_v8 = vrot.slane %v1429_v58, 7  ;;  %v2525_v61 = vrot.slane %v2524_v22, 4  ;;  %v1790_v35 = vld [vmem:[#allocation2 + $0x174] sm:$0xf]  ;;  %v2986_v26 = vrot.slane %v12250_v48, 5  ;;  %v2989_v41 = vrot.slane %v12262_v44, 5 }
 0x360   :  { %v2534_v38 = vor.u32 %v2533_v47, %v2529_v7  ;;  %v8160_v12 = vmax.f32 %v12354_v55, %v8096_v37  ;;  %v3591_v4 = vsel %vm9791_vm0, %v12389_v40, %v12374_v62  ;;  %v6950_v17 = vsel %vm6914_vm3, %v6871_v30, %v5892_v6  ;;  %v12416_v42 = vld [vmem:[#allocation2 + $0x160] sm:$0xf]  ;;  %v12427_v23 = vld [vmem:[#allocation2 + $0x164] sm:$0x1]  ;;  %v5146_v58 = vld [vmem:[#allocation2 + $0x15c] sm:$0xe] }
 0x361   :  { %v1434_v59 = vor.u32 %v1432_v10, %v12400_v8  ;;  %v2530_v45 = vsel %vm9791_vm0, %v2525_v61, %v2529_v7  ;;  %v2987_v48 = vsel %vm9696_vm10, %v8713_v28, %v2986_v26  ;;  %v2988_v44 = vrot.slane %v2986_v26, 4  ;;  %v12424_v30 = vld [vmem:[%s13653_s2] ss:$0 sm:$0xff]  ;;  %v9432_v22 = vld [vmem:[#allocation2 + $0x144] sm:$0xff]  ;;  %v3930_v6 = vld [vmem:[#allocation2 + $0x15c] sm:$0xe]  ;;  %v12436_v61 = vpop.f32.mrf.mxu3 }
 0x362   :  { %v2535_v55 = vrot.slane %v2534_v38, 4  ;;  %v5651_v63 = vunpack.c.l.b16 %v2530_v45  ;;  %9275 = vmatpush.xpose.msk.msrb.mxu3 %vm6817_vm2, %v8160_v12  ;;  %v5809_v40 = vunpack.c.l.b16 %v2987_v48  ;;  %v8095_v7 = vmul.f32 0.2, %v12214_v60  ;;  %v7799_v38 = vpop.f32.mrf.mxu2 }
 0x363   :  { %v1791_v62 = vsel %vm9727_vm11, %v1434_v59, %v1790_v35  ;;  %v528_v0 = vadd.f32 %v12424_v30, %v527_v54  ;;  %v2990_v47 = vsel %vm9696_vm10, %v2988_v44, %v2989_v41  ;;  %v875_v2 = vsel %vm9676_vm7, 0, %v874_v14  ;;  %v3130_v14 = vld [vmem:[#allocation2 + $0x164] sm:$0x1]  ;;  %v6084_v44 = vpop.permute.xlu2 %6083 }
 0x364   :  { %1792 = vst [vmem:[#allocation2 + $0x174] sm:$0xf] %v1791_v62  ;;  %v2540_v10 = vsel %vm9791_vm0, %v2535_v55, %v2539_v20  ;;  %v7631_v37 = vadd.f32 %v12105_v46, %v7630_v36  ;;  %v5810_v35 = vunpack.c.l.b16 %v2990_v47  ;;  %v8159_v12 = vmax.f32 %v12214_v60, %v8095_v7  ;;  %v3093_v20 = vld [vmem:[#allocation2 + $0x160] sm:$0xf]  ;;  %v12443_v46 = vpop.permute.xlu0 %6341 }
 0x365   :  { %v5652_v28 = vunpack.c.l.b16 %v2540_v10  ;;  %v602_v26 = vmul.f32 0.2, %v528_v0  ;;  %876 = vst [vmem:[#allocation2 + $0x17c] sm:$0x1] %v875_v2  ;;  %v8778_v59 = vrot.slane %v5146_v58, 9  ;;  %v5426_v41 = vrot.slane %v12416_v42, 5 }
 0x366   :  { %v12439_v54 = vadd.f32 %v7799_v38, %v7631_v37  ;;  %v5429_v45 = vrot.slane %v12427_v23, 5  ;;  %6097 = vrot.lane.b32.xlu2 %v9432_v22, %s9582_s12  ;;  %v5849_v55 = vpack.c.b16 %v5810_v35, %v5809_v40  ;;  %9276 = vmatpush.xpose.msk.msrb.mxu3 %vm6817_vm2, %v8159_v12  ;;  %v8747_v48 = vrot.slane %v3930_v6, 9  ;;  %v13724_v12 = vld [vmem:[#allocation14_spill] sm:$0xff] }
 0x367   :  { %v5690_v36 = vpack.c.b16 %v5652_v28, %v5651_v63  ;;  %v666_v60 = vmax.f32 %v528_v0, %v602_v26  ;;  %v6150_v62 = vunpack.c.l.b16 %v3591_v4  ;;  %v5427_v7 = vsel %vm9696_vm10, %v8778_v59, %v5426_v41  ;;  %v13725_v26 = vld [vmem:[#allocation4_spill] sm:$0xff] }
 0x368   :  { %13723 = vst [vmem:[#allocation25_spill] sm:$0xff] %v12439_v54  ;;  %v5428_v58 = vrot.slane %v5426_v41, 4  ;;  %v4216_v10 = vrot.slane %v3093_v20, 5  ;;  %5905 = vrot.lane.b32.xlu1 %v5849_v55, %s9581_s22  ;;  %v6771_v63 = vunpack.c.l.b16 %v5427_v7  ;;  %v4219_v2 = vrot.slane %v3130_v14, 5 }
 0x369   :  { %5747 = vrot.lane.b32.xlu0 %v5690_v36, %s9583_s1  ;;  %v943_v47 = vpack.c.bf16 %v666_v60, %v666_v60  ;;  %v7032_v40 = vsel %vm6979_vm6, %v6950_v17, %v6084_v44  ;;  %v8094_v37 = vmul.f32 0.2, %v12134_v1  ;;  %v12459_v20 = vadd.f32 %v13725_v26, %v13724_v12  ;;  %v3078_v60 = vld [vmem:[#allocation2 + $0x108] sm:$0xf]  ;;  %v13726_v44 = vld [vmem:[#allocation5_spill] sm:$0xff] }
 0x36a   :  { %v5430_v0 = vsel %vm9696_vm10, %v5428_v58, %v5429_v45  ;;  %v4217_v4 = vsel %vm9696_vm10, %v8747_v48, %v4216_v10  ;;  %v4218_v22 = vrot.slane %v4216_v10, 4  ;;  %7669 = vmatmul.bf16.gmra.mxu1 %v7032_v40  ;;  %v6149_v17 = vunpack.c.l.b16 %v3581_v33  ;;  %v4307_v48 = vld [vmem:[#allocation2 + $0x15c] sm:$0xf]  ;;  %v13727_v58 = vld [vmem:[#allocation6_spill] sm:$0xff]  ;;  %v12483_v10 = vpop.f32.mrf.mxu3 }
 0x36b   :  { %v1437_v6 = vshrl.u32 %v943_v47, 16  ;;  %v1440_v28 = vshll.u32 %v943_v47, 16  ;;  %v6772_v35 = vunpack.c.l.b16 %v5430_v0  ;;  %v6261_v38 = vunpack.c.l.b16 %v4217_v4  ;;  %v9465_v40 = vld [vmem:[#allocation2 + $0x15c] sm:$0xff] }
 0x36c   :  { %v4220_v59 = vsel %vm9696_vm10, %v4218_v22, %v4219_v2  ;;  %v8158_v41 = vmax.f32 %v12134_v1, %v8094_v37  ;;  %v1435_v45 = vrot.slane %v12400_v8, 4  ;;  %v12472_v7 = vadd.f32 %v13726_v44, %v12014_v32  ;;  %v13728_v1 = vld [vmem:[#allocation8_spill] sm:$0xff]  ;;  %v779_v44 = vld [vmem:[#allocation2 + $0x180] sm:$0x1] }
 0x36d   :  { %v1439_v14 = vrot.slane %v1437_v6, 7  ;;  %v6810_v36 = vpack.c.b16 %v6772_v35, %v6771_v63  ;;  %v6262_v55 = vunpack.c.l.b16 %v4220_v59  ;;  %v12476_v56 = vadd.f32 %v13727_v58, %v11844_v24  ;;  %v1794_v8 = vld [vmem:[#allocation2 + $0x17c] sm:$0x1]  ;;  %v13729_v6 = vld [vmem:[#allocation7_spill] sm:$0xff]  ;;  %v9551_v59 = vld [vmem:[#allocation2 + $0x10c] sm:$0xf] }
 0x36e   :  { %v7777_v16 = vadd.f32 %v11930_v3, %v12019_v9  ;;  %v7949_v33 = vadd.f32 %v13728_v1, %v11967_v15  ;;  %9277 = vmatpush.xpose.msk.msrb.mxu3 %vm6817_vm2, %v8158_v41  ;;  %v6195_v47 = vpack.c.b16 %v6150_v62, %v6149_v17  ;;  %v3593_v24 = vshrl.u32 %v3078_v60, 16  ;;  %v5734_v9 = vpop.permute.xlu0 %5733  ;;  %v9394_v35 = vld [vmem:[#allocation2 + $0xf0] sm:$0xff] }
 0x36f   :  { %v1442_v63 = vor.u32 %v1440_v28, %v1439_v14  ;;  %v1444_v2 = vrot.slane %v1439_v14, 4  ;;  %9266 = vmatmul.msk.bf16.gmra.mxu3 %vm6817_vm2, %v6810_v36  ;;  %v6299_v32 = vpack.c.b16 %v6262_v55, %v6261_v38  ;;  %v4954_v0 = vshrl.u32 %v4307_v48, 16  ;;  %v530_v14 = vpop.f32.mrf.mxu0  ;;  %v1870_v58 = vld [vmem:[#allocation2 + $0x150] sm:$0xf] }
 0x370   :  { %v4957_v4 = vshll.u32 %v4307_v48, 16  ;;  %v4963_v3 = vshll.u32 %v12416_v42, 16  ;;  %v3596_v62 = vshll.u32 %v3078_v60, 16  ;;  %v4967_v37 = vshrl.u32 %v12416_v42, 16  ;;  %6547 = vrot.lane.b32.xlu1 %v9465_v40, %s9581_s22 }
 0x371   :  { %v1443_v15 = vsel %vm9744_vm13, %v1435_v45, %v1442_v63  ;;  %v1795_v22 = vsel %vm9663_vm4, %v1444_v2, %v1794_v8  ;;  %6357 = vrot.lane.b32.xlu0 %v6299_v32, %s9583_s1  ;;  %v12495_v28 = vadd.f32 %v13729_v6, %v7777_v16  ;;  %v4956_v38 = vrot.slane %v4954_v0, 4 }
 0x372   :  { %1793 = vst.msk [vmem:[#allocation2 + $0x178] sm:$0xf] %vm673_vm5, %v1443_v15  ;;  %v4959_v12 = vrot.slane %v4957_v4, 5  ;;  %v4965_v26 = vrot.slane %v4963_v3, 5  ;;  %v7132_v17 = vsel %vm6817_vm2, %v6195_v47, %v12443_v46  ;;  %v3602_v41 = vshll.u32 %v9551_v59, 16  ;;  %v6534_v47 = vpop.permute.xlu1 %6533 }
 0x373   :  { %1796 = vst [vmem:[#allocation2 + $0x17c] sm:$0x1] %v1795_v22  ;;  %v4969_v45 = vrot.slane %v4967_v37, 4  ;;  %v4973_v42 = vshll.u32 %v12427_v23, 16  ;;  %v12502_v36 = vsel %vm6817_vm2, %v9394_v35, %v5734_v9  ;;  %v8093_v60 = vmul.f32 0.2, %v7949_v33  ;;  %v12511_v9 = vpop.f32.mrf.mxu1 }
 0x374   :  { %v4960_v55 = vor.u32 %v4959_v12, %v4956_v38  ;;  %v531_v48 = vadd.f32 %v12424_v30, %v530_v14  ;;  %v3595_v16 = vrot.slane %v3593_v24, 4  ;;  %v3598_v1 = vrot.slane %v3596_v62, 5  ;;  %13731 = vst [vmem:[#allocation14_spill] sm:$0xff] %v12511_v9  ;;  %v12513_v15 = vld [vmem:[#allocation2 + $0x154] sm:$0xf]  ;;  %v12528_v14 = vpop.f32.mrf.mxu2 }
 0x375   :  { %v4970_v8 = vor.u32 %v4969_v45, %v4965_v26  ;;  %v4975_v46 = vrot.slane %v4973_v42, 5  ;;  %v13730_v63 = vshrl.u32 %v11581_v31, 16  ;;  %v8157_v23 = vmax.f32 %v7949_v33, %v8093_v60  ;;  %v12522_v37 = vld [vmem:[#allocation2 + $0x158] sm:$0x1]  ;;  %13733 = vst [vmem:[#allocation4_spill] sm:$0xff] %v12528_v14 }
 0x376   :  { %v4961_v32 = vrot.slane %v4960_v55, 4  ;;  %v603_v40 = vmul.f32 0.2, %v531_v48  ;;  %v12507_v0 = vrot.slane %v3602_v41, 5  ;;  %v780_v3 = vsel %vm9663_vm4, 0, %v779_v44  ;;  %v6694_v44 = vpop.permute.xlu2 %6693 }
 0x377   :  { %v3608_v2 = vrot.slane %v13730_v63, 4  ;;  %v4971_v4 = vrot.slane %v4970_v8, 4  ;;  %v2542_v24 = vshrl.u32 %v1870_v58, 16  ;;  %v13732_v22 = vshll.u32 %v11989_v11, 16  ;;  %9278 = vmatpush.xpose.msk.msrb.mxu3 %vm6817_vm2, %v8157_v23  ;;  %781 = vst [vmem:[#allocation2 + $0x180] sm:$0x1] %v780_v3 }
 0x378   :  { %v4966_v31 = vsel %vm9791_vm0, %v4961_v32, %v4965_v26  ;;  %v667_v33 = vmax.f32 %v531_v48, %v603_v40  ;;  %v2545_v6 = vshll.u32 %v1870_v58, 16  ;;  %v3599_v35 = vor.u32 %v3598_v1, %v3595_v16  ;;  %v2710_v8 = vld [vmem:[#allocation2 + $0x144] sm:$0xe] }
 0x379   :  { %v12517_v62 = vrot.slane %v13732_v22, 5  ;;  %v4976_v38 = vsel %vm9791_vm0, %v4971_v4, %v4975_v46  ;;  %v7209_v12 = vsel %vm6914_vm3, %v7132_v17, %v6534_v47  ;;  %v2544_v59 = vrot.slane %v2542_v24, 4 }
 0x37a   :  { %v6611_v11 = vunpack.c.l.b16 %v4966_v31  ;;  %v6612_v41 = vunpack.c.l.b16 %v4976_v38  ;;  %v944_v45 = vpack.c.bf16 %v667_v33, %v667_v33  ;;  %v2547_v42 = vrot.slane %v2545_v6, 5  ;;  %v5894_v6 = vpop.permute.xlu1 %5893 }
 0x37b   :  { %v3609_v26 = vor.u32 %v3608_v2, %v12507_v0  ;;  %v2551_v55 = vshll.u32 %v12513_v15, 16  ;;  %v2555_v60 = vshrl.u32 %v12513_v15, 16  ;;  %v2561_v48 = vshll.u32 %v12522_v37, 16 }
 0x37c   :  { %v6650_v58 = vpack.c.b16 %v6612_v41, %v6611_v11  ;;  %v1446_v16 = vshrl.u32 %v944_v45, 16  ;;  %v1449_v1 = vshll.u32 %v944_v45, 16  ;;  %v2548_v17 = vor.u32 %v2547_v42, %v2544_v59  ;;  %v532_v11 = vpop.f32.mrf.mxu0  ;;  %v877_v41 = vld [vmem:[#allocation2 + $0x188] sm:$0x1] }
 0x37d   :  { %v12533_v46 = vrot.slane %v3599_v35, 4  ;;  %v2553_v47 = vrot.slane %v2551_v55, 5  ;;  %v2557_v63 = vrot.slane %v2555_v60, 4  ;;  %v7291_v2 = vsel %vm6979_vm6, %v7209_v12, %v6694_v44  ;;  %v7635_v60 = vpop.f32.mrf.mxu1 }
 0x37e   :  { %6707 = vrot.lane.b32.xlu2 %v6650_v58, %s9582_s12  ;;  %v12537_v32 = vrot.slane %v1446_v16, 7  ;;  %v2549_v23 = vrot.slane %v2548_v17, 4  ;;  %v2563_v40 = vrot.slane %v2561_v48, 5  ;;  %7843 = vmatmul.bf16.gmra.mxu2 %v7291_v2  ;;  %v8092_v4 = vmul.f32 0.2, %v12495_v28  ;;  %v9433_v17 = vld [vmem:[#allocation2 + $0x150] sm:$0xff] }
 0x37f   :  { %v1797_v3 = vld [vmem:[#allocation2 + $0x180] sm:$0xf]  ;;  %v2558_v24 = vor.u32 %v2557_v63, %v2553_v47  ;;  %v8714_v22 = vrot.slane %v2710_v8, 9  ;;  %v2993_v31 = vrot.slane %v12366_v52, 5  ;;  %v2996_v33 = vrot.slane %v12379_v39, 5 }
 0x380   :  { %v12542_v35 = vrot.slane %v3609_v26, 4  ;;  %v1451_v38 = vor.u32 %v1449_v1, %v12537_v32  ;;  %v2554_v12 = vsel %vm9791_vm0, %v2549_v23, %v2553_v47  ;;  %v8156_v59 = vmax.f32 %v12495_v28, %v8092_v4  ;;  %v12550_v39 = vld [vmem:[#allocation2 + $0x16c] sm:$0xf]  ;;  %v12558_v58 = vld [vmem:[#allocation2 + $0x170] sm:$0x1] }
 0x381   :  { %v2559_v45 = vrot.slane %v2558_v24, 4  ;;  %v5653_v42 = vunpack.c.l.b16 %v2554_v12  ;;  %v2994_v55 = vsel %vm9696_vm10, %v8714_v22, %v2993_v31  ;;  %v2995_v52 = vrot.slane %v2993_v31, 4  ;;  %v5147_v16 = vld [vmem:[#allocation2 + $0x168] sm:$0xe]  ;;  %v3095_v22 = vld [vmem:[#allocation2 + $0x16c] sm:$0xf] }
 0x382   :  { %v1798_v26 = vsel %vm9727_vm11, %v1451_v38, %v1797_v3  ;;  %9279 = vmatpush.xpose.msk.msrb.mxu3 %vm6817_vm2, %v8156_v59  ;;  %v5811_v48 = vunpack.c.l.b16 %v2994_v55  ;;  %v6952_v28 = vsel %vm6914_vm3, %v12502_v36, %v5894_v6  ;;  %v8091_v44 = vmul.f32 0.2, %v12476_v56  ;;  %v3931_v2 = vld [vmem:[#allocation2 + $0x168] sm:$0xe]  ;;  %v12567_v36 = vpop.f32.mrf.mxu3  ;;  %v3131_v31 = vld [vmem:[#allocation2 + $0x170] sm:$0x1]  ;;  %v6086_v55 = vpop.permute.xlu2 %6085 }
 0x383   :  { %1799 = vst [vmem:[#allocation2 + $0x180] sm:$0xf] %v1798_v26  ;;  %v2564_v1 = vsel %vm9791_vm0, %v2559_v45, %v2563_v40  ;;  %v2997_v8 = vsel %vm9696_vm10, %v2995_v52, %v2996_v33  ;;  %v533_v47 = vadd.f32 %v12424_v30, %v532_v11  ;;  %v878_v63 = vsel %vm9676_vm7, 0, %v877_v41  ;;  %v12573_v40 = vld [vmem:[%s13656_s4] ss:$0 sm:$0xff]  ;;  %v7804_v33 = vpop.f32.mrf.mxu2 }
 0x384   :  { %v5654_v23 = vunpack.c.l.b16 %v2564_v1  ;;  %v5812_v4 = vunpack.c.l.b16 %v2997_v8  ;;  %v8155_v3 = vmax.f32 %v12476_v56, %v8091_v44  ;;  %879 = vst [vmem:[#allocation2 + $0x188] sm:$0x1] %v878_v63  ;;  %v7636_v24 = vadd.f32 %v12573_v40, %v7635_v60 }
 0x385   :  { %v604_v6 = vmul.f32 0.2, %v533_v47  ;;  %v8779_v38 = vrot.slane %v5147_v16, 9  ;;  %v5433_v12 = vrot.slane %v12550_v39, 5  ;;  %v5436_v59 = vrot.slane %v12558_v58, 5 }
 0x386   :  { %v5691_v11 = vpack.c.b16 %v5654_v23, %v5653_v42  ;;  %6099 = vrot.lane.b32.xlu2 %v9433_v17, %s9582_s12  ;;  %v5850_v56 = vpack.c.b16 %v5812_v4, %v5811_v48  ;;  %9280 = vmatpush.xpose.msk.msrb.mxu3 %vm6817_vm2, %v8155_v3  ;;  %v12580_v41 = vadd.f32 %v7804_v33, %v7636_v24  ;;  %v8748_v45 = vrot.slane %v3931_v2, 9  ;;  %v12584_v16 = vld [vmem:[#allocation2 + $0x11c] sm:$0x1]  ;;  %v12587_v42 = vpop.permute.xlu0 %6343 }
 0x387   :  { %v668_v52 = vmax.f32 %v533_v47, %v604_v6  ;;  %v5434_v60 = vsel %vm9696_vm10, %v8779_v38, %v5433_v12  ;;  %v5435_v26 = vrot.slane %v5433_v12, 4  ;;  %v4223_v44 = vrot.slane %v3095_v22, 5  ;;  %v4309_v38 = vld [vmem:[#allocation2 + $0x168] sm:$0xf]  ;;  %v12607_v12 = vld [vmem:[#allocation2 + $0x124] sm:$0xf] }
 0x388   :  { %13734 = vst [vmem:[#allocation5_spill] sm:$0xff] %v12580_v41  ;;  %v3636_v1 = vshll.u32 %v12584_v16, 16  ;;  %5749 = vrot.lane.b32.xlu0 %v5691_v11, %s9583_s1  ;;  %5907 = vrot.lane.b32.xlu1 %v5850_v56, %s9581_s22  ;;  %v6773_v48 = vunpack.c.l.b16 %v5434_v60  ;;  %v4226_v17 = vrot.slane %v3131_v31, 5  ;;  %v7035_v8 = vsel %vm6979_vm6, %v6952_v28, %v6086_v55  ;;  %v9436_v41 = vld [vmem:[#allocation2 + $0x174] sm:$0xff] }
 0x389   :  { %v945_v47 = vpack.c.bf16 %v668_v52, %v668_v52  ;;  %v5437_v63 = vsel %vm9696_vm10, %v5435_v26, %v5436_v59  ;;  %v4224_v2 = vsel %vm9696_vm10, %v8748_v45, %v4223_v44  ;;  %v4225_v23 = vrot.slane %v4223_v44, 4  ;;  %7674 = vmatmul.bf16.gmra.mxu1 %v7035_v8  ;;  %v3080_v45 = vld [vmem:[#allocation2 + $0x114] sm:$0xf] }
 0x38a   :  { %v3615_v4 = vsel %vm9791_vm0, %v12542_v35, %v12517_v62  ;;  %v6774_v3 = vunpack.c.l.b16 %v5437_v63  ;;  %v6263_v24 = vunpack.c.l.b16 %v4224_v2  ;;  %v8090_v22 = vmul.f32 0.2, %v12472_v7  ;;  %v12610_v62 = vld [vmem:[#allocation2 + $0x128] sm:$0x1]  ;;  %v12615_v60 = vpop.f32.mrf.mxu3 }
 0x38b   :  { %v3605_v28 = vsel %vm9791_vm0, %v12533_v46, %v12507_v0  ;;  %v1454_v31 = vshrl.u32 %v945_v47, 16  ;;  %v1457_v33 = vshll.u32 %v945_v47, 16  ;;  %v4227_v6 = vsel %vm9696_vm10, %v4225_v23, %v4226_v17  ;;  %v1801_v44 = vld [vmem:[#allocation2 + $0x188] sm:$0x1] }
 0x38c   :  { %v6811_v11 = vpack.c.b16 %v6774_v3, %v6773_v48  ;;  %v6264_v56 = vunpack.c.l.b16 %v4227_v6  ;;  %v6152_v55 = vunpack.c.l.b16 %v3615_v4  ;;  %v1452_v0 = vrot.slane %v12537_v32, 4  ;;  %v9466_v63 = vld [vmem:[#allocation2 + $0x168] sm:$0xff] }
 0x38d   :  { %v1456_v46 = vrot.slane %v1454_v31, 7  ;;  %v8154_v52 = vmax.f32 %v12472_v7, %v8090_v22  ;;  %v6151_v26 = vunpack.c.l.b16 %v3605_v28  ;;  %v4978_v8 = vshrl.u32 %v4309_v38, 16 }
 0x38e   :  { %9267 = vmatmul.msk.bf16.gmra.mxu3 %vm6817_vm2, %v6811_v11  ;;  %v6300_v17 = vpack.c.b16 %v6264_v56, %v6263_v24  ;;  %v4981_v47 = vshll.u32 %v4309_v38, 16  ;;  %v3617_v23 = vshrl.u32 %v3080_v45, 16  ;;  %v3620_v4 = vshll.u32 %v3080_v45, 16  ;;  %v782_v38 = vld [vmem:[#allocation2 + $0x18c] sm:$0x1]  ;;  %v9395_v11 = vld [vmem:[#allocation2 + $0xfc] sm:$0xff]  ;;  %v5736_v56 = vpop.permute.xlu0 %5735 }
 0x38f   :  { %v1459_v2 = vor.u32 %v1457_v33, %v1456_v46  ;;  %v1461_v48 = vrot.slane %v1456_v46, 4  ;;  %9281 = vmatpush.xpose.msk.msrb.mxu3 %vm6817_vm2, %v8154_v52  ;;  %v4980_v32 = vrot.slane %v4978_v8, 4  ;;  %v4987_v3 = vshll.u32 %v12550_v39, 16  ;;  %v9556_v33 = vld [vmem:[#allocation2 + $0x118] sm:$0xf] }
 0x390   :  { %6359 = vrot.lane.b32.xlu0 %v6300_v17, %s9583_s1  ;;  %v4983_v7 = vrot.slane %v4981_v47, 5  ;;  %v4991_v22 = vshrl.u32 %v12550_v39, 16  ;;  %6549 = vrot.lane.b32.xlu1 %v9466_v63, %s9581_s22  ;;  %v6196_v24 = vpack.c.b16 %v6152_v55, %v6151_v26  ;;  %v3626_v6 = vshll.u32 %v9556_v33, 16  ;;  %v13735_v55 = vld [vmem:[#allocation3_spill] sm:$0xff] }
 0x391   :  { %v1460_v28 = vsel %vm9744_vm13, %v1452_v0, %v1459_v2  ;;  %v1802_v31 = vsel %vm9663_vm4, %v1461_v48, %v1801_v44  ;;  %v4989_v46 = vrot.slane %v4987_v3, 5  ;;  %v4997_v39 = vshll.u32 %v12558_v58, 16  ;;  %v6536_v44 = vpop.permute.xlu1 %6535 }
 0x392   :  { %1800 = vst.msk [vmem:[#allocation2 + $0x184] sm:$0xf] %vm673_vm5, %v1460_v28  ;;  %v4984_v45 = vor.u32 %v4983_v7, %v4980_v32  ;;  %v4993_v52 = vrot.slane %v4991_v22, 4  ;;  %v12631_v26 = vadd.f32 %v13735_v55, %v11995_v25  ;;  %v3619_v0 = vrot.slane %v3617_v23, 4  ;;  %v535_v32 = vpop.f32.mrf.mxu0  ;;  %v1872_v7 = vld [vmem:[#allocation2 + $0x15c] sm:$0xf] }
 0x393   :  { %1803 = vst [vmem:[#allocation2 + $0x188] sm:$0x1] %v1802_v31  ;;  %v3622_v17 = vrot.slane %v3620_v4, 5  ;;  %v8089_v8 = vmul.f32 0.2, %v12459_v20  ;;  %v7135_v47 = vsel %vm6817_vm2, %v6196_v24, %v12587_v42  ;;  %v4999_v48 = vrot.slane %v4997_v39, 5 }
 0x394   :  { %v4985_v63 = vrot.slane %v4984_v45, 4  ;;  %v4994_v2 = vor.u32 %v4993_v52, %v4989_v46  ;;  %v12637_v58 = vsel %vm6817_vm2, %v9395_v11, %v5736_v56  ;;  %v536_v3 = vadd.f32 %v12424_v30, %v535_v32  ;;  %v12643_v4 = vld [vmem:[#allocation2 + $0x160] sm:$0xf]  ;;  %v12652_v11 = vpop.f32.mrf.mxu1  ;;  %v6696_v45 = vpop.permute.xlu2 %6695  ;;  %v12657_v39 = vld [vmem:[#allocation2 + $0x164] sm:$0x1] }
 0x395   :  { %v8153_v25 = vmax.f32 %v12459_v20, %v8089_v8  ;;  %v783_v23 = vsel %vm9663_vm4, 0, %v782_v38  ;;  %v12645_v22 = vrot.slane %v3626_v6, 5  ;;  %v13736_v42 = vshrl.u32 %v11716_v57, 16  ;;  %13737 = vst [vmem:[#allocation6_spill] sm:$0xff] %v12652_v11  ;;  %v12665_v32 = vpop.f32.mrf.mxu2 }
 0x396   :  { %v4990_v28 = vsel %vm9791_vm0, %v4985_v63, %v4989_v46  ;;  %v4995_v31 = vrot.slane %v4994_v2, 4  ;;  %784 = vst [vmem:[#allocation2 + $0x18c] sm:$0x1] %v783_v23  ;;  %v3623_v33 = vor.u32 %v3622_v17, %v3619_v0  ;;  %v605_v20 = vmul.f32 0.2, %v536_v3 }
 0x397   :  { %v3632_v24 = vrot.slane %v13736_v42, 4  ;;  %9282 = vmatpush.xpose.msk.msrb.mxu3 %vm6817_vm2, %v8153_v25  ;;  %v2566_v56 = vshrl.u32 %v1872_v7, 16  ;;  %v2569_v38 = vshll.u32 %v1872_v7, 16  ;;  %v6613_v52 = vunpack.c.l.b16 %v4990_v28  ;;  %13738 = vst [vmem:[#allocation8_spill] sm:$0xff] %v12665_v32  ;;  %v2711_v42 = vld [vmem:[#allocation2 + $0x150] sm:$0xe] }
 0x398   :  { %v5000_v6 = vsel %vm9791_vm0, %v4995_v31, %v4999_v48  ;;  %v7211_v57 = vsel %vm6914_vm3, %v7135_v47, %v6536_v44  ;;  %v2575_v46 = vshll.u32 %v12643_v4, 16  ;;  %v669_v0 = vmax.f32 %v536_v3, %v605_v20  ;;  %v3088_v32 = vld [vmem:[#allocation2 + $0x144] sm:$0xf] }
 0x399   :  { %v6614_v55 = vunpack.c.l.b16 %v5000_v6  ;;  %v2568_v17 = vrot.slane %v2566_v56, 4  ;;  %v2571_v8 = vrot.slane %v2569_v38, 5  ;;  %v3633_v63 = vor.u32 %v3632_v24, %v12645_v22  ;;  %v5896_v38 = vpop.permute.xlu1 %5895 }
 0x39a   :  { %v12663_v2 = vrot.slane %v3636_v1, 5  ;;  %v2577_v48 = vrot.slane %v2575_v46, 5  ;;  %v2579_v7 = vshrl.u32 %v12643_v4, 16  ;;  %v946_v47 = vpack.c.bf16 %v669_v0, %v669_v0 }
 0x39b   :  { %v6651_v44 = vpack.c.b16 %v6614_v55, %v6613_v52  ;;  %v2572_v25 = vor.u32 %v2571_v8, %v2568_v17  ;;  %v2585_v23 = vshll.u32 %v12657_v39, 16  ;;  %v12669_v3 = vrot.slane %v3623_v33, 4  ;;  %v537_v17 = vpop.f32.mrf.mxu0  ;;  %v880_v8 = vld [vmem:[#allocation2 + $0x194] sm:$0x1] }
 0x39c   :  { %v2581_v28 = vrot.slane %v2579_v7, 4  ;;  %v7294_v24 = vsel %vm6979_vm6, %v7211_v57, %v6696_v45  ;;  %v8088_v16 = vmul.f32 0.2, %v12631_v26  ;;  %v1463_v1 = vshrl.u32 %v946_v47, 16 }
 0x39d   :  { %6709 = vrot.lane.b32.xlu2 %v6651_v44, %s9582_s12  ;;  %v1466_v31 = vshll.u32 %v946_v47, 16  ;;  %v2573_v20 = vrot.slane %v2572_v25, 4  ;;  %v2587_v56 = vrot.slane %v2585_v23, 5  ;;  %7848 = vmatmul.bf16.gmra.mxu2 %v7294_v24  ;;  %v8715_v46 = vrot.slane %v2711_v42, 9  ;;  %v1804_v7 = vld [vmem:[#allocation2 + $0x18c] sm:$0xf]  ;;  %v6088_v24 = vpop.permute.xlu2 %6087 }
 0x39e   :  { %v2582_v6 = vor.u32 %v2581_v28, %v2577_v48  ;;  %v8152_v52 = vmax.f32 %v12631_v26, %v8088_v16  ;;  %v3000_v33 = vrot.slane %v12513_v15, 5  ;;  %v12676_v55 = vrot.slane %v3633_v63, 4  ;;  %v12690_v42 = vld [vmem:[#allocation2 + $0x178] sm:$0xf]  ;;  %v5148_v28 = vld [vmem:[#allocation2 + $0x174] sm:$0xe] }
 0x39f   :  { %v12678_v0 = vrot.slane %v1463_v1, 7  ;;  %v2578_v45 = vsel %vm9791_vm0, %v2573_v20, %v2577_v48  ;;  %v3003_v57 = vrot.slane %v12522_v37, 5  ;;  %v6954_v15 = vsel %vm6914_vm3, %v12637_v58, %v5896_v38  ;;  %v7640_v37 = vpop.f32.mrf.mxu1  ;;  %v9434_v1 = vld [vmem:[#allocation2 + $0x15c] sm:$0xff] }
 0x3a0   :  { %v2583_v44 = vrot.slane %v2582_v6, 4  ;;  %9283 = vmatpush.xpose.msk.msrb.mxu3 %vm6817_vm2, %v8152_v52  ;;  %v3001_v26 = vsel %vm9696_vm10, %v8715_v46, %v3000_v33  ;;  %v3002_v47 = vrot.slane %v3000_v33, 4  ;;  %v5655_v25 = vunpack.c.l.b16 %v2578_v45  ;;  %v12699_v38 = vld [vmem:[#allocation2 + $0x17c] sm:$0x1]  ;;  %v3932_v6 = vld [vmem:[#allocation2 + $0x174] sm:$0xe]  ;;  %v12701_v52 = vpop.f32.mrf.mxu3 }
 0x3a1   :  { %v1468_v63 = vor.u32 %v1466_v31, %v12678_v0  ;;  %v5813_v23 = vunpack.c.l.b16 %v3001_v26  ;;  %v8087_v48 = vmul.f32 0.2, %v11896_v43  ;;  %v538_v58 = vadd.f32 %v12424_v30, %v537_v17  ;;  %v7809_v17 = vpop.f32.mrf.mxu2 }
 0x3a2   :  { %v2588_v16 = vsel %vm9791_vm0, %v2583_v44, %v2587_v56  ;;  %v3004_v20 = vsel %vm9696_vm10, %v3002_v47, %v3003_v57  ;;  %v881_v31 = vsel %vm9676_vm7, 0, %v880_v8  ;;  %v3097_v44 = vld [vmem:[#allocation2 + $0x178] sm:$0xf]  ;;  %v3132_v57 = vld [vmem:[#allocation2 + $0x17c] sm:$0x1]  ;;  %v7641_v8 = vadd.f32 %v12573_v40, %v7640_v37 }
 0x3a3   :  { %v1805_v46 = vsel %vm9727_vm11, %v1468_v63, %v1804_v7  ;;  %v5656_v33 = vunpack.c.l.b16 %v2588_v16  ;;  %v5814_v45 = vunpack.c.l.b16 %v3004_v20  ;;  %v8151_v56 = vmax.f32 %v11896_v43, %v8087_v48  ;;  %882 = vst [vmem:[#allocation2 + $0x194] sm:$0x1] %v881_v31  ;;  %v3082_v37 = vld [vmem:[#allocation2 + $0x120] sm:$0xf] }
 0x3a4   :  { %1806 = vst [vmem:[#allocation2 + $0x18c] sm:$0xf] %v1805_v46  ;;  %v606_v26 = vmul.f32 0.2, %v538_v58  ;;  %v8780_v47 = vrot.slane %v5148_v28, 9  ;;  %v5440_v35 = vrot.slane %v12690_v42, 5  ;;  %v12711_v48 = vadd.f32 %v7809_v17, %v7641_v8  ;;  %v12715_v28 = vpop.permute.xlu0 %6345 }
 0x3a5   :  { %v5692_v59 = vpack.c.b16 %v5656_v33, %v5655_v25  ;;  %6101 = vrot.lane.b32.xlu2 %v9434_v1, %s9582_s12  ;;  %v5851_v29 = vpack.c.b16 %v5814_v45, %v5813_v23  ;;  %9284 = vmatpush.xpose.msk.msrb.mxu3 %vm6817_vm2, %v8151_v56  ;;  %v5443_v7 = vrot.slane %v12699_v38, 5  ;;  %v8749_v43 = vrot.slane %v3932_v6, 9 }
 0x3a6   :  { %v670_v63 = vmax.f32 %v538_v58, %v606_v26  ;;  %13739 = vst [vmem:[#allocation7_spill] sm:$0xff] %v12711_v48  ;;  %v5441_v16 = vsel %vm9696_vm10, %v8780_v47, %v5440_v35  ;;  %v5442_v20 = vrot.slane %v5440_v35, 4  ;;  %v4230_v23 = vrot.slane %v3097_v44, 5  ;;  %v12735_v47 = vpop.permute.xlu2 %6697 }
 0x3a7   :  { %5751 = vrot.lane.b32.xlu0 %v5692_v59, %s9583_s1  ;;  %5909 = vrot.lane.b32.xlu1 %v5851_v29, %s9581_s22  ;;  %v6775_v25 = vunpack.c.l.b16 %v5441_v16  ;;  %v4233_v1 = vrot.slane %v3132_v57, 5  ;;  %v7038_v31 = vsel %vm6979_vm6, %v6954_v15, %v6088_v24  ;;  %v3639_v58 = vsel %vm9791_vm0, %v12676_v55, %v12663_v2  ;;  %v4311_v57 = vld [vmem:[#allocation2 + $0x174] sm:$0xf]  ;;  %v12730_v2 = vld [vmem:[#allocation2 + $0x130] sm:$0xf] }
 0x3a8   :  { %v947_v6 = vpack.c.bf16 %v670_v63, %v670_v63  ;;  %v5444_v35 = vsel %vm9696_vm10, %v5442_v20, %v5443_v7  ;;  %7679 = vmatmul.bf16.gmra.mxu1 %v7038_v31  ;;  %v8086_v46 = vmul.f32 0.2, %v11883_v49  ;;  %v4231_v29 = vsel %vm9696_vm10, %v8749_v43, %v4230_v23  ;;  %v12743_v16 = vpop.f32.mrf.mxu3  ;;  %v9467_v31 = vld [vmem:[#allocation2 + $0x174] sm:$0xff] }
 0x3a9   :  { %v6776_v59 = vunpack.c.l.b16 %v5444_v35  ;;  %v4232_v33 = vrot.slane %v4230_v23, 4  ;;  %v3641_v45 = vshrl.u32 %v3082_v37, 16  ;;  %v6265_v24 = vunpack.c.l.b16 %v4231_v29 }
 0x3aa   :  { %v1471_v56 = vshrl.u32 %v947_v6, 16  ;;  %v1474_v15 = vshll.u32 %v947_v6, 16  ;;  %v8150_v44 = vmax.f32 %v11883_v49, %v8086_v46  ;;  %v3644_v8 = vshll.u32 %v3082_v37, 16 }
 0x3ab   :  { %v6812_v17 = vpack.c.b16 %v6776_v59, %v6775_v25  ;;  %v4234_v26 = vsel %vm9696_vm10, %v4232_v33, %v4233_v1  ;;  %v3629_v7 = vsel %vm9791_vm0, %v12669_v3, %v12645_v22  ;;  %v1469_v43 = vrot.slane %v12678_v0, 4  ;;  %v1808_v25 = vld [vmem:[#allocation2 + $0x194] sm:$0x1]  ;;  %v12747_v3 = vpop.f32.mrf.mxu2 }
 0x3ac   :  { %v1473_v49 = vrot.slane %v1471_v56, 7  ;;  %v6266_v63 = vunpack.c.l.b16 %v4234_v26  ;;  %9285 = vmatpush.xpose.msk.msrb.mxu3 %vm6817_vm2, %v8150_v44  ;;  %v6154_v20 = vunpack.c.l.b16 %v3639_v58  ;;  %v3643_v37 = vrot.slane %v3641_v45, 4  ;;  %13740 = vst [vmem:[#allocation3_spill] sm:$0xff] %v12747_v3  ;;  %v6538_v58 = vpop.permute.xlu1 %6537  ;;  %v12751_v56 = vpop.f32.mrf.mxu1 }
 0x3ad   :  { %9268 = vmatmul.msk.bf16.gmra.mxu3 %vm6817_vm2, %v6812_v17  ;;  %v5002_v23 = vshrl.u32 %v4311_v57, 16  ;;  %v5005_v1 = vshll.u32 %v4311_v57, 16  ;;  %v3650_v22 = vshll.u32 %v12607_v12, 16  ;;  %v3646_v0 = vrot.slane %v3644_v8, 5  ;;  %v785_v57 = vld [vmem:[#allocation2 + $0x198] sm:$0x1]  ;;  %v5738_v17 = vpop.permute.xlu0 %5737 }
 0x3ae   :  { %v1476_v6 = vor.u32 %v1474_v15, %v1473_v49  ;;  %v1478_v35 = vrot.slane %v1473_v49, 4  ;;  %v6301_v46 = vpack.c.b16 %v6266_v63, %v6265_v24  ;;  %v5011_v33 = vshll.u32 %v12690_v42, 16 }
 0x3af   :  { %v5004_v59 = vrot.slane %v5002_v23, 4  ;;  %v5007_v29 = vrot.slane %v5005_v1, 5  ;;  %6551 = vrot.lane.b32.xlu1 %v9467_v31, %s9581_s22  ;;  %v6153_v45 = vunpack.c.l.b16 %v3629_v7  ;;  %v5015_v44 = vshrl.u32 %v12690_v42, 16  ;;  %v13742_v1 = vld [vmem:[#allocation18_spill] sm:$0xff]  ;;  %v12766_v42 = vld [vmem:[#allocation2 + $0x134] sm:$0x1] }
 0x3b0   :  { %v1477_v15 = vsel %vm9744_vm13, %v1469_v43, %v1476_v6  ;;  %v1809_v24 = vsel %vm9663_vm4, %v1478_v35, %v1808_v25  ;;  %6361 = vrot.lane.b32.xlu0 %v6301_v46, %s9583_s1  ;;  %v13741_v26 = vshrl.u32 %v12607_v12, 16  ;;  %v5013_v63 = vrot.slane %v5011_v33, 5  ;;  %v540_v6 = vpop.f32.mrf.mxu0  ;;  %v9396_v46 = vld [vmem:[#allocation2 + $0x108] sm:$0xff] }
 0x3b1   :  { %1807 = vst.msk [vmem:[#allocation2 + $0x190] sm:$0xf] %vm673_vm5, %v1477_v15  ;;  %v5008_v49 = vor.u32 %v5007_v29, %v5004_v59  ;;  %v5021_v7 = vshll.u32 %v12699_v38, 16  ;;  %v6197_v23 = vpack.c.b16 %v6154_v20, %v6153_v45  ;;  %v12763_v43 = vrot.slane %v3650_v22, 5  ;;  %v1874_v29 = vld [vmem:[#allocation2 + $0x168] sm:$0xf] }
 0x3b2   :  { %v3656_v8 = vrot.slane %v13741_v26, 4  ;;  %1810 = vst [vmem:[#allocation2 + $0x194] sm:$0x1] %v1809_v24  ;;  %v5017_v25 = vrot.slane %v5015_v44, 4  ;;  %v8085_v31 = vmul.f32 0.2, %v13742_v1  ;;  %v3647_v15 = vor.u32 %v3646_v0, %v3643_v37  ;;  %v12782_v0 = vpop.permute.xlu2 %6089 }
 0x3b3   :  { %v5009_v12 = vrot.slane %v5008_v49, 4  ;;  %v541_v59 = vadd.f32 %v12424_v30, %v540_v6  ;;  %v7138_v38 = vsel %vm6817_vm2, %v6197_v23, %v12715_v28  ;;  %v5023_v22 = vrot.slane %v5021_v7, 5  ;;  %v12773_v45 = vld [vmem:[#allocation2 + $0x16c] sm:$0xf] }
 0x3b4   :  { %v5018_v20 = vor.u32 %v5017_v25, %v5013_v63  ;;  %v8149_v33 = vmax.f32 %v13742_v1, %v8085_v31  ;;  %v6880_v24 = vsel %vm6817_vm2, %v9396_v46, %v5738_v17  ;;  %v13743_v44 = vshll.u32 %v12610_v62, 16  ;;  %v12790_v25 = vld [vmem:[#allocation2 + $0x170] sm:$0x1]  ;;  %v12797_v46 = vpop.f32.mrf.mxu2 }
 0x3b5   :  { %v607_v37 = vmul.f32 0.2, %v541_v59  ;;  %v786_v30 = vsel %vm9663_vm4, 0, %v785_v57  ;;  %v3657_v28 = vor.u32 %v3656_v8, %v12763_v43  ;;  %v5014_v49 = vsel %vm9791_vm0, %v5009_v12, %v5013_v63 }
 0x3b6   :  { %v12778_v26 = vrot.slane %v13743_v44, 5  ;;  %v5019_v7 = vrot.slane %v5018_v20, 4  ;;  %9286 = vmatpush.xpose.msk.msrb.mxu3 %vm6817_vm2, %v8149_v33  ;;  %787 = vst [vmem:[#allocation2 + $0x198] sm:$0x1] %v786_v30  ;;  %v2590_v17 = vshrl.u32 %v1874_v29, 16  ;;  %v12788_v23 = vrot.slane %v3647_v15, 4  ;;  %v7645_v44 = vpop.f32.mrf.mxu1 }
 0x3b7   :  { %v671_v62 = vmax.f32 %v541_v59, %v607_v37  ;;  %v2593_v1 = vshll.u32 %v1874_v29, 16  ;;  %v2599_v57 = vshll.u32 %v12773_v45, 16  ;;  %v7213_v8 = vsel %vm6914_vm3, %v7138_v38, %v6538_v58  ;;  %v5898_v59 = vpop.permute.xlu1 %5897 }
 0x3b8   :  { %v5024_v31 = vsel %vm9791_vm0, %v5019_v7, %v5023_v22  ;;  %v2592_v6 = vrot.slane %v2590_v17, 4  ;;  %v2603_v63 = vshrl.u32 %v12773_v45, 16  ;;  %v6615_v12 = vunpack.c.l.b16 %v5014_v49  ;;  %v2712_v22 = vld [vmem:[#allocation2 + $0x15c] sm:$0xe]  ;;  %v12802_v7 = vpop.permute.xlu0 %6347 }
 0x3b9   :  { %v6616_v20 = vunpack.c.l.b16 %v5024_v31  ;;  %v948_v15 = vpack.c.bf16 %v671_v62, %v671_v62  ;;  %v2595_v33 = vrot.slane %v2593_v1, 5  ;;  %v12799_v37 = vrot.slane %v3657_v28, 4  ;;  %v13744_v1 = vld [vmem:[#allocation16_spill] sm:$0xff]  ;;  %v3133_v28 = vld [vmem:[#allocation2 + $0x188] sm:$0x1] }
 0x3ba   :  { %v2601_v29 = vrot.slane %v2599_v57, 5  ;;  %v2605_v30 = vrot.slane %v2603_v63, 4  ;;  %v2609_v35 = vshll.u32 %v12790_v25, 16  ;;  %v7297_v62 = vsel %vm6979_vm6, %v7213_v8, %v12735_v47 }
 0x3bb   :  { %v6652_v58 = vpack.c.b16 %v6616_v20, %v6615_v12  ;;  %v1480_v38 = vshrl.u32 %v948_v15, 16  ;;  %v1483_v17 = vshll.u32 %v948_v15, 16  ;;  %v2596_v55 = vor.u32 %v2595_v33, %v2592_v6  ;;  %7853 = vmatmul.bf16.gmra.mxu2 %v7297_v62 }
 0x3bc   :  { %v2606_v54 = vor.u32 %v2605_v30, %v2601_v29  ;;  %v2611_v49 = vrot.slane %v2609_v35, 5  ;;  %v8084_v31 = vmul.f32 0.2, %v13744_v1  ;;  %v8716_v12 = vrot.slane %v2712_v22, 9  ;;  %v542_v22 = vpop.f32.mrf.mxu0 }
 0x3bd   :  { %6711 = vrot.lane.b32.xlu2 %v6652_v58, %s9582_s12  ;;  %v12812_v57 = vrot.slane %v1480_v38, 7  ;;  %v2597_v63 = vrot.slane %v2596_v55, 4  ;;  %v1811_v6 = vld [vmem:[#allocation2 + $0x198] sm:$0xf]  ;;  %v3007_v47 = vrot.slane %v12643_v4, 5  ;;  %v3010_v8 = vrot.slane %v12657_v39, 5  ;;  %v12827_v38 = vpop.permute.xlu2 %6699 }
 0x3be   :  { %v2607_v20 = vrot.slane %v2606_v54, 4  ;;  %v8148_v35 = vmax.f32 %v13744_v1, %v8084_v31  ;;  %v3663_v15 = vsel %vm9791_vm0, %v12799_v37, %v12778_v26  ;;  %v6956_v30 = vsel %vm6914_vm3, %v6880_v24, %v5898_v59  ;;  %v883_v54 = vld [vmem:[#allocation2 + $0x1a0] sm:$0x1]  ;;  %v12825_v58 = vld [vmem:[#allocation2 + $0x184] sm:$0xf]  ;;  %v13745_v1 = vld [vmem:[#allocation15_spill] sm:$0xff] }
 0x3bf   :  { %v1485_v33 = vor.u32 %v1483_v17, %v12812_v57  ;;  %v2602_v55 = vsel %vm9791_vm0, %v2597_v63, %v2601_v29  ;;  %v3008_v26 = vsel %vm9696_vm10, %v8716_v12, %v3007_v47  ;;  %v3009_v37 = vrot.slane %v3007_v47, 4  ;;  %v12834_v17 = vld [vmem:[#allocation2 + $0x188] sm:$0x1]  ;;  %v5149_v29 = vld [vmem:[#allocation2 + $0x180] sm:$0xe] }
 0x3c0   :  { %v2612_v4 = vsel %vm9791_vm0, %v2607_v20, %v2611_v49  ;;  %v5657_v39 = vunpack.c.l.b16 %v2602_v55  ;;  %9287 = vmatpush.xpose.msk.msrb.mxu3 %vm6817_vm2, %v8148_v35  ;;  %v5815_v62 = vunpack.c.l.b16 %v3008_v26  ;;  %v8083_v31 = vmul.f32 0.2, %v13745_v1  ;;  %v3099_v63 = vld [vmem:[#allocation2 + $0x184] sm:$0xf]  ;;  %v12839_v49 = vpop.f32.mrf.mxu3  ;;  %v9559_v12 = vld [vmem:[%s13653_s2] ss:$0 sm:$0xff] }
 0x3c1   :  { %v1812_v24 = vsel %vm9727_vm11, %v1485_v33, %v1811_v6  ;;  %v5658_v59 = vunpack.c.l.b16 %v2612_v4  ;;  %13746 = vst [vmem:[#allocation18_spill] sm:$0xff] %v12839_v49  ;;  %v3011_v20 = vsel %vm9696_vm10, %v3009_v37, %v3010_v8  ;;  %v543_v35 = vadd.f32 %v9559_v12, %v542_v22  ;;  %v3933_v47 = vld [vmem:[#allocation2 + $0x180] sm:$0xe]  ;;  %v12849_v33 = vpop.f32.mrf.mxu2  ;;  %v9435_v4 = vld [vmem:[#allocation2 + $0x168] sm:$0xff]  ;;  %v12852_v37 = vpop.permute.xlu1 %6539 }
 0x3c2   :  { %1813 = vst [vmem:[#allocation2 + $0x198] sm:$0xf] %v1812_v24  ;;  %v884_v53 = vsel %vm9676_vm7, 0, %v883_v54  ;;  %v7646_v6 = vadd.f32 %v12573_v40, %v7645_v44  ;;  %v5816_v26 = vunpack.c.l.b16 %v3011_v20  ;;  %v8147_v24 = vmax.f32 %v13745_v1, %v8083_v31  ;;  %v12854_v49 = vpop.f32.mrf.mxu1  ;;  %v12862_v54 = vpop.permute.xlu0 %5739  ;;  %v3084_v31 = vld [vmem:[#allocation2 + $0x12c] sm:$0xf] }
 0x3c3   :  { %v5693_v55 = vpack.c.b16 %v5658_v59, %v5657_v39  ;;  %885 = vst [vmem:[#allocation2 + $0x1a0] sm:$0x1] %v884_v53  ;;  %v8781_v8 = vrot.slane %v5149_v29, 9  ;;  %v608_v22 = vmul.f32 0.2, %v543_v35  ;;  %v5447_v40 = vrot.slane %v12825_v58, 5 }
 0x3c4   :  { %v12857_v18 = vadd.f32 %v12797_v46, %v7646_v6  ;;  %v5450_v44 = vrot.slane %v12834_v17, 5  ;;  %v5852_v39 = vpack.c.b16 %v5816_v26, %v5815_v62  ;;  %v8750_v29 = vrot.slane %v3933_v47, 9  ;;  %9288 = vmatpush.xpose.msk.msrb.mxu3 %vm6817_vm2, %v8147_v24 }
 0x3c5   :  { %5753 = vrot.lane.b32.xlu0 %v5693_v55, %s9583_s1  ;;  %6103 = vrot.lane.b32.xlu2 %v9435_v4, %s9582_s12  ;;  %v4237_v59 = vrot.slane %v3099_v63, 5  ;;  %v4240_v1 = vrot.slane %v3133_v28, 5  ;;  %v12865_v20 = vunpack.c.l.b16 %v3663_v15  ;;  %v672_v46 = vmax.f32 %v543_v35, %v608_v22  ;;  %v4313_v22 = vld [vmem:[#allocation2 + $0x180] sm:$0xf] }
 0x3c6   :  { %13747 = vst [vmem:[#allocation16_spill] sm:$0xff] %v12857_v18  ;;  %v5448_v12 = vsel %vm9696_vm10, %v8781_v8, %v5447_v40  ;;  %v5449_v53 = vrot.slane %v5447_v40, 4  ;;  %5911 = vrot.lane.b32.xlu1 %v5852_v39, %s9581_s22  ;;  %v7041_v28 = vsel %vm6979_vm6, %v6956_v30, %v12782_v0  ;;  %v3665_v35 = vshrl.u32 %v3084_v31, 16  ;;  %v12880_v40 = vpop.permute.xlu2 %6091 }
 0x3c7   :  { %v6777_v6 = vunpack.c.l.b16 %v5448_v12  ;;  %v4238_v55 = vsel %vm9696_vm10, %v8750_v29, %v4237_v59  ;;  %v4239_v62 = vrot.slane %v4237_v59, 4  ;;  %v949_v63 = vpack.c.bf16 %v672_v46, %v672_v46  ;;  %7684 = vmatmul.bf16.gmra.mxu1 %v7041_v28 }
 0x3c8   :  { %v5451_v15 = vsel %vm9696_vm10, %v5449_v53, %v5450_v44  ;;  %v6267_v47 = vunpack.c.l.b16 %v4238_v55  ;;  %v3668_v24 = vshll.u32 %v3084_v31, 16  ;;  %v3674_v8 = vshll.u32 %v12730_v2, 16  ;;  %v12886_v55 = vpop.f32.mrf.mxu3 }
 0x3c9   :  { %v6778_v4 = vunpack.c.l.b16 %v5451_v15  ;;  %v4241_v26 = vsel %vm9696_vm10, %v4239_v62, %v4240_v1  ;;  %v1488_v39 = vshrl.u32 %v949_v63, 16  ;;  %v1491_v29 = vshll.u32 %v949_v63, 16  ;;  %13749 = vst [vmem:[#allocation15_spill] sm:$0xff] %v12886_v55  ;;  %v12889_v15 = vpop.f32.mrf.mxu2  ;;  %v12961_v55 = vld [vmem:[#allocation2 + $0x190] sm:$0xf] }
 0x3ca   :  { %v6268_v0 = vunpack.c.l.b16 %v4241_v26  ;;  %v3667_v30 = vrot.slane %v3665_v35, 4  ;;  %v3670_v46 = vrot.slane %v3668_v24, 5  ;;  %v12882_v44 = vrot.slane %v3674_v8, 5  ;;  %v1815_v35 = vld [vmem:[#allocation2 + $0x1a0] sm:$0x1] }
 0x3cb   :  { %v6813_v59 = vpack.c.b16 %v6778_v4, %v6777_v6  ;;  %v13748_v12 = vshrl.u32 %v12730_v2, 16  ;;  %v1486_v1 = vrot.slane %v12812_v57, 4  ;;  %v1490_v31 = vrot.slane %v1488_v39, 7  ;;  %v9468_v24 = vld [vmem:[#allocation2 + $0x180] sm:$0xff]  ;;  %v12898_v57 = vpop.permute.xlu1 %5899 }
 0x3cc   :  { %v6302_v62 = vpack.c.b16 %v6268_v0, %v6267_v47  ;;  %v5026_v28 = vshrl.u32 %v4313_v22, 16  ;;  %v13750_v6 = vsel %vm9791_vm0, %v12788_v23, %v12763_v43  ;;  %v3671_v2 = vor.u32 %v3670_v46, %v3667_v30  ;;  %v12900_v47 = vpop.f32.mrf.mxu1  ;;  %v12906_v30 = vpop.permute.xlu0 %6349 }
 0x3cd   :  { %v3680_v53 = vrot.slane %v13748_v12, 4  ;;  %v6155_v63 = vunpack.c.l.b16 %v13750_v6  ;;  %9269 = vmatmul.msk.bf16.gmra.mxu3 %vm6817_vm2, %v6813_v59  ;;  %v5029_v4 = vshll.u32 %v4313_v22, 16  ;;  %v5035_v26 = vshll.u32 %v12825_v58, 16  ;;  %v12918_v6 = vld [vmem:[#allocation2 + $0x178] sm:$0xf] }
 0x3ce   :  { %v1493_v8 = vor.u32 %v1491_v29, %v1490_v31  ;;  %v1495_v39 = vrot.slane %v1490_v31, 4  ;;  %6363 = vrot.lane.b32.xlu0 %v6302_v62, %s9583_s1  ;;  %v5028_v0 = vrot.slane %v5026_v28, 4  ;;  %v5039_v43 = vshrl.u32 %v12825_v58, 16  ;;  %6553 = vrot.lane.b32.xlu1 %v9468_v24, %s9581_s22  ;;  %v1876_v58 = vld [vmem:[#allocation2 + $0x174] sm:$0xf] }
 0x3cf   :  { %v6198_v23 = vpack.c.b16 %v12865_v20, %v6155_v63  ;;  %v3681_v59 = vor.u32 %v3680_v53, %v12882_v44  ;;  %v5031_v22 = vrot.slane %v5029_v4, 5  ;;  %v5037_v46 = vrot.slane %v5035_v26, 5  ;;  %v12914_v28 = vld [vmem:[#allocation2 + $0x13c] sm:$0xf] }
 0x3d0   :  { %v1494_v12 = vsel %vm9744_vm13, %v1486_v1, %v1493_v8  ;;  %v1816_v29 = vsel %vm9663_vm4, %v1495_v39, %v1815_v35  ;;  %v5041_v31 = vrot.slane %v5039_v43, 4  ;;  %v5045_v62 = vshll.u32 %v12834_v17, 16  ;;  %v12924_v8 = vpop.permute.xlu2 %6701 }
 0x3d1   :  { %1814 = vst.msk [vmem:[#allocation2 + $0x19c] sm:$0xf] %vm673_vm5, %v1494_v12  ;;  %v5032_v53 = vor.u32 %v5031_v22, %v5028_v0  ;;  %v7141_v5 = vsel %vm6817_vm2, %v6198_v23, %v12802_v7  ;;  %v3672_v1 = vrot.slane %v3671_v2, 4  ;;  %v13751_v35 = vshll.u32 %v12766_v42, 16  ;;  %v12932_v23 = vld [vmem:[#allocation2 + $0x17c] sm:$0x1] }
 0x3d2   :  { %1817 = vst [vmem:[#allocation2 + $0x1a0] sm:$0x1] %v1816_v29  ;;  %v5042_v13 = vor.u32 %v5041_v31, %v5037_v46  ;;  %v5047_v63 = vrot.slane %v5045_v62, 5  ;;  %v2614_v26 = vshrl.u32 %v1876_v58, 16  ;;  %v2617_v24 = vshll.u32 %v1876_v58, 16 }
 0x3d3   :  { %v3686_v17 = vrot.slane %v13751_v35, 5  ;;  %v5033_v4 = vrot.slane %v5032_v53, 4  ;;  %v3682_v39 = vrot.slane %v3681_v59, 4  ;;  %v2623_v0 = vshll.u32 %v12918_v6, 16  ;;  %v2713_v29 = vld [vmem:[#allocation2 + $0x168] sm:$0xe]  ;;  %v12942_v53 = vpop.f32.mrf.mxu2 }
 0x3d4   :  { %v5043_v43 = vrot.slane %v5042_v13, 4  ;;  %v2627_v22 = vshrl.u32 %v12918_v6, 16  ;;  %v7215_v2 = vsel %vm6914_vm3, %v7141_v5, %v12852_v37  ;;  %v2616_v42 = vrot.slane %v2614_v26, 4  ;;  %v12934_v31 = vld [vmem:[#allocation2 + $0x140] sm:$0x1]  ;;  %v12946_v26 = vpop.f32.mrf.mxu1 }
 0x3d5   :  { %v5038_v7 = vsel %vm9791_vm0, %v5033_v4, %v5037_v46  ;;  %v2619_v12 = vrot.slane %v2617_v24, 5  ;;  %v3677_v62 = vsel %vm9791_vm0, %v3672_v1, %v12882_v44  ;;  %v2625_v46 = vrot.slane %v2623_v0, 5  ;;  %v12944_v4 = vpop.permute.xlu1 %6541  ;;  %v9397_v24 = vld [vmem:[#allocation2 + $0x114] sm:$0xff] }
 0x3d6   :  { %v5048_v58 = vsel %vm9791_vm0, %v5043_v43, %v5047_v63  ;;  %v6617_v37 = vunpack.c.l.b16 %v5038_v7  ;;  %v2629_v35 = vrot.slane %v2627_v22, 4  ;;  %v3687_v59 = vsel %vm9791_vm0, %v3682_v39, %v3686_v17 }
 0x3d7   :  { %v6618_v5 = vunpack.c.l.b16 %v5048_v58  ;;  %v2620_v13 = vor.u32 %v2619_v12, %v2616_v42  ;;  %v2633_v44 = vshll.u32 %v12932_v23, 16  ;;  %v7300_v1 = vsel %vm6979_vm6, %v7215_v2, %v12827_v38  ;;  %v12953_v42 = vpop.permute.xlu0 %5741  ;;  %v5150_v12 = vld [vmem:[#allocation2 + $0x18c] sm:$0xe]  ;;  %v12963_v38 = vld [vmem:[#allocation2 + $0x194] sm:$0x1] }
 0x3d8   :  { %v8717_v63 = vrot.slane %v2713_v29, 9  ;;  %v2630_v7 = vor.u32 %v2629_v35, %v2625_v46  ;;  %7858 = vmatmul.bf16.gmra.mxu2 %v7300_v1  ;;  %v3014_v22 = vrot.slane %v12773_v45, 5  ;;  %v6883_v58 = vsel %vm6817_vm2, %v9397_v24, %v12862_v54  ;;  %v3934_v54 = vld [vmem:[#allocation2 + $0x18c] sm:$0xe]  ;;  %v3101_v24 = vld [vmem:[#allocation2 + $0x190] sm:$0xf] }
 0x3d9   :  { %v6653_v43 = vpack.c.b16 %v6618_v5, %v6617_v37  ;;  %v2621_v0 = vrot.slane %v2620_v13, 4  ;;  %v12958_v20 = vunpack.c.l.b16 %v3677_v62  ;;  %v2635_v17 = vrot.slane %v2633_v44, 5  ;;  %v12970_v62 = vpop.f32.mrf.mxu3  ;;  %v3134_v44 = vld [vmem:[#allocation2 + $0x194] sm:$0x1]  ;;  %v13065_v14 = vld [vmem:[#allocation2 + $0x1a0] sm:$0x1] }
 0x3da   :  { %v3017_v39 = vrot.slane %v12790_v25, 5  ;;  %v2631_v29 = vrot.slane %v2630_v7, 4  ;;  %v3015_v45 = vsel %vm9696_vm10, %v8717_v63, %v3014_v22  ;;  %v3016_v37 = vrot.slane %v3014_v22, 4  ;;  %13752 = vst [vmem:[#allocation26_spill] sm:$0xff] %v12970_v62 }
 0x3db   :  { %6713 = vrot.lane.b32.xlu2 %v6653_v43, %s9582_s12  ;;  %v2626_v2 = vsel %vm9791_vm0, %v2621_v0, %v2625_v46  ;;  %v12972_v5 = vunpack.c.l.b16 %v3687_v59  ;;  %v5817_v25 = vunpack.c.l.b16 %v3015_v45  ;;  %v6958_v13 = vsel %vm6914_vm3, %v6883_v58, %v12898_v57  ;;  %v12982_v0 = vpop.permute.xlu2 %6093  ;;  %v3086_v57 = vld [vmem:[#allocation2 + $0x138] sm:$0xf]  ;;  %v12988_v50 = vpop.f32.mrf.mxu2 }
 0x3dc   :  { %v8782_v35 = vrot.slane %v5150_v12, 9  ;;  %v2636_v46 = vsel %vm9791_vm0, %v2631_v29, %v2635_v17  ;;  %v3018_v1 = vsel %vm9696_vm10, %v3016_v37, %v3017_v39  ;;  %v5454_v63 = vrot.slane %v12961_v55, 5 }
 0x3dd   :  { %v5457_v43 = vrot.slane %v12963_v38, 5  ;;  %v5659_v59 = vunpack.c.l.b16 %v2626_v2  ;;  %v5660_v7 = vunpack.c.l.b16 %v2636_v46  ;;  %v5818_v22 = vunpack.c.l.b16 %v3018_v1 }
 0x3de   :  { %v8751_v45 = vrot.slane %v3934_v54, 9  ;;  %v5455_v12 = vsel %vm9696_vm10, %v8782_v35, %v5454_v63  ;;  %v5456_v58 = vrot.slane %v5454_v63, 4  ;;  %v4244_v62 = vrot.slane %v3101_v24, 5  ;;  %v12994_v24 = vpop.permute.xlu1 %5901  ;;  %v4315_v63 = vld [vmem:[#allocation2 + $0x18c] sm:$0xf] }
 0x3df   :  { %v4247_v17 = vrot.slane %v3134_v44, 5  ;;  %v5694_v29 = vpack.c.b16 %v5660_v7, %v5659_v59  ;;  %v5853_v51 = vpack.c.b16 %v5818_v22, %v5817_v25  ;;  %v6779_v39 = vunpack.c.l.b16 %v5455_v12  ;;  %v12996_v44 = vpop.f32.mrf.mxu1  ;;  %v13008_v12 = vpop.permute.xlu0 %6351 }
 0x3e0   :  { %v7044_v37 = vsel %vm6979_vm6, %v6958_v13, %v12880_v40  ;;  %v5458_v2 = vsel %vm9696_vm10, %v5456_v58, %v5457_v43  ;;  %v4245_v54 = vsel %vm9696_vm10, %v8751_v45, %v4244_v62  ;;  %v4246_v46 = vrot.slane %v4244_v62, 4 }
 0x3e1   :  { %7689 = vmatmul.bf16.gmra.mxu1 %v7044_v37  ;;  %v3689_v35 = vshrl.u32 %v3086_v57, 16  ;;  %5755 = vrot.lane.b32.xlu0 %v5694_v29, %s9583_s1  ;;  %v6780_v40 = vunpack.c.l.b16 %v5458_v2  ;;  %v6269_v25 = vunpack.c.l.b16 %v4245_v54  ;;  %v3692_v13 = vshll.u32 %v3086_v57, 16 }
 0x3e2   :  { %5913 = vrot.lane.b32.xlu1 %v5853_v51, %s9581_s22  ;;  %v3698_v1 = vshll.u32 %v12914_v28, 16  ;;  %v4248_v62 = vsel %vm9696_vm10, %v4246_v46, %v4247_v17  ;;  %v13753_v59 = vshrl.u32 %v12914_v28, 16  ;;  %v13754_v22 = vshll.u32 %v12934_v31, 16  ;;  %v13012_v17 = vpop.f32.mrf.mxu3 }
 0x3e3   :  { %6105 = vrot.lane.b32.xlu2 %v9436_v41, %s9582_s12  ;;  %v3691_v43 = vrot.slane %v3689_v35, 4  ;;  %v6814_v51 = vpack.c.b16 %v6780_v40, %v6779_v39  ;;  %v6270_v58 = vunpack.c.l.b16 %v4248_v62  ;;  %v3694_v57 = vrot.slane %v3692_v13, 5  ;;  %13755 = vst [vmem:[#allocation27_spill] sm:$0xff] %v13012_v17  ;;  %v13016_v62 = vld [vmem:[#allocation2 + $0x184] sm:$0xf] }
 0x3e4   :  { %v3704_v7 = vrot.slane %v13753_v59, 4  ;;  %v3710_v45 = vrot.slane %v13754_v22, 5  ;;  %v3700_v29 = vrot.slane %v3698_v1, 5  ;;  %v5050_v37 = vshrl.u32 %v4315_v63, 16  ;;  %v1878_v59 = vld [vmem:[#allocation2 + $0x180] sm:$0xf] }
 0x3e5   :  { %v5053_v2 = vshll.u32 %v4315_v63, 16  ;;  %v5059_v41 = vshll.u32 %v12961_v55, 16  ;;  %v5063_v54 = vshrl.u32 %v12961_v55, 16  ;;  %9270 = vmatmul.msk.bf16.gmra.mxu3 %vm6817_vm2, %v6814_v51  ;;  %v6303_v28 = vpack.c.b16 %v6270_v58, %v6269_v25  ;;  %v13020_v55 = vpop.permute.xlu2 %6703  ;;  %v9469_v51 = vld [vmem:[#allocation2 + $0x18c] sm:$0xff] }
 0x3e6   :  { %v3695_v46 = vor.u32 %v3694_v57, %v3691_v43  ;;  %v3705_v31 = vor.u32 %v3704_v7, %v3700_v29  ;;  %v5069_v35 = vshll.u32 %v12963_v38, 16  ;;  %v5052_v39 = vrot.slane %v5050_v37, 4  ;;  %v13022_v38 = vld [vmem:[#allocation2 + $0x148] sm:$0xf] }
 0x3e7   :  { %v5055_v40 = vrot.slane %v5053_v2, 5  ;;  %v5061_v13 = vrot.slane %v5059_v41, 5  ;;  %v5065_v1 = vrot.slane %v5063_v54, 4  ;;  %v6199_v63 = vpack.c.b16 %v12972_v5, %v12958_v20  ;;  %v13028_v5 = vpop.f32.mrf.mxu2 }
 0x3e8   :  { %v3696_v22 = vrot.slane %v3695_v46, 4  ;;  %v3706_v17 = vrot.slane %v3705_v31, 4  ;;  %v5071_v7 = vrot.slane %v5069_v35, 5  ;;  %v2638_v58 = vshrl.u32 %v1878_v59, 16  ;;  %v13034_v31 = vpop.permute.xlu1 %6543  ;;  %v13036_v35 = vpop.f32.mrf.mxu1 }
 0x3e9   :  { %v5056_v25 = vor.u32 %v5055_v40, %v5052_v39  ;;  %v5066_v43 = vor.u32 %v5065_v1, %v5061_v13  ;;  %6365 = vrot.lane.b32.xlu0 %v6303_v28, %s9583_s1  ;;  %v2641_v37 = vshll.u32 %v1878_v59, 16  ;;  %v2647_v20 = vshll.u32 %v13016_v62, 16  ;;  %v13042_v39 = vld [vmem:[#allocation2 + $0x188] sm:$0x1] }
 0x3ea   :  { %6555 = vrot.lane.b32.xlu1 %v9469_v51, %s9581_s22  ;;  %v7144_v2 = vsel %vm6817_vm2, %v6199_v63, %v12906_v30  ;;  %v3711_v41 = vsel %vm9791_vm0, %v3706_v17, %v3710_v45  ;;  %v3701_v28 = vsel %vm9791_vm0, %v3696_v22, %v3700_v29  ;;  %v2640_v40 = vrot.slane %v2638_v58, 4  ;;  %v13049_v51 = vpop.permute.xlu0 %5743 }
 0x3eb   :  { %v5057_v54 = vrot.slane %v5056_v25, 4  ;;  %v5067_v46 = vrot.slane %v5066_v43, 4  ;;  %v7217_v59 = vsel %vm6914_vm3, %v7144_v2, %v12944_v4  ;;  %v2643_v1 = vrot.slane %v2641_v37, 5  ;;  %v2714_v25 = vld [vmem:[#allocation2 + $0x174] sm:$0xe] }
 0x3ec   :  { %v2649_v17 = vrot.slane %v2647_v20, 5  ;;  %v2651_v63 = vshrl.u32 %v13016_v62, 16  ;;  %v13051_v29 = vunpack.c.l.b16 %v3711_v41  ;;  %v13053_v2 = vld [vmem:[#allocation2 + $0x14c] sm:$0x1]  ;;  %v5151_v20 = vld [vmem:[#allocation2 + $0x198] sm:$0xe] }
 0x3ed   :  { %v5062_v30 = vsel %vm9791_vm0, %v5057_v54, %v5061_v13  ;;  %v5072_v45 = vsel %vm9791_vm0, %v5067_v46, %v5071_v7  ;;  %v2644_v43 = vor.u32 %v2643_v1, %v2640_v40  ;;  %v2657_v13 = vshll.u32 %v13042_v39, 16  ;;  %v9398_v54 = vld [vmem:[#allocation2 + $0x120] sm:$0xff] }
 0x3ee   :  { %v6619_v22 = vunpack.c.l.b16 %v5062_v30  ;;  %v6620_v4 = vunpack.c.l.b16 %v5072_v45  ;;  %v2653_v37 = vrot.slane %v2651_v63, 4  ;;  %v7303_v7 = vsel %vm6979_vm6, %v7217_v59, %v12924_v8  ;;  %v13061_v45 = vld [vmem:[#allocation2 + $0x19c] sm:$0xf]  ;;  %v13072_v59 = vpop.permute.xlu2 %6095 }
 0x3ef   :  { %v13059_v46 = vunpack.c.l.b16 %v3701_v28  ;;  %v2645_v41 = vrot.slane %v2644_v43, 4  ;;  %7863 = vmatmul.bf16.gmra.mxu2 %v7303_v7  ;;  %v8718_v30 = vrot.slane %v2714_v25, 9  ;;  %v2659_v1 = vrot.slane %v2657_v13, 5  ;;  %v13077_v25 = vld [vmem:[%s13656_s4] ss:$0 sm:$0xff]  ;;  %v13087_v13 = vpop.f32.mrf.mxu3  ;;  %v13093_v28 = vpop.f32.mrf.mxu2 }
 0x3f0   :  { %v6654_v57 = vpack.c.b16 %v6620_v4, %v6619_v22  ;;  %v2654_v40 = vor.u32 %v2653_v37, %v2649_v17  ;;  %v3021_v58 = vrot.slane %v12918_v6, 5  ;;  %v3024_v63 = vrot.slane %v12932_v23, 5  ;;  %v3103_v22 = vld [vmem:[#allocation2 + $0x19c] sm:$0xf]  ;;  %v3935_v4 = vld [vmem:[#allocation2 + $0x198] sm:$0xe] }
 0x3f1   :  { %v6886_v8 = vsel %vm6817_vm2, %v9398_v54, %v12953_v42  ;;  %v13081_v6 = vadd.f32 %v13077_v25, %v12946_v26  ;;  %v8783_v23 = vrot.slane %v5151_v20, 9  ;;  %v2650_v42 = vsel %vm9791_vm0, %v2645_v41, %v2649_v17  ;;  %13756 = vst [vmem:[#allocation28_spill] sm:$0xff] %v13087_v13  ;;  %v13099_v13 = vpop.permute.xlu1 %5903 }
 0x3f2   :  { %6715 = vrot.lane.b32.xlu2 %v6654_v57, %s9582_s12  ;;  %v2655_v43 = vrot.slane %v2654_v40, 4  ;;  %v3022_v57 = vsel %vm9696_vm10, %v8718_v30, %v3021_v58  ;;  %v3023_v37 = vrot.slane %v3021_v58, 4  ;;  %v6960_v54 = vsel %vm6914_vm3, %v6886_v8, %v12994_v24  ;;  %v3135_v30 = vld [vmem:[#allocation2 + $0x1a0] sm:$0x1] }
 0x3f3   :  { %v5819_v7 = vunpack.c.l.b16 %v3022_v57  ;;  %v5461_v26 = vrot.slane %v13061_v45, 5  ;;  %v5464_v20 = vrot.slane %v13065_v14, 5  ;;  %v8752_v58 = vrot.slane %v3935_v4, 9  ;;  %v13101_v57 = vpop.f32.mrf.mxu1  ;;  %v9437_v4 = vld [vmem:[#allocation2 + $0x180] sm:$0xff] }
 0x3f4   :  { %v2660_v17 = vsel %vm9791_vm0, %v2655_v43, %v2659_v1  ;;  %v3025_v41 = vsel %vm9696_vm10, %v3023_v37, %v3024_v63  ;;  %v4251_v40 = vrot.slane %v3103_v22, 5  ;;  %v5661_v24 = vunpack.c.l.b16 %v2650_v42  ;;  %v13107_v43 = vpop.permute.xlu0 %6353 }
 0x3f5   :  { %v5662_v8 = vunpack.c.l.b16 %v2660_v17  ;;  %v5820_v9 = vunpack.c.l.b16 %v3025_v41  ;;  %v5462_v48 = vsel %vm9696_vm10, %v8783_v23, %v5461_v26  ;;  %v5463_v11 = vrot.slane %v5461_v26, 4 }
 0x3f6   :  { %v6781_v21 = vunpack.c.l.b16 %v5462_v48  ;;  %v4252_v1 = vsel %vm9696_vm10, %v8752_v58, %v4251_v40  ;;  %v4253_v63 = vrot.slane %v4251_v40, 4  ;;  %v4254_v18 = vrot.slane %v3135_v30, 5  ;;  %v4317_v48 = vld [vmem:[#allocation2 + $0x198] sm:$0xf]  ;;  %v13123_v40 = vpop.permute.xlu2 %6705 }
 0x3f7   :  { %v5695_v22 = vpack.c.b16 %v5662_v8, %v5661_v24  ;;  %v5854_v37 = vpack.c.b16 %v5820_v9, %v5819_v7  ;;  %v6271_v3 = vunpack.c.l.b16 %v4252_v1  ;;  %v5465_v42 = vsel %vm9696_vm10, %v5463_v11, %v5464_v20 }
 0x3f8   :  { %v7047_v23 = vsel %vm6979_vm6, %v6960_v54, %v12982_v0  ;;  %v3713_v17 = vshrl.u32 %v3088_v32, 16  ;;  %v3716_v26 = vshll.u32 %v3088_v32, 16  ;;  %v6782_v41 = vunpack.c.l.b16 %v5465_v42  ;;  %v9399_v42 = vld [vmem:[#allocation2 + $0x12c] sm:$0xff] }
 0x3f9   :  { %5757 = vrot.lane.b32.xlu0 %v5695_v22, %s9583_s1  ;;  %v4255_v58 = vsel %vm9696_vm10, %v4253_v63, %v4254_v18  ;;  %v3722_v9 = vshll.u32 %v13022_v38, 16  ;;  %v13757_v7 = vshrl.u32 %v13022_v38, 16  ;;  %5915 = vrot.lane.b32.xlu1 %v5854_v37, %s9581_s22  ;;  %v13758_v54 = vshll.u32 %v13053_v2, 16  ;;  %v13127_v37 = vpop.f32.mrf.mxu3 }
 0x3fa   :  { %6107 = vrot.lane.b32.xlu2 %v9437_v4, %s9582_s12  ;;  %v6272_v11 = vunpack.c.l.b16 %v4255_v58  ;;  %7694 = vmatmul.bf16.gmra.mxu1 %v7047_v23  ;;  %v3715_v0 = vrot.slane %v3713_v17, 4  ;;  %v3718_v32 = vrot.slane %v3716_v26, 5  ;;  %v6815_v24 = vpack.c.b16 %v6782_v41, %v6781_v21  ;;  %v1880_v21 = vld [vmem:[#allocation2 + $0x18c] sm:$0xf]  ;;  %v13131_v41 = vpop.f32.mrf.mxu2 }
 0x3fb   :  { %v3728_v30 = vrot.slane %v13757_v7, 4  ;;  %v3734_v20 = vrot.slane %v13758_v54, 5  ;;  %v3724_v8 = vrot.slane %v3722_v9, 5  ;;  %v5074_v1 = vshrl.u32 %v4317_v48, 16  ;;  %v13138_v7 = vpop.permute.xlu1 %6545 }
 0x3fc   :  { %v5077_v18 = vshll.u32 %v4317_v48, 16  ;;  %v6304_v63 = vpack.c.b16 %v6272_v11, %v6271_v3  ;;  %v3719_v22 = vor.u32 %v3718_v32, %v3715_v0  ;;  %v5083_v38 = vshll.u32 %v13061_v45, 16  ;;  %9271 = vmatmul.msk.bf16.gmra.mxu3 %vm6817_vm2, %v6815_v24  ;;  %v13140_v11 = vpop.f32.mrf.mxu1 }
 0x3fd   :  { %v5087_v4 = vshrl.u32 %v13061_v45, 16  ;;  %v3729_v23 = vor.u32 %v3728_v30, %v3724_v8  ;;  %v5076_v2 = vrot.slane %v5074_v1, 4  ;;  %v5093_v26 = vshll.u32 %v13065_v14, 16 }
 0x3fe   :  { %v5079_v17 = vrot.slane %v5077_v18, 5  ;;  %v13759_v3 = vpack.c.b16 %v13051_v29, %v13059_v46  ;;  %v3720_v45 = vrot.slane %v3719_v22, 4  ;;  %v5085_v58 = vrot.slane %v5083_v38, 5  ;;  %v9470_v29 = vld [vmem:[#allocation2 + $0x198] sm:$0xff]  ;;  %v13146_v46 = vld [vmem:[#allocation2 + $0x190] sm:$0xf]  ;;  %v13148_v18 = vpop.permute.xlu0 %5745 }
 0x3ff   :  { %v5089_v9 = vrot.slane %v5087_v4, 4  ;;  %v6889_v30 = vsel %vm6817_vm2, %v9399_v42, %v13049_v51  ;;  %v7656_v14 = vadd.f32 %v13077_v25, %v12996_v44  ;;  %v3730_v0 = vrot.slane %v3729_v23, 4  ;;  %v13158_v23 = vld [vmem:[#allocation2 + $0x194] sm:$0x1] }
 0x400   :  { %v7147_v48 = vsel %vm6817_vm2, %v13759_v3, %v13008_v12  ;;  %v5080_v32 = vor.u32 %v5079_v17, %v5076_v2  ;;  %v5095_v24 = vrot.slane %v5093_v26, 5  ;;  %v2662_v12 = vshrl.u32 %v1880_v21, 16 }
 0x401   :  { %v5090_v54 = vor.u32 %v5089_v9, %v5085_v58  ;;  %v2665_v1 = vshll.u32 %v1880_v21, 16  ;;  %6367 = vrot.lane.b32.xlu0 %v6304_v63, %s9583_s1  ;;  %v3725_v22 = vsel %vm9791_vm0, %v3720_v45, %v3724_v8  ;;  %v3735_v51 = vsel %vm9791_vm0, %v3730_v0, %v3734_v20  ;;  %6557 = vrot.lane.b32.xlu1 %v9470_v29, %s9581_s22  ;;  %v2715_v45 = vld [vmem:[#allocation2 + $0x180] sm:$0xe]  ;;  %v13168_v0 = vpop.permute.xlu2 %6097 }
 0x402   :  { %v5081_v44 = vrot.slane %v5080_v32, 4  ;;  %v7219_v38 = vsel %vm6914_vm3, %v7147_v48, %v13034_v31  ;;  %v6162_v4 = vunpack.c.l.b16 %v3735_v51  ;;  %v2664_v2 = vrot.slane %v2662_v12, 4  ;;  %v13171_v29 = vpop.f32.mrf.mxu2 }
 0x403   :  { %v5091_v42 = vrot.slane %v5090_v54, 4  ;;  %v2667_v17 = vrot.slane %v2665_v1, 5  ;;  %v7658_v8 = vadd.f32 %v13077_v25, %v13036_v35  ;;  %v2671_v20 = vshll.u32 %v13146_v46, 16 }
 0x404   :  { %v5086_v63 = vsel %vm9791_vm0, %v5081_v44, %v5085_v58  ;;  %v2675_v26 = vshrl.u32 %v13146_v46, 16  ;;  %v6161_v21 = vunpack.c.l.b16 %v3725_v22  ;;  %v2681_v58 = vshll.u32 %v13158_v23, 16  ;;  %v13178_v22 = vpop.permute.xlu1 %5905  ;;  %v13180_v51 = vpop.f32.mrf.mxu1 }
 0x405   :  { %v5096_v31 = vsel %vm9791_vm0, %v5091_v42, %v5095_v24  ;;  %v6621_v3 = vunpack.c.l.b16 %v5086_v63  ;;  %v2668_v48 = vor.u32 %v2667_v17, %v2664_v2  ;;  %v2673_v32 = vrot.slane %v2671_v20, 5  ;;  %v3090_v63 = vld [vmem:[#allocation2 + $0x150] sm:$0xf] }
 0x406   :  { %v6622_v9 = vunpack.c.l.b16 %v5096_v31  ;;  %v2677_v54 = vrot.slane %v2675_v26, 4  ;;  %v13174_v35 = vadd.f32 %v12988_v50, %v7656_v14  ;;  %v6201_v12 = vpack.c.b16 %v6162_v4, %v6161_v21 }
 0x407   :  { %v2669_v1 = vrot.slane %v2668_v48, 4  ;;  %v7306_v24 = vsel %vm6979_vm6, %v7219_v38, %v13020_v55  ;;  %v2683_v2 = vrot.slane %v2681_v58, 5  ;;  %v8719_v17 = vrot.slane %v2715_v45, 9  ;;  %v4319_v45 = vld [vmem:[#allocation2 + $0x1a4] sm:$0xf] }
 0x408   :  { %v6655_v44 = vpack.c.b16 %v6622_v9, %v6621_v3  ;;  %v2678_v42 = vor.u32 %v2677_v54, %v2673_v32  ;;  %7868 = vmatmul.bf16.gmra.mxu2 %v7306_v24  ;;  %v3028_v50 = vrot.slane %v13016_v62, 5  ;;  %v3031_v14 = vrot.slane %v13042_v39, 5  ;;  %v13204_v58 = vld [vmem:[#allocation2 + $0x1a8] sm:$0xf] }
 0x409   :  { %v2674_v20 = vsel %vm9791_vm0, %v2669_v1, %v2673_v32  ;;  %v6962_v55 = vsel %vm6914_vm3, %v6889_v30, %v13099_v13  ;;  %v7150_v38 = vsel %vm6817_vm2, %v6201_v12, %v13107_v43  ;;  %v13192_v4 = vadd.f32 %v13028_v5, %v7658_v8  ;;  %v13198_v13 = vpop.permute.xlu0 %6355  ;;  %v9565_v5 = vld [vmem:[#allocation2 + $0x154] sm:$0xf] }
 0x40a   :  { %6717 = vrot.lane.b32.xlu2 %v6655_v44, %s9582_s12  ;;  %v2679_v26 = vrot.slane %v2678_v42, 4  ;;  %v7050_v21 = vsel %vm6979_vm6, %v6962_v55, %v13072_v59  ;;  %v3029_v62 = vsel %vm9696_vm10, %v8719_v17, %v3028_v50  ;;  %v3030_v31 = vrot.slane %v3028_v50, 4  ;;  %v13208_v42 = vpop.f32.mrf.mxu2  ;;  %v13210_v50 = vld [vmem:[#allocation2 + $0x1ac] sm:$0x1] }
 0x40b   :  { %7699 = vmatmul.bf16.gmra.mxu1 %v7050_v21  ;;  %v3737_v39 = vshrl.u32 %v3090_v63, 16  ;;  %v3740_v3 = vshll.u32 %v3090_v63, 16  ;;  %v5663_v30 = vunpack.c.l.b16 %v2674_v20  ;;  %v5821_v48 = vunpack.c.l.b16 %v3029_v62  ;;  %v9566_v63 = vld [vmem:[#allocation2 + $0x158] sm:$0x1]  ;;  %v9438_v21 = vld [vmem:[#allocation2 + $0x18c] sm:$0xff] }
 0x40c   :  { %v2684_v43 = vsel %vm9791_vm0, %v2679_v26, %v2683_v2  ;;  %v3746_v8 = vshll.u32 %v9565_v5, 16  ;;  %v3032_v59 = vsel %vm9696_vm10, %v3030_v31, %v3031_v14  ;;  %v7661_v1 = vadd.f32 %v13077_v25, %v13101_v57  ;;  %v13212_v14 = vpop.permute.xlu1 %6547  ;;  %v13214_v26 = vpop.f32.mrf.mxu1 }
 0x40d   :  { %v5664_v9 = vunpack.c.l.b16 %v2684_v43  ;;  %v3739_v32 = vrot.slane %v3737_v39, 4  ;;  %v3742_v54 = vrot.slane %v3740_v3, 5  ;;  %v5822_v12 = vunpack.c.l.b16 %v3032_v59  ;;  %v13218_v3 = vpop.permute.xlu2 %6707 }
 0x40e   :  { %v3748_v24 = vrot.slane %v3746_v8, 5  ;;  %v3750_v44 = vshrl.u32 %v9565_v5, 16  ;;  %v3756_v20 = vshll.u32 %v9566_v63, 16  ;;  %v5098_v55 = vshrl.u32 %v4319_v45, 16 }
 0x40f   :  { %v5696_v2 = vpack.c.b16 %v5664_v9, %v5663_v30  ;;  %v3743_v17 = vor.u32 %v3742_v54, %v3739_v32  ;;  %v5855_v62 = vpack.c.b16 %v5822_v12, %v5821_v48  ;;  %v5101_v39 = vshll.u32 %v4319_v45, 16  ;;  %v9400_v9 = vld [vmem:[#allocation2 + $0x138] sm:$0xff] }
 0x410   :  { %v3752_v31 = vrot.slane %v3750_v44, 4  ;;  %v5107_v57 = vshll.u32 %v13204_v58, 16  ;;  %v3758_v30 = vrot.slane %v3756_v20, 5  ;;  %v5100_v5 = vrot.slane %v5098_v55, 4 }
 0x411   :  { %5759 = vrot.lane.b32.xlu0 %v5696_v2, %s9583_s1  ;;  %v3744_v43 = vrot.slane %v3743_v17, 4  ;;  %v5111_v8 = vshrl.u32 %v13204_v58, 16  ;;  %5917 = vrot.lane.b32.xlu1 %v5855_v62, %s9581_s22  ;;  %v5103_v48 = vrot.slane %v5101_v39, 5  ;;  %v5117_v45 = vshll.u32 %v13210_v50, 16  ;;  %v2716_v17 = vld [vmem:[#allocation2 + $0x18c] sm:$0xe] }
 0x412   :  { %6109 = vrot.lane.b32.xlu2 %v9438_v21, %s9582_s12  ;;  %v3753_v59 = vor.u32 %v3752_v31, %v3748_v24  ;;  %v5109_v32 = vrot.slane %v5107_v57, 5  ;;  %v7830_v54 = vadd.f32 %v13093_v28, %v7661_v1  ;;  %v7221_v44 = vsel %vm6914_vm3, %v7150_v38, %v13138_v7  ;;  %v13236_v7 = vpop.permute.xlu0 %5747  ;;  %v9471_v39 = vld [vmem:[#allocation2 + $0x1a4] sm:$0xff] }
 0x413   :  { %v5113_v12 = vrot.slane %v5111_v8, 4  ;;  %v7663_v2 = vadd.f32 %v13077_v25, %v13140_v11  ;;  %v6892_v63 = vsel %vm6817_vm2, %v9400_v9, %v13148_v18  ;;  %v3749_v20 = vsel %vm9791_vm0, %v3744_v43, %v3748_v24  ;;  %v13241_v24 = vpop.f32.mrf.mxu2 }
 0x414   :  { %v3754_v55 = vrot.slane %v3753_v59, 4  ;;  %v5104_v21 = vor.u32 %v5103_v48, %v5100_v5  ;;  %v5119_v31 = vrot.slane %v5117_v45, 5  ;;  %v7309_v1 = vsel %vm6979_vm6, %v7221_v44, %v13123_v40  ;;  %v3092_v59 = vld [vmem:[#allocation2 + $0x15c] sm:$0xf]  ;;  %v7670_v48 = vpop.f32.mrf.mxu1 }
 0x415   :  { %v5114_v62 = vor.u32 %v5113_v12, %v5109_v32  ;;  %v7832_v28 = vadd.f32 %v13131_v41, %v7663_v2  ;;  %v8720_v18 = vrot.slane %v2716_v17, 9  ;;  %v3035_v57 = vrot.slane %v13146_v46, 5  ;;  %v13263_v2 = vpop.permute.xlu2 %6099 }
 0x416   :  { %v3759_v11 = vsel %vm9791_vm0, %v3754_v55, %v3758_v30  ;;  %v5105_v38 = vrot.slane %v5104_v21, 4  ;;  %v13244_v43 = vadd.f32 %v12701_v52, %v7830_v54  ;;  %v3038_v40 = vrot.slane %v13158_v23, 5  ;;  %v5908_v23 = vpop.permute.xlu1 %5907 }
 0x417   :  { %v5115_v5 = vrot.slane %v5114_v62, 4  ;;  %v8001_v41 = vadd.f32 %v12743_v16, %v7832_v28  ;;  %v3036_v30 = vsel %vm9696_vm10, %v8720_v18, %v3035_v57  ;;  %v3037_v9 = vrot.slane %v3035_v57, 4  ;;  %v9567_v28 = vld [vmem:[#allocation2 + $0x160] sm:$0xf] }
 0x418   :  { %v5110_v8 = vsel %vm9791_vm0, %v5105_v38, %v5109_v32  ;;  %7873 = vmatmul.bf16.gmra.mxu2 %v7309_v1  ;;  %v6964_v46 = vsel %vm6914_vm3, %v6892_v63, %v13178_v22  ;;  %v6163_v52 = vunpack.c.l.b16 %v3749_v20  ;;  %v6164_v45 = vunpack.c.l.b16 %v3759_v11 }
 0x419   :  { %v5120_v16 = vsel %vm9791_vm0, %v5115_v5, %v5119_v31  ;;  %v6623_v54 = vunpack.c.l.b16 %v5110_v8  ;;  %6559 = vrot.lane.b32.xlu1 %v9471_v39, %s9581_s22  ;;  %v3039_v32 = vsel %vm9696_vm10, %v3037_v9, %v3038_v40  ;;  %v7666_v44 = vadd.f32 %v13077_v25, %v13180_v51 }
 0x41a   :  { %v6624_v12 = vunpack.c.l.b16 %v5120_v16  ;;  %v7053_v22 = vsel %vm6979_vm6, %v6964_v46, %v13168_v0  ;;  %v5823_v17 = vunpack.c.l.b16 %v3036_v30  ;;  %v5824_v63 = vunpack.c.l.b16 %v3039_v32  ;;  %v9568_v46 = vld [vmem:[#allocation2 + $0x164] sm:$0x1] }
 0x41b   :  { %7704 = vmatmul.bf16.gmra.mxu1 %v7053_v22  ;;  %v8114_v20 = vmul.f32 0.2, %v8001_v41  ;;  %v3761_v55 = vshrl.u32 %v3092_v59, 16  ;;  %v13266_v62 = vadd.f32 %v13171_v29, %v7666_v44  ;;  %v3764_v31 = vshll.u32 %v3092_v59, 16  ;;  %v13273_v5 = vpop.f32.mrf.mxu2  ;;  %v9401_v16 = vld [vmem:[#allocation2 + $0x144] sm:$0xff] }
 0x41c   :  { %v6656_v21 = vpack.c.b16 %v6624_v12, %v6623_v54  ;;  %v3770_v1 = vshll.u32 %v9567_v28, 16  ;;  %v7996_v51 = vadd.f32 %v12615_v60, %v13192_v4  ;;  %v3774_v38 = vshrl.u32 %v9567_v28, 16  ;;  %v13280_v4 = vpop.permute.xlu0 %6357 }
 0x41d   :  { %v8178_v11 = vmax.f32 %v8001_v41, %v8114_v20  ;;  %v6202_v0 = vpack.c.b16 %v6164_v45, %v6163_v52  ;;  %v3763_v39 = vrot.slane %v3761_v55, 4  ;;  %v3766_v18 = vrot.slane %v3764_v31, 5  ;;  %v13315_v31 = vpop.f32.mrf.mxu3 }
 0x41e   :  { %6719 = vrot.lane.b32.xlu2 %v6656_v21, %s9582_s12  ;;  %v13271_v57 = vrot.slane %v3770_v1, 5  ;;  %v7651_v29 = vadd.f32 %v13077_v25, %v12900_v47  ;;  %v7822_v40 = vadd.f32 %v12942_v53, %v13081_v6  ;;  %v3776_v60 = vrot.slane %v3774_v38, 4  ;;  %v13287_v47 = vpop.f32.mrf.mxu1  ;;  %v13300_v32 = vpop.permute.xlu1 %6549  ;;  %v3094_v21 = vld [vmem:[#allocation2 + $0x168] sm:$0xf] }
 0x41f   :  { %9290 = vmatpush.xpose.msk.msrb.mxu0 %vm6817_vm2, %v8178_v11  ;;  %v8113_v41 = vmul.f32 0.2, %v13244_v43  ;;  %v7994_v8 = vadd.f32 %v12567_v36, %v13174_v35  ;;  %v7153_v30 = vsel %vm6817_vm2, %v6202_v0, %v13198_v13  ;;  %v5856_v9 = vpack.c.b16 %v5824_v63, %v5823_v17 }
 0x420   :  { %v3780_v59 = vshll.u32 %v9568_v46, 16  ;;  %v3777_v53 = vor.u32 %v3776_v60, %v13271_v57  ;;  %v7223_v6 = vsel %vm6914_vm3, %v7153_v30, %v13212_v14  ;;  %v8112_v45 = vmul.f32 0.2, %v7996_v51 }
 0x421   :  { %v8177_v52 = vmax.f32 %v13244_v43, %v8113_v41  ;;  %5919 = vrot.lane.b32.xlu1 %v5856_v9, %s9581_s22  ;;  %v3767_v36 = vor.u32 %v3766_v18, %v3763_v39  ;;  %v7648_v35 = vadd.f32 %v13077_v25, %v12854_v49  ;;  %v7820_v13 = vadd.f32 %v12889_v15, %v7651_v29  ;;  %v9439_v43 = vld [vmem:[#allocation2 + $0x198] sm:$0xff]  ;;  %v13306_v49 = vpop.permute.xlu2 %6709 }
 0x422   :  { %v7991_v54 = vadd.f32 %v12483_v10, %v7822_v40  ;;  %v7671_v12 = vadd.f32 %v13077_v25, %v7670_v48  ;;  %v6895_v14 = vsel %vm6817_vm2, %v9401_v16, %v13236_v7  ;;  %v3778_v44 = vrot.slane %v3777_v53, 4 }
 0x423   :  { %9291 = vmatpush.xpose.msk.msrb.mxu0 %vm6817_vm2, %v8177_v52  ;;  %v3782_v22 = vrot.slane %v3780_v59, 5  ;;  %v7312_v17 = vsel %vm6979_vm6, %v7223_v6, %v13218_v3  ;;  %v8176_v15 = vmax.f32 %v7996_v51, %v8112_v45  ;;  %v6966_v10 = vsel %vm6914_vm3, %v6895_v14, %v5908_v23  ;;  %v7844_v55 = vpop.f32.mrf.mxu2  ;;  %v13762_v14 = vld [vmem:[#allocation10_spill] sm:$0xff] }
 0x424   :  { %v8111_v63 = vmul.f32 0.2, %v7994_v8  ;;  %v13310_v20 = vadd.f32 %v13241_v24, %v7671_v12  ;;  %v3768_v48 = vrot.slane %v3767_v36, 4  ;;  %v7817_v7 = vadd.f32 %v12849_v33, %v7648_v35  ;;  %v9569_v24 = vld [vmem:[#allocation2 + $0x16c] sm:$0xf]  ;;  %v5750_v38 = vpop.permute.xlu0 %5749  ;;  %v13761_v12 = vld [vmem:[#allocation16_spill] sm:$0xff] }
 0x425   :  { %v3783_v3 = vsel %vm9791_vm0, %v3778_v44, %v3782_v22  ;;  %v7056_v23 = vsel %vm6979_vm6, %v6966_v10, %v13263_v2  ;;  %v3794_v28 = vshll.u32 %v9569_v24, 16  ;;  %v3798_v1 = vshrl.u32 %v9569_v24, 16  ;;  %v9570_v35 = vld [vmem:[#allocation2 + $0x170] sm:$0x1] }
 0x426   :  { %6111 = vrot.lane.b32.xlu2 %v9439_v43, %s9582_s12  ;;  %v7675_v51 = vpop.f32.mrf.mxu1  ;;  %v7989_v11 = vadd.f32 %v12436_v61, %v7820_v13  ;;  %v8175_v33 = vmax.f32 %v7994_v8, %v8111_v63  ;;  %v8110_v0 = vmul.f32 0.2, %v7991_v54  ;;  %v3773_v39 = vsel %vm9791_vm0, %v3768_v48, %v13271_v57  ;;  %v5910_v46 = vpop.permute.xlu1 %5909  ;;  %v9402_v10 = vld [vmem:[#allocation2 + $0x150] sm:$0xff] }
 0x427   :  { %9292 = vmatpush.xpose.msk.msrb.mxu0 %vm6817_vm2, %v8176_v15  ;;  %v3785_v18 = vshrl.u32 %v3094_v21, 16  ;;  %v3788_v29 = vshll.u32 %v3094_v21, 16  ;;  %v6166_v40 = vunpack.c.l.b16 %v3783_v3  ;;  %v7643_v2 = vadd.f32 %v13077_v25, %v12751_v56  ;;  %v13345_v15 = vpop.f32.mrf.mxu3  ;;  %v13764_v3 = vld [vmem:[#allocation12_spill] sm:$0xff] }
 0x428   :  { %7878 = vmatmul.bf16.gmra.mxu2 %v7312_v17  ;;  %v7986_v60 = vadd.f32 %v12340_v19, %v7817_v7  ;;  %v13329_v41 = vrot.slane %v3794_v28, 5  ;;  %v3800_v61 = vrot.slane %v3798_v1, 4  ;;  %v6165_v8 = vunpack.c.l.b16 %v3773_v39  ;;  %v13760_v19 = vld [vmem:[#allocation3_spill] sm:$0xff]  ;;  %v13765_v39 = vld [vmem:[#allocation8_spill] sm:$0xff] }
 0x429   :  { %v8174_v30 = vmax.f32 %v7991_v54, %v8110_v0  ;;  %v8109_v9 = vmul.f32 0.2, %v7989_v11  ;;  %v7676_v57 = vadd.f32 %v13077_v25, %v7675_v51  ;;  %v3787_v59 = vrot.slane %v3785_v18, 4  ;;  %v6102_v45 = vpop.permute.xlu2 %6101 }
 0x42a   :  { %v3790_v53 = vrot.slane %v3788_v29, 5  ;;  %v6203_v52 = vpack.c.b16 %v6166_v40, %v6165_v8  ;;  %v7812_v16 = vadd.f32 %v13760_v19, %v7643_v2  ;;  %v3801_v36 = vor.u32 %v3800_v61, %v13329_v41  ;;  %v3096_v29 = vld [vmem:[#allocation2 + $0x174] sm:$0xf]  ;;  %v9571_v61 = vld [vmem:[#allocation2 + $0x178] sm:$0xf] }
 0x42b   :  { %9293 = vmatpush.xpose.msk.msrb.mxu0 %vm6817_vm2, %v8175_v33  ;;  %7709 = vmatmul.bf16.gmra.mxu1 %v7056_v23  ;;  %v13332_v6 = vpop.f32.mrf.mxu2  ;;  %v13335_v56 = vadd.f32 %v7844_v55, %v7676_v57  ;;  %v3804_v13 = vshll.u32 %v9570_v35, 16  ;;  %v7984_v43 = vadd.f32 %v13762_v14, %v13761_v12  ;;  %v8173_v22 = vmax.f32 %v7989_v11, %v8109_v9  ;;  %v13763_v55 = vld [vmem:[#allocation6_spill] sm:$0xff]  ;;  %v13767_v9 = vld [vmem:[#allocation9_spill] sm:$0xff] }
 0x42c   :  { %v7156_v44 = vsel %vm6817_vm2, %v6203_v52, %v13280_v4  ;;  %v8108_v17 = vmul.f32 0.2, %v7986_v60  ;;  %v3791_v63 = vor.u32 %v3790_v53, %v3787_v59  ;;  %v7638_v7 = vadd.f32 %v13077_v25, %v13763_v55  ;;  %v6360_v21 = vpop.permute.xlu0 %6359 }
 0x42d   :  { %v7225_v48 = vsel %vm6914_vm3, %v7156_v44, %v13300_v32  ;;  %v7981_v23 = vadd.f32 %v13764_v3, %v7812_v16  ;;  %v6898_v24 = vsel %vm6817_vm2, %v9402_v10, %v5750_v38  ;;  %v3802_v4 = vrot.slane %v3801_v36, 4 }
 0x42e   :  { %v13339_v54 = vpop.f32.mrf.mxu1  ;;  %v3806_v28 = vrot.slane %v3804_v13, 5  ;;  %v7315_v1 = vsel %vm6979_vm6, %v7225_v48, %v13306_v49  ;;  %v8172_v51 = vmax.f32 %v7986_v60, %v8108_v17  ;;  %v6968_v11 = vsel %vm6914_vm3, %v6898_v24, %v5910_v46  ;;  %v6552_v40 = vpop.permute.xlu1 %6551  ;;  %v13768_v13 = vld [vmem:[#allocation14_spill] sm:$0xff] }
 0x42f   :  { %9294 = vmatpush.xpose.msk.msrb.mxu0 %vm6817_vm2, %v8174_v30  ;;  %v8107_v33 = vmul.f32 0.2, %v7984_v43  ;;  %v3792_v32 = vrot.slane %v3791_v63, 4  ;;  %v7807_v18 = vadd.f32 %v13765_v39, %v7638_v7  ;;  %v7059_v2 = vsel %vm6979_vm6, %v6968_v11, %v6102_v45  ;;  %v13766_v30 = vld [vmem:[#allocation7_spill] sm:$0xff]  ;;  %v13373_v14 = vpop.f32.mrf.mxu3 }
 0x430   :  { %v3807_v38 = vsel %vm9791_vm0, %v3802_v4, %v3806_v28  ;;  %v3818_v49 = vshll.u32 %v9571_v61, 16  ;;  %v3822_v60 = vshrl.u32 %v9571_v61, 16  ;;  %v7979_v46 = vadd.f32 %v13767_v9, %v13766_v30  ;;  %v13770_v4 = vld [vmem:[#allocation4_spill] sm:$0xff]  ;;  %v13774_v9 = vld [vmem:[#allocation21_spill] sm:$0xff] }
 0x431   :  { %v6712_v57 = vpop.permute.xlu2 %6711  ;;  %v8171_v59 = vmax.f32 %v7984_v43, %v8107_v33  ;;  %v8106_v53 = vmul.f32 0.2, %v7981_v23  ;;  %v3797_v19 = vsel %vm9791_vm0, %v3792_v32, %v13329_v41  ;;  %v3809_v16 = vshrl.u32 %v3096_v29, 16  ;;  %v13771_v32 = vld [vmem:[#allocation5_spill] sm:$0xff] }
 0x432   :  { %v3812_v36 = vshll.u32 %v3096_v29, 16  ;;  %v6168_v35 = vunpack.c.l.b16 %v3807_v38  ;;  %v7633_v12 = vadd.f32 %v13077_v25, %v13768_v13  ;;  %v13375_v43 = vrot.slane %v3818_v49, 5 }
 0x433   :  { %9295 = vmatpush.xpose.msk.msrb.mxu0 %vm6817_vm2, %v8173_v22  ;;  %v7849_v0 = vpop.f32.mrf.mxu2  ;;  %v3824_v44 = vrot.slane %v3822_v60, 4  ;;  %v13769_v22 = vld [vmem:[#allocation23_spill] sm:$0xff]  ;;  %v6167_v10 = vunpack.c.l.b16 %v3797_v19  ;;  %v8170_v63 = vmax.f32 %v7981_v23, %v8106_v53  ;;  %v8105_v48 = vmul.f32 0.2, %v7979_v46  ;;  %v13773_v60 = vld [vmem:[#allocation13_spill] sm:$0xff] }
 0x434   :  { %v7976_v17 = vadd.f32 %v13769_v22, %v7807_v18  ;;  %v5752_v41 = vpop.permute.xlu0 %5751  ;;  %v3811_v55 = vrot.slane %v3809_v16, 4  ;;  %v3814_v7 = vrot.slane %v3812_v36, 5  ;;  %v7802_v28 = vadd.f32 %v13770_v4, %v7633_v12  ;;  %v3098_v12 = vld [vmem:[#allocation2 + $0x180] sm:$0xf] }
 0x435   :  { %v6204_v24 = vpack.c.b16 %v6168_v35, %v6167_v10  ;;  %v8169_v18 = vmax.f32 %v7979_v46, %v8105_v48  ;;  %v9573_v10 = vld [vmem:[#allocation2 + $0x184] sm:$0xf]  ;;  %v13775_v48 = vld [vmem:[#allocation11_spill] sm:$0xff]  ;;  %vm8360_vm1 = vcmask 1043456  }
 0x436   :  { %v7680_v8 = vpop.f32.mrf.mxu1  ;;  %v8104_v29 = vmul.f32 0.2, %v7976_v17  ;;  %v3815_v61 = vor.u32 %v3814_v7, %v3811_v55  ;;  %v13776_v7 = vld [vmem:[#allocation25_spill] sm:$0xff] }
 0x437   :  { %9296 = vmatpush.xpose.msk.msrb.mxu0 %vm6817_vm2, %v8172_v51  ;;  %v7681_v52 = vadd.f32 %v13077_v25, %v7680_v8  ;;  %v9572_v51 = vld [vmem:[#allocation2 + $0x17c] sm:$0x1]  ;;  %v7159_v23 = vsel %vm6817_vm2, %v6204_v24, %v6360_v21  ;;  %v7628_v8 = vadd.f32 %v13077_v25, %v13773_v60  ;;  %v13396_v35 = vpop.f32.mrf.mxu3 }
 0x438   :  { %7883 = vmatmul.bf16.gmra.mxu2 %v7315_v1  ;;  %v3825_v1 = vor.u32 %v3824_v44, %v13375_v43  ;;  %v3828_v11 = vshll.u32 %v9572_v51, 16  ;;  %v5912_v38 = vpop.permute.xlu1 %5911  ;;  %v7227_v49 = vsel %vm6914_vm3, %v7159_v23, %v6552_v40  ;;  %v8168_v46 = vmax.f32 %v7976_v17, %v8104_v29  ;;  %v13777_v24 = vld [vmem:[#allocation20_spill] sm:$0xff] }
 0x439   :  { %v13369_v45 = vadd.f32 %v7849_v0, %v7681_v52  ;;  %v13772_v0 = vld [vmem:[#allocation22_spill] sm:$0xff]  ;;  %v6104_v30 = vpop.permute.xlu2 %6103  ;;  %v7318_v21 = vsel %vm6979_vm6, %v7227_v49, %v6712_v57  ;;  %v3816_v40 = vrot.slane %v3815_v61, 4  ;;  %v3846_v57 = vshrl.u32 %v9573_v10, 16 }
 0x43a   :  { %v7974_v39 = vadd.f32 %v13772_v0, %v13771_v32  ;;  %v3826_v52 = vrot.slane %v3825_v1, 4  ;;  %v3830_v19 = vrot.slane %v3828_v11, 5  ;;  %v7797_v55 = vadd.f32 %v13775_v48, %v7628_v8  ;;  %v9404_v48 = vld [vmem:[#allocation2 + $0x168] sm:$0xff] }
 0x43b   :  { %9297 = vmatpush.xpose.msk.msrb.mxu0 %vm6817_vm2, %v8171_v59  ;;  %7714 = vmatmul.bf16.gmra.mxu1 %v7059_v2  ;;  %v13378_v3 = vpop.f32.mrf.mxu2  ;;  %v9403_v2 = vld [vmem:[#allocation2 + $0x15c] sm:$0xff]  ;;  %v7971_v59 = vadd.f32 %v13774_v9, %v7802_v28  ;;  %v7969_v4 = vadd.f32 %v13777_v24, %v13776_v7  ;;  %v3821_v51 = vsel %vm9791_vm0, %v3816_v40, %v13375_v43  ;;  %v3833_v11 = vshrl.u32 %v3098_v12, 16 }
 0x43c   :  { %v6901_v53 = vsel %vm6817_vm2, %v9403_v2, %v5752_v41  ;;  %v8103_v36 = vmul.f32 0.2, %v7974_v39  ;;  %v6362_v13 = vpop.permute.xlu0 %6361  ;;  %v3831_v44 = vsel %vm9791_vm0, %v3826_v52, %v3830_v19  ;;  %v3842_v41 = vshll.u32 %v9573_v10, 16  ;;  %v13779_v43 = vld [vmem:[#allocation24_spill] sm:$0xff] }
 0x43d   :  { %v6970_v16 = vsel %vm6914_vm3, %v6901_v53, %v5912_v38  ;;  %v8102_v1 = vmul.f32 0.2, %v7971_v59  ;;  %v3836_v32 = vshll.u32 %v3098_v12, 16  ;;  %v6170_v0 = vunpack.c.l.b16 %v3831_v44  ;;  %v13778_v38 = vld [vmem:[#allocation19_spill] sm:$0xff]  ;;  %v13780_v53 = vld [vmem:[#allocation17_spill] sm:$0xff] }
 0x43e   :  { %v13383_v33 = vpop.f32.mrf.mxu1  ;;  %v7062_v22 = vsel %vm6979_vm6, %v6970_v16, %v6104_v30  ;;  %v8167_v28 = vmax.f32 %v7974_v39, %v8103_v36  ;;  %v3848_v29 = vrot.slane %v3846_v57, 4  ;;  %v7966_v2 = vadd.f32 %v13778_v38, %v7797_v55 }
 0x43f   :  { %9298 = vmatpush.xpose.msk.msrb.mxu0 %vm6817_vm2, %v8170_v63  ;;  %v6169_v49 = vunpack.c.l.b16 %v3821_v51  ;;  %v8166_v60 = vmax.f32 %v7971_v59, %v8102_v1  ;;  %v8101_v39 = vmul.f32 0.2, %v7969_v4  ;;  %v3835_v8 = vrot.slane %v3833_v11, 4  ;;  %v13417_v19 = vpop.f32.mrf.mxu3 }
 0x440   :  { %v6554_v23 = vpop.permute.xlu1 %6553  ;;  %v3838_v30 = vrot.slane %v3836_v32, 5  ;;  %v7964_v52 = vadd.f32 %v13780_v53, %v13779_v43  ;;  %v8100_v44 = vmul.f32 0.2, %v7966_v2 }
 0x441   :  { %v6714_v61 = vpop.permute.xlu2 %6713  ;;  %v6205_v9 = vpack.c.b16 %v6170_v0, %v6169_v49  ;;  %v8165_v12 = vmax.f32 %v7969_v4, %v8101_v39  ;;  %v3100_v49 = vld [vmem:[#allocation2 + $0x18c] sm:$0xf] }
 0x442   :  { %v3839_v10 = vor.u32 %v3838_v30, %v3835_v8  ;;  %v8164_v4 = vmax.f32 %v7966_v2, %v8100_v44  ;;  %v8099_v51 = vmul.f32 0.2, %v7964_v52  ;;  %v3857_v43 = vshrl.u32 %v3100_v49, 16 }
 0x443   :  { %9299 = vmatpush.xpose.msk.msrb.mxu0 %vm6817_vm2, %v8169_v18  ;;  %v13402_v17 = vpop.f32.mrf.mxu2  ;;  %v3844_v18 = vrot.slane %v3842_v41, 5  ;;  %v7162_v40 = vsel %vm6817_vm2, %v6205_v9, %v6362_v13  ;;  %v3860_v53 = vshll.u32 %v3100_v49, 16 }
 0x444   :  { %v7229_v41 = vsel %vm6914_vm3, %v7162_v40, %v6554_v23 }
 0x445   :  { %v7321_v13 = vsel %vm6979_vm6, %v7229_v41, %v6714_v61  ;;  %v9576_v41 = vld [vmem:[#allocation2 + $0x194] sm:$0x1] }
 0x446   :  { %v13404_v63 = vpop.f32.mrf.mxu1 }
 0x447   :  { %9300 = vmatpush.xpose.msk.msrb.mxu0 %vm6817_vm2, %v8168_v46  ;;  %v9574_v46 = vld [vmem:[#allocation2 + $0x188] sm:$0x1]  ;;  %v13432_v38 = vpop.f32.mrf.mxu3 }
 0x448   :  { %7888 = vmatmul.bf16.gmra.mxu2 %v7318_v21  ;;  %v3849_v21 = vor.u32 %v3848_v29, %v3844_v18  ;;  %v3852_v16 = vshll.u32 %v9574_v46, 16  ;;  %v8163_v29 = vmax.f32 %v7964_v52, %v8099_v51  ;;  %v9405_v51 = vld [vmem:[#allocation2 + $0x174] sm:$0xff] }
 0x449   :  { %v6106_v32 = vpop.permute.xlu2 %6105 }
 0x44a   :  { %v3850_v7 = vrot.slane %v3849_v21, 4  ;;  %v3854_v24 = vrot.slane %v3852_v16, 5 }
 0x44b   :  { %9301 = vmatpush.xpose.msk.msrb.mxu0 %vm6817_vm2, %v8167_v28  ;;  %7719 = vmatmul.bf16.gmra.mxu1 %v7062_v22  ;;  %v5754_v22 = vpop.permute.xlu0 %5753  ;;  %v7856_v57 = vpop.f32.mrf.mxu2 }
 0x44c   :  { %v6904_v28 = vsel %vm6817_vm2, %v9404_v48, %v5754_v22  ;;  %v3855_v0 = vsel %vm9791_vm0, %v3850_v7, %v3854_v24 }
 0x44d   :  { %v6172_v61 = vunpack.c.l.b16 %v3855_v0 }
 0x44e   :  { %v7687_v36 = vpop.f32.mrf.mxu1 }
 0x44f   :  { %9302 = vmatpush.xpose.msk.msrb.mxu0 %vm6817_vm2, %v8166_v60  ;;  %v7688_v59 = vadd.f32 %v13077_v25, %v7687_v36  ;;  %v3840_v25 = vrot.slane %v3839_v10, 4  ;;  %v9575_v60 = vld [vmem:[#allocation2 + $0x190] sm:$0xf]  ;;  %v13441_v22 = vpop.f32.mrf.mxu3 }
 0x450   :  { %v3866_v39 = vshll.u32 %v9575_v60, 16  ;;  %v3870_v8 = vshrl.u32 %v9575_v60, 16 }
 0x451   :  { %v13423_v55 = vadd.f32 %v7856_v57, %v7688_v59  ;;  %v3845_v2 = vsel %vm9791_vm0, %v3840_v25, %v3844_v18  ;;  %v6716_v40 = vpop.permute.xlu2 %6715  ;;  %v3859_v18 = vrot.slane %v3857_v43, 4  ;;  %v3876_v57 = vshll.u32 %v9576_v41, 16 }
 0x452   :  { %v6171_v30 = vunpack.c.l.b16 %v3845_v2  ;;  %v3868_v52 = vrot.slane %v3866_v39, 5  ;;  %v3872_v16 = vrot.slane %v3870_v8, 4  ;;  %v5468_v2 = vrot.slane %v13204_v58, 5 }
 0x453   :  { %9303 = vmatpush.xpose.msk.msrb.mxu0 %vm6817_vm2, %v8165_v12  ;;  %v6364_v9 = vpop.permute.xlu0 %6363  ;;  %v3862_v12 = vrot.slane %v3860_v53, 5 }
 0x454   :  { %v5914_v1 = vpop.permute.xlu1 %5913  ;;  %v6206_v21 = vpack.c.b16 %v6172_v61, %v6171_v30  ;;  %v3873_v10 = vor.u32 %v3872_v16, %v3868_v52  ;;  %v5471_v61 = vrot.slane %v13210_v50, 5  ;;  %v5470_v53 = vrot.slane %v5468_v2, 4 }
 0x455   :  { %v6972_v11 = vsel %vm6914_vm3, %v6904_v28, %v5914_v1  ;;  %v3863_v24 = vor.u32 %v3862_v12, %v3859_v18  ;;  %v9577_v18 = vld [vmem:[#allocation2 + $0x19c] sm:$0xf] }
 0x456   :  { %v7065_v23 = vsel %vm6979_vm6, %v6972_v11, %v6106_v32  ;;  %v7165_v36 = vsel %vm6817_vm2, %v6206_v21, %v6364_v9  ;;  %v5472_v50 = vsel %vm9696_vm10, %v5470_v53, %v5471_v61  ;;  %v3890_v12 = vshll.u32 %v9577_v18, 16 }
 0x457   :  { %9304 = vmatpush.xpose.msk.msrb.mxu0 %vm6817_vm2, %v8164_v4  ;;  %v3878_v4 = vrot.slane %v3876_v57, 5  ;;  %v3864_v1 = vrot.slane %v3863_v24, 4  ;;  %v13453_v49 = vpop.f32.mrf.mxu3 }
 0x458   :  { %7893 = vmatmul.bf16.gmra.mxu2 %v7321_v13  ;;  %v3874_v13 = vrot.slane %v3873_v10, 4  ;;  %v3892_v27 = vrot.slane %v3890_v12, 5 }
 0x459   :  { %v6108_v25 = vpop.permute.xlu2 %6107  ;;  %v3869_v60 = vsel %vm9791_vm0, %v3864_v1, %v3868_v52  ;;  %v3102_v52 = vld [vmem:[#allocation2 + $0x198] sm:$0xf] }
 0x45a   :  { %v3879_v11 = vsel %vm9791_vm0, %v3874_v13, %v3878_v4  ;;  %v6173_v21 = vunpack.c.l.b16 %v3869_v60  ;;  %v3881_v57 = vshrl.u32 %v3102_v52, 16 }
 0x45b   :  { %9305 = vmatpush.xpose.msk.msrb.mxu0 %vm6817_vm2, %v8163_v29  ;;  %7724 = vmatmul.bf16.gmra.mxu1 %v7065_v23  ;;  %v13439_v59 = vpop.f32.mrf.mxu2  ;;  %v5756_v28 = vpop.permute.xlu0 %5755  ;;  %v5152_v29 = vld [vmem:[#allocation2 + $0x1a4] sm:$0xe]  ;;  %v6174_v9 = vunpack.c.l.b16 %v3879_v11 }
 0x45c   :  { %v6556_v46 = vpop.permute.xlu1 %6555  ;;  %v6907_v32 = vsel %vm6817_vm2, %v9405_v51, %v5756_v28  ;;  %v8784_v30 = vrot.slane %v5152_v29, 9 }
 0x45d   :  { %v7231_v44 = vsel %vm6914_vm3, %v7165_v36, %v6556_v46  ;;  %v6784_v36 = vunpack.c.l.b16 %v5472_v50 }
 0x45e   :  { %v13443_v48 = vpop.f32.mrf.mxu1  ;;  %v7324_v7 = vsel %vm6979_vm6, %v7231_v44, %v6716_v40  ;;  %v5469_v58 = vsel %vm9696_vm10, %v8784_v30, %v5468_v2  ;;  %v6207_v40 = vpack.c.b16 %v6174_v9, %v6173_v21  ;;  %v3894_v44 = vshrl.u32 %v9577_v18, 16  ;;  %v9578_v2 = vld [vmem:[#allocation2 + $0x1a0] sm:$0x1] }
 0x45f   :  { %v6783_v46 = vunpack.c.l.b16 %v5469_v58  ;;  %v3900_v61 = vshll.u32 %v9578_v2, 16 }
 0x460   :  { %v3896_v4 = vrot.slane %v3894_v44, 4 }
 0x461   :  { %v6816_v10 = vpack.c.b16 %v6784_v36, %v6783_v46  ;;  %v3902_v9 = vrot.slane %v3900_v61, 5  ;;  %v9406_v46 = vld [vmem:[#allocation2 + $0x180] sm:$0xff] }
 0x462   :  { %v3897_v29 = vor.u32 %v3896_v4, %v3892_v27 }
 0x463   :  { %v13449_v23 = vpop.f32.mrf.mxu2  ;;  %v6366_v16 = vpop.permute.xlu0 %6365  ;;  %9272 = vmatmul.msk.bf16.gmra.mxu3 %vm6817_vm2, %v6816_v10 }
 0x464   :  { %v7168_v41 = vsel %vm6817_vm2, %v6207_v40, %v6366_v16  ;;  %v6718_v28 = vpop.permute.xlu2 %6717  ;;  %v3898_v30 = vrot.slane %v3897_v29, 4 }
 0x466   :  { %v13458_v8 = vpop.f32.mrf.mxu1  ;;  %v3903_v16 = vsel %vm9791_vm0, %v3898_v30, %v3902_v9 }
 0x467   :  { %v6176_v12 = vunpack.c.l.b16 %v3903_v16 }
 0x468   :  { %7898 = vmatmul.bf16.gmra.mxu2 %v7324_v7  ;;  %v3884_v7 = vshll.u32 %v3102_v52, 16 }
 0x46b   :  { %v5916_v0 = vpop.permute.xlu1 %5915  ;;  %v5758_v60 = vpop.permute.xlu0 %5757 }
 0x46c   :  { %v6974_v39 = vsel %vm6914_vm3, %v6907_v32, %v5916_v0  ;;  %v3883_v32 = vrot.slane %v3881_v57, 4  ;;  %v3886_v0 = vrot.slane %v3884_v7, 5  ;;  %v6110_v53 = vpop.permute.xlu2 %6109  ;;  %v6910_v52 = vsel %vm6817_vm2, %v9406_v46, %v5758_v60  ;;  %v9407_v60 = vld [vmem:[#allocation2 + $0x18c] sm:$0xff] }
 0x46d   :  { %v7068_v43 = vsel %vm6979_vm6, %v6974_v39, %v6108_v25  ;;  %v8038_v25 = vpop.f32.mrf.mxu3 }
 0x46e   :  { %7729 = vmatmul.bf16.gmra.mxu1 %v7068_v43  ;;  %v3887_v39 = vor.u32 %v3886_v0, %v3883_v32  ;;  %v13486_v32 = vld [vmem:[%s13656_s4] ss:$0 sm:$0xff] }
 0x470   :  { %v3888_v58 = vrot.slane %v3887_v39, 4 }
 0x472   :  { %v13469_v51 = vpop.f32.mrf.mxu2  ;;  %v3893_v40 = vsel %vm9791_vm0, %v3888_v58, %v3892_v27 }
 0x473   :  { %v6558_v24 = vpop.permute.xlu1 %6557  ;;  %v6368_v10 = vpop.permute.xlu0 %6367 }
 0x474   :  { %v7233_v13 = vsel %vm6914_vm3, %v7168_v41, %v6558_v24  ;;  %v6175_v41 = vunpack.c.l.b16 %v3893_v40 }
 0x475   :  { %v7327_v1 = vsel %vm6979_vm6, %v7233_v13, %v6718_v28  ;;  %v8040_v50 = vpop.f32.mrf.mxu3 }
 0x476   :  { %v6208_v7 = vpack.c.b16 %v6176_v12, %v6175_v41 }
 0x477   :  { %v7695_v11 = vpop.f32.mrf.mxu1 }
 0x478   :  { %7903 = vmatmul.bf16.gmra.mxu2 %v7327_v1  ;;  %v6720_v24 = vpop.permute.xlu2 %6719  ;;  %v7171_v4 = vsel %vm6817_vm2, %v6208_v7, %v6368_v10 }
 0x47a   :  { %v7866_v21 = vpop.f32.mrf.mxu2 }
 0x47d   :  { %v13478_v13 = vpop.f32.mrf.mxu3 }
 0x47f   :  { %v7697_v43 = vpop.f32.mrf.mxu1 }
 0x480   :  { %v7698_v39 = vadd.f32 %v13486_v32, %v7697_v43  ;;  %v6112_v16 = vpop.permute.xlu2 %6111 }
 0x483   :  { %v5918_v36 = vpop.permute.xlu1 %5917  ;;  %v5760_v2 = vpop.permute.xlu0 %5759 }
 0x484   :  { %v6976_v18 = vsel %vm6914_vm3, %v6910_v52, %v5918_v36  ;;  %v7696_v52 = vadd.f32 %v13486_v32, %v7695_v11 }
 0x485   :  { %v7071_v44 = vsel %vm6979_vm6, %v6976_v18, %v6110_v53  ;;  %v6913_v53 = vsel %vm6817_vm2, %v9407_v60, %v5760_v2  ;;  %v13494_v40 = vpop.f32.mrf.mxu3  ;;  %v7867_v18 = vadd.f32 %v7866_v21, %v7698_v39 }
 0x486   :  { %7734 = vmatmul.bf16.gmra.mxu1 %v7071_v44 }
 0x487   :  { %v8036_v11 = vadd.f32 %v13453_v49, %v7867_v18 }
 0x488   :  { %v7700_v57 = vpop.f32.mrf.mxu1 }
 0x489   :  { %v7701_v0 = vadd.f32 %v13486_v32, %v7700_v57  ;;  %v7693_v57 = vadd.f32 %v13486_v32, %v13458_v8 }
 0x48b   :  { %v7869_v28 = vpop.f32.mrf.mxu2  ;;  %v6560_v1 = vpop.permute.xlu1 %6559 }
 0x48c   :  { %v7235_v34 = vsel %vm6914_vm3, %v7171_v4, %v6560_v1  ;;  %v7870_v30 = vadd.f32 %v7869_v28, %v7701_v0 }
 0x48d   :  { %v7330_v27 = vsel %vm6979_vm6, %v7235_v34, %v6720_v24  ;;  %v7865_v24 = vadd.f32 %v13469_v51, %v7696_v52  ;;  %v13509_v0 = vpop.f32.mrf.mxu3 }
 0x48e   :  { %7908 = vmatmul.bf16.gmra.mxu2 %v7330_v27  ;;  %v8039_v12 = vadd.f32 %v8038_v25, %v7870_v30  ;;  %v7691_v25 = vadd.f32 %v13486_v32, %v13443_v48  ;;  %v8128_v27 = vmul.f32 0.2, %v8036_v11 }
 0x48f   :  { %v8034_v8 = vadd.f32 %v13441_v22, %v7865_v24  ;;  %v7686_v22 = vadd.f32 %v13486_v32, %v13404_v63  ;;  %v8019_v24 = vadd.f32 %v13315_v31, %v13369_v45 }
 0x490   :  { %v7702_v29 = vpop.f32.mrf.mxu1  ;;  %v8129_v4 = vmul.f32 0.2, %v8039_v12 }
 0x491   :  { %v7703_v61 = vadd.f32 %v13486_v32, %v7702_v29  ;;  %v7860_v29 = vadd.f32 %v13439_v59, %v7691_v25  ;;  %v8127_v60 = vmul.f32 0.2, %v8034_v8 }
 0x492   :  { %v8193_v34 = vmax.f32 %v8039_v12, %v8129_v4  ;;  %v7673_v4 = vadd.f32 %v13486_v32, %v13287_v47 }
 0x493   :  { %v7871_v9 = vpop.f32.mrf.mxu2  ;;  %v5920_v58 = vpop.permute.xlu1 %5919  ;;  %v8191_v30 = vmax.f32 %v8034_v8, %v8127_v60 }
 0x494   :  { %v7872_v46 = vadd.f32 %v7871_v9, %v7703_v61  ;;  %v6978_v36 = vsel %vm6914_vm3, %v6913_v53, %v5920_v58  ;;  %v8192_v61 = vmax.f32 %v8036_v11, %v8128_v27  ;;  %v7842_v31 = vadd.f32 %v13273_v5, %v7673_v4 }
 0x495   :  { %v7074_v44 = vsel %vm6979_vm6, %v6978_v36, %v6112_v16  ;;  %v13525_v58 = vpop.f32.mrf.mxu3  ;;  %v8026_v16 = vadd.f32 %v13396_v35, %v13423_v55  ;;  %v7678_v35 = vadd.f32 %v13486_v32, %v13339_v54 }
 0x496   :  { %v8041_v10 = vadd.f32 %v8040_v50, %v7872_v46  ;;  %7739 = vmatmul.bf16.gmra.mxu1 %v7074_v44  ;;  %v7862_v50 = vadd.f32 %v13449_v23, %v7693_v57  ;;  %v8029_v23 = vadd.f32 %v13417_v19, %v7860_v29  ;;  %v7855_v46 = vadd.f32 %v13402_v17, %v7686_v22 }
 0x497   :  { %v8124_v44 = vmul.f32 0.2, %v8026_v16  ;;  %v7668_v29 = vadd.f32 %v13486_v32, %v13214_v26 }
 0x498   :  { %v7705_v43 = vpop.f32.mrf.mxu1  ;;  %v8130_v41 = vmul.f32 0.2, %v8041_v10  ;;  %v8031_v2 = vadd.f32 %v13432_v38, %v7862_v50  ;;  %v7683_v38 = vadd.f32 %v13486_v32, %v13383_v33  ;;  %v8125_v52 = vmul.f32 0.2, %v8029_v23 }
 0x499   :  { %v7706_v7 = vadd.f32 %v13486_v32, %v7705_v43  ;;  %v8024_v33 = vadd.f32 %v13373_v14, %v7855_v46  ;;  %v8188_v43 = vmax.f32 %v8026_v16, %v8124_v44  ;;  %v7847_v14 = vadd.f32 %v13332_v6, %v7678_v35  ;;  %v13781_v6 = vld [vmem:[#allocation28_spill] sm:$0xff]  ;;  %v13784_v46 = vld [vmem:[#allocation15_spill] sm:$0xff] }
 0x49a   :  { %v8194_v28 = vmax.f32 %v8041_v10, %v8130_v41  ;;  %v8126_v9 = vmul.f32 0.2, %v8031_v2  ;;  %v7852_v18 = vadd.f32 %v13378_v3, %v7683_v38  ;;  %v8189_v12 = vmax.f32 %v8029_v23, %v8125_v52  ;;  %v13783_v23 = vld [vmem:[#allocation26_spill] sm:$0xff] }
 0x49b   :  { %v7874_v1 = vpop.f32.mrf.mxu2  ;;  %v8123_v41 = vmul.f32 0.2, %v8024_v33  ;;  %v8121_v50 = vmul.f32 0.2, %v8019_v24  ;;  %v8014_v45 = vadd.f32 %v13781_v6, %v13335_v56  ;;  %v7837_v56 = vadd.f32 %v13208_v42, %v7668_v29  ;;  %v13785_v42 = vld [vmem:[#allocation18_spill] sm:$0xff] }
 0x49c   :  { %v13502_v21 = vadd.f32 %v7874_v1, %v7706_v7  ;;  %9307 = vmatpush.xpose.msk.msrb.mxu1 %vm6817_vm2, %v8194_v28  ;;  %v8190_v63 = vmax.f32 %v8031_v2, %v8126_v9  ;;  %v8021_v55 = vadd.f32 %v13345_v15, %v7852_v18  ;;  %v8016_v1 = vadd.f32 %v13127_v37, %v7847_v14  ;;  %v13782_v2 = vld [vmem:[#allocation27_spill] sm:$0xff] }
 0x49d   :  { %v13540_v7 = vpop.f32.mrf.mxu3  ;;  %v8187_v11 = vmax.f32 %v8024_v33, %v8123_v41  ;;  %v8006_v16 = vadd.f32 %v13784_v46, %v7837_v56 }
 0x49e   :  { %v8122_v28 = vmul.f32 0.2, %v8021_v55 }
 0x4a0   :  { %9308 = vmatpush.xpose.msk.msrb.mxu1 %vm6817_vm2, %v8193_v34  ;;  %v7707_v49 = vpop.f32.mrf.mxu1  ;;  %v8186_v25 = vmax.f32 %v8021_v55, %v8122_v28 }
 0x4a1   :  { %v7708_v51 = vadd.f32 %v13486_v32, %v7707_v49  ;;  %v8185_v49 = vmax.f32 %v8019_v24, %v8121_v50 }
 0x4a3   :  { %v7876_v48 = vpop.f32.mrf.mxu2 }
 0x4a4   :  { %v13515_v39 = vadd.f32 %v7876_v48, %v7708_v51  ;;  %9309 = vmatpush.xpose.msk.msrb.mxu1 %vm6817_vm2, %v8192_v61  ;;  %v8120_v51 = vmul.f32 0.2, %v8016_v1  ;;  %v8011_v61 = vadd.f32 %v13782_v2, %v7842_v31  ;;  %v8119_v48 = vmul.f32 0.2, %v8014_v45 }
 0x4a5   :  { %v13559_v27 = vpop.f32.mrf.mxu3 }
 0x4a6   :  { %v8184_v60 = vmax.f32 %v8016_v1, %v8120_v51  ;;  %v8183_v9 = vmax.f32 %v8014_v45, %v8119_v48 }
 0x4a8   :  { %9310 = vmatpush.xpose.msk.msrb.mxu1 %vm6817_vm2, %v8191_v30  ;;  %v7710_v53 = vpop.f32.mrf.mxu1  ;;  %v8009_v30 = vadd.f32 %v13783_v23, %v13310_v20  ;;  %v8004_v20 = vadd.f32 %v13785_v42, %v13266_v62 }
 0x4a9   :  { %v7711_v59 = vadd.f32 %v13486_v32, %v7710_v53  ;;  %v8118_v53 = vmul.f32 0.2, %v8011_v61 }
 0x4aa   :  { %v8117_v52 = vmul.f32 0.2, %v8009_v30  ;;  %v8115_v55 = vmul.f32 0.2, %v8004_v20 }
 0x4ab   :  { %v7879_v19 = vpop.f32.mrf.mxu2 }
 0x4ac   :  { %v13530_v36 = vadd.f32 %v7879_v19, %v7711_v59  ;;  %9311 = vmatpush.xpose.msk.msrb.mxu1 %vm6817_vm2, %v8190_v63  ;;  %v8182_v63 = vmax.f32 %v8011_v61, %v8118_v53  ;;  %v8181_v33 = vmax.f32 %v8009_v30, %v8117_v52 }
 0x4ad   :  { %v13572_v38 = vpop.f32.mrf.mxu3 }
 0x4b0   :  { %9312 = vmatpush.xpose.msk.msrb.mxu1 %vm6817_vm2, %v8189_v12  ;;  %v7712_v10 = vpop.f32.mrf.mxu1  ;;  %v8116_v12 = vmul.f32 0.2, %v8006_v16 }
 0x4b1   :  { %v7713_v17 = vadd.f32 %v13486_v32, %v7712_v10 }
 0x4b2   :  { %v8180_v35 = vmax.f32 %v8006_v16, %v8116_v12 }
 0x4b3   :  { %v7881_v57 = vpop.f32.mrf.mxu2 }
 0x4b4   :  { %v13542_v3 = vadd.f32 %v7881_v57, %v7713_v17  ;;  %9313 = vmatpush.xpose.msk.msrb.mxu1 %vm6817_vm2, %v8188_v43  ;;  %v8179_v57 = vmax.f32 %v8004_v20, %v8115_v55 }
 0x4b5   :  { %v13584_v17 = vpop.f32.mrf.mxu3 }
 0x4b8   :  { %9314 = vmatpush.xpose.msk.msrb.mxu1 %vm6817_vm2, %v8187_v11  ;;  %v7715_v54 = vpop.f32.mrf.mxu1 }
 0x4b9   :  { %v7716_v15 = vadd.f32 %v13486_v32, %v7715_v54 }
 0x4bb   :  { %v7884_v8 = vpop.f32.mrf.mxu2 }
 0x4bc   :  { %v13553_v34 = vadd.f32 %v7884_v8, %v7716_v15  ;;  %9315 = vmatpush.xpose.msk.msrb.mxu1 %vm6817_vm2, %v8186_v25 }
 0x4bd   :  { %v8063_v11 = vpop.f32.mrf.mxu3 }
 0x4c0   :  { %9316 = vmatpush.xpose.msk.msrb.mxu1 %vm6817_vm2, %v8185_v49  ;;  %v7717_v47 = vpop.f32.mrf.mxu1 }
 0x4c1   :  { %v7718_v37 = vadd.f32 %v13486_v32, %v7717_v47 }
 0x4c3   :  { %v7886_v5 = vpop.f32.mrf.mxu2 }
 0x4c4   :  { %v13566_v22 = vadd.f32 %v7886_v5, %v7718_v37  ;;  %9317 = vmatpush.xpose.msk.msrb.mxu1 %vm6817_vm2, %v8184_v60 }
 0x4c5   :  { %v8065_v25 = vpop.f32.mrf.mxu3 }
 0x4c8   :  { %9318 = vmatpush.xpose.msk.msrb.mxu1 %vm6817_vm2, %v8183_v9  ;;  %v7720_v26 = vpop.f32.mrf.mxu1 }
 0x4c9   :  { %v7721_v59 = vadd.f32 %v13486_v32, %v7720_v26 }
 0x4cb   :  { %v7889_v19 = vpop.f32.mrf.mxu2 }
 0x4cc   :  { %v13577_v18 = vadd.f32 %v7889_v19, %v7721_v59  ;;  %9319 = vmatpush.xpose.msk.msrb.mxu1 %vm6817_vm2, %v8182_v63 }
 0x4cd   :  { %v8068_v8 = vpop.f32.mrf.mxu3 }
 0x4d0   :  { %9320 = vmatpush.xpose.msk.msrb.mxu1 %vm6817_vm2, %v8181_v33  ;;  %v7722_v44 = vpop.f32.mrf.mxu1 }
 0x4d1   :  { %v7723_v10 = vadd.f32 %v13486_v32, %v7722_v44 }
 0x4d3   :  { %v7891_v43 = vpop.f32.mrf.mxu2 }
 0x4d4   :  { %v13586_v41 = vadd.f32 %v7891_v43, %v7723_v10  ;;  %9321 = vmatpush.xpose.msk.msrb.mxu1 %vm6817_vm2, %v8180_v35 }
 0x4d5   :  { %v8070_v45 = vpop.f32.mrf.mxu3 }
 0x4d8   :  { %9322 = vmatpush.xpose.msk.msrb.mxu1 %vm6817_vm2, %v8179_v57  ;;  %v7725_v62 = vpop.f32.mrf.mxu1 }
 0x4d9   :  { %v7726_v14 = vadd.f32 %v13486_v32, %v7725_v62 }
 0x4db   :  { %v7894_v24 = vpop.f32.mrf.mxu2 }
 0x4dc   :  { %v7895_v28 = vadd.f32 %v7894_v24, %v7726_v14 }
 0x4dd   :  { %v8073_v47 = vpop.f32.mrf.mxu3 }
 0x4e0   :  { %v7727_v54 = vpop.f32.mrf.mxu1 }
 0x4e1   :  { %v7728_v15 = vadd.f32 %v13486_v32, %v7727_v54 }
 0x4e3   :  { %v7896_v4 = vpop.f32.mrf.mxu2 }
 0x4e4   :  { %v7897_v1 = vadd.f32 %v7896_v4, %v7728_v15 }
 0x4e5   :  { %v8075_v61 = vpop.f32.mrf.mxu3 }
 0x4eb   :  { %v7899_v50 = vpop.f32.mrf.mxu2  ;;  %v7730_v31 = vpop.f32.mrf.mxu1 }
 0x4ec   :  { %v7731_v35 = vadd.f32 %v13486_v32, %v7730_v31  ;;  %v8064_v31 = vadd.f32 %v8063_v11, %v7895_v28  ;;  %v8364_v11 = vld [vmem:[%s13657_s5] sm:$0xf] }
 0x4ed   :  { %v8078_v5 = vpop.f32.mrf.mxu3  ;;  %9323 = vmatmul.msk.f32.vlgmr.msrb.gmra.mxu1 %vm6817_vm2, %v8364_v11 }
 0x4ee   :  { %v7900_v14 = vadd.f32 %v7899_v50, %v7731_v35  ;;  %v8061_v50 = vadd.f32 %v13584_v17, %v13586_v41  ;;  %v8056_v17 = vadd.f32 %v13559_v27, %v13566_v22  ;;  %v8054_v27 = vadd.f32 %v13540_v7, %v13553_v34 }
 0x4ef   :  { %v8046_v7 = vadd.f32 %v13494_v40, %v13515_v39 }
 0x4f0   :  { %v8069_v4 = vadd.f32 %v8068_v8, %v7900_v14  ;;  %v8059_v8 = vadd.f32 %v13572_v38, %v13577_v18  ;;  %v8365_v38 = vld [vmem:[%s13658_s6] sm:$0xf] }
 0x4f1   :  { %v8212_v18 = vld [vmem:[%s13658_s6] sm:$0xf]  ;;  %8368 = vperm.xlu1 %9495, %v8365_v38  }
 0x4f2   :  { %v8137_v28 = vmul.f32 0.2, %v8059_v8  ;;  %8215 = vperm.xlu0 %9494, %v8212_v18  }
 0x4f3   :  { %v7901_v6 = vpop.f32.mrf.mxu2  ;;  %v7732_v49 = vpop.f32.mrf.mxu1 }
 0x4f4   :  { %v7733_v20 = vadd.f32 %v13486_v32, %v7732_v49  ;;  %v8201_v22 = vmax.f32 %v8059_v8, %v8137_v28 }
 0x4f5   :  { %v8080_v46 = vpop.f32.mrf.mxu3 }
 0x4f6   :  { %v7902_v55 = vadd.f32 %v7901_v6, %v7733_v20 }
 0x4f8   :  { %v8071_v24 = vadd.f32 %v8070_v45, %v7902_v55 }
 0x4fb   :  { %v7904_v51 = vpop.f32.mrf.mxu2 }
 0x503   :  { %v7735_v37 = vpop.f32.mrf.mxu1  ;;  %v7906_v29 = vpop.f32.mrf.mxu2 }
 0x504   :  { %v7736_v16 = vadd.f32 %v13486_v32, %v7735_v37  ;;  %v8066_v37 = vadd.f32 %v8065_v25, %v7897_v1  ;;  %v8138_v25 = vmul.f32 0.2, %v8061_v50 }
 0x506   :  { %v7905_v33 = vadd.f32 %v7904_v51, %v7736_v16  ;;  %v8142_v51 = vmul.f32 0.2, %v8071_v24  ;;  %v8202_v41 = vmax.f32 %v8061_v50, %v8138_v25 }
 0x508   :  { %v8074_v43 = vadd.f32 %v8073_v47, %v7905_v33  ;;  %v8140_v47 = vmul.f32 0.2, %v8066_v37 }
 0x50a   :  { %v8143_v15 = vmul.f32 0.2, %v8074_v43  ;;  %v8204_v45 = vmax.f32 %v8066_v37, %v8140_v47 }
 0x50b   :  { %v7737_v2 = vpop.f32.mrf.mxu1 }
 0x50c   :  { %v7738_v30 = vadd.f32 %v13486_v32, %v7737_v2  ;;  %v8207_v49 = vmax.f32 %v8074_v43, %v8143_v15  ;;  %v8139_v2 = vmul.f32 0.2, %v8064_v31 }
 0x50e   :  { %v7907_v63 = vadd.f32 %v7906_v29, %v7738_v30  ;;  %v8206_v29 = vmax.f32 %v8071_v24, %v8142_v51  ;;  %v8203_v1 = vmax.f32 %v8064_v31, %v8139_v2 }
 0x510   :  { %v8076_v12 = vadd.f32 %v8075_v61, %v7907_v63  ;;  %v8211_v61 = vld [vmem:[%s13657_s5] sm:$0xf] }
 0x511   :  { %v7909_v60 = vpop.f32.mrf.mxu2  ;;  %9289 = vmatmul.msk.f32.vlgmr.msrb.gmra.mxu3 %vm6817_vm2, %v8211_v61  ;;  %9306 = vmatmul.msk.f32.vlgmr.msrb.gmra.mxu0 %vm6817_vm2, %v8211_v61 }
 0x512   :  { %v8144_v62 = vmul.f32 0.2, %v8076_v12 }
 0x513   :  { %v7740_v48 = vpop.f32.mrf.mxu1 }
 0x514   :  { %v7741_v56 = vadd.f32 %v13486_v32, %v7740_v48  ;;  %v8208_v54 = vmax.f32 %v8076_v12, %v8144_v62  ;;  %v8051_v48 = vadd.f32 %v13525_v58, %v13542_v3  ;;  %v8044_v58 = vadd.f32 %v13478_v13, %v13502_v21 }
 0x516   :  { %v7910_v9 = vadd.f32 %v7909_v60, %v7741_v56  ;;  %v8136_v60 = vmul.f32 0.2, %v8056_v17  ;;  %v8135_v56 = vmul.f32 0.2, %v8054_v27 }
 0x518   :  { %v8079_v52 = vadd.f32 %v8078_v5, %v7910_v9  ;;  %v8200_v5 = vmax.f32 %v8056_v17, %v8136_v60  ;;  %v8199_v30 = vmax.f32 %v8054_v27, %v8135_v56  ;;  %v8134_v9 = vmul.f32 0.2, %v8051_v48 }
 0x519   :  { %v7911_v26 = vpop.f32.mrf.mxu2 }
 0x51a   :  { %v8145_v10 = vmul.f32 0.2, %v8079_v52  ;;  %v8198_v34 = vmax.f32 %v8051_v48, %v8134_v9 }
 0x51b   :  { %v7742_v23 = vpop.f32.mrf.mxu1 }
 0x51c   :  { %v7743_v53 = vadd.f32 %v13486_v32, %v7742_v23  ;;  %v8209_v57 = vmax.f32 %v8079_v52, %v8145_v10  ;;  %v8141_v32 = vmul.f32 0.2, %v8069_v4  ;;  %v8049_v23 = vadd.f32 %v13509_v0, %v13530_v36 }
 0x51d   :  { %v8131_v0 = vmul.f32 0.2, %v8044_v58 }
 0x51e   :  { %v7912_v59 = vadd.f32 %v7911_v26, %v7743_v53  ;;  %v8205_v6 = vmax.f32 %v8069_v4, %v8141_v32  ;;  %v8133_v53 = vmul.f32 0.2, %v8049_v23  ;;  %v8132_v26 = vmul.f32 0.2, %v8046_v7 }
 0x51f   :  { %v8195_v36 = vmax.f32 %v8044_v58, %v8131_v0 }
 0x520   :  { %v8081_v19 = vadd.f32 %v8080_v46, %v7912_v59  ;;  %v8197_v3 = vmax.f32 %v8049_v23, %v8133_v53  ;;  %v8196_v59 = vmax.f32 %v8046_v7, %v8132_v26 }
 0x522   :  { %v8146_v42 = vmul.f32 0.2, %v8081_v19 }
 0x524   :  { %v8210_v44 = vmax.f32 %v8081_v19, %v8146_v42 }
 0x526   :  { %9324 = vmatpush.xpose.msk.msrb.mxu2 %vm6817_vm2, %v8210_v44 }
 0x52a   :  { %9325 = vmatpush.xpose.msk.msrb.mxu2 %vm6817_vm2, %v8209_v57 }
 0x52e   :  { %9326 = vmatpush.xpose.msk.msrb.mxu2 %vm6817_vm2, %v8208_v54 }
 0x532   :  { %9327 = vmatpush.xpose.msk.msrb.mxu2 %vm6817_vm2, %v8207_v49 }
 0x536   :  { %9328 = vmatpush.xpose.msk.msrb.mxu2 %vm6817_vm2, %v8206_v29 }
 0x53a   :  { %9329 = vmatpush.xpose.msk.msrb.mxu2 %vm6817_vm2, %v8205_v6 }
 0x53e   :  { %9330 = vmatpush.xpose.msk.msrb.mxu2 %vm6817_vm2, %v8204_v45 }
 0x542   :  { %9331 = vmatpush.xpose.msk.msrb.mxu2 %vm6817_vm2, %v8203_v1 }
 0x546   :  { %9332 = vmatpush.xpose.msk.msrb.mxu2 %vm6817_vm2, %v8202_v41 }
 0x54a   :  { %9333 = vmatpush.xpose.msk.msrb.mxu2 %vm6817_vm2, %v8201_v22 }
 0x54e   :  { %9334 = vmatpush.xpose.msk.msrb.mxu2 %vm6817_vm2, %v8200_v5 }
 0x552   :  { %9335 = vmatpush.xpose.msk.msrb.mxu2 %vm6817_vm2, %v8199_v30 }
 0x556   :  { %9336 = vmatpush.xpose.msk.msrb.mxu2 %vm6817_vm2, %v8198_v34 }
 0x55a   :  { %9337 = vmatpush.xpose.msk.msrb.mxu2 %vm6817_vm2, %v8197_v3 }
 0x55e   :  { %9338 = vmatpush.xpose.msk.msrb.mxu2 %vm6817_vm2, %v8196_v59 }
 0x562   :  { %9339 = vmatpush.xpose.msk.msrb.mxu2 %vm6817_vm2, %v8195_v36 }
 0x563   :  { %v8369_v52 = vpop.permute.xlu1 %8368 }
 0x564   :  { %v8216_v39 = vpop.permute.xlu0 %8215 }
 0x565   :  { %9340 = vmatmul.msk.f32.vlgmr.msrb.gmra.mxu2 %vm6817_vm2, %v8364_v11 }
 0x56a   :  { %v8487_v42 = vpop.f32.mrf.mxu1 }
 0x56b   :  { %v8488_v12 = vadd.f32 %v8487_v42, %v8369_v52 }
 0x58e   :  { %v8354_v40 = vpop.f32.mrf.mxu0 }
 0x58f   :  { %v8355_v16 = vadd.f32 %v8354_v40, %v8216_v39 }
 0x591   :  { %v8359_v13 = vrot.slane %v8355_v16, 4 }
 0x594   :  { %v8334_v46 = vpop.f32.mrf.mxu3 }
 0x595   :  { %v8335_v63 = vadd.f32 %v8334_v46, %v8216_v39 }
 0x597   :  { %v8361_v21 = vsel %vm8360_vm1, %v8335_v63, %v8359_v13 }
 0x598   :  { %8363 = vst [vmem:[%s13659_s7] sm:$0xff] %v8361_v21 }
 0x5e8   :  { %v8507_v19 = vpop.f32.mrf.mxu2 }
 0x5e9   :  { %v8508_v20 = vadd.f32 %v8507_v19, %v8369_v52 }
 0x5eb   :  { %v8512_v33 = vrot.slane %v8508_v20, 4 }
 0x5ed   :  { %v8513_v44 = vsel %vm8360_vm1, %v8488_v12, %v8512_v33 }
 0x5ee   :  { %9341 = vst [vmem:[%s13659_s7 + $0x8] sm:$0xff] %v8513_v44 }

</bundles_post_ra>
